<compile_context>
chip_gen: v5e
topology: v5e:2x2
jax: 0.10.0
libtpu: 0.0.40
codegen_flags: <defaults>
</compile_context>

<pallas_src>
import functools
import math

import jax
import jax.numpy as jnp
from jax.experimental import pallas as pl
from jax.experimental.pallas import tpu as pltpu


def _round_up(x, m):
    return (x + m - 1) // m * m


# ============================================================================
# Kernel 1: fused matmul    out = act(A @ B + c [+ residual * scale])
#   A, B, residual: bf16    c, scale: f32    accumulation: f32 (MXU)
# ============================================================================
def _matmul_kernel(a_ref, b_ref, c_ref, o_ref, *, act):
    acc = jnp.dot(a_ref[...], b_ref[...], preferred_element_type=jnp.float32)
    acc = acc + c_ref[...]
    if act == "relu":
        acc = jnp.maximum(acc, 0.0)
    o_ref[...] = acc.astype(o_ref.dtype)


def _matmul_res_kernel(a_ref, b_ref, c_ref, s_ref, r_ref, o_ref, *, act):
    acc = jnp.dot(a_ref[...], b_ref[...], preferred_element_type=jnp.float32)
    acc = acc + c_ref[...] + r_ref[...].astype(jnp.float32) * s_ref[...]
    if act == "relu":
        acc = jnp.maximum(acc, 0.0)
    o_ref[...] = acc.astype(o_ref.dtype)


def matmul_fused(A, B, bias=None, scale=None, shift=None, residual=None,
                 act="none", out_dtype=jnp.bfloat16):
    """act((A @ B + bias + residual) * scale + shift) with the affine folded:
         = act(A @ (B*scale) + (bias*scale + shift) + residual*scale)."""
    M, K = A.shape
    K2, N = B.shape
    assert K == K2

    bias_v = jnp.zeros((N,), jnp.float32) if bias is None else bias.astype(jnp.float32)
    if scale is None and shift is None:
        scale_v = jnp.ones((N,), jnp.float32)
        c = bias_v
        Bm = B.astype(jnp.bfloat16)
    else:
        scale_v = (jnp.ones((N,), jnp.float32) if scale is None
                   else scale.astype(jnp.float32))
        shift_v = (jnp.zeros((N,), jnp.float32) if shift is None
                   else shift.astype(jnp.float32))
        c = bias_v * scale_v + shift_v
        Bm = (B.astype(jnp.float32) * scale_v[None, :]).astype(jnp.bfloat16)
    c = c.reshape(1, N)
    A = A.astype(jnp.bfloat16)
    has_res = residual is not None

    # Pick the largest M tile that fits a conservative VMEM budget (v7x: 64MiB
    # physical; stay well inside so double buffering survives on every chip).
    def footprint(tm):
        fixed = 2 * (K * N * 2 + 2 * N * 4)           # weights + constants (x2 buf)
        per_m = 2 * (tm * K * 2 + tm * N * 2)         # A tile + out tile (x2 buf)
        if has_res:
            per_m += 2 * tm * N * 2                   # residual tile (x2 buf)
        return fixed + per_m + tm * N * 4             # live f32 accumulator

    TM = min(512, _round_up(M, 8))
    while TM > 128 and footprint(TM) > (48 << 20):
        TM = max(128, _round_up(TM // 2, 8))
    grid_m = pl.cdiv(M, TM)
    vmem_limit = int(min(max(footprint(TM) + (8 << 20), 32 << 20), 96 << 20))

    cparams = pltpu.CompilerParams(
        dimension_semantics=("parallel",),   # independent output tiles -> both TCs on v7x
        vmem_limit_bytes=vmem_limit)

    if not has_res:
        return pl.pallas_call(
            functools.partial(_matmul_kernel, act=act),
            out_shape=jax.ShapeDtypeStruct((M, N), out_dtype),
            grid_spec=pltpu.PrefetchScalarGridSpec(
                num_scalar_prefetch=0,
                grid=(grid_m,),
                in_specs=[
                    pl.BlockSpec((TM, K), lambda i: (i, 0)),   # A tile
                    pl.BlockSpec((K, N), lambda i: (0, 0)),    # folded weights
                    pl.BlockSpec((1, N), lambda i: (0, 0)),    # folded constant
                ],
                out_specs=pl.BlockSpec((TM, N), lambda i: (i, 0)),
            ),
            compiler_params=cparams,
        )(A, Bm, c)

    R = residual.reshape(M, N).astype(jnp.bfloat16)
    s = scale_v.reshape(1, N)
    return pl.pallas_call(
        functools.partial(_matmul_res_kernel, act=act),
        out_shape=jax.ShapeDtypeStruct((M, N), out_dtype),
        grid_spec=pltpu.PrefetchScalarGridSpec(
            num_scalar_prefetch=0,
            grid=(grid_m,),
            in_specs=[
                pl.BlockSpec((TM, K), lambda i: (i, 0)),       # A tile
                pl.BlockSpec((K, N), lambda i: (0, 0)),        # folded weights
                pl.BlockSpec((1, N), lambda i: (0, 0)),        # folded constant
                pl.BlockSpec((1, N), lambda i: (0, 0)),        # bn scale (for residual)
                pl.BlockSpec((TM, N), lambda i: (i, 0)),       # residual tile
            ],
            out_specs=pl.BlockSpec((TM, N), lambda i: (i, 0)),
        ),
        compiler_params=cparams,
    )(A, Bm, c, s, R)


# ============================================================================
# Kernel 2: tap-streaming k x k, stride-1, 'same' conv
#   The padded activation is flattened row-major; every tap (di,dj) is then a
#   static contiguous slice at offset di*Wp+dj, so the input is read once.
# ============================================================================
def _conv_tap_kernel(x_ref, w_ref, c_ref, o_ref, *, offsets, cin, m_out):
    cout = o_ref.shape[-1]
    acc = jnp.zeros((m_out, cout), jnp.float32)
    for t, off in enumerate(offsets):                      # static, unrolled
        a = x_ref[0, off:off + m_out, :]                   # (m_out, Cin) bf16
        wt = w_ref[t * cin:(t + 1) * cin, :]               # (Cin, Cout) bf16
        acc = acc + jnp.dot(a, wt, preferred_element_type=jnp.float32)
    acc = acc + c_ref[...]
    o_ref[0, :, :] = acc.astype(o_ref.dtype)


def conv_same_s1(x, w, b, out_dtype=jnp.bfloat16):
    """k x k, stride 1, padding k//2 conv.  x: NHWC, w: (Cout,Cin,k,k) torch."""
    N, H, W, Cin = x.shape
    Cout, Cin2, kh, kw = w.shape
    assert Cin == Cin2 and kh == kw and kh % 2 == 1
    p = kh // 2
    Hp, Wp = H + 2 * p, W + 2 * p
    m_out = H * Wp                               # 2*p garbage columns per row, sliced off below
    max_off = (kh - 1) * Wp + (kw - 1)
    a_rows = _round_up(m_out + max_off, 8)

    xp = jnp.pad(x.astype(jnp.bfloat16), ((0, 0), (p, p), (p, p), (0, 0)))
    xf = xp.reshape(N, Hp * Wp, Cin)
    xf = jnp.pad(xf, ((0, 0), (0, a_rows - Hp * Wp), (0, 0)))

    wm = jnp.transpose(w, (2, 3, 1, 0)).reshape(kh * kw * Cin, Cout).astype(jnp.bfloat16)
    c = (jnp.zeros((Cout,), jnp.float32) if b is None
         else b.astype(jnp.float32)).reshape(1, Cout)
    offsets = tuple(di * Wp + dj for di in range(kh) for dj in range(kw))

    vmem = (2 * (a_rows * Cin * 2 + kh * kw * Cin * Cout * 2 + Cout * 4
                 + m_out * Cout * 2) + m_out * Cout * 4)
    vmem_limit = int(min(max(vmem + (8 << 20), 32 << 20), 96 << 20))

    out_flat = pl.pallas_call(
        functools.partial(_conv_tap_kernel, offsets=offsets, cin=Cin, m_out=m_out),
        out_shape=jax.ShapeDtypeStruct((N, m_out, Cout), out_dtype),
        grid_spec=pltpu.PrefetchScalarGridSpec(
            num_scalar_prefetch=0,
            grid=(N,),
            in_specs=[
                pl.BlockSpec((1, a_rows, Cin), lambda n: (n, 0, 0)),        # flat image
                pl.BlockSpec((kh * kw * Cin, Cout), lambda n: (0, 0)),      # tap weights
                pl.BlockSpec((1, Cout), lambda n: (0, 0)),                  # bias
            ],
            out_specs=pl.BlockSpec((1, m_out, Cout), lambda n: (n, 0, 0)),
        ),
        compiler_params=pltpu.CompilerParams(
            dimension_semantics=("parallel",),
            vmem_limit_bytes=vmem_limit),
    )(xf, wm, c)

    return out_flat.reshape(N, H, Wp, Cout)[:, :, :W, :]


# ============================================================================
# Conv wrappers built on the kernels
# ============================================================================
def conv1x1(x, w, b, stride=1, scale=None, shift=None, residual=None,
            act="none", out_dtype=jnp.bfloat16):
    """1x1 conv == channel matmul; stride handled by spatial subsampling."""
    Cout, Cin = w.shape[0], w.shape[1]
    if stride > 1:
        x = x[:, ::stride, ::stride, :]
    N, H, W, _ = x.shape
    A = x.reshape(N * H * W, Cin)
    Bm = jnp.transpose(w.reshape(Cout, Cin), (1, 0))
    out = matmul_fused(A, Bm, bias=b, scale=scale, shift=shift,
                       residual=residual, act=act, out_dtype=out_dtype)
    return out.reshape(N, H, W, Cout)


def conv_same_strided_im2col(x, w, b, stride, out_dtype=jnp.bfloat16):
    """k x k, stride s, padding k//2 conv via im2col + fused matmul kernel.
    # TODO(synk): space-to-depth (subpixel) decomposition would stream taps
    # from the original activation and avoid the k*k A-read inflation here too.
    """
    N, H, W, Cin = x.shape
    Cout, _, kh, kw = w.shape
    p = kh // 2
    Ho = (H + 2 * p - kh) // stride + 1
    Wo = (W + 2 * p - kw) // stride + 1
    xp = jnp.pad(x.astype(jnp.bfloat16), ((0, 0), (p, p), (p, p), (0, 0)))
    cols = []
    for di in range(kh):
        for dj in range(kw):
            cols.append(xp[:, di:di + (Ho - 1) * stride + 1:stride,
                              dj:dj + (Wo - 1) * stride + 1:stride, :])
    patches = jnp.concatenate(cols, axis=-1)            # (N, Ho, Wo, kh*kw*Cin)
    A = patches.reshape(N * Ho * Wo, kh * kw * Cin)
    Bm = jnp.transpose(w, (2, 3, 1, 0)).reshape(kh * kw * Cin, Cout)
    out = matmul_fused(A, Bm, bias=b, act="none", out_dtype=out_dtype)
    return out.reshape(N, Ho, Wo, Cout)


# ============================================================================
# ResBlock forward (Pallas) — matches the PyTorch module exactly.
# ============================================================================
def res_block(x, p, stride, planes):
    # PyTorch quirk reproduced: `_, _, _, x_planes = x.size()` on NCHW reads
    # the WIDTH, so the shortcut-conv condition compares width vs out_planes.
    width = x.shape[2]                   # NHWC width == NCHW dim 3
    if stride != 1 or width != planes:
        shortcut = conv1x1(x, p["sc"]["w"], p["sc"]["b"], stride)
    else:
        shortcut = x
    h = conv1x1(x, p["c1"]["w"], p["c1"]["b"], 1)
    if stride == 1:
        h = conv_same_s1(h, p["c2"]["w"], p["c2"]["b"])
    else:
        h = conv_same_strided_im2col(h, p["c2"]["w"], p["c2"]["b"], stride)
    # conv3 + residual add (BEFORE BN, as in the reference) + BN(eval) + ReLU,
    # all fused into one kernel invocation.
    h = conv1x1(h, p["c3"]["w"], p["c3"]["b"], 1,
                scale=p["bn"]["scale"], shift=p["bn"]["shift"],
                residual=shortcut, act="relu")
    return h


# ============================================================================
# Synthetic parameters + pure-JAX reference
# ============================================================================
def _conv_params(key, cout, cin, k):
    kw_key, kb_key = jax.random.split(key)
    fan_in = cin * k * k
    w = jax.random.normal(kw_key, (cout, cin, k, k), jnp.float32) / math.sqrt(fan_in)
    b = jax.random.normal(kb_key, (cout,), jnp.float32) * 0.05
    return {"w": w, "b": b}


def _bn_params(key, planes, eps=1e-5):
    # eval-mode BatchNorm2d folded to per-channel scale/shift (non-trivial
    # stats so the folded epilogue and residual-before-BN order are exercised).
    kg, kb, km, kv = jax.random.split(key, 4)
    gamma = 1.0 + 0.1 * jax.random.normal(kg, (planes,), jnp.float32)
    beta = 0.1 * jax.random.normal(kb, (planes,), jnp.float32)
    mean = 0.1 * jax.random.normal(km, (planes,), jnp.float32)
    var = jnp.abs(1.0 + 0.1 * jax.random.normal(kv, (planes,), jnp.float32))
    scale = gamma / jnp.sqrt(var + eps)
    shift = beta - mean * scale
    return {"scale": scale, "shift": shift}


def resblock_params(key, inplanes, planes, kernel_size=3):
    ks = jax.random.split(key, 5)
    return {
        "sc": _conv_params(ks[0], planes, inplanes, 1),
        "c1": _conv_params(ks[1], planes // 2, inplanes, 1),
        "c2": _conv_params(ks[2], planes // 2, planes // 2, kernel_size),
        "c3": _conv_params(ks[3], planes, planes // 2, 1),
        "bn": _bn_params(ks[4], planes),
    }


def _conv_ref(x, w, b, stride, pad):
    out = jax.lax.conv_general_dilated(
        x, jnp.transpose(w, (2, 3, 1, 0)),
        window_strides=(stride, stride),
        padding=((pad, pad), (pad, pad)),
        dimension_numbers=("NHWC", "HWIO", "NHWC"))
    return out + b.reshape(1, 1, 1, -1)


def res_block_ref(x, p, stride, planes):
    width = x.shape[2]
    if stride != 1 or width != planes:
        shortcut = _conv_ref(x, p["sc"]["w"], p["sc"]["b"], stride, 0)
    else:
        shortcut = x
    h = _conv_ref(x, p["c1"]["w"], p["c1"]["b"], 1, 0)
    h = _conv_ref(h, p["c2"]["w"], p["c2"]["b"], stride, 1)
    h = _conv_ref(h, p["c3"]["w"], p["c3"]["b"], 1, 0)
    h = h + shortcut
    h = (h * p["bn"]["scale"].reshape(1, 1, 1, -1)
         + p["bn"]["shift"].reshape(1, 1, 1, -1))
    return jnp.maximum(h, 0.0)


# ============================================================================
if __name__ == "__main__":
    key = jax.random.PRNGKey(0)
    kp1, kp2, kx = jax.random.split(key, 3)

    inplanes, planes, Hs = 32, 64, 16
    params1 = resblock_params(kp1, inplanes, planes)     # stride 1 (tap kernel path)
    params2 = resblock_params(kp2, planes, planes)       # stride 2 (strided path)

    x_nchw = jax.random.normal(kx, (2, inplanes, Hs, Hs), jnp.float32)

    @jax.jit
    def forward(xn):
        x = jnp.transpose(xn, (0, 2, 3, 1)).astype(jnp.bfloat16)   # -> NHWC bf16
        h = res_block(x, params1, stride=1, planes=planes)
        h = res_block(h, params2, stride=2, planes=planes)
        return jnp.transpose(h, (0, 3, 1, 2)).astype(jnp.float32)  # -> NCHW f32

    @jax.jit
    def forward_ref(xn):
        x = jnp.transpose(xn, (0, 2, 3, 1))
        h = res_block_ref(x, params1, 1, planes)
        h = res_block_ref(h, params2, 2, planes)
        return jnp.transpose(h, (0, 3, 1, 2))

    out = jax.block_until_ready(forward(x_nchw))
    ref = jax.block_until_ready(forward_ref(x_nchw))

    assert out.shape == (2, planes, Hs // 2, Hs // 2), out.shape
    assert bool(jnp.all(jnp.isfinite(out)))
    assert bool(jnp.all(out >= 0.0))                     # ReLU output
    rel_l2 = float(jnp.linalg.norm(out - ref) / (jnp.linalg.norm(ref) + 1e-6))
    assert rel_l2 < 6e-2, rel_l2                         # bf16 operands / f32 accumulate
    print("KERNEL_OK")
</pallas_src>

<mosaic_0001>
module attributes {stable_mosaic.version = 11 : i64} {
  func.func @_matmul_kernel(%arg0: i32, %arg1: memref<512x32xbf16, #tpu.memory_space<vmem>>, %arg2: memref<32x64xbf16, #tpu.memory_space<vmem>>, %arg3: memref<1x64xf32, #tpu.memory_space<vmem>>, %arg4: memref<512x64xbf16, #tpu.memory_space<vmem>>) attributes {dimension_semantics = [#tpu.dimension_semantics<parallel>], iteration_bounds = array<i64: 1>, scalar_prefetch = 0 : i64, scratch_operands = 0 : i64, tpu.core_type = #tpu.core_type<tc>, window_params = [{transform_indices = @transform_0, window_bounds = array<i64: 512, 32>}, {pipeline_mode = #tpu.pipeline_mode<synchronous>, transform_indices = @transform_1, window_bounds = array<i64: 32, 64>}, {pipeline_mode = #tpu.pipeline_mode<synchronous>, transform_indices = @transform_2, window_bounds = array<i64: 1, 64>}, {transform_indices = @transform_3, window_bounds = array<i64: 512, 64>}]} {
    %c0 = arith.constant 0 : index
    %c0_0 = arith.constant 0 : index
    %0 = vector.load %arg1[%c0, %c0_0] : memref<512x32xbf16, #tpu.memory_space<vmem>>, vector<512x32xbf16>
    %c0_1 = arith.constant 0 : index
    %c0_2 = arith.constant 0 : index
    %1 = vector.load %arg2[%c0_1, %c0_2] : memref<32x64xbf16, #tpu.memory_space<vmem>>, vector<32x64xbf16>
    %cst = arith.constant dense<0.000000e+00> : vector<512x64xf32>
    %2 = tpu.matmul %0, %1, %cst {dimension_numbers = #tpu.dot_dimension_numbers<[1], [0], [0], [1], [0, 0, 1, 1], [], []>} : vector<512x32xbf16>, vector<32x64xbf16>, vector<512x64xf32> -> vector<512x64xf32>
    %c0_3 = arith.constant 0 : index
    %c0_4 = arith.constant 0 : index
    %3 = vector.load %arg3[%c0_3, %c0_4] : memref<1x64xf32, #tpu.memory_space<vmem>>, vector<1x64xf32>
    %4 = vector.broadcast %3 : vector<1x64xf32> to vector<512x64xf32>
    %5 = arith.addf %2, %4 : vector<512x64xf32>
    %6 = arith.truncf %5 : vector<512x64xf32> to vector<512x64xbf16>
    %c0_5 = arith.constant 0 : index
    %c0_6 = arith.constant 0 : index
    %7 = vector.load %arg4[%c0_5, %c0_6] : memref<512x64xbf16, #tpu.memory_space<vmem>>, vector<512x64xbf16>
    tpu.vector_store %arg4[%c0_5, %c0_6], %6 {strides = array<i32>} : memref<512x64xbf16, #tpu.memory_space<vmem>>, vector<512x64xbf16>,
    return
  }
  func.func @transform_0(%arg0: i32) -> (i32, i32) {
    %c0_i32 = arith.constant 0 : i32
    %c0_i32_0 = arith.constant 0 : i32
    return %arg0, %c0_i32 : i32, i32
  }
  func.func @transform_1(%arg0: i32) -> (i32, i32) {
    %c0_i32 = arith.constant 0 : i32
    %c0_i32_0 = arith.constant 0 : i32
    %c0_i32_1 = arith.constant 0 : i32
    return %c0_i32, %c0_i32_0 : i32, i32
  }
  func.func @transform_2(%arg0: i32) -> (i32, i32) {
    %c0_i32 = arith.constant 0 : i32
    %c0_i32_0 = arith.constant 0 : i32
    %c0_i32_1 = arith.constant 0 : i32
    return %c0_i32, %c0_i32_0 : i32, i32
  }
  func.func @transform_3(%arg0: i32) -> (i32, i32) {
    %c0_i32 = arith.constant 0 : i32
    %c0_i32_0 = arith.constant 0 : i32
    return %arg0, %c0_i32 : i32, i32
  }
}

module attributes {stable_mosaic.version = 11 : i64} {
  func.func @_matmul_kernel(%arg0: i32, %arg1: memref<512x32xbf16, #tpu.memory_space<vmem>>, %arg2: memref<32x32xbf16, #tpu.memory_space<vmem>>, %arg3: memref<1x32xf32, #tpu.memory_space<vmem>>, %arg4: memref<512x32xbf16, #tpu.memory_space<vmem>>) attributes {dimension_semantics = [#tpu.dimension_semantics<parallel>], iteration_bounds = array<i64: 1>, scalar_prefetch = 0 : i64, scratch_operands = 0 : i64, tpu.core_type = #tpu.core_type<tc>, window_params = [{transform_indices = @transform_0, window_bounds = array<i64: 512, 32>}, {pipeline_mode = #tpu.pipeline_mode<synchronous>, transform_indices = @transform_1, window_bounds = array<i64: 32, 32>}, {pipeline_mode = #tpu.pipeline_mode<synchronous>, transform_indices = @transform_2, window_bounds = array<i64: 1, 32>}, {transform_indices = @transform_3, window_bounds = array<i64: 512, 32>}]} {
    %c0 = arith.constant 0 : index
    %c0_0 = arith.constant 0 : index
    %0 = vector.load %arg1[%c0, %c0_0] : memref<512x32xbf16, #tpu.memory_space<vmem>>, vector<512x32xbf16>
    %c0_1 = arith.constant 0 : index
    %c0_2 = arith.constant 0 : index
    %1 = vector.load %arg2[%c0_1, %c0_2] : memref<32x32xbf16, #tpu.memory_space<vmem>>, vector<32x32xbf16>
    %cst = arith.constant dense<0.000000e+00> : vector<512x32xf32>
    %2 = tpu.matmul %0, %1, %cst {dimension_numbers = #tpu.dot_dimension_numbers<[1], [0], [0], [1], [0, 0, 1, 1], [], []>} : vector<512x32xbf16>, vector<32x32xbf16>, vector<512x32xf32> -> vector<512x32xf32>
    %c0_3 = arith.constant 0 : index
    %c0_4 = arith.constant 0 : index
    %3 = vector.load %arg3[%c0_3, %c0_4] : memref<1x32xf32, #tpu.memory_space<vmem>>, vector<1x32xf32>
    %4 = vector.broadcast %3 : vector<1x32xf32> to vector<512x32xf32>
    %5 = arith.addf %2, %4 : vector<512x32xf32>
    %6 = arith.truncf %5 : vector<512x32xf32> to vector<512x32xbf16>
    %c0_5 = arith.constant 0 : index
    %c0_6 = arith.constant 0 : index
    %7 = vector.load %arg4[%c0_5, %c0_6] : memref<512x32xbf16, #tpu.memory_space<vmem>>, vector<512x32xbf16>
    tpu.vector_store %arg4[%c0_5, %c0_6], %6 {strides = array<i32>} : memref<512x32xbf16, #tpu.memory_space<vmem>>, vector<512x32xbf16>,
    return
  }
  func.func @transform_0(%arg0: i32) -> (i32, i32) {
    %c0_i32 = arith.constant 0 : i32
    %c0_i32_0 = arith.constant 0 : i32
    return %arg0, %c0_i32 : i32, i32
  }
  func.func @transform_1(%arg0: i32) -> (i32, i32) {
    %c0_i32 = arith.constant 0 : i32
    %c0_i32_0 = arith.constant 0 : i32
    %c0_i32_1 = arith.constant 0 : i32
    return %c0_i32, %c0_i32_0 : i32, i32
  }
  func.func @transform_2(%arg0: i32) -> (i32, i32) {
    %c0_i32 = arith.constant 0 : i32
    %c0_i32_0 = arith.constant 0 : i32
    %c0_i32_1 = arith.constant 0 : i32
    return %c0_i32, %c0_i32_0 : i32, i32
  }
  func.func @transform_3(%arg0: i32) -> (i32, i32) {
    %c0_i32 = arith.constant 0 : i32
    %c0_i32_0 = arith.constant 0 : i32
    return %arg0, %c0_i32 : i32, i32
  }
}

module attributes {stable_mosaic.version = 11 : i64} {
  func.func @_conv_tap_kernel(%arg0: i32, %arg1: memref<1x328x32xbf16, #tpu.memory_space<vmem>>, %arg2: memref<288x32xbf16, #tpu.memory_space<vmem>>, %arg3: memref<1x32xf32, #tpu.memory_space<vmem>>, %arg4: memref<1x288x32xbf16, #tpu.memory_space<vmem>>) attributes {dimension_semantics = [#tpu.dimension_semantics<parallel>], iteration_bounds = array<i64: 2>, scalar_prefetch = 0 : i64, scratch_operands = 0 : i64, tpu.core_type = #tpu.core_type<tc>, window_params = [{transform_indices = @transform_0, window_bounds = array<i64: 1, 328, 32>}, {pipeline_mode = #tpu.pipeline_mode<synchronous>, transform_indices = @transform_1, window_bounds = array<i64: 288, 32>}, {pipeline_mode = #tpu.pipeline_mode<synchronous>, transform_indices = @transform_2, window_bounds = array<i64: 1, 32>}, {transform_indices = @transform_3, window_bounds = array<i64: 1, 288, 32>}]} {
    %cst = arith.constant 0.000000e+00 : f32
    %0 = vector.broadcast %cst : f32 to vector<288x32xf32>
    %c0 = arith.constant 0 : index
    %c0_0 = arith.constant 0 : index
    %c0_1 = arith.constant 0 : index
    %1 = vector.load %arg1[%c0, %c0_0, %c0_1] : memref<1x328x32xbf16, #tpu.memory_space<vmem>>, vector<1x288x32xbf16>
    %2 = vector.shape_cast %1 : vector<1x288x32xbf16> to vector<288x32xbf16>
    %c0_2 = arith.constant 0 : index
    %c0_3 = arith.constant 0 : index
    %3 = vector.load %arg2[%c0_2, %c0_3] : memref<288x32xbf16, #tpu.memory_space<vmem>>, vector<32x32xbf16>
    %cst_4 = arith.constant dense<0.000000e+00> : vector<288x32xf32>
    %4 = tpu.matmul %2, %3, %cst_4 {dimension_numbers = #tpu.dot_dimension_numbers<[1], [0], [0], [1], [0, 0, 1, 1], [], []>} : vector<288x32xbf16>, vector<32x32xbf16>, vector<288x32xf32> -> vector<288x32xf32>
    %5 = arith.addf %0, %4 : vector<288x32xf32>
    %c0_5 = arith.constant 0 : index
    %c1 = arith.constant 1 : index
    %c0_6 = arith.constant 0 : index
    %6 = vector.load %arg1[%c0_5, %c1, %c0_6] : memref<1x328x32xbf16, #tpu.memory_space<vmem>>, vector<1x288x32xbf16>
    %7 = vector.shape_cast %6 : vector<1x288x32xbf16> to vector<288x32xbf16>
    %c32 = arith.constant 32 : index
    %c0_7 = arith.constant 0 : index
    %8 = vector.load %arg2[%c32, %c0_7] : memref<288x32xbf16, #tpu.memory_space<vmem>>, vector<32x32xbf16>
    %cst_8 = arith.constant dense<0.000000e+00> : vector<288x32xf32>
    %9 = tpu.matmul %7, %8, %cst_8 {dimension_numbers = #tpu.dot_dimension_numbers<[1], [0], [0], [1], [0, 0, 1, 1], [], []>} : vector<288x32xbf16>, vector<32x32xbf16>, vector<288x32xf32> -> vector<288x32xf32>
    %10 = arith.addf %5, %9 : vector<288x32xf32>
    %c0_9 = arith.constant 0 : index
    %c2 = arith.constant 2 : index
    %c0_10 = arith.constant 0 : index
    %11 = vector.load %arg1[%c0_9, %c2, %c0_10] : memref<1x328x32xbf16, #tpu.memory_space<vmem>>, vector<1x288x32xbf16>
    %12 = vector.shape_cast %11 : vector<1x288x32xbf16> to vector<288x32xbf16>
    %c64 = arith.constant 64 : index
    %c0_11 = arith.constant 0 : index
    %13 = vector.load %arg2[%c64, %c0_11] : memref<288x32xbf16, #tpu.memory_space<vmem>>, vector<32x32xbf16>
    %cst_12 = arith.constant dense<0.000000e+00> : vector<288x32xf32>
    %14 = tpu.matmul %12, %13, %cst_12 {dimension_numbers = #tpu.dot_dimension_numbers<[1], [0], [0], [1], [0, 0, 1, 1], [], []>} : vector<288x32xbf16>, vector<32x32xbf16>, vector<288x32xf32> -> vector<288x32xf32>
    %15 = arith.addf %10, %14 : vector<288x32xf32>
    %c0_13 = arith.constant 0 : index
    %c18 = arith.constant 18 : index
    %c0_14 = arith.constant 0 : index
    %16 = vector.load %arg1[%c0_13, %c18, %c0_14] : memref<1x328x32xbf16, #tpu.memory_space<vmem>>, vector<1x288x32xbf16>
    %17 = vector.shape_cast %16 : vector<1x288x32xbf16> to vector<288x32xbf16>
    %c96 = arith.constant 96 : index
    %c0_15 = arith.constant 0 : index
    %18 = vector.load %arg2[%c96, %c0_15] : memref<288x32xbf16, #tpu.memory_space<vmem>>, vector<32x32xbf16>
    %cst_16 = arith.constant dense<0.000000e+00> : vector<288x32xf32>
    %19 = tpu.matmul %17, %18, %cst_16 {dimension_numbers = #tpu.dot_dimension_numbers<[1], [0], [0], [1], [0, 0, 1, 1], [], []>} : vector<288x32xbf16>, vector<32x32xbf16>, vector<288x32xf32> -> vector<288x32xf32>
    %20 = arith.addf %15, %19 : vector<288x32xf32>
    %c0_17 = arith.constant 0 : index
    %c19 = arith.constant 19 : index
    %c0_18 = arith.constant 0 : index
    %21 = vector.load %arg1[%c0_17, %c19, %c0_18] : memref<1x328x32xbf16, #tpu.memory_space<vmem>>, vector<1x288x32xbf16>
    %22 = vector.shape_cast %21 : vector<1x288x32xbf16> to vector<288x32xbf16>
    %c128 = arith.constant 128 : index
    %c0_19 = arith.constant 0 : index
    %23 = vector.load %arg2[%c128, %c0_19] : memref<288x32xbf16, #tpu.memory_space<vmem>>, vector<32x32xbf16>
    %cst_20 = arith.constant dense<0.000000e+00> : vector<288x32xf32>
    %24 = tpu.matmul %22, %23, %cst_20 {dimension_numbers = #tpu.dot_dimension_numbers<[1], [0], [0], [1], [0, 0, 1, 1], [], []>} : vector<288x32xbf16>, vector<32x32xbf16>, vector<288x32xf32> -> vector<288x32xf32>
    %25 = arith.addf %20, %24 : vector<288x32xf32>
    %c0_21 = arith.constant 0 : index
    %c20 = arith.constant 20 : index
    %c0_22 = arith.constant 0 : index
    %26 = vector.load %arg1[%c0_21, %c20, %c0_22] : memref<1x328x32xbf16, #tpu.memory_space<vmem>>, vector<1x288x32xbf16>
    %27 = vector.shape_cast %26 : vector<1x288x32xbf16> to vector<288x32xbf16>
    %c160 = arith.constant 160 : index
    %c0_23 = arith.constant 0 : index
    %28 = vector.load %arg2[%c160, %c0_23] : memref<288x32xbf16, #tpu.memory_space<vmem>>, vector<32x32xbf16>
    %cst_24 = arith.constant dense<0.000000e+00> : vector<288x32xf32>
    %29 = tpu.matmul %27, %28, %cst_24 {dimension_numbers = #tpu.dot_dimension_numbers<[1], [0], [0], [1], [0, 0, 1, 1], [], []>} : vector<288x32xbf16>, vector<32x32xbf16>, vector<288x32xf32> -> vector<288x32xf32>
    %30 = arith.addf %25, %29 : vector<288x32xf32>
    %c0_25 = arith.constant 0 : index
    %c36 = arith.constant 36 : index
    %c0_26 = arith.constant 0 : index
    %31 = vector.load %arg1[%c0_25, %c36, %c0_26] : memref<1x328x32xbf16, #tpu.memory_space<vmem>>, vector<1x288x32xbf16>
    %32 = vector.shape_cast %31 : vector<1x288x32xbf16> to vector<288x32xbf16>
    %c192 = arith.constant 192 : index
    %c0_27 = arith.constant 0 : index
    %33 = vector.load %arg2[%c192, %c0_27] : memref<288x32xbf16, #tpu.memory_space<vmem>>, vector<32x32xbf16>
    %cst_28 = arith.constant dense<0.000000e+00> : vector<288x32xf32>
    %34 = tpu.matmul %32, %33, %cst_28 {dimension_numbers = #tpu.dot_dimension_numbers<[1], [0], [0], [1], [0, 0, 1, 1], [], []>} : vector<288x32xbf16>, vector<32x32xbf16>, vector<288x32xf32> -> vector<288x32xf32>
    %35 = arith.addf %30, %34 : vector<288x32xf32>
    %c0_29 = arith.constant 0 : index
    %c37 = arith.constant 37 : index
    %c0_30 = arith.constant 0 : index
    %36 = vector.load %arg1[%c0_29, %c37, %c0_30] : memref<1x328x32xbf16, #tpu.memory_space<vmem>>, vector<1x288x32xbf16>
    %37 = vector.shape_cast %36 : vector<1x288x32xbf16> to vector<288x32xbf16>
    %c224 = arith.constant 224 : index
    %c0_31 = arith.constant 0 : index
    %38 = vector.load %arg2[%c224, %c0_31] : memref<288x32xbf16, #tpu.memory_space<vmem>>, vector<32x32xbf16>
    %cst_32 = arith.constant dense<0.000000e+00> : vector<288x32xf32>
    %39 = tpu.matmul %37, %38, %cst_32 {dimension_numbers = #tpu.dot_dimension_numbers<[1], [0], [0], [1], [0, 0, 1, 1], [], []>} : vector<288x32xbf16>, vector<32x32xbf16>, vector<288x32xf32> -> vector<288x32xf32>
    %40 = arith.addf %35, %39 : vector<288x32xf32>
    %c0_33 = arith.constant 0 : index
    %c38 = arith.constant 38 : index
    %c0_34 = arith.constant 0 : index
    %41 = vector.load %arg1[%c0_33, %c38, %c0_34] : memref<1x328x32xbf16, #tpu.memory_space<vmem>>, vector<1x288x32xbf16>
    %42 = vector.shape_cast %41 : vector<1x288x32xbf16> to vector<288x32xbf16>
    %c256 = arith.constant 256 : index
    %c0_35 = arith.constant 0 : index
    %43 = vector.load %arg2[%c256, %c0_35] : memref<288x32xbf16, #tpu.memory_space<vmem>>, vector<32x32xbf16>
    %cst_36 = arith.constant dense<0.000000e+00> : vector<288x32xf32>
    %44 = tpu.matmul %42, %43, %cst_36 {dimension_numbers = #tpu.dot_dimension_numbers<[1], [0], [0], [1], [0, 0, 1, 1], [], []>} : vector<288x32xbf16>, vector<32x32xbf16>, vector<288x32xf32> -> vector<288x32xf32>
    %45 = arith.addf %40, %44 : vector<288x32xf32>
    %c0_37 = arith.constant 0 : index
    %c0_38 = arith.constant 0 : index
    %46 = vector.load %arg3[%c0_37, %c0_38] : memref<1x32xf32, #tpu.memory_space<vmem>>, vector<1x32xf32>
    %47 = vector.broadcast %46 : vector<1x32xf32> to vector<288x32xf32>
    %48 = arith.addf %45, %47 : vector<288x32xf32>
    %49 = arith.truncf %48 : vector<288x32xf32> to vector<288x32xbf16>
    %c0_39 = arith.constant 0 : index
    %c0_40 = arith.constant 0 : index
    %c0_41 = arith.constant 0 : index
    %50 = vector.load %arg4[%c0_39, %c0_40, %c0_41] : memref<1x288x32xbf16, #tpu.memory_space<vmem>>, vector<1x288x32xbf16>
    %51 = vector.shape_cast %50 : vector<1x288x32xbf16> to vector<288x32xbf16>
    %52 = vector.shape_cast %49 : vector<288x32xbf16> to vector<1x288x32xbf16>
    tpu.vector_store %arg4[%c0_39, %c0_40, %c0_41], %52 {strides = array<i32>} : memref<1x288x32xbf16, #tpu.memory_space<vmem>>, vector<1x288x32xbf16>,
    return
  }
  func.func @transform_0(%arg0: i32) -> (i32, i32, i32) {
    %c0_i32 = arith.constant 0 : i32
    %c0_i32_0 = arith.constant 0 : i32
    %c0_i32_1 = arith.constant 0 : i32
    return %arg0, %c0_i32, %c0_i32_0 : i32, i32, i32
  }
  func.func @transform_1(%arg0: i32) -> (i32, i32) {
    %c0_i32 = arith.constant 0 : i32
    %c0_i32_0 = arith.constant 0 : i32
    %c0_i32_1 = arith.constant 0 : i32
    return %c0_i32, %c0_i32_0 : i32, i32
  }
  func.func @transform_2(%arg0: i32) -> (i32, i32) {
    %c0_i32 = arith.constant 0 : i32
    %c0_i32_0 = arith.constant 0 : i32
    %c0_i32_1 = arith.constant 0 : i32
    return %c0_i32, %c0_i32_0 : i32, i32
  }
  func.func @transform_3(%arg0: i32) -> (i32, i32, i32) {
    %c0_i32 = arith.constant 0 : i32
    %c0_i32_0 = arith.constant 0 : i32
    %c0_i32_1 = arith.constant 0 : i32
    return %arg0, %c0_i32, %c0_i32_0 : i32, i32, i32
  }
}

module attributes {stable_mosaic.version = 11 : i64} {
  func.func @_matmul_res_kernel(%arg0: i32, %arg1: memref<512x32xbf16, #tpu.memory_space<vmem>>, %arg2: memref<32x64xbf16, #tpu.memory_space<vmem>>, %arg3: memref<1x64xf32, #tpu.memory_space<vmem>>, %arg4: memref<1x64xf32, #tpu.memory_space<vmem>>, %arg5: memref<512x64xbf16, #tpu.memory_space<vmem>>, %arg6: memref<512x64xbf16, #tpu.memory_space<vmem>>) attributes {dimension_semantics = [#tpu.dimension_semantics<parallel>], iteration_bounds = array<i64: 1>, scalar_prefetch = 0 : i64, scratch_operands = 0 : i64, tpu.core_type = #tpu.core_type<tc>, window_params = [{transform_indices = @transform_0, window_bounds = array<i64: 512, 32>}, {pipeline_mode = #tpu.pipeline_mode<synchronous>, transform_indices = @transform_1, window_bounds = array<i64: 32, 64>}, {pipeline_mode = #tpu.pipeline_mode<synchronous>, transform_indices = @transform_2, window_bounds = array<i64: 1, 64>}, {pipeline_mode = #tpu.pipeline_mode<synchronous>, transform_indices = @transform_3, window_bounds = array<i64: 1, 64>}, {transform_indices = @transform_4, window_bounds = array<i64: 512, 64>}, {transform_indices = @transform_5, window_bounds = array<i64: 512, 64>}]} {
    %c0 = arith.constant 0 : index
    %c0_0 = arith.constant 0 : index
    %0 = vector.load %arg1[%c0, %c0_0] : memref<512x32xbf16, #tpu.memory_space<vmem>>, vector<512x32xbf16>
    %c0_1 = arith.constant 0 : index
    %c0_2 = arith.constant 0 : index
    %1 = vector.load %arg2[%c0_1, %c0_2] : memref<32x64xbf16, #tpu.memory_space<vmem>>, vector<32x64xbf16>
    %cst = arith.constant dense<0.000000e+00> : vector<512x64xf32>
    %2 = tpu.matmul %0, %1, %cst {dimension_numbers = #tpu.dot_dimension_numbers<[1], [0], [0], [1], [0, 0, 1, 1], [], []>} : vector<512x32xbf16>, vector<32x64xbf16>, vector<512x64xf32> -> vector<512x64xf32>
    %c0_3 = arith.constant 0 : index
    %c0_4 = arith.constant 0 : index
    %3 = vector.load %arg3[%c0_3, %c0_4] : memref<1x64xf32, #tpu.memory_space<vmem>>, vector<1x64xf32>
    %4 = vector.broadcast %3 : vector<1x64xf32> to vector<512x64xf32>
    %5 = arith.addf %2, %4 : vector<512x64xf32>
    %c0_5 = arith.constant 0 : index
    %c0_6 = arith.constant 0 : index
    %6 = vector.load %arg5[%c0_5, %c0_6] : memref<512x64xbf16, #tpu.memory_space<vmem>>, vector<512x64xbf16>
    %7 = arith.extf %6 : vector<512x64xbf16> to vector<512x64xf32>
    %c0_7 = arith.constant 0 : index
    %c0_8 = arith.constant 0 : index
    %8 = vector.load %arg4[%c0_7, %c0_8] : memref<1x64xf32, #tpu.memory_space<vmem>>, vector<1x64xf32>
    %9 = vector.broadcast %8 : vector<1x64xf32> to vector<512x64xf32>
    %10 = arith.mulf %7, %9 : vector<512x64xf32>
    %11 = arith.addf %5, %10 : vector<512x64xf32>
    %cst_9 = arith.constant 0.000000e+00 : f32
    %12 = vector.broadcast %cst_9 : f32 to vector<512x64xf32>
    %13 = arith.maximumf %11, %12 : vector<512x64xf32>
    %14 = arith.truncf %13 : vector<512x64xf32> to vector<512x64xbf16>
    %c0_10 = arith.constant 0 : index
    %c0_11 = arith.constant 0 : index
    %15 = vector.load %arg6[%c0_10, %c0_11] : memref<512x64xbf16, #tpu.memory_space<vmem>>, vector<512x64xbf16>
    tpu.vector_store %arg6[%c0_10, %c0_11], %14 {strides = array<i32>} : memref<512x64xbf16, #tpu.memory_space<vmem>>, vector<512x64xbf16>,
    return
  }
  func.func @transform_0(%arg0: i32) -> (i32, i32) {
    %c0_i32 = arith.constant 0 : i32
    %c0_i32_0 = arith.constant 0 : i32
    return %arg0, %c0_i32 : i32, i32
  }
  func.func @transform_1(%arg0: i32) -> (i32, i32) {
    %c0_i32 = arith.constant 0 : i32
    %c0_i32_0 = arith.constant 0 : i32
    %c0_i32_1 = arith.constant 0 : i32
    return %c0_i32, %c0_i32_0 : i32, i32
  }
  func.func @transform_2(%arg0: i32) -> (i32, i32) {
    %c0_i32 = arith.constant 0 : i32
    %c0_i32_0 = arith.constant 0 : i32
    %c0_i32_1 = arith.constant 0 : i32
    return %c0_i32, %c0_i32_0 : i32, i32
  }
  func.func @transform_3(%arg0: i32) -> (i32, i32) {
    %c0_i32 = arith.constant 0 : i32
    %c0_i32_0 = arith.constant 0 : i32
    %c0_i32_1 = arith.constant 0 : i32
    return %c0_i32, %c0_i32_0 : i32, i32
  }
  func.func @transform_4(%arg0: i32) -> (i32, i32) {
    %c0_i32 = arith.constant 0 : i32
    %c0_i32_0 = arith.constant 0 : i32
    return %arg0, %c0_i32 : i32, i32
  }
  func.func @transform_5(%arg0: i32) -> (i32, i32) {
    %c0_i32 = arith.constant 0 : i32
    %c0_i32_0 = arith.constant 0 : i32
    return %arg0, %c0_i32 : i32, i32
  }
}

module attributes {stable_mosaic.version = 11 : i64} {
  func.func @_matmul_kernel(%arg0: i32, %arg1: memref<128x64xbf16, #tpu.memory_space<vmem>>, %arg2: memref<64x64xbf16, #tpu.memory_space<vmem>>, %arg3: memref<1x64xf32, #tpu.memory_space<vmem>>, %arg4: memref<128x64xbf16, #tpu.memory_space<vmem>>) attributes {dimension_semantics = [#tpu.dimension_semantics<parallel>], iteration_bounds = array<i64: 1>, scalar_prefetch = 0 : i64, scratch_operands = 0 : i64, tpu.core_type = #tpu.core_type<tc>, window_params = [{transform_indices = @transform_0, window_bounds = array<i64: 128, 64>}, {pipeline_mode = #tpu.pipeline_mode<synchronous>, transform_indices = @transform_1, window_bounds = array<i64: 64, 64>}, {pipeline_mode = #tpu.pipeline_mode<synchronous>, transform_indices = @transform_2, window_bounds = array<i64: 1, 64>}, {transform_indices = @transform_3, window_bounds = array<i64: 128, 64>}]} {
    %c0 = arith.constant 0 : index
    %c0_0 = arith.constant 0 : index
    %0 = vector.load %arg1[%c0, %c0_0] : memref<128x64xbf16, #tpu.memory_space<vmem>>, vector<128x64xbf16>
    %c0_1 = arith.constant 0 : index
    %c0_2 = arith.constant 0 : index
    %1 = vector.load %arg2[%c0_1, %c0_2] : memref<64x64xbf16, #tpu.memory_space<vmem>>, vector<64x64xbf16>
    %cst = arith.constant dense<0.000000e+00> : vector<128x64xf32>
    %2 = tpu.matmul %0, %1, %cst {dimension_numbers = #tpu.dot_dimension_numbers<[1], [0], [0], [1], [0, 0, 1, 1], [], []>} : vector<128x64xbf16>, vector<64x64xbf16>, vector<128x64xf32> -> vector<128x64xf32>
    %c0_3 = arith.constant 0 : index
    %c0_4 = arith.constant 0 : index
    %3 = vector.load %arg3[%c0_3, %c0_4] : memref<1x64xf32, #tpu.memory_space<vmem>>, vector<1x64xf32>
    %4 = vector.broadcast %3 : vector<1x64xf32> to vector<128x64xf32>
    %5 = arith.addf %2, %4 : vector<128x64xf32>
    %6 = arith.truncf %5 : vector<128x64xf32> to vector<128x64xbf16>
    %c0_5 = arith.constant 0 : index
    %c0_6 = arith.constant 0 : index
    %7 = vector.load %arg4[%c0_5, %c0_6] : memref<128x64xbf16, #tpu.memory_space<vmem>>, vector<128x64xbf16>
    tpu.vector_store %arg4[%c0_5, %c0_6], %6 {strides = array<i32>} : memref<128x64xbf16, #tpu.memory_space<vmem>>, vector<128x64xbf16>,
    return
  }
  func.func @transform_0(%arg0: i32) -> (i32, i32) {
    %c0_i32 = arith.constant 0 : i32
    %c0_i32_0 = arith.constant 0 : i32
    return %arg0, %c0_i32 : i32, i32
  }
  func.func @transform_1(%arg0: i32) -> (i32, i32) {
    %c0_i32 = arith.constant 0 : i32
    %c0_i32_0 = arith.constant 0 : i32
    %c0_i32_1 = arith.constant 0 : i32
    return %c0_i32, %c0_i32_0 : i32, i32
  }
  func.func @transform_2(%arg0: i32) -> (i32, i32) {
    %c0_i32 = arith.constant 0 : i32
    %c0_i32_0 = arith.constant 0 : i32
    %c0_i32_1 = arith.constant 0 : i32
    return %c0_i32, %c0_i32_0 : i32, i32
  }
  func.func @transform_3(%arg0: i32) -> (i32, i32) {
    %c0_i32 = arith.constant 0 : i32
    %c0_i32_0 = arith.constant 0 : i32
    return %arg0, %c0_i32 : i32, i32
  }
}

module attributes {stable_mosaic.version = 11 : i64} {
  func.func @_matmul_kernel(%arg0: i32, %arg1: memref<512x64xbf16, #tpu.memory_space<vmem>>, %arg2: memref<64x32xbf16, #tpu.memory_space<vmem>>, %arg3: memref<1x32xf32, #tpu.memory_space<vmem>>, %arg4: memref<512x32xbf16, #tpu.memory_space<vmem>>) attributes {dimension_semantics = [#tpu.dimension_semantics<parallel>], iteration_bounds = array<i64: 1>, scalar_prefetch = 0 : i64, scratch_operands = 0 : i64, tpu.core_type = #tpu.core_type<tc>, window_params = [{transform_indices = @transform_0, window_bounds = array<i64: 512, 64>}, {pipeline_mode = #tpu.pipeline_mode<synchronous>, transform_indices = @transform_1, window_bounds = array<i64: 64, 32>}, {pipeline_mode = #tpu.pipeline_mode<synchronous>, transform_indices = @transform_2, window_bounds = array<i64: 1, 32>}, {transform_indices = @transform_3, window_bounds = array<i64: 512, 32>}]} {
    %c0 = arith.constant 0 : index
    %c0_0 = arith.constant 0 : index
    %0 = vector.load %arg1[%c0, %c0_0] : memref<512x64xbf16, #tpu.memory_space<vmem>>, vector<512x64xbf16>
    %c0_1 = arith.constant 0 : index
    %c0_2 = arith.constant 0 : index
    %1 = vector.load %arg2[%c0_1, %c0_2] : memref<64x32xbf16, #tpu.memory_space<vmem>>, vector<64x32xbf16>
    %cst = arith.constant dense<0.000000e+00> : vector<512x32xf32>
    %2 = tpu.matmul %0, %1, %cst {dimension_numbers = #tpu.dot_dimension_numbers<[1], [0], [0], [1], [0, 0, 1, 1], [], []>} : vector<512x64xbf16>, vector<64x32xbf16>, vector<512x32xf32> -> vector<512x32xf32>
    %c0_3 = arith.constant 0 : index
    %c0_4 = arith.constant 0 : index
    %3 = vector.load %arg3[%c0_3, %c0_4] : memref<1x32xf32, #tpu.memory_space<vmem>>, vector<1x32xf32>
    %4 = vector.broadcast %3 : vector<1x32xf32> to vector<512x32xf32>
    %5 = arith.addf %2, %4 : vector<512x32xf32>
    %6 = arith.truncf %5 : vector<512x32xf32> to vector<512x32xbf16>
    %c0_5 = arith.constant 0 : index
    %c0_6 = arith.constant 0 : index
    %7 = vector.load %arg4[%c0_5, %c0_6] : memref<512x32xbf16, #tpu.memory_space<vmem>>, vector<512x32xbf16>
    tpu.vector_store %arg4[%c0_5, %c0_6], %6 {strides = array<i32>} : memref<512x32xbf16, #tpu.memory_space<vmem>>, vector<512x32xbf16>,
    return
  }
  func.func @transform_0(%arg0: i32) -> (i32, i32) {
    %c0_i32 = arith.constant 0 : i32
    %c0_i32_0 = arith.constant 0 : i32
    return %arg0, %c0_i32 : i32, i32
  }
  func.func @transform_1(%arg0: i32) -> (i32, i32) {
    %c0_i32 = arith.constant 0 : i32
    %c0_i32_0 = arith.constant 0 : i32
    %c0_i32_1 = arith.constant 0 : i32
    return %c0_i32, %c0_i32_0 : i32, i32
  }
  func.func @transform_2(%arg0: i32) -> (i32, i32) {
    %c0_i32 = arith.constant 0 : i32
    %c0_i32_0 = arith.constant 0 : i32
    %c0_i32_1 = arith.constant 0 : i32
    return %c0_i32, %c0_i32_0 : i32, i32
  }
  func.func @transform_3(%arg0: i32) -> (i32, i32) {
    %c0_i32 = arith.constant 0 : i32
    %c0_i32_0 = arith.constant 0 : i32
    return %arg0, %c0_i32 : i32, i32
  }
}

module attributes {stable_mosaic.version = 11 : i64} {
  func.func @_matmul_res_kernel(%arg0: i32, %arg1: memref<128x32xbf16, #tpu.memory_space<vmem>>, %arg2: memref<32x64xbf16, #tpu.memory_space<vmem>>, %arg3: memref<1x64xf32, #tpu.memory_space<vmem>>, %arg4: memref<1x64xf32, #tpu.memory_space<vmem>>, %arg5: memref<128x64xbf16, #tpu.memory_space<vmem>>, %arg6: memref<128x64xbf16, #tpu.memory_space<vmem>>) attributes {dimension_semantics = [#tpu.dimension_semantics<parallel>], iteration_bounds = array<i64: 1>, scalar_prefetch = 0 : i64, scratch_operands = 0 : i64, tpu.core_type = #tpu.core_type<tc>, window_params = [{transform_indices = @transform_0, window_bounds = array<i64: 128, 32>}, {pipeline_mode = #tpu.pipeline_mode<synchronous>, transform_indices = @transform_1, window_bounds = array<i64: 32, 64>}, {pipeline_mode = #tpu.pipeline_mode<synchronous>, transform_indices = @transform_2, window_bounds = array<i64: 1, 64>}, {pipeline_mode = #tpu.pipeline_mode<synchronous>, transform_indices = @transform_3, window_bounds = array<i64: 1, 64>}, {transform_indices = @transform_4, window_bounds = array<i64: 128, 64>}, {transform_indices = @transform_5, window_bounds = array<i64: 128, 64>}]} {
    %c0 = arith.constant 0 : index
    %c0_0 = arith.constant 0 : index
    %0 = vector.load %arg1[%c0, %c0_0] : memref<128x32xbf16, #tpu.memory_space<vmem>>, vector<128x32xbf16>
    %c0_1 = arith.constant 0 : index
    %c0_2 = arith.constant 0 : index
    %1 = vector.load %arg2[%c0_1, %c0_2] : memref<32x64xbf16, #tpu.memory_space<vmem>>, vector<32x64xbf16>
    %cst = arith.constant dense<0.000000e+00> : vector<128x64xf32>
    %2 = tpu.matmul %0, %1, %cst {dimension_numbers = #tpu.dot_dimension_numbers<[1], [0], [0], [1], [0, 0, 1, 1], [], []>} : vector<128x32xbf16>, vector<32x64xbf16>, vector<128x64xf32> -> vector<128x64xf32>
    %c0_3 = arith.constant 0 : index
    %c0_4 = arith.constant 0 : index
    %3 = vector.load %arg3[%c0_3, %c0_4] : memref<1x64xf32, #tpu.memory_space<vmem>>, vector<1x64xf32>
    %4 = vector.broadcast %3 : vector<1x64xf32> to vector<128x64xf32>
    %5 = arith.addf %2, %4 : vector<128x64xf32>
    %c0_5 = arith.constant 0 : index
    %c0_6 = arith.constant 0 : index
    %6 = vector.load %arg5[%c0_5, %c0_6] : memref<128x64xbf16, #tpu.memory_space<vmem>>, vector<128x64xbf16>
    %7 = arith.extf %6 : vector<128x64xbf16> to vector<128x64xf32>
    %c0_7 = arith.constant 0 : index
    %c0_8 = arith.constant 0 : index
    %8 = vector.load %arg4[%c0_7, %c0_8] : memref<1x64xf32, #tpu.memory_space<vmem>>, vector<1x64xf32>
    %9 = vector.broadcast %8 : vector<1x64xf32> to vector<128x64xf32>
    %10 = arith.mulf %7, %9 : vector<128x64xf32>
    %11 = arith.addf %5, %10 : vector<128x64xf32>
    %cst_9 = arith.constant 0.000000e+00 : f32
    %12 = vector.broadcast %cst_9 : f32 to vector<128x64xf32>
    %13 = arith.maximumf %11, %12 : vector<128x64xf32>
    %14 = arith.truncf %13 : vector<128x64xf32> to vector<128x64xbf16>
    %c0_10 = arith.constant 0 : index
    %c0_11 = arith.constant 0 : index
    %15 = vector.load %arg6[%c0_10, %c0_11] : memref<128x64xbf16, #tpu.memory_space<vmem>>, vector<128x64xbf16>
    tpu.vector_store %arg6[%c0_10, %c0_11], %14 {strides = array<i32>} : memref<128x64xbf16, #tpu.memory_space<vmem>>, vector<128x64xbf16>,
    return
  }
  func.func @transform_0(%arg0: i32) -> (i32, i32) {
    %c0_i32 = arith.constant 0 : i32
    %c0_i32_0 = arith.constant 0 : i32
    return %arg0, %c0_i32 : i32, i32
  }
  func.func @transform_1(%arg0: i32) -> (i32, i32) {
    %c0_i32 = arith.constant 0 : i32
    %c0_i32_0 = arith.constant 0 : i32
    %c0_i32_1 = arith.constant 0 : i32
    return %c0_i32, %c0_i32_0 : i32, i32
  }
  func.func @transform_2(%arg0: i32) -> (i32, i32) {
    %c0_i32 = arith.constant 0 : i32
    %c0_i32_0 = arith.constant 0 : i32
    %c0_i32_1 = arith.constant 0 : i32
    return %c0_i32, %c0_i32_0 : i32, i32
  }
  func.func @transform_3(%arg0: i32) -> (i32, i32) {
    %c0_i32 = arith.constant 0 : i32
    %c0_i32_0 = arith.constant 0 : i32
    %c0_i32_1 = arith.constant 0 : i32
    return %c0_i32, %c0_i32_0 : i32, i32
  }
  func.func @transform_4(%arg0: i32) -> (i32, i32) {
    %c0_i32 = arith.constant 0 : i32
    %c0_i32_0 = arith.constant 0 : i32
    return %arg0, %c0_i32 : i32, i32
  }
  func.func @transform_5(%arg0: i32) -> (i32, i32) {
    %c0_i32 = arith.constant 0 : i32
    %c0_i32_0 = arith.constant 0 : i32
    return %arg0, %c0_i32 : i32, i32
  }
}

module attributes {stable_mosaic.version = 11 : i64} {
  func.func @_matmul_kernel(%arg0: i32, %arg1: memref<128x288xbf16, #tpu.memory_space<vmem>>, %arg2: memref<288x32xbf16, #tpu.memory_space<vmem>>, %arg3: memref<1x32xf32, #tpu.memory_space<vmem>>, %arg4: memref<128x32xbf16, #tpu.memory_space<vmem>>) attributes {dimension_semantics = [#tpu.dimension_semantics<parallel>], iteration_bounds = array<i64: 1>, scalar_prefetch = 0 : i64, scratch_operands = 0 : i64, tpu.core_type = #tpu.core_type<tc>, window_params = [{transform_indices = @transform_0, window_bounds = array<i64: 128, 288>}, {pipeline_mode = #tpu.pipeline_mode<synchronous>, transform_indices = @transform_1, window_bounds = array<i64: 288, 32>}, {pipeline_mode = #tpu.pipeline_mode<synchronous>, transform_indices = @transform_2, window_bounds = array<i64: 1, 32>}, {transform_indices = @transform_3, window_bounds = array<i64: 128, 32>}]} {
    %c0 = arith.constant 0 : index
    %c0_0 = arith.constant 0 : index
    %0 = vector.load %arg1[%c0, %c0_0] : memref<128x288xbf16, #tpu.memory_space<vmem>>, vector<128x288xbf16>
    %c0_1 = arith.constant 0 : index
    %c0_2 = arith.constant 0 : index
    %1 = vector.load %arg2[%c0_1, %c0_2] : memref<288x32xbf16, #tpu.memory_space<vmem>>, vector<288x32xbf16>
    %cst = arith.constant dense<0.000000e+00> : vector<128x32xf32>
    %2 = tpu.matmul %0, %1, %cst {dimension_numbers = #tpu.dot_dimension_numbers<[1], [0], [0], [1], [0, 0, 1, 1], [], []>} : vector<128x288xbf16>, vector<288x32xbf16>, vector<128x32xf32> -> vector<128x32xf32>
    %c0_3 = arith.constant 0 : index
    %c0_4 = arith.constant 0 : index
    %3 = vector.load %arg3[%c0_3, %c0_4] : memref<1x32xf32, #tpu.memory_space<vmem>>, vector<1x32xf32>
    %4 = vector.broadcast %3 : vector<1x32xf32> to vector<128x32xf32>
    %5 = arith.addf %2, %4 : vector<128x32xf32>
    %6 = arith.truncf %5 : vector<128x32xf32> to vector<128x32xbf16>
    %c0_5 = arith.constant 0 : index
    %c0_6 = arith.constant 0 : index
    %7 = vector.load %arg4[%c0_5, %c0_6] : memref<128x32xbf16, #tpu.memory_space<vmem>>, vector<128x32xbf16>
    tpu.vector_store %arg4[%c0_5, %c0_6], %6 {strides = array<i32>} : memref<128x32xbf16, #tpu.memory_space<vmem>>, vector<128x32xbf16>,
    return
  }
  func.func @transform_0(%arg0: i32) -> (i32, i32) {
    %c0_i32 = arith.constant 0 : i32
    %c0_i32_0 = arith.constant 0 : i32
    return %arg0, %c0_i32 : i32, i32
  }
  func.func @transform_1(%arg0: i32) -> (i32, i32) {
    %c0_i32 = arith.constant 0 : i32
    %c0_i32_0 = arith.constant 0 : i32
    %c0_i32_1 = arith.constant 0 : i32
    return %c0_i32, %c0_i32_0 : i32, i32
  }
  func.func @transform_2(%arg0: i32) -> (i32, i32) {
    %c0_i32 = arith.constant 0 : i32
    %c0_i32_0 = arith.constant 0 : i32
    %c0_i32_1 = arith.constant 0 : i32
    return %c0_i32, %c0_i32_0 : i32, i32
  }
  func.func @transform_3(%arg0: i32) -> (i32, i32) {
    %c0_i32 = arith.constant 0 : i32
    %c0_i32_0 = arith.constant 0 : i32
    return %arg0, %c0_i32 : i32, i32
  }
}

</mosaic_0001>

<bundles_post_ra>
// kernel: forward.9
= control target key start
LH: loop header
LB: loop body
LE: loop exit
PB: predicated region body
PF: predicated region fallthrough
CT: control target
= control target key end

     0   :  { %vm259_vm0 = vcmask 261120   ;;  %vm589_vm1 = vcmask 257024   ;;  %s1346_s1 = inlined_call_operand.vmem [shape: bf16[32,32], index: 1, kind: input, shape index: {}]   ;;  %s1347_s0 = inlined_call_operand.vmem [shape: bf16[512,32], index: 0, kind: input, shape index: {}]   ;;  %s1348_s2 = inlined_call_operand.vmem [shape: f32[1,32], index: 2, kind: input, shape index: {}]   ;;  %s1349_s3 = inlined_call_operand.vmem [shape: bf16[512,32], index: 3, kind: output, shape index: {}]  }
   0x1   :  { %v859_v0 = vld [vmem:[%s1346_s1 + $0x8] sm:$0xff]  ;;  %v858_v1 = vld [vmem:[%s1346_s1] sm:$0xff]  ;;  %v828_v10 = vld [vmem:[%s1347_s0 + $0x10] sm:$0xff] }
   0x2   :  { %362 = vmatpush.bf16.msra.mxu0 %v859_v0  ;;  %860 = vmatpush.bf16.msra.mxu1 %v859_v0  ;;  %v826_v2 = vld [vmem:[%s1347_s0] sm:$0xff]  ;;  %v827_v6 = vld [vmem:[%s1347_s0 + $0x8] sm:$0xff]  ;;  %v836_v11 = vld [vmem:[%s1347_s0 + $0x50] sm:$0xff] }
   0x3   :  { %861 = vmatpush.bf16.msra.mxu2 %v859_v0  ;;  %862 = vmatpush.bf16.msra.mxu3 %v859_v0  ;;  %v834_v3 = vld [vmem:[%s1347_s0 + $0x40] sm:$0xff]  ;;  %v835_v7 = vld [vmem:[%s1347_s0 + $0x48] sm:$0xff]  ;;  %v844_v12 = vld [vmem:[%s1347_s0 + $0x90] sm:$0xff] }
   0x4   :  { %v842_v4 = vld [vmem:[%s1347_s0 + $0x80] sm:$0xff]  ;;  %v843_v8 = vld [vmem:[%s1347_s0 + $0x88] sm:$0xff]  ;;  %v852_v13 = vld [vmem:[%s1347_s0 + $0xd0] sm:$0xff] }
   0x5   :  { %v850_v5 = vld [vmem:[%s1347_s0 + $0xc0] sm:$0xff]  ;;  %v851_v9 = vld [vmem:[%s1347_s0 + $0xc8] sm:$0xff]  ;;  %v829_v14 = vld [vmem:[%s1347_s0 + $0x18] sm:$0xff] }
   0x6   :  { %363 = vmatpush.bf16.msra.mxu0 %v858_v1  ;;  %863 = vmatpush.bf16.msra.mxu1 %v858_v1  ;;  %v837_v15 = vld [vmem:[%s1347_s0 + $0x58] sm:$0xff]  ;;  %v830_v18 = vld [vmem:[%s1347_s0 + $0x20] sm:$0xff]  ;;  %v831_v22 = vld [vmem:[%s1347_s0 + $0x28] sm:$0xff] }
   0x7   :  { %864 = vmatpush.bf16.msra.mxu2 %v858_v1  ;;  %865 = vmatpush.bf16.msra.mxu3 %v858_v1  ;;  %v845_v16 = vld [vmem:[%s1347_s0 + $0x98] sm:$0xff]  ;;  %v838_v19 = vld [vmem:[%s1347_s0 + $0x60] sm:$0xff]  ;;  %v839_v23 = vld [vmem:[%s1347_s0 + $0x68] sm:$0xff] }
   0x8   :  { %v853_v17 = vld [vmem:[%s1347_s0 + $0xd8] sm:$0xff]  ;;  %v846_v20 = vld [vmem:[%s1347_s0 + $0xa0] sm:$0xff]  ;;  %v847_v24 = vld [vmem:[%s1347_s0 + $0xa8] sm:$0xff] }
   0x9   :  { %794 = vmatmul.msk.bf16.vlgmr.msra.gmra.mxu0 %vm259_vm0, %v826_v2  ;;  %802 = vmatmul.msk.bf16.vlgmr.msra.gmra.mxu1 %vm259_vm0, %v834_v3  ;;  %v854_v21 = vld [vmem:[%s1347_s0 + $0xe0] sm:$0xff]  ;;  %v855_v25 = vld [vmem:[%s1347_s0 + $0xe8] sm:$0xff]  ;;  %v832_v26 = vld [vmem:[%s1347_s0 + $0x30] sm:$0xff] }
   0xa   :  { %810 = vmatmul.msk.bf16.vlgmr.msra.gmra.mxu2 %vm259_vm0, %v842_v4  ;;  %818 = vmatmul.msk.bf16.vlgmr.msra.gmra.mxu3 %vm259_vm0, %v850_v5  ;;  %v840_v27 = vld [vmem:[%s1347_s0 + $0x70] sm:$0xff]  ;;  %v833_v30 = vld [vmem:[%s1347_s0 + $0x38] sm:$0xff]  ;;  %v1024_v34 = vld [vmem:[%s1348_s2] ss:$0 sm:$0xff] }
   0xb   :  { %v848_v28 = vld [vmem:[%s1347_s0 + $0xb0] sm:$0xff]  ;;  %v841_v31 = vld [vmem:[%s1347_s0 + $0x78] sm:$0xff] }
   0xc   :  { %v856_v29 = vld [vmem:[%s1347_s0 + $0xf0] sm:$0xff]  ;;  %v849_v32 = vld [vmem:[%s1347_s0 + $0xb8] sm:$0xff] }
   0xd   :  { %v857_v33 = vld [vmem:[%s1347_s0 + $0xf8] sm:$0xff] }
  0x19   :  { %795 = vmatmul.msk.bf16.gmra.mxu0 %vm259_vm0, %v827_v6  ;;  %803 = vmatmul.msk.bf16.gmra.mxu1 %vm259_vm0, %v835_v7 }
  0x1a   :  { %811 = vmatmul.msk.bf16.gmra.mxu2 %vm259_vm0, %v843_v8  ;;  %819 = vmatmul.msk.bf16.gmra.mxu3 %vm259_vm0, %v851_v9 }
  0x29   :  { %796 = vmatmul.msk.bf16.gmra.mxu0 %vm259_vm0, %v828_v10  ;;  %804 = vmatmul.msk.bf16.gmra.mxu1 %vm259_vm0, %v836_v11 }
  0x2a   :  { %812 = vmatmul.msk.bf16.gmra.mxu2 %vm259_vm0, %v844_v12  ;;  %820 = vmatmul.msk.bf16.gmra.mxu3 %vm259_vm0, %v852_v13 }
  0x39   :  { %797 = vmatmul.msk.bf16.gmra.mxu0 %vm259_vm0, %v829_v14  ;;  %805 = vmatmul.msk.bf16.gmra.mxu1 %vm259_vm0, %v837_v15 }
  0x3a   :  { %813 = vmatmul.msk.bf16.gmra.mxu2 %vm259_vm0, %v845_v16  ;;  %821 = vmatmul.msk.bf16.gmra.mxu3 %vm259_vm0, %v853_v17 }
  0x49   :  { %798 = vmatmul.msk.bf16.gmra.mxu0 %vm259_vm0, %v830_v18  ;;  %806 = vmatmul.msk.bf16.gmra.mxu1 %vm259_vm0, %v838_v19 }
  0x4a   :  { %814 = vmatmul.msk.bf16.gmra.mxu2 %vm259_vm0, %v846_v20  ;;  %822 = vmatmul.msk.bf16.gmra.mxu3 %vm259_vm0, %v854_v21 }
  0x59   :  { %799 = vmatmul.msk.bf16.gmra.mxu0 %vm259_vm0, %v831_v22  ;;  %807 = vmatmul.msk.bf16.gmra.mxu1 %vm259_vm0, %v839_v23 }
  0x5a   :  { %815 = vmatmul.msk.bf16.gmra.mxu2 %vm259_vm0, %v847_v24  ;;  %823 = vmatmul.msk.bf16.gmra.mxu3 %vm259_vm0, %v855_v25 }
  0x69   :  { %800 = vmatmul.msk.bf16.gmra.mxu0 %vm259_vm0, %v832_v26  ;;  %808 = vmatmul.msk.bf16.gmra.mxu1 %vm259_vm0, %v840_v27 }
  0x6a   :  { %816 = vmatmul.msk.bf16.gmra.mxu2 %vm259_vm0, %v848_v28  ;;  %824 = vmatmul.msk.bf16.gmra.mxu3 %vm259_vm0, %v856_v29 }
  0x79   :  { %801 = vmatmul.msk.bf16.gmra.mxu0 %vm259_vm0, %v833_v30  ;;  %809 = vmatmul.msk.bf16.gmra.mxu1 %vm259_vm0, %v841_v31 }
  0x7a   :  { %817 = vmatmul.msk.bf16.gmra.mxu2 %vm259_vm0, %v849_v32  ;;  %825 = vmatmul.msk.bf16.gmra.mxu3 %vm259_vm0, %v857_v33 }
  0x86   :  { %v365_v35 = vpop.f32.mrf.mxu0  ;;  %v405_v36 = vpop.f32.mrf.mxu1 }
  0x87   :  { %v366_v37 = vadd.f32 %v1024_v34, %v365_v35  ;;  %v406_v38 = vadd.f32 %v1024_v34, %v405_v36 }
  0x89   :  { %v525_v39 = vpack.c.bf16 %v366_v37, %v366_v37  ;;  %v541_v40 = vpack.c.bf16 %v406_v38, %v406_v38 }
  0x8b   :  { %590 = vst.msk [vmem:[%s1349_s3] sm:$0xf] %vm589_vm1, %v525_v39 }
  0x8c   :  { %606 = vst.msk [vmem:[%s1349_s3 + $0x40] sm:$0xf] %vm589_vm1, %v541_v40 }
  0x8d   :  { %v445_v41 = vpop.f32.mrf.mxu2  ;;  %v485_v42 = vpop.f32.mrf.mxu3 }
  0x8e   :  { %v446_v43 = vadd.f32 %v1024_v34, %v445_v41  ;;  %v486_v44 = vadd.f32 %v1024_v34, %v485_v42  ;;  %v367_v45 = vpop.f32.mrf.mxu0  ;;  %v407_v46 = vpop.f32.mrf.mxu1 }
  0x8f   :  { %v368_v47 = vadd.f32 %v1024_v34, %v367_v45  ;;  %v408_v48 = vadd.f32 %v1024_v34, %v407_v46 }
  0x90   :  { %v557_v49 = vpack.c.bf16 %v446_v43, %v446_v43  ;;  %v573_v50 = vpack.c.bf16 %v486_v44, %v486_v44 }
  0x91   :  { %v526_v51 = vpack.c.bf16 %v368_v47, %v368_v47  ;;  %v542_v52 = vpack.c.bf16 %v408_v48, %v408_v48 }
  0x92   :  { %622 = vst.msk [vmem:[%s1349_s3 + $0x80] sm:$0xf] %vm589_vm1, %v557_v49 }
  0x93   :  { %638 = vst.msk [vmem:[%s1349_s3 + $0xc0] sm:$0xf] %vm589_vm1, %v573_v50 }
  0x94   :  { %591 = vst.msk [vmem:[%s1349_s3 + $0x4] sm:$0xf] %vm589_vm1, %v526_v51 }
  0x95   :  { %607 = vst.msk [vmem:[%s1349_s3 + $0x44] sm:$0xf] %vm589_vm1, %v542_v52  ;;  %v447_v53 = vpop.f32.mrf.mxu2  ;;  %v487_v54 = vpop.f32.mrf.mxu3 }
  0x96   :  { %v448_v55 = vadd.f32 %v1024_v34, %v447_v53  ;;  %v488_v56 = vadd.f32 %v1024_v34, %v487_v54  ;;  %v370_v57 = vpop.f32.mrf.mxu0  ;;  %v410_v58 = vpop.f32.mrf.mxu1 }
  0x97   :  { %v371_v59 = vadd.f32 %v1024_v34, %v370_v57  ;;  %v411_v60 = vadd.f32 %v1024_v34, %v410_v58 }
  0x98   :  { %v558_v61 = vpack.c.bf16 %v448_v55, %v448_v55  ;;  %v574_v62 = vpack.c.bf16 %v488_v56, %v488_v56 }
  0x99   :  { %v527_v63 = vpack.c.bf16 %v371_v59, %v371_v59  ;;  %v543_v0 = vpack.c.bf16 %v411_v60, %v411_v60 }
  0x9a   :  { %623 = vst.msk [vmem:[%s1349_s3 + $0x84] sm:$0xf] %vm589_vm1, %v558_v61 }
  0x9b   :  { %639 = vst.msk [vmem:[%s1349_s3 + $0xc4] sm:$0xf] %vm589_vm1, %v574_v62 }
  0x9c   :  { %592 = vst.msk [vmem:[%s1349_s3 + $0x8] sm:$0xf] %vm589_vm1, %v527_v63 }
  0x9d   :  { %608 = vst.msk [vmem:[%s1349_s3 + $0x48] sm:$0xf] %vm589_vm1, %v543_v0  ;;  %v450_v1 = vpop.f32.mrf.mxu2  ;;  %v490_v2 = vpop.f32.mrf.mxu3 }
  0x9e   :  { %v451_v3 = vadd.f32 %v1024_v34, %v450_v1  ;;  %v491_v4 = vadd.f32 %v1024_v34, %v490_v2  ;;  %v372_v5 = vpop.f32.mrf.mxu0  ;;  %v412_v6 = vpop.f32.mrf.mxu1 }
  0x9f   :  { %v373_v7 = vadd.f32 %v1024_v34, %v372_v5  ;;  %v413_v8 = vadd.f32 %v1024_v34, %v412_v6 }
  0xa0   :  { %v559_v9 = vpack.c.bf16 %v451_v3, %v451_v3  ;;  %v575_v10 = vpack.c.bf16 %v491_v4, %v491_v4 }
  0xa1   :  { %v528_v11 = vpack.c.bf16 %v373_v7, %v373_v7  ;;  %v544_v12 = vpack.c.bf16 %v413_v8, %v413_v8 }
  0xa2   :  { %624 = vst.msk [vmem:[%s1349_s3 + $0x88] sm:$0xf] %vm589_vm1, %v559_v9 }
  0xa3   :  { %640 = vst.msk [vmem:[%s1349_s3 + $0xc8] sm:$0xf] %vm589_vm1, %v575_v10 }
  0xa4   :  { %593 = vst.msk [vmem:[%s1349_s3 + $0xc] sm:$0xf] %vm589_vm1, %v528_v11 }
  0xa5   :  { %609 = vst.msk [vmem:[%s1349_s3 + $0x4c] sm:$0xf] %vm589_vm1, %v544_v12  ;;  %v452_v13 = vpop.f32.mrf.mxu2  ;;  %v492_v14 = vpop.f32.mrf.mxu3 }
  0xa6   :  { %v453_v15 = vadd.f32 %v1024_v34, %v452_v13  ;;  %v493_v16 = vadd.f32 %v1024_v34, %v492_v14  ;;  %v375_v17 = vpop.f32.mrf.mxu0  ;;  %v415_v18 = vpop.f32.mrf.mxu1 }
  0xa7   :  { %v376_v19 = vadd.f32 %v1024_v34, %v375_v17  ;;  %v416_v20 = vadd.f32 %v1024_v34, %v415_v18 }
  0xa8   :  { %v560_v21 = vpack.c.bf16 %v453_v15, %v453_v15  ;;  %v576_v22 = vpack.c.bf16 %v493_v16, %v493_v16 }
  0xa9   :  { %v529_v23 = vpack.c.bf16 %v376_v19, %v376_v19  ;;  %v545_v24 = vpack.c.bf16 %v416_v20, %v416_v20 }
  0xaa   :  { %625 = vst.msk [vmem:[%s1349_s3 + $0x8c] sm:$0xf] %vm589_vm1, %v560_v21 }
  0xab   :  { %641 = vst.msk [vmem:[%s1349_s3 + $0xcc] sm:$0xf] %vm589_vm1, %v576_v22 }
  0xac   :  { %594 = vst.msk [vmem:[%s1349_s3 + $0x10] sm:$0xf] %vm589_vm1, %v529_v23 }
  0xad   :  { %610 = vst.msk [vmem:[%s1349_s3 + $0x50] sm:$0xf] %vm589_vm1, %v545_v24  ;;  %v455_v25 = vpop.f32.mrf.mxu2  ;;  %v495_v26 = vpop.f32.mrf.mxu3 }
  0xae   :  { %v456_v27 = vadd.f32 %v1024_v34, %v455_v25  ;;  %v496_v28 = vadd.f32 %v1024_v34, %v495_v26  ;;  %v377_v29 = vpop.f32.mrf.mxu0  ;;  %v417_v30 = vpop.f32.mrf.mxu1 }
  0xaf   :  { %v378_v31 = vadd.f32 %v1024_v34, %v377_v29  ;;  %v418_v32 = vadd.f32 %v1024_v34, %v417_v30 }
  0xb0   :  { %v561_v33 = vpack.c.bf16 %v456_v27, %v456_v27  ;;  %v577_v35 = vpack.c.bf16 %v496_v28, %v496_v28 }
  0xb1   :  { %v530_v36 = vpack.c.bf16 %v378_v31, %v378_v31  ;;  %v546_v37 = vpack.c.bf16 %v418_v32, %v418_v32 }
  0xb2   :  { %626 = vst.msk [vmem:[%s1349_s3 + $0x90] sm:$0xf] %vm589_vm1, %v561_v33 }
  0xb3   :  { %642 = vst.msk [vmem:[%s1349_s3 + $0xd0] sm:$0xf] %vm589_vm1, %v577_v35 }
  0xb4   :  { %595 = vst.msk [vmem:[%s1349_s3 + $0x14] sm:$0xf] %vm589_vm1, %v530_v36 }
  0xb5   :  { %611 = vst.msk [vmem:[%s1349_s3 + $0x54] sm:$0xf] %vm589_vm1, %v546_v37  ;;  %v457_v38 = vpop.f32.mrf.mxu2  ;;  %v497_v39 = vpop.f32.mrf.mxu3 }
  0xb6   :  { %v458_v40 = vadd.f32 %v1024_v34, %v457_v38  ;;  %v498_v41 = vadd.f32 %v1024_v34, %v497_v39  ;;  %v380_v42 = vpop.f32.mrf.mxu0  ;;  %v420_v43 = vpop.f32.mrf.mxu1 }
  0xb7   :  { %v381_v44 = vadd.f32 %v1024_v34, %v380_v42  ;;  %v421_v45 = vadd.f32 %v1024_v34, %v420_v43 }
  0xb8   :  { %v562_v46 = vpack.c.bf16 %v458_v40, %v458_v40  ;;  %v578_v47 = vpack.c.bf16 %v498_v41, %v498_v41 }
  0xb9   :  { %v531_v48 = vpack.c.bf16 %v381_v44, %v381_v44  ;;  %v547_v49 = vpack.c.bf16 %v421_v45, %v421_v45 }
  0xba   :  { %627 = vst.msk [vmem:[%s1349_s3 + $0x94] sm:$0xf] %vm589_vm1, %v562_v46 }
  0xbb   :  { %643 = vst.msk [vmem:[%s1349_s3 + $0xd4] sm:$0xf] %vm589_vm1, %v578_v47 }
  0xbc   :  { %596 = vst.msk [vmem:[%s1349_s3 + $0x18] sm:$0xf] %vm589_vm1, %v531_v48 }
  0xbd   :  { %612 = vst.msk [vmem:[%s1349_s3 + $0x58] sm:$0xf] %vm589_vm1, %v547_v49  ;;  %v460_v50 = vpop.f32.mrf.mxu2  ;;  %v500_v51 = vpop.f32.mrf.mxu3 }
  0xbe   :  { %v461_v52 = vadd.f32 %v1024_v34, %v460_v50  ;;  %v501_v53 = vadd.f32 %v1024_v34, %v500_v51  ;;  %v382_v54 = vpop.f32.mrf.mxu0  ;;  %v422_v55 = vpop.f32.mrf.mxu1 }
  0xbf   :  { %v383_v56 = vadd.f32 %v1024_v34, %v382_v54  ;;  %v423_v57 = vadd.f32 %v1024_v34, %v422_v55 }
  0xc0   :  { %v563_v58 = vpack.c.bf16 %v461_v52, %v461_v52  ;;  %v579_v59 = vpack.c.bf16 %v501_v53, %v501_v53 }
  0xc1   :  { %v532_v60 = vpack.c.bf16 %v383_v56, %v383_v56  ;;  %v548_v61 = vpack.c.bf16 %v423_v57, %v423_v57 }
  0xc2   :  { %628 = vst.msk [vmem:[%s1349_s3 + $0x98] sm:$0xf] %vm589_vm1, %v563_v58 }
  0xc3   :  { %644 = vst.msk [vmem:[%s1349_s3 + $0xd8] sm:$0xf] %vm589_vm1, %v579_v59 }
  0xc4   :  { %597 = vst.msk [vmem:[%s1349_s3 + $0x1c] sm:$0xf] %vm589_vm1, %v532_v60 }
  0xc5   :  { %613 = vst.msk [vmem:[%s1349_s3 + $0x5c] sm:$0xf] %vm589_vm1, %v548_v61  ;;  %v462_v62 = vpop.f32.mrf.mxu2  ;;  %v502_v63 = vpop.f32.mrf.mxu3 }
  0xc6   :  { %v463_v0 = vadd.f32 %v1024_v34, %v462_v62  ;;  %v503_v1 = vadd.f32 %v1024_v34, %v502_v63  ;;  %v385_v2 = vpop.f32.mrf.mxu0  ;;  %v425_v3 = vpop.f32.mrf.mxu1 }
  0xc7   :  { %v386_v4 = vadd.f32 %v1024_v34, %v385_v2  ;;  %v426_v5 = vadd.f32 %v1024_v34, %v425_v3 }
  0xc8   :  { %v564_v6 = vpack.c.bf16 %v463_v0, %v463_v0  ;;  %v580_v7 = vpack.c.bf16 %v503_v1, %v503_v1 }
  0xc9   :  { %v533_v8 = vpack.c.bf16 %v386_v4, %v386_v4  ;;  %v549_v9 = vpack.c.bf16 %v426_v5, %v426_v5 }
  0xca   :  { %629 = vst.msk [vmem:[%s1349_s3 + $0x9c] sm:$0xf] %vm589_vm1, %v564_v6 }
  0xcb   :  { %645 = vst.msk [vmem:[%s1349_s3 + $0xdc] sm:$0xf] %vm589_vm1, %v580_v7 }
  0xcc   :  { %598 = vst.msk [vmem:[%s1349_s3 + $0x20] sm:$0xf] %vm589_vm1, %v533_v8 }
  0xcd   :  { %614 = vst.msk [vmem:[%s1349_s3 + $0x60] sm:$0xf] %vm589_vm1, %v549_v9  ;;  %v465_v10 = vpop.f32.mrf.mxu2  ;;  %v505_v11 = vpop.f32.mrf.mxu3 }
  0xce   :  { %v466_v12 = vadd.f32 %v1024_v34, %v465_v10  ;;  %v506_v13 = vadd.f32 %v1024_v34, %v505_v11  ;;  %v387_v14 = vpop.f32.mrf.mxu0  ;;  %v427_v15 = vpop.f32.mrf.mxu1 }
  0xcf   :  { %v388_v16 = vadd.f32 %v1024_v34, %v387_v14  ;;  %v428_v17 = vadd.f32 %v1024_v34, %v427_v15 }
  0xd0   :  { %v565_v18 = vpack.c.bf16 %v466_v12, %v466_v12  ;;  %v581_v19 = vpack.c.bf16 %v506_v13, %v506_v13 }
  0xd1   :  { %v534_v20 = vpack.c.bf16 %v388_v16, %v388_v16  ;;  %v550_v21 = vpack.c.bf16 %v428_v17, %v428_v17 }
  0xd2   :  { %630 = vst.msk [vmem:[%s1349_s3 + $0xa0] sm:$0xf] %vm589_vm1, %v565_v18 }
  0xd3   :  { %646 = vst.msk [vmem:[%s1349_s3 + $0xe0] sm:$0xf] %vm589_vm1, %v581_v19 }
  0xd4   :  { %599 = vst.msk [vmem:[%s1349_s3 + $0x24] sm:$0xf] %vm589_vm1, %v534_v20 }
  0xd5   :  { %615 = vst.msk [vmem:[%s1349_s3 + $0x64] sm:$0xf] %vm589_vm1, %v550_v21  ;;  %v467_v22 = vpop.f32.mrf.mxu2  ;;  %v507_v23 = vpop.f32.mrf.mxu3 }
  0xd6   :  { %v468_v24 = vadd.f32 %v1024_v34, %v467_v22  ;;  %v508_v25 = vadd.f32 %v1024_v34, %v507_v23  ;;  %v390_v26 = vpop.f32.mrf.mxu0  ;;  %v430_v27 = vpop.f32.mrf.mxu1 }
  0xd7   :  { %v391_v28 = vadd.f32 %v1024_v34, %v390_v26  ;;  %v431_v29 = vadd.f32 %v1024_v34, %v430_v27 }
  0xd8   :  { %v566_v30 = vpack.c.bf16 %v468_v24, %v468_v24  ;;  %v582_v31 = vpack.c.bf16 %v508_v25, %v508_v25 }
  0xd9   :  { %v535_v32 = vpack.c.bf16 %v391_v28, %v391_v28  ;;  %v551_v33 = vpack.c.bf16 %v431_v29, %v431_v29 }
  0xda   :  { %631 = vst.msk [vmem:[%s1349_s3 + $0xa4] sm:$0xf] %vm589_vm1, %v566_v30 }
  0xdb   :  { %647 = vst.msk [vmem:[%s1349_s3 + $0xe4] sm:$0xf] %vm589_vm1, %v582_v31 }
  0xdc   :  { %600 = vst.msk [vmem:[%s1349_s3 + $0x28] sm:$0xf] %vm589_vm1, %v535_v32 }
  0xdd   :  { %616 = vst.msk [vmem:[%s1349_s3 + $0x68] sm:$0xf] %vm589_vm1, %v551_v33  ;;  %v470_v35 = vpop.f32.mrf.mxu2  ;;  %v510_v36 = vpop.f32.mrf.mxu3 }
  0xde   :  { %v471_v37 = vadd.f32 %v1024_v34, %v470_v35  ;;  %v511_v38 = vadd.f32 %v1024_v34, %v510_v36  ;;  %v392_v39 = vpop.f32.mrf.mxu0  ;;  %v432_v40 = vpop.f32.mrf.mxu1 }
  0xdf   :  { %v393_v41 = vadd.f32 %v1024_v34, %v392_v39  ;;  %v433_v42 = vadd.f32 %v1024_v34, %v432_v40 }
  0xe0   :  { %v567_v43 = vpack.c.bf16 %v471_v37, %v471_v37  ;;  %v583_v44 = vpack.c.bf16 %v511_v38, %v511_v38 }
  0xe1   :  { %v536_v45 = vpack.c.bf16 %v393_v41, %v393_v41  ;;  %v552_v46 = vpack.c.bf16 %v433_v42, %v433_v42 }
  0xe2   :  { %632 = vst.msk [vmem:[%s1349_s3 + $0xa8] sm:$0xf] %vm589_vm1, %v567_v43 }
  0xe3   :  { %648 = vst.msk [vmem:[%s1349_s3 + $0xe8] sm:$0xf] %vm589_vm1, %v583_v44 }
  0xe4   :  { %601 = vst.msk [vmem:[%s1349_s3 + $0x2c] sm:$0xf] %vm589_vm1, %v536_v45 }
  0xe5   :  { %617 = vst.msk [vmem:[%s1349_s3 + $0x6c] sm:$0xf] %vm589_vm1, %v552_v46  ;;  %v472_v47 = vpop.f32.mrf.mxu2  ;;  %v512_v48 = vpop.f32.mrf.mxu3 }
  0xe6   :  { %v473_v49 = vadd.f32 %v1024_v34, %v472_v47  ;;  %v513_v50 = vadd.f32 %v1024_v34, %v512_v48  ;;  %v395_v51 = vpop.f32.mrf.mxu0  ;;  %v435_v52 = vpop.f32.mrf.mxu1 }
  0xe7   :  { %v396_v53 = vadd.f32 %v1024_v34, %v395_v51  ;;  %v436_v54 = vadd.f32 %v1024_v34, %v435_v52 }
  0xe8   :  { %v568_v55 = vpack.c.bf16 %v473_v49, %v473_v49  ;;  %v584_v56 = vpack.c.bf16 %v513_v50, %v513_v50 }
  0xe9   :  { %v537_v57 = vpack.c.bf16 %v396_v53, %v396_v53  ;;  %v553_v58 = vpack.c.bf16 %v436_v54, %v436_v54 }
  0xea   :  { %633 = vst.msk [vmem:[%s1349_s3 + $0xac] sm:$0xf] %vm589_vm1, %v568_v55 }
  0xeb   :  { %649 = vst.msk [vmem:[%s1349_s3 + $0xec] sm:$0xf] %vm589_vm1, %v584_v56 }
  0xec   :  { %602 = vst.msk [vmem:[%s1349_s3 + $0x30] sm:$0xf] %vm589_vm1, %v537_v57 }
  0xed   :  { %618 = vst.msk [vmem:[%s1349_s3 + $0x70] sm:$0xf] %vm589_vm1, %v553_v58  ;;  %v475_v59 = vpop.f32.mrf.mxu2  ;;  %v515_v60 = vpop.f32.mrf.mxu3 }
  0xee   :  { %v476_v61 = vadd.f32 %v1024_v34, %v475_v59  ;;  %v516_v62 = vadd.f32 %v1024_v34, %v515_v60  ;;  %v397_v63 = vpop.f32.mrf.mxu0  ;;  %v437_v0 = vpop.f32.mrf.mxu1 }
  0xef   :  { %v398_v1 = vadd.f32 %v1024_v34, %v397_v63  ;;  %v438_v2 = vadd.f32 %v1024_v34, %v437_v0 }
  0xf0   :  { %v569_v3 = vpack.c.bf16 %v476_v61, %v476_v61  ;;  %v585_v4 = vpack.c.bf16 %v516_v62, %v516_v62 }
  0xf1   :  { %v538_v5 = vpack.c.bf16 %v398_v1, %v398_v1  ;;  %v554_v6 = vpack.c.bf16 %v438_v2, %v438_v2 }
  0xf2   :  { %634 = vst.msk [vmem:[%s1349_s3 + $0xb0] sm:$0xf] %vm589_vm1, %v569_v3 }
  0xf3   :  { %650 = vst.msk [vmem:[%s1349_s3 + $0xf0] sm:$0xf] %vm589_vm1, %v585_v4 }
  0xf4   :  { %603 = vst.msk [vmem:[%s1349_s3 + $0x34] sm:$0xf] %vm589_vm1, %v538_v5 }
  0xf5   :  { %619 = vst.msk [vmem:[%s1349_s3 + $0x74] sm:$0xf] %vm589_vm1, %v554_v6  ;;  %v477_v7 = vpop.f32.mrf.mxu2  ;;  %v517_v8 = vpop.f32.mrf.mxu3 }
  0xf6   :  { %v478_v9 = vadd.f32 %v1024_v34, %v477_v7  ;;  %v518_v10 = vadd.f32 %v1024_v34, %v517_v8  ;;  %v400_v11 = vpop.f32.mrf.mxu0  ;;  %v440_v12 = vpop.f32.mrf.mxu1 }
  0xf7   :  { %v401_v13 = vadd.f32 %v1024_v34, %v400_v11  ;;  %v441_v14 = vadd.f32 %v1024_v34, %v440_v12 }
  0xf8   :  { %v570_v15 = vpack.c.bf16 %v478_v9, %v478_v9  ;;  %v586_v16 = vpack.c.bf16 %v518_v10, %v518_v10 }
  0xf9   :  { %v539_v17 = vpack.c.bf16 %v401_v13, %v401_v13  ;;  %v555_v18 = vpack.c.bf16 %v441_v14, %v441_v14 }
  0xfa   :  { %635 = vst.msk [vmem:[%s1349_s3 + $0xb4] sm:$0xf] %vm589_vm1, %v570_v15 }
  0xfb   :  { %651 = vst.msk [vmem:[%s1349_s3 + $0xf4] sm:$0xf] %vm589_vm1, %v586_v16 }
  0xfc   :  { %604 = vst.msk [vmem:[%s1349_s3 + $0x38] sm:$0xf] %vm589_vm1, %v539_v17 }
  0xfd   :  { %620 = vst.msk [vmem:[%s1349_s3 + $0x78] sm:$0xf] %vm589_vm1, %v555_v18  ;;  %v480_v19 = vpop.f32.mrf.mxu2  ;;  %v520_v20 = vpop.f32.mrf.mxu3 }
  0xfe   :  { %v481_v21 = vadd.f32 %v1024_v34, %v480_v19  ;;  %v521_v22 = vadd.f32 %v1024_v34, %v520_v20  ;;  %v402_v23 = vpop.f32.mrf.mxu0  ;;  %v442_v24 = vpop.f32.mrf.mxu1 }
  0xff   :  { %v403_v25 = vadd.f32 %v1024_v34, %v402_v23  ;;  %v443_v26 = vadd.f32 %v1024_v34, %v442_v24 }
 0x100   :  { %v571_v27 = vpack.c.bf16 %v481_v21, %v481_v21  ;;  %v587_v28 = vpack.c.bf16 %v521_v22, %v521_v22 }
 0x101   :  { %v540_v29 = vpack.c.bf16 %v403_v25, %v403_v25  ;;  %v556_v30 = vpack.c.bf16 %v443_v26, %v443_v26 }
 0x102   :  { %636 = vst.msk [vmem:[%s1349_s3 + $0xb8] sm:$0xf] %vm589_vm1, %v571_v27 }
 0x103   :  { %652 = vst.msk [vmem:[%s1349_s3 + $0xf8] sm:$0xf] %vm589_vm1, %v587_v28 }
 0x104   :  { %605 = vst.msk [vmem:[%s1349_s3 + $0x3c] sm:$0xf] %vm589_vm1, %v540_v29 }
 0x105   :  { %621 = vst.msk [vmem:[%s1349_s3 + $0x7c] sm:$0xf] %vm589_vm1, %v556_v30  ;;  %v482_v31 = vpop.f32.mrf.mxu2  ;;  %v522_v32 = vpop.f32.mrf.mxu3 }
 0x106   :  { %v483_v33 = vadd.f32 %v1024_v34, %v482_v31  ;;  %v523_v35 = vadd.f32 %v1024_v34, %v522_v32 }
 0x108   :  { %v572_v36 = vpack.c.bf16 %v483_v33, %v483_v33  ;;  %v588_v37 = vpack.c.bf16 %v523_v35, %v523_v35 }
 0x10a   :  { %637 = vst.msk [vmem:[%s1349_s3 + $0xbc] sm:$0xf] %vm589_vm1, %v572_v36 }
 0x10b   :  { %653 = vst.msk [vmem:[%s1349_s3 + $0xfc] sm:$0xf] %vm589_vm1, %v588_v37 }

// kernel: forward.8
= control target key start
LH: loop header
LB: loop body
LE: loop exit
PB: predicated region body
PF: predicated region fallthrough
CT: control target
= control target key end

     0   :  { %vm259_vm0 = vcmask 261120   ;;  %vm589_vm1 = vcmask 519168   ;;  %s1346_s1 = inlined_call_operand.vmem [shape: bf16[32,64], index: 1, kind: input, shape index: {}]   ;;  %s1347_s0 = inlined_call_operand.vmem [shape: bf16[512,32], index: 0, kind: input, shape index: {}]   ;;  %s1348_s2 = inlined_call_operand.vmem [shape: f32[1,64], index: 2, kind: input, shape index: {}]   ;;  %s1349_s3 = inlined_call_operand.vmem [shape: bf16[512,64], index: 3, kind: output, shape index: {}]  }
   0x1   :  { %v859_v0 = vld [vmem:[%s1346_s1 + $0x8] sm:$0xff]  ;;  %v858_v1 = vld [vmem:[%s1346_s1] sm:$0xff]  ;;  %v828_v10 = vld [vmem:[%s1347_s0 + $0x10] sm:$0xff] }
   0x2   :  { %362 = vmatpush.bf16.msra.mxu0 %v859_v0  ;;  %860 = vmatpush.bf16.msra.mxu1 %v859_v0  ;;  %v826_v2 = vld [vmem:[%s1347_s0] sm:$0xff]  ;;  %v827_v6 = vld [vmem:[%s1347_s0 + $0x8] sm:$0xff]  ;;  %v836_v11 = vld [vmem:[%s1347_s0 + $0x50] sm:$0xff] }
   0x3   :  { %861 = vmatpush.bf16.msra.mxu2 %v859_v0  ;;  %862 = vmatpush.bf16.msra.mxu3 %v859_v0  ;;  %v834_v3 = vld [vmem:[%s1347_s0 + $0x40] sm:$0xff]  ;;  %v835_v7 = vld [vmem:[%s1347_s0 + $0x48] sm:$0xff]  ;;  %v844_v12 = vld [vmem:[%s1347_s0 + $0x90] sm:$0xff] }
   0x4   :  { %v842_v4 = vld [vmem:[%s1347_s0 + $0x80] sm:$0xff]  ;;  %v843_v8 = vld [vmem:[%s1347_s0 + $0x88] sm:$0xff]  ;;  %v852_v13 = vld [vmem:[%s1347_s0 + $0xd0] sm:$0xff] }
   0x5   :  { %v850_v5 = vld [vmem:[%s1347_s0 + $0xc0] sm:$0xff]  ;;  %v851_v9 = vld [vmem:[%s1347_s0 + $0xc8] sm:$0xff]  ;;  %v829_v14 = vld [vmem:[%s1347_s0 + $0x18] sm:$0xff] }
   0x6   :  { %363 = vmatpush.bf16.msra.mxu0 %v858_v1  ;;  %863 = vmatpush.bf16.msra.mxu1 %v858_v1  ;;  %v837_v15 = vld [vmem:[%s1347_s0 + $0x58] sm:$0xff]  ;;  %v830_v18 = vld [vmem:[%s1347_s0 + $0x20] sm:$0xff]  ;;  %v831_v22 = vld [vmem:[%s1347_s0 + $0x28] sm:$0xff] }
   0x7   :  { %864 = vmatpush.bf16.msra.mxu2 %v858_v1  ;;  %865 = vmatpush.bf16.msra.mxu3 %v858_v1  ;;  %v845_v16 = vld [vmem:[%s1347_s0 + $0x98] sm:$0xff]  ;;  %v838_v19 = vld [vmem:[%s1347_s0 + $0x60] sm:$0xff]  ;;  %v839_v23 = vld [vmem:[%s1347_s0 + $0x68] sm:$0xff] }
   0x8   :  { %v853_v17 = vld [vmem:[%s1347_s0 + $0xd8] sm:$0xff]  ;;  %v846_v20 = vld [vmem:[%s1347_s0 + $0xa0] sm:$0xff]  ;;  %v847_v24 = vld [vmem:[%s1347_s0 + $0xa8] sm:$0xff] }
   0x9   :  { %794 = vmatmul.msk.bf16.vlgmr.msra.gmra.mxu0 %vm259_vm0, %v826_v2  ;;  %802 = vmatmul.msk.bf16.vlgmr.msra.gmra.mxu1 %vm259_vm0, %v834_v3  ;;  %v854_v21 = vld [vmem:[%s1347_s0 + $0xe0] sm:$0xff]  ;;  %v855_v25 = vld [vmem:[%s1347_s0 + $0xe8] sm:$0xff]  ;;  %v832_v26 = vld [vmem:[%s1347_s0 + $0x30] sm:$0xff] }
   0xa   :  { %810 = vmatmul.msk.bf16.vlgmr.msra.gmra.mxu2 %vm259_vm0, %v842_v4  ;;  %818 = vmatmul.msk.bf16.vlgmr.msra.gmra.mxu3 %vm259_vm0, %v850_v5  ;;  %v840_v27 = vld [vmem:[%s1347_s0 + $0x70] sm:$0xff]  ;;  %v833_v30 = vld [vmem:[%s1347_s0 + $0x38] sm:$0xff]  ;;  %v1024_v34 = vld [vmem:[%s1348_s2] ss:$0 sm:$0xff] }
   0xb   :  { %v848_v28 = vld [vmem:[%s1347_s0 + $0xb0] sm:$0xff]  ;;  %v841_v31 = vld [vmem:[%s1347_s0 + $0x78] sm:$0xff] }
   0xc   :  { %v856_v29 = vld [vmem:[%s1347_s0 + $0xf0] sm:$0xff]  ;;  %v849_v32 = vld [vmem:[%s1347_s0 + $0xb8] sm:$0xff] }
   0xd   :  { %v857_v33 = vld [vmem:[%s1347_s0 + $0xf8] sm:$0xff] }
  0x19   :  { %795 = vmatmul.msk.bf16.gmra.mxu0 %vm259_vm0, %v827_v6  ;;  %803 = vmatmul.msk.bf16.gmra.mxu1 %vm259_vm0, %v835_v7 }
  0x1a   :  { %811 = vmatmul.msk.bf16.gmra.mxu2 %vm259_vm0, %v843_v8  ;;  %819 = vmatmul.msk.bf16.gmra.mxu3 %vm259_vm0, %v851_v9 }
  0x29   :  { %796 = vmatmul.msk.bf16.gmra.mxu0 %vm259_vm0, %v828_v10  ;;  %804 = vmatmul.msk.bf16.gmra.mxu1 %vm259_vm0, %v836_v11 }
  0x2a   :  { %812 = vmatmul.msk.bf16.gmra.mxu2 %vm259_vm0, %v844_v12  ;;  %820 = vmatmul.msk.bf16.gmra.mxu3 %vm259_vm0, %v852_v13 }
  0x39   :  { %797 = vmatmul.msk.bf16.gmra.mxu0 %vm259_vm0, %v829_v14  ;;  %805 = vmatmul.msk.bf16.gmra.mxu1 %vm259_vm0, %v837_v15 }
  0x3a   :  { %813 = vmatmul.msk.bf16.gmra.mxu2 %vm259_vm0, %v845_v16  ;;  %821 = vmatmul.msk.bf16.gmra.mxu3 %vm259_vm0, %v853_v17 }
  0x49   :  { %798 = vmatmul.msk.bf16.gmra.mxu0 %vm259_vm0, %v830_v18  ;;  %806 = vmatmul.msk.bf16.gmra.mxu1 %vm259_vm0, %v838_v19 }
  0x4a   :  { %814 = vmatmul.msk.bf16.gmra.mxu2 %vm259_vm0, %v846_v20  ;;  %822 = vmatmul.msk.bf16.gmra.mxu3 %vm259_vm0, %v854_v21 }
  0x59   :  { %799 = vmatmul.msk.bf16.gmra.mxu0 %vm259_vm0, %v831_v22  ;;  %807 = vmatmul.msk.bf16.gmra.mxu1 %vm259_vm0, %v839_v23 }
  0x5a   :  { %815 = vmatmul.msk.bf16.gmra.mxu2 %vm259_vm0, %v847_v24  ;;  %823 = vmatmul.msk.bf16.gmra.mxu3 %vm259_vm0, %v855_v25 }
  0x69   :  { %800 = vmatmul.msk.bf16.gmra.mxu0 %vm259_vm0, %v832_v26  ;;  %808 = vmatmul.msk.bf16.gmra.mxu1 %vm259_vm0, %v840_v27 }
  0x6a   :  { %816 = vmatmul.msk.bf16.gmra.mxu2 %vm259_vm0, %v848_v28  ;;  %824 = vmatmul.msk.bf16.gmra.mxu3 %vm259_vm0, %v856_v29 }
  0x79   :  { %801 = vmatmul.msk.bf16.gmra.mxu0 %vm259_vm0, %v833_v30  ;;  %809 = vmatmul.msk.bf16.gmra.mxu1 %vm259_vm0, %v841_v31 }
  0x7a   :  { %817 = vmatmul.msk.bf16.gmra.mxu2 %vm259_vm0, %v849_v32  ;;  %825 = vmatmul.msk.bf16.gmra.mxu3 %vm259_vm0, %v857_v33 }
  0x86   :  { %v365_v35 = vpop.f32.mrf.mxu0  ;;  %v405_v36 = vpop.f32.mrf.mxu1 }
  0x87   :  { %v366_v37 = vadd.f32 %v1024_v34, %v365_v35  ;;  %v406_v38 = vadd.f32 %v1024_v34, %v405_v36 }
  0x89   :  { %v525_v39 = vpack.c.bf16 %v366_v37, %v366_v37  ;;  %v541_v40 = vpack.c.bf16 %v406_v38, %v406_v38 }
  0x8b   :  { %590 = vst.msk [vmem:[%s1349_s3] sm:$0xf] %vm589_vm1, %v525_v39 }
  0x8c   :  { %606 = vst.msk [vmem:[%s1349_s3 + $0x40] sm:$0xf] %vm589_vm1, %v541_v40 }
  0x8d   :  { %v445_v41 = vpop.f32.mrf.mxu2  ;;  %v485_v42 = vpop.f32.mrf.mxu3 }
  0x8e   :  { %v446_v43 = vadd.f32 %v1024_v34, %v445_v41  ;;  %v486_v44 = vadd.f32 %v1024_v34, %v485_v42  ;;  %v367_v45 = vpop.f32.mrf.mxu0  ;;  %v407_v46 = vpop.f32.mrf.mxu1 }
  0x8f   :  { %v368_v47 = vadd.f32 %v1024_v34, %v367_v45  ;;  %v408_v48 = vadd.f32 %v1024_v34, %v407_v46 }
  0x90   :  { %v557_v49 = vpack.c.bf16 %v446_v43, %v446_v43  ;;  %v573_v50 = vpack.c.bf16 %v486_v44, %v486_v44 }
  0x91   :  { %v526_v51 = vpack.c.bf16 %v368_v47, %v368_v47  ;;  %v542_v52 = vpack.c.bf16 %v408_v48, %v408_v48 }
  0x92   :  { %622 = vst.msk [vmem:[%s1349_s3 + $0x80] sm:$0xf] %vm589_vm1, %v557_v49 }
  0x93   :  { %638 = vst.msk [vmem:[%s1349_s3 + $0xc0] sm:$0xf] %vm589_vm1, %v573_v50 }
  0x94   :  { %591 = vst.msk [vmem:[%s1349_s3 + $0x4] sm:$0xf] %vm589_vm1, %v526_v51 }
  0x95   :  { %607 = vst.msk [vmem:[%s1349_s3 + $0x44] sm:$0xf] %vm589_vm1, %v542_v52  ;;  %v447_v53 = vpop.f32.mrf.mxu2  ;;  %v487_v54 = vpop.f32.mrf.mxu3 }
  0x96   :  { %v448_v55 = vadd.f32 %v1024_v34, %v447_v53  ;;  %v488_v56 = vadd.f32 %v1024_v34, %v487_v54  ;;  %v370_v57 = vpop.f32.mrf.mxu0  ;;  %v410_v58 = vpop.f32.mrf.mxu1 }
  0x97   :  { %v371_v59 = vadd.f32 %v1024_v34, %v370_v57  ;;  %v411_v60 = vadd.f32 %v1024_v34, %v410_v58 }
  0x98   :  { %v558_v61 = vpack.c.bf16 %v448_v55, %v448_v55  ;;  %v574_v62 = vpack.c.bf16 %v488_v56, %v488_v56 }
  0x99   :  { %v527_v63 = vpack.c.bf16 %v371_v59, %v371_v59  ;;  %v543_v0 = vpack.c.bf16 %v411_v60, %v411_v60 }
  0x9a   :  { %623 = vst.msk [vmem:[%s1349_s3 + $0x84] sm:$0xf] %vm589_vm1, %v558_v61 }
  0x9b   :  { %639 = vst.msk [vmem:[%s1349_s3 + $0xc4] sm:$0xf] %vm589_vm1, %v574_v62 }
  0x9c   :  { %592 = vst.msk [vmem:[%s1349_s3 + $0x8] sm:$0xf] %vm589_vm1, %v527_v63 }
  0x9d   :  { %608 = vst.msk [vmem:[%s1349_s3 + $0x48] sm:$0xf] %vm589_vm1, %v543_v0  ;;  %v450_v1 = vpop.f32.mrf.mxu2  ;;  %v490_v2 = vpop.f32.mrf.mxu3 }
  0x9e   :  { %v451_v3 = vadd.f32 %v1024_v34, %v450_v1  ;;  %v491_v4 = vadd.f32 %v1024_v34, %v490_v2  ;;  %v372_v5 = vpop.f32.mrf.mxu0  ;;  %v412_v6 = vpop.f32.mrf.mxu1 }
  0x9f   :  { %v373_v7 = vadd.f32 %v1024_v34, %v372_v5  ;;  %v413_v8 = vadd.f32 %v1024_v34, %v412_v6 }
  0xa0   :  { %v559_v9 = vpack.c.bf16 %v451_v3, %v451_v3  ;;  %v575_v10 = vpack.c.bf16 %v491_v4, %v491_v4 }
  0xa1   :  { %v528_v11 = vpack.c.bf16 %v373_v7, %v373_v7  ;;  %v544_v12 = vpack.c.bf16 %v413_v8, %v413_v8 }
  0xa2   :  { %624 = vst.msk [vmem:[%s1349_s3 + $0x88] sm:$0xf] %vm589_vm1, %v559_v9 }
  0xa3   :  { %640 = vst.msk [vmem:[%s1349_s3 + $0xc8] sm:$0xf] %vm589_vm1, %v575_v10 }
  0xa4   :  { %593 = vst.msk [vmem:[%s1349_s3 + $0xc] sm:$0xf] %vm589_vm1, %v528_v11 }
  0xa5   :  { %609 = vst.msk [vmem:[%s1349_s3 + $0x4c] sm:$0xf] %vm589_vm1, %v544_v12  ;;  %v452_v13 = vpop.f32.mrf.mxu2  ;;  %v492_v14 = vpop.f32.mrf.mxu3 }
  0xa6   :  { %v453_v15 = vadd.f32 %v1024_v34, %v452_v13  ;;  %v493_v16 = vadd.f32 %v1024_v34, %v492_v14  ;;  %v375_v17 = vpop.f32.mrf.mxu0  ;;  %v415_v18 = vpop.f32.mrf.mxu1 }
  0xa7   :  { %v376_v19 = vadd.f32 %v1024_v34, %v375_v17  ;;  %v416_v20 = vadd.f32 %v1024_v34, %v415_v18 }
  0xa8   :  { %v560_v21 = vpack.c.bf16 %v453_v15, %v453_v15  ;;  %v576_v22 = vpack.c.bf16 %v493_v16, %v493_v16 }
  0xa9   :  { %v529_v23 = vpack.c.bf16 %v376_v19, %v376_v19  ;;  %v545_v24 = vpack.c.bf16 %v416_v20, %v416_v20 }
  0xaa   :  { %625 = vst.msk [vmem:[%s1349_s3 + $0x8c] sm:$0xf] %vm589_vm1, %v560_v21 }
  0xab   :  { %641 = vst.msk [vmem:[%s1349_s3 + $0xcc] sm:$0xf] %vm589_vm1, %v576_v22 }
  0xac   :  { %594 = vst.msk [vmem:[%s1349_s3 + $0x10] sm:$0xf] %vm589_vm1, %v529_v23 }
  0xad   :  { %610 = vst.msk [vmem:[%s1349_s3 + $0x50] sm:$0xf] %vm589_vm1, %v545_v24  ;;  %v455_v25 = vpop.f32.mrf.mxu2  ;;  %v495_v26 = vpop.f32.mrf.mxu3 }
  0xae   :  { %v456_v27 = vadd.f32 %v1024_v34, %v455_v25  ;;  %v496_v28 = vadd.f32 %v1024_v34, %v495_v26  ;;  %v377_v29 = vpop.f32.mrf.mxu0  ;;  %v417_v30 = vpop.f32.mrf.mxu1 }
  0xaf   :  { %v378_v31 = vadd.f32 %v1024_v34, %v377_v29  ;;  %v418_v32 = vadd.f32 %v1024_v34, %v417_v30 }
  0xb0   :  { %v561_v33 = vpack.c.bf16 %v456_v27, %v456_v27  ;;  %v577_v35 = vpack.c.bf16 %v496_v28, %v496_v28 }
  0xb1   :  { %v530_v36 = vpack.c.bf16 %v378_v31, %v378_v31  ;;  %v546_v37 = vpack.c.bf16 %v418_v32, %v418_v32 }
  0xb2   :  { %626 = vst.msk [vmem:[%s1349_s3 + $0x90] sm:$0xf] %vm589_vm1, %v561_v33 }
  0xb3   :  { %642 = vst.msk [vmem:[%s1349_s3 + $0xd0] sm:$0xf] %vm589_vm1, %v577_v35 }
  0xb4   :  { %595 = vst.msk [vmem:[%s1349_s3 + $0x14] sm:$0xf] %vm589_vm1, %v530_v36 }
  0xb5   :  { %611 = vst.msk [vmem:[%s1349_s3 + $0x54] sm:$0xf] %vm589_vm1, %v546_v37  ;;  %v457_v38 = vpop.f32.mrf.mxu2  ;;  %v497_v39 = vpop.f32.mrf.mxu3 }
  0xb6   :  { %v458_v40 = vadd.f32 %v1024_v34, %v457_v38  ;;  %v498_v41 = vadd.f32 %v1024_v34, %v497_v39  ;;  %v380_v42 = vpop.f32.mrf.mxu0  ;;  %v420_v43 = vpop.f32.mrf.mxu1 }
  0xb7   :  { %v381_v44 = vadd.f32 %v1024_v34, %v380_v42  ;;  %v421_v45 = vadd.f32 %v1024_v34, %v420_v43 }
  0xb8   :  { %v562_v46 = vpack.c.bf16 %v458_v40, %v458_v40  ;;  %v578_v47 = vpack.c.bf16 %v498_v41, %v498_v41 }
  0xb9   :  { %v531_v48 = vpack.c.bf16 %v381_v44, %v381_v44  ;;  %v547_v49 = vpack.c.bf16 %v421_v45, %v421_v45 }
  0xba   :  { %627 = vst.msk [vmem:[%s1349_s3 + $0x94] sm:$0xf] %vm589_vm1, %v562_v46 }
  0xbb   :  { %643 = vst.msk [vmem:[%s1349_s3 + $0xd4] sm:$0xf] %vm589_vm1, %v578_v47 }
  0xbc   :  { %596 = vst.msk [vmem:[%s1349_s3 + $0x18] sm:$0xf] %vm589_vm1, %v531_v48 }
  0xbd   :  { %612 = vst.msk [vmem:[%s1349_s3 + $0x58] sm:$0xf] %vm589_vm1, %v547_v49  ;;  %v460_v50 = vpop.f32.mrf.mxu2  ;;  %v500_v51 = vpop.f32.mrf.mxu3 }
  0xbe   :  { %v461_v52 = vadd.f32 %v1024_v34, %v460_v50  ;;  %v501_v53 = vadd.f32 %v1024_v34, %v500_v51  ;;  %v382_v54 = vpop.f32.mrf.mxu0  ;;  %v422_v55 = vpop.f32.mrf.mxu1 }
  0xbf   :  { %v383_v56 = vadd.f32 %v1024_v34, %v382_v54  ;;  %v423_v57 = vadd.f32 %v1024_v34, %v422_v55 }
  0xc0   :  { %v563_v58 = vpack.c.bf16 %v461_v52, %v461_v52  ;;  %v579_v59 = vpack.c.bf16 %v501_v53, %v501_v53 }
  0xc1   :  { %v532_v60 = vpack.c.bf16 %v383_v56, %v383_v56  ;;  %v548_v61 = vpack.c.bf16 %v423_v57, %v423_v57 }
  0xc2   :  { %628 = vst.msk [vmem:[%s1349_s3 + $0x98] sm:$0xf] %vm589_vm1, %v563_v58 }
  0xc3   :  { %644 = vst.msk [vmem:[%s1349_s3 + $0xd8] sm:$0xf] %vm589_vm1, %v579_v59 }
  0xc4   :  { %597 = vst.msk [vmem:[%s1349_s3 + $0x1c] sm:$0xf] %vm589_vm1, %v532_v60 }
  0xc5   :  { %613 = vst.msk [vmem:[%s1349_s3 + $0x5c] sm:$0xf] %vm589_vm1, %v548_v61  ;;  %v462_v62 = vpop.f32.mrf.mxu2  ;;  %v502_v63 = vpop.f32.mrf.mxu3 }
  0xc6   :  { %v463_v0 = vadd.f32 %v1024_v34, %v462_v62  ;;  %v503_v1 = vadd.f32 %v1024_v34, %v502_v63  ;;  %v385_v2 = vpop.f32.mrf.mxu0  ;;  %v425_v3 = vpop.f32.mrf.mxu1 }
  0xc7   :  { %v386_v4 = vadd.f32 %v1024_v34, %v385_v2  ;;  %v426_v5 = vadd.f32 %v1024_v34, %v425_v3 }
  0xc8   :  { %v564_v6 = vpack.c.bf16 %v463_v0, %v463_v0  ;;  %v580_v7 = vpack.c.bf16 %v503_v1, %v503_v1 }
  0xc9   :  { %v533_v8 = vpack.c.bf16 %v386_v4, %v386_v4  ;;  %v549_v9 = vpack.c.bf16 %v426_v5, %v426_v5 }
  0xca   :  { %629 = vst.msk [vmem:[%s1349_s3 + $0x9c] sm:$0xf] %vm589_vm1, %v564_v6 }
  0xcb   :  { %645 = vst.msk [vmem:[%s1349_s3 + $0xdc] sm:$0xf] %vm589_vm1, %v580_v7 }
  0xcc   :  { %598 = vst.msk [vmem:[%s1349_s3 + $0x20] sm:$0xf] %vm589_vm1, %v533_v8 }
  0xcd   :  { %614 = vst.msk [vmem:[%s1349_s3 + $0x60] sm:$0xf] %vm589_vm1, %v549_v9  ;;  %v465_v10 = vpop.f32.mrf.mxu2  ;;  %v505_v11 = vpop.f32.mrf.mxu3 }
  0xce   :  { %v466_v12 = vadd.f32 %v1024_v34, %v465_v10  ;;  %v506_v13 = vadd.f32 %v1024_v34, %v505_v11  ;;  %v387_v14 = vpop.f32.mrf.mxu0  ;;  %v427_v15 = vpop.f32.mrf.mxu1 }
  0xcf   :  { %v388_v16 = vadd.f32 %v1024_v34, %v387_v14  ;;  %v428_v17 = vadd.f32 %v1024_v34, %v427_v15 }
  0xd0   :  { %v565_v18 = vpack.c.bf16 %v466_v12, %v466_v12  ;;  %v581_v19 = vpack.c.bf16 %v506_v13, %v506_v13 }
  0xd1   :  { %v534_v20 = vpack.c.bf16 %v388_v16, %v388_v16  ;;  %v550_v21 = vpack.c.bf16 %v428_v17, %v428_v17 }
  0xd2   :  { %630 = vst.msk [vmem:[%s1349_s3 + $0xa0] sm:$0xf] %vm589_vm1, %v565_v18 }
  0xd3   :  { %646 = vst.msk [vmem:[%s1349_s3 + $0xe0] sm:$0xf] %vm589_vm1, %v581_v19 }
  0xd4   :  { %599 = vst.msk [vmem:[%s1349_s3 + $0x24] sm:$0xf] %vm589_vm1, %v534_v20 }
  0xd5   :  { %615 = vst.msk [vmem:[%s1349_s3 + $0x64] sm:$0xf] %vm589_vm1, %v550_v21  ;;  %v467_v22 = vpop.f32.mrf.mxu2  ;;  %v507_v23 = vpop.f32.mrf.mxu3 }
  0xd6   :  { %v468_v24 = vadd.f32 %v1024_v34, %v467_v22  ;;  %v508_v25 = vadd.f32 %v1024_v34, %v507_v23  ;;  %v390_v26 = vpop.f32.mrf.mxu0  ;;  %v430_v27 = vpop.f32.mrf.mxu1 }
  0xd7   :  { %v391_v28 = vadd.f32 %v1024_v34, %v390_v26  ;;  %v431_v29 = vadd.f32 %v1024_v34, %v430_v27 }
  0xd8   :  { %v566_v30 = vpack.c.bf16 %v468_v24, %v468_v24  ;;  %v582_v31 = vpack.c.bf16 %v508_v25, %v508_v25 }
  0xd9   :  { %v535_v32 = vpack.c.bf16 %v391_v28, %v391_v28  ;;  %v551_v33 = vpack.c.bf16 %v431_v29, %v431_v29 }
  0xda   :  { %631 = vst.msk [vmem:[%s1349_s3 + $0xa4] sm:$0xf] %vm589_vm1, %v566_v30 }
  0xdb   :  { %647 = vst.msk [vmem:[%s1349_s3 + $0xe4] sm:$0xf] %vm589_vm1, %v582_v31 }
  0xdc   :  { %600 = vst.msk [vmem:[%s1349_s3 + $0x28] sm:$0xf] %vm589_vm1, %v535_v32 }
  0xdd   :  { %616 = vst.msk [vmem:[%s1349_s3 + $0x68] sm:$0xf] %vm589_vm1, %v551_v33  ;;  %v470_v35 = vpop.f32.mrf.mxu2  ;;  %v510_v36 = vpop.f32.mrf.mxu3 }
  0xde   :  { %v471_v37 = vadd.f32 %v1024_v34, %v470_v35  ;;  %v511_v38 = vadd.f32 %v1024_v34, %v510_v36  ;;  %v392_v39 = vpop.f32.mrf.mxu0  ;;  %v432_v40 = vpop.f32.mrf.mxu1 }
  0xdf   :  { %v393_v41 = vadd.f32 %v1024_v34, %v392_v39  ;;  %v433_v42 = vadd.f32 %v1024_v34, %v432_v40 }
  0xe0   :  { %v567_v43 = vpack.c.bf16 %v471_v37, %v471_v37  ;;  %v583_v44 = vpack.c.bf16 %v511_v38, %v511_v38 }
  0xe1   :  { %v536_v45 = vpack.c.bf16 %v393_v41, %v393_v41  ;;  %v552_v46 = vpack.c.bf16 %v433_v42, %v433_v42 }
  0xe2   :  { %632 = vst.msk [vmem:[%s1349_s3 + $0xa8] sm:$0xf] %vm589_vm1, %v567_v43 }
  0xe3   :  { %648 = vst.msk [vmem:[%s1349_s3 + $0xe8] sm:$0xf] %vm589_vm1, %v583_v44 }
  0xe4   :  { %601 = vst.msk [vmem:[%s1349_s3 + $0x2c] sm:$0xf] %vm589_vm1, %v536_v45 }
  0xe5   :  { %617 = vst.msk [vmem:[%s1349_s3 + $0x6c] sm:$0xf] %vm589_vm1, %v552_v46  ;;  %v472_v47 = vpop.f32.mrf.mxu2  ;;  %v512_v48 = vpop.f32.mrf.mxu3 }
  0xe6   :  { %v473_v49 = vadd.f32 %v1024_v34, %v472_v47  ;;  %v513_v50 = vadd.f32 %v1024_v34, %v512_v48  ;;  %v395_v51 = vpop.f32.mrf.mxu0  ;;  %v435_v52 = vpop.f32.mrf.mxu1 }
  0xe7   :  { %v396_v53 = vadd.f32 %v1024_v34, %v395_v51  ;;  %v436_v54 = vadd.f32 %v1024_v34, %v435_v52 }
  0xe8   :  { %v568_v55 = vpack.c.bf16 %v473_v49, %v473_v49  ;;  %v584_v56 = vpack.c.bf16 %v513_v50, %v513_v50 }
  0xe9   :  { %v537_v57 = vpack.c.bf16 %v396_v53, %v396_v53  ;;  %v553_v58 = vpack.c.bf16 %v436_v54, %v436_v54 }
  0xea   :  { %633 = vst.msk [vmem:[%s1349_s3 + $0xac] sm:$0xf] %vm589_vm1, %v568_v55 }
  0xeb   :  { %649 = vst.msk [vmem:[%s1349_s3 + $0xec] sm:$0xf] %vm589_vm1, %v584_v56 }
  0xec   :  { %602 = vst.msk [vmem:[%s1349_s3 + $0x30] sm:$0xf] %vm589_vm1, %v537_v57 }
  0xed   :  { %618 = vst.msk [vmem:[%s1349_s3 + $0x70] sm:$0xf] %vm589_vm1, %v553_v58  ;;  %v475_v59 = vpop.f32.mrf.mxu2  ;;  %v515_v60 = vpop.f32.mrf.mxu3 }
  0xee   :  { %v476_v61 = vadd.f32 %v1024_v34, %v475_v59  ;;  %v516_v62 = vadd.f32 %v1024_v34, %v515_v60  ;;  %v397_v63 = vpop.f32.mrf.mxu0  ;;  %v437_v0 = vpop.f32.mrf.mxu1 }
  0xef   :  { %v398_v1 = vadd.f32 %v1024_v34, %v397_v63  ;;  %v438_v2 = vadd.f32 %v1024_v34, %v437_v0 }
  0xf0   :  { %v569_v3 = vpack.c.bf16 %v476_v61, %v476_v61  ;;  %v585_v4 = vpack.c.bf16 %v516_v62, %v516_v62 }
  0xf1   :  { %v538_v5 = vpack.c.bf16 %v398_v1, %v398_v1  ;;  %v554_v6 = vpack.c.bf16 %v438_v2, %v438_v2 }
  0xf2   :  { %634 = vst.msk [vmem:[%s1349_s3 + $0xb0] sm:$0xf] %vm589_vm1, %v569_v3 }
  0xf3   :  { %650 = vst.msk [vmem:[%s1349_s3 + $0xf0] sm:$0xf] %vm589_vm1, %v585_v4 }
  0xf4   :  { %603 = vst.msk [vmem:[%s1349_s3 + $0x34] sm:$0xf] %vm589_vm1, %v538_v5 }
  0xf5   :  { %619 = vst.msk [vmem:[%s1349_s3 + $0x74] sm:$0xf] %vm589_vm1, %v554_v6  ;;  %v477_v7 = vpop.f32.mrf.mxu2  ;;  %v517_v8 = vpop.f32.mrf.mxu3 }
  0xf6   :  { %v478_v9 = vadd.f32 %v1024_v34, %v477_v7  ;;  %v518_v10 = vadd.f32 %v1024_v34, %v517_v8  ;;  %v400_v11 = vpop.f32.mrf.mxu0  ;;  %v440_v12 = vpop.f32.mrf.mxu1 }
  0xf7   :  { %v401_v13 = vadd.f32 %v1024_v34, %v400_v11  ;;  %v441_v14 = vadd.f32 %v1024_v34, %v440_v12 }
  0xf8   :  { %v570_v15 = vpack.c.bf16 %v478_v9, %v478_v9  ;;  %v586_v16 = vpack.c.bf16 %v518_v10, %v518_v10 }
  0xf9   :  { %v539_v17 = vpack.c.bf16 %v401_v13, %v401_v13  ;;  %v555_v18 = vpack.c.bf16 %v441_v14, %v441_v14 }
  0xfa   :  { %635 = vst.msk [vmem:[%s1349_s3 + $0xb4] sm:$0xf] %vm589_vm1, %v570_v15 }
  0xfb   :  { %651 = vst.msk [vmem:[%s1349_s3 + $0xf4] sm:$0xf] %vm589_vm1, %v586_v16 }
  0xfc   :  { %604 = vst.msk [vmem:[%s1349_s3 + $0x38] sm:$0xf] %vm589_vm1, %v539_v17 }
  0xfd   :  { %620 = vst.msk [vmem:[%s1349_s3 + $0x78] sm:$0xf] %vm589_vm1, %v555_v18  ;;  %v480_v19 = vpop.f32.mrf.mxu2  ;;  %v520_v20 = vpop.f32.mrf.mxu3 }
  0xfe   :  { %v481_v21 = vadd.f32 %v1024_v34, %v480_v19  ;;  %v521_v22 = vadd.f32 %v1024_v34, %v520_v20  ;;  %v402_v23 = vpop.f32.mrf.mxu0  ;;  %v442_v24 = vpop.f32.mrf.mxu1 }
  0xff   :  { %v403_v25 = vadd.f32 %v1024_v34, %v402_v23  ;;  %v443_v26 = vadd.f32 %v1024_v34, %v442_v24 }
 0x100   :  { %v571_v27 = vpack.c.bf16 %v481_v21, %v481_v21  ;;  %v587_v28 = vpack.c.bf16 %v521_v22, %v521_v22 }
 0x101   :  { %v540_v29 = vpack.c.bf16 %v403_v25, %v403_v25  ;;  %v556_v30 = vpack.c.bf16 %v443_v26, %v443_v26 }
 0x102   :  { %636 = vst.msk [vmem:[%s1349_s3 + $0xb8] sm:$0xf] %vm589_vm1, %v571_v27 }
 0x103   :  { %652 = vst.msk [vmem:[%s1349_s3 + $0xf8] sm:$0xf] %vm589_vm1, %v587_v28 }
 0x104   :  { %605 = vst.msk [vmem:[%s1349_s3 + $0x3c] sm:$0xf] %vm589_vm1, %v540_v29 }
 0x105   :  { %621 = vst.msk [vmem:[%s1349_s3 + $0x7c] sm:$0xf] %vm589_vm1, %v556_v30  ;;  %v482_v31 = vpop.f32.mrf.mxu2  ;;  %v522_v32 = vpop.f32.mrf.mxu3 }
 0x106   :  { %v483_v33 = vadd.f32 %v1024_v34, %v482_v31  ;;  %v523_v35 = vadd.f32 %v1024_v34, %v522_v32 }
 0x108   :  { %v572_v36 = vpack.c.bf16 %v483_v33, %v483_v33  ;;  %v588_v37 = vpack.c.bf16 %v523_v35, %v523_v35 }
 0x10a   :  { %637 = vst.msk [vmem:[%s1349_s3 + $0xbc] sm:$0xf] %vm589_vm1, %v572_v36 }
 0x10b   :  { %653 = vst.msk [vmem:[%s1349_s3 + $0xfc] sm:$0xf] %vm589_vm1, %v588_v37 }

// kernel: forward.12
= control target key start
LH: loop header
LB: loop body
LE: loop exit
PB: predicated region body
PF: predicated region fallthrough
CT: control target
= control target key end

     0   :  { %vm107_vm0 = vcmask 523264   ;;  %vm197_vm1 = vcmask 519168   ;;  %s430_s1 = inlined_call_operand.vmem [shape: bf16[64,64], index: 1, kind: input, shape index: {}]   ;;  %s431_s2 = inlined_call_operand.vmem [shape: f32[1,64], index: 2, kind: input, shape index: {}]   ;;  %s432_s0 = inlined_call_operand.vmem [shape: bf16[128,64], index: 0, kind: input, shape index: {}]   ;;  %s433_s3 = inlined_call_operand.vmem [shape: bf16[128,64], index: 3, kind: output, shape index: {}]  }
   0x1   :  { %v285_v0 = vld [vmem:[%s430_s1 + $0x18] sm:$0xff]  ;;  %v284_v1 = vld [vmem:[%s430_s1 + $0x10] sm:$0xff]  ;;  %v283_v2 = vld [vmem:[%s430_s1 + $0x8] sm:$0xff] }
   0x2   :  { %136 = vmatpush.bf16.msra.mxu0 %v285_v0  ;;  %286 = vmatpush.bf16.msra.mxu1 %v285_v0  ;;  %v282_v3 = vld [vmem:[%s430_s1] sm:$0xff]  ;;  %v276_v5 = vld [vmem:[%s432_s0 + $0x10] sm:$0xff]  ;;  %v275_v8 = vld [vmem:[%s432_s0 + $0x8] sm:$0xff] }
   0x3   :  { %287 = vmatpush.bf16.msra.mxu2 %v285_v0  ;;  %288 = vmatpush.bf16.msra.mxu3 %v285_v0  ;;  %v274_v4 = vld [vmem:[%s432_s0] sm:$0xff]  ;;  %v280_v7 = vld [vmem:[%s432_s0 + $0x30] sm:$0xff]  ;;  %v277_v9 = vld [vmem:[%s432_s0 + $0x18] sm:$0xff] }
   0x4   :  { %v278_v6 = vld [vmem:[%s432_s0 + $0x20] sm:$0xff]  ;;  %v279_v10 = vld [vmem:[%s432_s0 + $0x28] sm:$0xff]  ;;  %v281_v11 = vld [vmem:[%s432_s0 + $0x38] sm:$0xff] }
   0x5   :  { %v298_v12 = vld [vmem:[%s431_s2] ss:$0 sm:$0xff] }
   0x6   :  { %137 = vmatpush.bf16.msra.mxu0 %v284_v1  ;;  %289 = vmatpush.bf16.msra.mxu1 %v284_v1 }
   0x7   :  { %290 = vmatpush.bf16.msra.mxu2 %v284_v1  ;;  %291 = vmatpush.bf16.msra.mxu3 %v284_v1 }
   0xa   :  { %138 = vmatpush.bf16.msra.mxu0 %v283_v2  ;;  %292 = vmatpush.bf16.msra.mxu1 %v283_v2 }
   0xb   :  { %293 = vmatpush.bf16.msra.mxu2 %v283_v2  ;;  %294 = vmatpush.bf16.msra.mxu3 %v283_v2 }
   0xe   :  { %139 = vmatpush.bf16.msra.mxu0 %v282_v3  ;;  %295 = vmatpush.bf16.msra.mxu1 %v282_v3 }
   0xf   :  { %296 = vmatpush.bf16.msra.mxu2 %v282_v3  ;;  %297 = vmatpush.bf16.msra.mxu3 %v282_v3 }
  0x11   :  { %266 = vmatmul.msk.bf16.vlgmr.msra.gmra.mxu0 %vm107_vm0, %v274_v4  ;;  %268 = vmatmul.msk.bf16.vlgmr.msra.gmra.mxu1 %vm107_vm0, %v276_v5 }
  0x12   :  { %270 = vmatmul.msk.bf16.vlgmr.msra.gmra.mxu2 %vm107_vm0, %v278_v6  ;;  %272 = vmatmul.msk.bf16.vlgmr.msra.gmra.mxu3 %vm107_vm0, %v280_v7 }
  0x21   :  { %267 = vmatmul.msk.bf16.gmra.mxu0 %vm107_vm0, %v275_v8  ;;  %269 = vmatmul.msk.bf16.gmra.mxu1 %vm107_vm0, %v277_v9 }
  0x22   :  { %271 = vmatmul.msk.bf16.gmra.mxu2 %vm107_vm0, %v279_v10  ;;  %273 = vmatmul.msk.bf16.gmra.mxu3 %vm107_vm0, %v281_v11 }
  0x8e   :  { %v141_v13 = vpop.f32.mrf.mxu0  ;;  %v151_v14 = vpop.f32.mrf.mxu1 }
  0x8f   :  { %v142_v15 = vadd.f32 %v298_v12, %v141_v13  ;;  %v152_v16 = vadd.f32 %v298_v12, %v151_v14 }
  0x91   :  { %v181_v17 = vpack.c.bf16 %v142_v15, %v142_v15  ;;  %v185_v18 = vpack.c.bf16 %v152_v16, %v152_v16 }
  0x93   :  { %198 = vst.msk [vmem:[%s433_s3] sm:$0xf] %vm197_vm1, %v181_v17 }
  0x94   :  { %202 = vst.msk [vmem:[%s433_s3 + $0x10] sm:$0xf] %vm197_vm1, %v185_v18 }
  0x95   :  { %v161_v19 = vpop.f32.mrf.mxu2  ;;  %v171_v20 = vpop.f32.mrf.mxu3 }
  0x96   :  { %v162_v21 = vadd.f32 %v298_v12, %v161_v19  ;;  %v172_v22 = vadd.f32 %v298_v12, %v171_v20  ;;  %v143_v23 = vpop.f32.mrf.mxu0  ;;  %v153_v24 = vpop.f32.mrf.mxu1 }
  0x97   :  { %v144_v25 = vadd.f32 %v298_v12, %v143_v23  ;;  %v154_v26 = vadd.f32 %v298_v12, %v153_v24 }
  0x98   :  { %v189_v27 = vpack.c.bf16 %v162_v21, %v162_v21  ;;  %v193_v28 = vpack.c.bf16 %v172_v22, %v172_v22 }
  0x99   :  { %v182_v29 = vpack.c.bf16 %v144_v25, %v144_v25  ;;  %v186_v30 = vpack.c.bf16 %v154_v26, %v154_v26 }
  0x9a   :  { %206 = vst.msk [vmem:[%s433_s3 + $0x20] sm:$0xf] %vm197_vm1, %v189_v27 }
  0x9b   :  { %210 = vst.msk [vmem:[%s433_s3 + $0x30] sm:$0xf] %vm197_vm1, %v193_v28 }
  0x9c   :  { %199 = vst.msk [vmem:[%s433_s3 + $0x4] sm:$0xf] %vm197_vm1, %v182_v29 }
  0x9d   :  { %203 = vst.msk [vmem:[%s433_s3 + $0x14] sm:$0xf] %vm197_vm1, %v186_v30  ;;  %v163_v31 = vpop.f32.mrf.mxu2  ;;  %v173_v32 = vpop.f32.mrf.mxu3 }
  0x9e   :  { %v164_v33 = vadd.f32 %v298_v12, %v163_v31  ;;  %v174_v34 = vadd.f32 %v298_v12, %v173_v32  ;;  %v146_v35 = vpop.f32.mrf.mxu0  ;;  %v156_v36 = vpop.f32.mrf.mxu1 }
  0x9f   :  { %v147_v37 = vadd.f32 %v298_v12, %v146_v35  ;;  %v157_v38 = vadd.f32 %v298_v12, %v156_v36 }
  0xa0   :  { %v190_v39 = vpack.c.bf16 %v164_v33, %v164_v33  ;;  %v194_v40 = vpack.c.bf16 %v174_v34, %v174_v34 }
  0xa1   :  { %v183_v41 = vpack.c.bf16 %v147_v37, %v147_v37  ;;  %v187_v42 = vpack.c.bf16 %v157_v38, %v157_v38 }
  0xa2   :  { %207 = vst.msk [vmem:[%s433_s3 + $0x24] sm:$0xf] %vm197_vm1, %v190_v39 }
  0xa3   :  { %211 = vst.msk [vmem:[%s433_s3 + $0x34] sm:$0xf] %vm197_vm1, %v194_v40 }
  0xa4   :  { %200 = vst.msk [vmem:[%s433_s3 + $0x8] sm:$0xf] %vm197_vm1, %v183_v41 }
  0xa5   :  { %204 = vst.msk [vmem:[%s433_s3 + $0x18] sm:$0xf] %vm197_vm1, %v187_v42  ;;  %v166_v43 = vpop.f32.mrf.mxu2  ;;  %v176_v44 = vpop.f32.mrf.mxu3 }
  0xa6   :  { %v167_v45 = vadd.f32 %v298_v12, %v166_v43  ;;  %v177_v46 = vadd.f32 %v298_v12, %v176_v44  ;;  %v148_v47 = vpop.f32.mrf.mxu0  ;;  %v158_v48 = vpop.f32.mrf.mxu1 }
  0xa7   :  { %v149_v49 = vadd.f32 %v298_v12, %v148_v47  ;;  %v159_v50 = vadd.f32 %v298_v12, %v158_v48 }
  0xa8   :  { %v191_v51 = vpack.c.bf16 %v167_v45, %v167_v45  ;;  %v195_v52 = vpack.c.bf16 %v177_v46, %v177_v46 }
  0xa9   :  { %v184_v53 = vpack.c.bf16 %v149_v49, %v149_v49  ;;  %v188_v54 = vpack.c.bf16 %v159_v50, %v159_v50 }
  0xaa   :  { %208 = vst.msk [vmem:[%s433_s3 + $0x28] sm:$0xf] %vm197_vm1, %v191_v51 }
  0xab   :  { %212 = vst.msk [vmem:[%s433_s3 + $0x38] sm:$0xf] %vm197_vm1, %v195_v52 }
  0xac   :  { %201 = vst.msk [vmem:[%s433_s3 + $0xc] sm:$0xf] %vm197_vm1, %v184_v53 }
  0xad   :  { %205 = vst.msk [vmem:[%s433_s3 + $0x1c] sm:$0xf] %vm197_vm1, %v188_v54  ;;  %v168_v55 = vpop.f32.mrf.mxu2  ;;  %v178_v56 = vpop.f32.mrf.mxu3 }
  0xae   :  { %v169_v57 = vadd.f32 %v298_v12, %v168_v55  ;;  %v179_v58 = vadd.f32 %v298_v12, %v178_v56 }
  0xb0   :  { %v192_v59 = vpack.c.bf16 %v169_v57, %v169_v57  ;;  %v196_v60 = vpack.c.bf16 %v179_v58, %v179_v58 }
  0xb2   :  { %209 = vst.msk [vmem:[%s433_s3 + $0x2c] sm:$0xf] %vm197_vm1, %v192_v59 }
  0xb3   :  { %213 = vst.msk [vmem:[%s433_s3 + $0x3c] sm:$0xf] %vm197_vm1, %v196_v60 }

// kernel: forward.11
= control target key start
LH: loop header
LB: loop body
LE: loop exit
PB: predicated region body
PF: predicated region fallthrough
CT: control target
= control target key end

     0   :  { %vm265_vm0 = vcmask 261120   ;;  %vm919_vm1 = vcmask 519168   ;;  %s2015_s1 = inlined_call_operand.vmem [shape: bf16[32,64], index: 1, kind: input, shape index: {}]   ;;  %s2016_s0 = inlined_call_operand.vmem [shape: bf16[512,32], index: 0, kind: input, shape index: {}]   ;;  %s2017_s2 = inlined_call_operand.vmem [shape: f32[1,64], index: 2, kind: input, shape index: {}]   ;;  %s2018_s3 = inlined_call_operand.vmem [shape: f32[1,64], index: 3, kind: input, shape index: {}]   ;;  %s2019_s4 = inlined_call_operand.vmem [shape: bf16[512,64], index: 4, kind: input, shape index: {}]   ;;  %s2020_s5 = inlined_call_operand.vmem [shape: bf16[512,64], index: 5, kind: output, shape index: {}]  }
   0x1   :  { %v1189_v0 = vld [vmem:[%s2015_s1 + $0x8] sm:$0xff]  ;;  %v1188_v1 = vld [vmem:[%s2015_s1] sm:$0xff]  ;;  %v1158_v10 = vld [vmem:[%s2016_s0 + $0x10] sm:$0xff] }
   0x2   :  { %368 = vmatpush.bf16.msra.mxu0 %v1189_v0  ;;  %1349 = vmatpush.bf16.msra.mxu1 %v1189_v0  ;;  %v1156_v2 = vld [vmem:[%s2016_s0] sm:$0xff]  ;;  %v1157_v6 = vld [vmem:[%s2016_s0 + $0x8] sm:$0xff]  ;;  %v1166_v11 = vld [vmem:[%s2016_s0 + $0x50] sm:$0xff] }
   0x3   :  { %1350 = vmatpush.bf16.msra.mxu2 %v1189_v0  ;;  %1351 = vmatpush.bf16.msra.mxu3 %v1189_v0  ;;  %v1164_v3 = vld [vmem:[%s2016_s0 + $0x40] sm:$0xff]  ;;  %v1165_v7 = vld [vmem:[%s2016_s0 + $0x48] sm:$0xff]  ;;  %v1174_v12 = vld [vmem:[%s2016_s0 + $0x90] sm:$0xff] }
   0x4   :  { %v1172_v4 = vld [vmem:[%s2016_s0 + $0x80] sm:$0xff]  ;;  %v1173_v8 = vld [vmem:[%s2016_s0 + $0x88] sm:$0xff]  ;;  %v1182_v13 = vld [vmem:[%s2016_s0 + $0xd0] sm:$0xff] }
   0x5   :  { %v1180_v5 = vld [vmem:[%s2016_s0 + $0xc0] sm:$0xff]  ;;  %v1181_v9 = vld [vmem:[%s2016_s0 + $0xc8] sm:$0xff]  ;;  %v1159_v14 = vld [vmem:[%s2016_s0 + $0x18] sm:$0xff] }
   0x6   :  { %369 = vmatpush.bf16.msra.mxu0 %v1188_v1  ;;  %1352 = vmatpush.bf16.msra.mxu1 %v1188_v1  ;;  %v1167_v15 = vld [vmem:[%s2016_s0 + $0x58] sm:$0xff]  ;;  %v1160_v18 = vld [vmem:[%s2016_s0 + $0x20] sm:$0xff]  ;;  %v1161_v22 = vld [vmem:[%s2016_s0 + $0x28] sm:$0xff] }
   0x7   :  { %1353 = vmatpush.bf16.msra.mxu2 %v1188_v1  ;;  %1354 = vmatpush.bf16.msra.mxu3 %v1188_v1  ;;  %v1175_v16 = vld [vmem:[%s2016_s0 + $0x98] sm:$0xff]  ;;  %v1168_v19 = vld [vmem:[%s2016_s0 + $0x60] sm:$0xff]  ;;  %v1169_v23 = vld [vmem:[%s2016_s0 + $0x68] sm:$0xff] }
   0x8   :  { %v1183_v17 = vld [vmem:[%s2016_s0 + $0xd8] sm:$0xff]  ;;  %v1176_v20 = vld [vmem:[%s2016_s0 + $0xa0] sm:$0xff]  ;;  %v1177_v24 = vld [vmem:[%s2016_s0 + $0xa8] sm:$0xff] }
   0x9   :  { %1124 = vmatmul.msk.bf16.vlgmr.msra.gmra.mxu0 %vm265_vm0, %v1156_v2  ;;  %1132 = vmatmul.msk.bf16.vlgmr.msra.gmra.mxu1 %vm265_vm0, %v1164_v3  ;;  %v1184_v21 = vld [vmem:[%s2016_s0 + $0xe0] sm:$0xff]  ;;  %v1185_v25 = vld [vmem:[%s2016_s0 + $0xe8] sm:$0xff]  ;;  %v1162_v26 = vld [vmem:[%s2016_s0 + $0x30] sm:$0xff] }
   0xa   :  { %1140 = vmatmul.msk.bf16.vlgmr.msra.gmra.mxu2 %vm265_vm0, %v1172_v4  ;;  %1148 = vmatmul.msk.bf16.vlgmr.msra.gmra.mxu3 %vm265_vm0, %v1180_v5  ;;  %v1170_v27 = vld [vmem:[%s2016_s0 + $0x70] sm:$0xff]  ;;  %v1163_v30 = vld [vmem:[%s2016_s0 + $0x38] sm:$0xff]  ;;  %v1191_v34 = vld [vmem:[%s2019_s4] sm:$0xff]  }
   0xb   :  { %v1178_v28 = vld [vmem:[%s2016_s0 + $0xb0] sm:$0xff]  ;;  %v1171_v31 = vld [vmem:[%s2016_s0 + $0x78] sm:$0xff]  ;;  %v1325_v35 = vld [vmem:[%s2019_s4 + $0x40] sm:$0xff]   ;;  %v1192_v36 = vunpack.c.l.bf16 %v1191_v34  ;;  %v1193_v52 = vunpack.c.h.bf16 %v1191_v34 }
   0xc   :  { %v1186_v29 = vld [vmem:[%s2016_s0 + $0xf0] sm:$0xff]  ;;  %v1179_v32 = vld [vmem:[%s2016_s0 + $0xb8] sm:$0xff]  ;;  %v1532_v37 = vld [vmem:[%s2018_s3] ss:$0 sm:$0xff]  ;;  %v1224_v38 = vunpack.c.l.bf16 %v1325_v35  ;;  %v1225_v53 = vunpack.c.h.bf16 %v1325_v35 }
   0xd   :  { %v1187_v33 = vld [vmem:[%s2016_s0 + $0xf8] sm:$0xff]  ;;  %v1537_v39 = vld [vmem:[%s2017_s2] ss:$0 sm:$0xff]  ;;  %v663_v40 = vmul.f32 %v1532_v37, %v1192_v36  ;;  %v664_v62 = vmul.f32 %v1532_v37, %v1193_v52  ;;  %v1318_v4 = vld [vmem:[%s2019_s4 + $0x8] sm:$0xff]  }
   0xe   :  { %v679_v41 = vmul.f32 %v1532_v37, %v1224_v38  ;;  %v1333_v42 = vld [vmem:[%s2019_s4 + $0x80] sm:$0xff]   ;;  %v680_v63 = vmul.f32 %v1532_v37, %v1225_v53  ;;  %v1326_v5 = vld [vmem:[%s2019_s4 + $0x48] sm:$0xff]  }
   0xf   :  { %v1341_v43 = vld [vmem:[%s2019_s4 + $0xc0] sm:$0xff]   ;;  %v1256_v48 = vunpack.c.l.bf16 %v1333_v42 }
  0x10   :  { %v1288_v49 = vunpack.c.l.bf16 %v1341_v43 }
  0x11   :  { %v695_v56 = vmul.f32 %v1532_v37, %v1256_v48 }
  0x12   :  { %v711_v57 = vmul.f32 %v1532_v37, %v1288_v49 }
  0x19   :  { %1125 = vmatmul.msk.bf16.gmra.mxu0 %vm265_vm0, %v1157_v6  ;;  %1133 = vmatmul.msk.bf16.gmra.mxu1 %vm265_vm0, %v1165_v7 }
  0x1a   :  { %1141 = vmatmul.msk.bf16.gmra.mxu2 %vm265_vm0, %v1173_v8  ;;  %1149 = vmatmul.msk.bf16.gmra.mxu3 %vm265_vm0, %v1181_v9 }
  0x29   :  { %1126 = vmatmul.msk.bf16.gmra.mxu0 %vm265_vm0, %v1158_v10  ;;  %1134 = vmatmul.msk.bf16.gmra.mxu1 %vm265_vm0, %v1166_v11  ;;  %v1257_v10 = vunpack.c.h.bf16 %v1333_v42  ;;  %v1289_v11 = vunpack.c.h.bf16 %v1341_v43 }
  0x2a   :  { %1142 = vmatmul.msk.bf16.gmra.mxu2 %vm265_vm0, %v1174_v12  ;;  %1150 = vmatmul.msk.bf16.gmra.mxu3 %vm265_vm0, %v1182_v13 }
  0x39   :  { %1127 = vmatmul.msk.bf16.gmra.mxu0 %vm265_vm0, %v1159_v14  ;;  %1135 = vmatmul.msk.bf16.gmra.mxu1 %vm265_vm0, %v1167_v15  ;;  %v1196_v14 = vunpack.c.l.bf16 %v1318_v4  ;;  %v1228_v15 = vunpack.c.l.bf16 %v1326_v5 }
  0x3a   :  { %1143 = vmatmul.msk.bf16.gmra.mxu2 %vm265_vm0, %v1175_v16  ;;  %1151 = vmatmul.msk.bf16.gmra.mxu3 %vm265_vm0, %v1183_v17 }
  0x49   :  { %1128 = vmatmul.msk.bf16.gmra.mxu0 %vm265_vm0, %v1160_v18  ;;  %1136 = vmatmul.msk.bf16.gmra.mxu1 %vm265_vm0, %v1168_v19 }
  0x4a   :  { %1144 = vmatmul.msk.bf16.gmra.mxu2 %vm265_vm0, %v1176_v20  ;;  %1152 = vmatmul.msk.bf16.gmra.mxu3 %vm265_vm0, %v1184_v21 }
  0x59   :  { %1129 = vmatmul.msk.bf16.gmra.mxu0 %vm265_vm0, %v1161_v22  ;;  %1137 = vmatmul.msk.bf16.gmra.mxu1 %vm265_vm0, %v1169_v23  ;;  %v696_v22 = vmul.f32 %v1532_v37, %v1257_v10  ;;  %v712_v23 = vmul.f32 %v1532_v37, %v1289_v11 }
  0x5a   :  { %1145 = vmatmul.msk.bf16.gmra.mxu2 %vm265_vm0, %v1177_v24  ;;  %1153 = vmatmul.msk.bf16.gmra.mxu3 %vm265_vm0, %v1185_v25 }
  0x69   :  { %1130 = vmatmul.msk.bf16.gmra.mxu0 %vm265_vm0, %v1162_v26  ;;  %1138 = vmatmul.msk.bf16.gmra.mxu1 %vm265_vm0, %v1170_v27 }
  0x6a   :  { %1146 = vmatmul.msk.bf16.gmra.mxu2 %vm265_vm0, %v1178_v28  ;;  %1154 = vmatmul.msk.bf16.gmra.mxu3 %vm265_vm0, %v1186_v29  ;;  %v665_v28 = vmul.f32 %v1532_v37, %v1196_v14  ;;  %v681_v29 = vmul.f32 %v1532_v37, %v1228_v15 }
  0x79   :  { %1131 = vmatmul.msk.bf16.gmra.mxu0 %vm265_vm0, %v1163_v30  ;;  %1139 = vmatmul.msk.bf16.gmra.mxu1 %vm265_vm0, %v1171_v31  ;;  %v1334_v30 = vld [vmem:[%s2019_s4 + $0x88] sm:$0xff]  }
  0x7a   :  { %1147 = vmatmul.msk.bf16.gmra.mxu2 %vm265_vm0, %v1179_v32  ;;  %1155 = vmatmul.msk.bf16.gmra.mxu3 %vm265_vm0, %v1187_v33  ;;  %v1342_v31 = vld [vmem:[%s2019_s4 + $0xc8] sm:$0xff]   ;;  %v1260_v42 = vunpack.c.l.bf16 %v1334_v30 }
  0x7b   :  { %v1292_v43 = vunpack.c.l.bf16 %v1342_v31 }
  0x86   :  { %v371_v44 = vpop.f32.mrf.mxu0  ;;  %v411_v45 = vpop.f32.mrf.mxu1 }
  0x87   :  { %v372_v46 = vadd.f32 %v1537_v39, %v371_v44  ;;  %v412_v47 = vadd.f32 %v1537_v39, %v411_v45 }
  0x89   :  { %v727_v50 = vadd.f32 %v663_v40, %v372_v46  ;;  %v743_v51 = vadd.f32 %v679_v41, %v412_v47  ;;  %v1197_v46 = vunpack.c.h.bf16 %v1318_v4  ;;  %v1229_v47 = vunpack.c.h.bf16 %v1326_v5 }
  0x8b   :  { %v791_v54 = vmax.f32 %v727_v50, 0.0  ;;  %v807_v55 = vmax.f32 %v743_v51, 0.0 }
  0x8d   :  { %v855_v58 = vpack.c.bf16 %v791_v54, %v791_v54  ;;  %v871_v59 = vpack.c.bf16 %v807_v55, %v807_v55  ;;  %v451_v60 = vpop.f32.mrf.mxu2  ;;  %v491_v61 = vpop.f32.mrf.mxu3  ;;  %v697_v54 = vmul.f32 %v1532_v37, %v1260_v42  ;;  %v713_v55 = vmul.f32 %v1532_v37, %v1292_v43 }
  0x8e   :  { %v452_v0 = vadd.f32 %v1537_v39, %v451_v60  ;;  %v492_v1 = vadd.f32 %v1537_v39, %v491_v61  ;;  %v373_v2 = vpop.f32.mrf.mxu0  ;;  %v413_v3 = vpop.f32.mrf.mxu1  ;;  %v666_v60 = vmul.f32 %v1532_v37, %v1197_v46  ;;  %v682_v61 = vmul.f32 %v1532_v37, %v1229_v47 }
  0x8f   :  { %920 = vst.msk [vmem:[%s2020_s5] sm:$0xf] %vm919_vm1, %v855_v58  ;;  %v374_v6 = vadd.f32 %v1537_v39, %v373_v2  ;;  %v414_v7 = vadd.f32 %v1537_v39, %v413_v3  ;;  %v1319_v2 = vld [vmem:[%s2019_s4 + $0x10] sm:$0xff]  }
  0x90   :  { %936 = vst.msk [vmem:[%s2020_s5 + $0x40] sm:$0xf] %vm919_vm1, %v871_v59  ;;  %v759_v8 = vadd.f32 %v695_v56, %v452_v0  ;;  %v775_v9 = vadd.f32 %v711_v57, %v492_v1  ;;  %v1327_v3 = vld [vmem:[%s2019_s4 + $0x50] sm:$0xff]  }
  0x91   :  { %v728_v12 = vadd.f32 %v664_v62, %v374_v6  ;;  %v744_v13 = vadd.f32 %v680_v63, %v414_v7 }
  0x92   :  { %v823_v16 = vmax.f32 %v759_v8, 0.0  ;;  %v839_v17 = vmax.f32 %v775_v9, 0.0  ;;  %v1261_v8 = vunpack.c.h.bf16 %v1334_v30  ;;  %v1293_v9 = vunpack.c.h.bf16 %v1342_v31 }
  0x93   :  { %v792_v18 = vmax.f32 %v728_v12, 0.0  ;;  %v808_v19 = vmax.f32 %v744_v13, 0.0  ;;  %v1200_v12 = vunpack.c.l.bf16 %v1319_v2  ;;  %v1232_v13 = vunpack.c.l.bf16 %v1327_v3 }
  0x94   :  { %v887_v20 = vpack.c.bf16 %v823_v16, %v823_v16  ;;  %v903_v21 = vpack.c.bf16 %v839_v17, %v839_v17 }
  0x95   :  { %v856_v24 = vpack.c.bf16 %v792_v18, %v792_v18  ;;  %v872_v25 = vpack.c.bf16 %v808_v19, %v808_v19  ;;  %v453_v26 = vpop.f32.mrf.mxu2  ;;  %v493_v27 = vpop.f32.mrf.mxu3 }
  0x96   :  { %952 = vst.msk [vmem:[%s2020_s5 + $0x80] sm:$0xf] %vm919_vm1, %v887_v20  ;;  %v454_v32 = vadd.f32 %v1537_v39, %v453_v26  ;;  %v494_v33 = vadd.f32 %v1537_v39, %v493_v27  ;;  %v376_v34 = vpop.f32.mrf.mxu0  ;;  %v416_v35 = vpop.f32.mrf.mxu1  ;;  %v698_v20 = vmul.f32 %v1532_v37, %v1261_v8  ;;  %v667_v26 = vmul.f32 %v1532_v37, %v1200_v12 }
  0x97   :  { %968 = vst.msk [vmem:[%s2020_s5 + $0xc0] sm:$0xf] %vm919_vm1, %v903_v21  ;;  %v377_v36 = vadd.f32 %v1537_v39, %v376_v34  ;;  %v417_v38 = vadd.f32 %v1537_v39, %v416_v35  ;;  %v714_v21 = vmul.f32 %v1532_v37, %v1293_v9  ;;  %v683_v27 = vmul.f32 %v1532_v37, %v1232_v13 }
  0x98   :  { %921 = vst.msk [vmem:[%s2020_s5 + $0x4] sm:$0xf] %vm919_vm1, %v856_v24  ;;  %v760_v40 = vadd.f32 %v696_v22, %v454_v32  ;;  %v776_v41 = vadd.f32 %v712_v23, %v494_v33 }
  0x99   :  { %937 = vst.msk [vmem:[%s2020_s5 + $0x44] sm:$0xf] %vm919_vm1, %v872_v25  ;;  %v729_v44 = vadd.f32 %v665_v28, %v377_v36  ;;  %v745_v45 = vadd.f32 %v681_v29, %v417_v38  ;;  %v1335_v28 = vld [vmem:[%s2019_s4 + $0x90] sm:$0xff]  }
  0x9a   :  { %v824_v48 = vmax.f32 %v760_v40, 0.0  ;;  %v840_v49 = vmax.f32 %v776_v41, 0.0  ;;  %v1343_v29 = vld [vmem:[%s2019_s4 + $0xd0] sm:$0xff]   ;;  %v1264_v40 = vunpack.c.l.bf16 %v1335_v28 }
  0x9b   :  { %v793_v50 = vmax.f32 %v729_v44, 0.0  ;;  %v809_v51 = vmax.f32 %v745_v45, 0.0  ;;  %v1296_v41 = vunpack.c.l.bf16 %v1343_v29  ;;  %v1201_v44 = vunpack.c.h.bf16 %v1319_v2 }
  0x9c   :  { %v888_v52 = vpack.c.bf16 %v824_v48, %v824_v48  ;;  %v904_v53 = vpack.c.bf16 %v840_v49, %v840_v49  ;;  %v1233_v45 = vunpack.c.h.bf16 %v1327_v3 }
  0x9d   :  { %v857_v56 = vpack.c.bf16 %v793_v50, %v793_v50  ;;  %v873_v57 = vpack.c.bf16 %v809_v51, %v809_v51  ;;  %v456_v58 = vpop.f32.mrf.mxu2  ;;  %v496_v59 = vpop.f32.mrf.mxu3 }
  0x9e   :  { %953 = vst.msk [vmem:[%s2020_s5 + $0x84] sm:$0xf] %vm919_vm1, %v888_v52  ;;  %v457_v62 = vadd.f32 %v1537_v39, %v456_v58  ;;  %v497_v63 = vadd.f32 %v1537_v39, %v496_v59  ;;  %v378_v0 = vpop.f32.mrf.mxu0  ;;  %v418_v1 = vpop.f32.mrf.mxu1  ;;  %v699_v52 = vmul.f32 %v1532_v37, %v1264_v40  ;;  %v668_v58 = vmul.f32 %v1532_v37, %v1201_v44 }
  0x9f   :  { %969 = vst.msk [vmem:[%s2020_s5 + $0xc4] sm:$0xf] %vm919_vm1, %v904_v53  ;;  %v379_v4 = vadd.f32 %v1537_v39, %v378_v0  ;;  %v419_v5 = vadd.f32 %v1537_v39, %v418_v1  ;;  %v715_v53 = vmul.f32 %v1532_v37, %v1296_v41  ;;  %v684_v59 = vmul.f32 %v1532_v37, %v1233_v45  ;;  %v1320_v0 = vld [vmem:[%s2019_s4 + $0x18] sm:$0xff]  }
  0xa0   :  { %922 = vst.msk [vmem:[%s2020_s5 + $0x8] sm:$0xf] %vm919_vm1, %v857_v56  ;;  %v761_v6 = vadd.f32 %v697_v54, %v457_v62  ;;  %v777_v7 = vadd.f32 %v713_v55, %v497_v63  ;;  %v1328_v1 = vld [vmem:[%s2019_s4 + $0x58] sm:$0xff]  }
  0xa1   :  { %938 = vst.msk [vmem:[%s2020_s5 + $0x48] sm:$0xf] %vm919_vm1, %v873_v57  ;;  %v730_v10 = vadd.f32 %v666_v60, %v379_v4  ;;  %v746_v11 = vadd.f32 %v682_v61, %v419_v5 }
  0xa2   :  { %v825_v14 = vmax.f32 %v761_v6, 0.0  ;;  %v841_v15 = vmax.f32 %v777_v7, 0.0  ;;  %v1265_v6 = vunpack.c.h.bf16 %v1335_v28  ;;  %v1297_v7 = vunpack.c.h.bf16 %v1343_v29 }
  0xa3   :  { %v794_v16 = vmax.f32 %v730_v10, 0.0  ;;  %v810_v17 = vmax.f32 %v746_v11, 0.0  ;;  %v1204_v10 = vunpack.c.l.bf16 %v1320_v0  ;;  %v1236_v11 = vunpack.c.l.bf16 %v1328_v1 }
  0xa4   :  { %v889_v18 = vpack.c.bf16 %v825_v14, %v825_v14  ;;  %v905_v19 = vpack.c.bf16 %v841_v15, %v841_v15 }
  0xa5   :  { %v858_v22 = vpack.c.bf16 %v794_v16, %v794_v16  ;;  %v874_v23 = vpack.c.bf16 %v810_v17, %v810_v17  ;;  %v458_v24 = vpop.f32.mrf.mxu2  ;;  %v498_v25 = vpop.f32.mrf.mxu3 }
  0xa6   :  { %954 = vst.msk [vmem:[%s2020_s5 + $0x88] sm:$0xf] %vm919_vm1, %v889_v18  ;;  %v459_v30 = vadd.f32 %v1537_v39, %v458_v24  ;;  %v499_v31 = vadd.f32 %v1537_v39, %v498_v25  ;;  %v381_v32 = vpop.f32.mrf.mxu0  ;;  %v421_v33 = vpop.f32.mrf.mxu1  ;;  %v700_v18 = vmul.f32 %v1532_v37, %v1265_v6  ;;  %v669_v24 = vmul.f32 %v1532_v37, %v1204_v10 }
  0xa7   :  { %970 = vst.msk [vmem:[%s2020_s5 + $0xc8] sm:$0xf] %vm919_vm1, %v905_v19  ;;  %v382_v34 = vadd.f32 %v1537_v39, %v381_v32  ;;  %v422_v35 = vadd.f32 %v1537_v39, %v421_v33  ;;  %v716_v19 = vmul.f32 %v1532_v37, %v1297_v7  ;;  %v685_v25 = vmul.f32 %v1532_v37, %v1236_v11 }
  0xa8   :  { %923 = vst.msk [vmem:[%s2020_s5 + $0xc] sm:$0xf] %vm919_vm1, %v858_v22  ;;  %v762_v36 = vadd.f32 %v698_v20, %v459_v30  ;;  %v778_v38 = vadd.f32 %v714_v21, %v499_v31 }
  0xa9   :  { %939 = vst.msk [vmem:[%s2020_s5 + $0x4c] sm:$0xf] %vm919_vm1, %v874_v23  ;;  %v731_v42 = vadd.f32 %v667_v26, %v382_v34  ;;  %v747_v43 = vadd.f32 %v683_v27, %v422_v35  ;;  %v1336_v26 = vld [vmem:[%s2019_s4 + $0x98] sm:$0xff]  }
  0xaa   :  { %v826_v46 = vmax.f32 %v762_v36, 0.0  ;;  %v842_v47 = vmax.f32 %v778_v38, 0.0  ;;  %v1344_v27 = vld [vmem:[%s2019_s4 + $0xd8] sm:$0xff]   ;;  %v1268_v36 = vunpack.c.l.bf16 %v1336_v26 }
  0xab   :  { %v795_v48 = vmax.f32 %v731_v42, 0.0  ;;  %v811_v49 = vmax.f32 %v747_v43, 0.0  ;;  %v1300_v38 = vunpack.c.l.bf16 %v1344_v27  ;;  %v1205_v42 = vunpack.c.h.bf16 %v1320_v0 }
  0xac   :  { %v890_v50 = vpack.c.bf16 %v826_v46, %v826_v46  ;;  %v906_v51 = vpack.c.bf16 %v842_v47, %v842_v47  ;;  %v1237_v43 = vunpack.c.h.bf16 %v1328_v1 }
  0xad   :  { %v859_v54 = vpack.c.bf16 %v795_v48, %v795_v48  ;;  %v875_v55 = vpack.c.bf16 %v811_v49, %v811_v49  ;;  %v461_v56 = vpop.f32.mrf.mxu2  ;;  %v501_v57 = vpop.f32.mrf.mxu3 }
  0xae   :  { %955 = vst.msk [vmem:[%s2020_s5 + $0x8c] sm:$0xf] %vm919_vm1, %v890_v50  ;;  %v462_v60 = vadd.f32 %v1537_v39, %v461_v56  ;;  %v502_v61 = vadd.f32 %v1537_v39, %v501_v57  ;;  %v383_v62 = vpop.f32.mrf.mxu0  ;;  %v423_v63 = vpop.f32.mrf.mxu1  ;;  %v701_v50 = vmul.f32 %v1532_v37, %v1268_v36  ;;  %v670_v56 = vmul.f32 %v1532_v37, %v1205_v42 }
  0xaf   :  { %971 = vst.msk [vmem:[%s2020_s5 + $0xcc] sm:$0xf] %vm919_vm1, %v906_v51  ;;  %v384_v2 = vadd.f32 %v1537_v39, %v383_v62  ;;  %v424_v3 = vadd.f32 %v1537_v39, %v423_v63  ;;  %v717_v51 = vmul.f32 %v1532_v37, %v1300_v38  ;;  %v686_v57 = vmul.f32 %v1532_v37, %v1237_v43  ;;  %v1321_v62 = vld [vmem:[%s2019_s4 + $0x20] sm:$0xff]  }
  0xb0   :  { %924 = vst.msk [vmem:[%s2020_s5 + $0x10] sm:$0xf] %vm919_vm1, %v859_v54  ;;  %v763_v4 = vadd.f32 %v699_v52, %v462_v60  ;;  %v779_v5 = vadd.f32 %v715_v53, %v502_v61  ;;  %v1329_v63 = vld [vmem:[%s2019_s4 + $0x60] sm:$0xff]  }
  0xb1   :  { %940 = vst.msk [vmem:[%s2020_s5 + $0x50] sm:$0xf] %vm919_vm1, %v875_v55  ;;  %v732_v8 = vadd.f32 %v668_v58, %v384_v2  ;;  %v748_v9 = vadd.f32 %v684_v59, %v424_v3 }
  0xb2   :  { %v827_v12 = vmax.f32 %v763_v4, 0.0  ;;  %v843_v13 = vmax.f32 %v779_v5, 0.0  ;;  %v1269_v4 = vunpack.c.h.bf16 %v1336_v26  ;;  %v1301_v5 = vunpack.c.h.bf16 %v1344_v27 }
  0xb3   :  { %v796_v14 = vmax.f32 %v732_v8, 0.0  ;;  %v812_v15 = vmax.f32 %v748_v9, 0.0  ;;  %v1208_v8 = vunpack.c.l.bf16 %v1321_v62  ;;  %v1240_v9 = vunpack.c.l.bf16 %v1329_v63 }
  0xb4   :  { %v891_v16 = vpack.c.bf16 %v827_v12, %v827_v12  ;;  %v907_v17 = vpack.c.bf16 %v843_v13, %v843_v13 }
  0xb5   :  { %v860_v20 = vpack.c.bf16 %v796_v14, %v796_v14  ;;  %v876_v21 = vpack.c.bf16 %v812_v15, %v812_v15  ;;  %v463_v22 = vpop.f32.mrf.mxu2  ;;  %v503_v23 = vpop.f32.mrf.mxu3 }
  0xb6   :  { %956 = vst.msk [vmem:[%s2020_s5 + $0x90] sm:$0xf] %vm919_vm1, %v891_v16  ;;  %v464_v28 = vadd.f32 %v1537_v39, %v463_v22  ;;  %v504_v29 = vadd.f32 %v1537_v39, %v503_v23  ;;  %v386_v30 = vpop.f32.mrf.mxu0  ;;  %v426_v31 = vpop.f32.mrf.mxu1  ;;  %v702_v16 = vmul.f32 %v1532_v37, %v1269_v4  ;;  %v671_v22 = vmul.f32 %v1532_v37, %v1208_v8 }
  0xb7   :  { %972 = vst.msk [vmem:[%s2020_s5 + $0xd0] sm:$0xf] %vm919_vm1, %v907_v17  ;;  %v387_v32 = vadd.f32 %v1537_v39, %v386_v30  ;;  %v427_v33 = vadd.f32 %v1537_v39, %v426_v31  ;;  %v718_v17 = vmul.f32 %v1532_v37, %v1301_v5  ;;  %v687_v23 = vmul.f32 %v1532_v37, %v1240_v9 }
  0xb8   :  { %925 = vst.msk [vmem:[%s2020_s5 + $0x14] sm:$0xf] %vm919_vm1, %v860_v20  ;;  %v764_v34 = vadd.f32 %v700_v18, %v464_v28  ;;  %v780_v35 = vadd.f32 %v716_v19, %v504_v29 }
  0xb9   :  { %941 = vst.msk [vmem:[%s2020_s5 + $0x54] sm:$0xf] %vm919_vm1, %v876_v21  ;;  %v733_v40 = vadd.f32 %v669_v24, %v387_v32  ;;  %v749_v41 = vadd.f32 %v685_v25, %v427_v33  ;;  %v1337_v24 = vld [vmem:[%s2019_s4 + $0xa0] sm:$0xff]  }
  0xba   :  { %v828_v44 = vmax.f32 %v764_v34, 0.0  ;;  %v844_v45 = vmax.f32 %v780_v35, 0.0  ;;  %v1345_v25 = vld [vmem:[%s2019_s4 + $0xe0] sm:$0xff]   ;;  %v1272_v34 = vunpack.c.l.bf16 %v1337_v24 }
  0xbb   :  { %v797_v46 = vmax.f32 %v733_v40, 0.0  ;;  %v813_v47 = vmax.f32 %v749_v41, 0.0  ;;  %v1304_v35 = vunpack.c.l.bf16 %v1345_v25  ;;  %v1209_v40 = vunpack.c.h.bf16 %v1321_v62 }
  0xbc   :  { %v892_v48 = vpack.c.bf16 %v828_v44, %v828_v44  ;;  %v908_v49 = vpack.c.bf16 %v844_v45, %v844_v45  ;;  %v1241_v41 = vunpack.c.h.bf16 %v1329_v63 }
  0xbd   :  { %v861_v52 = vpack.c.bf16 %v797_v46, %v797_v46  ;;  %v877_v53 = vpack.c.bf16 %v813_v47, %v813_v47  ;;  %v466_v54 = vpop.f32.mrf.mxu2  ;;  %v506_v55 = vpop.f32.mrf.mxu3 }
  0xbe   :  { %957 = vst.msk [vmem:[%s2020_s5 + $0x94] sm:$0xf] %vm919_vm1, %v892_v48  ;;  %v467_v58 = vadd.f32 %v1537_v39, %v466_v54  ;;  %v507_v59 = vadd.f32 %v1537_v39, %v506_v55  ;;  %v388_v60 = vpop.f32.mrf.mxu0  ;;  %v428_v61 = vpop.f32.mrf.mxu1  ;;  %v703_v48 = vmul.f32 %v1532_v37, %v1272_v34  ;;  %v672_v54 = vmul.f32 %v1532_v37, %v1209_v40 }
  0xbf   :  { %973 = vst.msk [vmem:[%s2020_s5 + $0xd4] sm:$0xf] %vm919_vm1, %v908_v49  ;;  %v389_v0 = vadd.f32 %v1537_v39, %v388_v60  ;;  %v429_v1 = vadd.f32 %v1537_v39, %v428_v61  ;;  %v719_v49 = vmul.f32 %v1532_v37, %v1304_v35  ;;  %v688_v55 = vmul.f32 %v1532_v37, %v1241_v41  ;;  %v1322_v60 = vld [vmem:[%s2019_s4 + $0x28] sm:$0xff]  }
  0xc0   :  { %926 = vst.msk [vmem:[%s2020_s5 + $0x18] sm:$0xf] %vm919_vm1, %v861_v52  ;;  %v765_v2 = vadd.f32 %v701_v50, %v467_v58  ;;  %v781_v3 = vadd.f32 %v717_v51, %v507_v59  ;;  %v1330_v61 = vld [vmem:[%s2019_s4 + $0x68] sm:$0xff]  }
  0xc1   :  { %942 = vst.msk [vmem:[%s2020_s5 + $0x58] sm:$0xf] %vm919_vm1, %v877_v53  ;;  %v734_v6 = vadd.f32 %v670_v56, %v389_v0  ;;  %v750_v7 = vadd.f32 %v686_v57, %v429_v1 }
  0xc2   :  { %v829_v10 = vmax.f32 %v765_v2, 0.0  ;;  %v845_v11 = vmax.f32 %v781_v3, 0.0  ;;  %v1273_v2 = vunpack.c.h.bf16 %v1337_v24  ;;  %v1305_v3 = vunpack.c.h.bf16 %v1345_v25 }
  0xc3   :  { %v798_v12 = vmax.f32 %v734_v6, 0.0  ;;  %v814_v13 = vmax.f32 %v750_v7, 0.0  ;;  %v1212_v6 = vunpack.c.l.bf16 %v1322_v60  ;;  %v1244_v7 = vunpack.c.l.bf16 %v1330_v61 }
  0xc4   :  { %v893_v14 = vpack.c.bf16 %v829_v10, %v829_v10  ;;  %v909_v15 = vpack.c.bf16 %v845_v11, %v845_v11 }
  0xc5   :  { %v862_v18 = vpack.c.bf16 %v798_v12, %v798_v12  ;;  %v878_v19 = vpack.c.bf16 %v814_v13, %v814_v13  ;;  %v468_v20 = vpop.f32.mrf.mxu2  ;;  %v508_v21 = vpop.f32.mrf.mxu3 }
  0xc6   :  { %958 = vst.msk [vmem:[%s2020_s5 + $0x98] sm:$0xf] %vm919_vm1, %v893_v14  ;;  %v469_v26 = vadd.f32 %v1537_v39, %v468_v20  ;;  %v509_v27 = vadd.f32 %v1537_v39, %v508_v21  ;;  %v391_v28 = vpop.f32.mrf.mxu0  ;;  %v431_v29 = vpop.f32.mrf.mxu1  ;;  %v704_v14 = vmul.f32 %v1532_v37, %v1273_v2  ;;  %v673_v20 = vmul.f32 %v1532_v37, %v1212_v6 }
  0xc7   :  { %974 = vst.msk [vmem:[%s2020_s5 + $0xd8] sm:$0xf] %vm919_vm1, %v909_v15  ;;  %v392_v30 = vadd.f32 %v1537_v39, %v391_v28  ;;  %v432_v31 = vadd.f32 %v1537_v39, %v431_v29  ;;  %v720_v15 = vmul.f32 %v1532_v37, %v1305_v3  ;;  %v689_v21 = vmul.f32 %v1532_v37, %v1244_v7 }
  0xc8   :  { %927 = vst.msk [vmem:[%s2020_s5 + $0x1c] sm:$0xf] %vm919_vm1, %v862_v18  ;;  %v766_v32 = vadd.f32 %v702_v16, %v469_v26  ;;  %v782_v33 = vadd.f32 %v718_v17, %v509_v27 }
  0xc9   :  { %943 = vst.msk [vmem:[%s2020_s5 + $0x5c] sm:$0xf] %vm919_vm1, %v878_v19  ;;  %v735_v36 = vadd.f32 %v671_v22, %v392_v30  ;;  %v751_v38 = vadd.f32 %v687_v23, %v432_v31  ;;  %v1338_v22 = vld [vmem:[%s2019_s4 + $0xa8] sm:$0xff]  }
  0xca   :  { %v830_v42 = vmax.f32 %v766_v32, 0.0  ;;  %v846_v43 = vmax.f32 %v782_v33, 0.0  ;;  %v1346_v23 = vld [vmem:[%s2019_s4 + $0xe8] sm:$0xff]   ;;  %v1276_v32 = vunpack.c.l.bf16 %v1338_v22 }
  0xcb   :  { %v799_v44 = vmax.f32 %v735_v36, 0.0  ;;  %v815_v45 = vmax.f32 %v751_v38, 0.0  ;;  %v1308_v33 = vunpack.c.l.bf16 %v1346_v23  ;;  %v1213_v36 = vunpack.c.h.bf16 %v1322_v60 }
  0xcc   :  { %v894_v46 = vpack.c.bf16 %v830_v42, %v830_v42  ;;  %v910_v47 = vpack.c.bf16 %v846_v43, %v846_v43  ;;  %v1245_v38 = vunpack.c.h.bf16 %v1330_v61 }
  0xcd   :  { %v863_v50 = vpack.c.bf16 %v799_v44, %v799_v44  ;;  %v879_v51 = vpack.c.bf16 %v815_v45, %v815_v45  ;;  %v471_v52 = vpop.f32.mrf.mxu2  ;;  %v511_v53 = vpop.f32.mrf.mxu3 }
  0xce   :  { %959 = vst.msk [vmem:[%s2020_s5 + $0x9c] sm:$0xf] %vm919_vm1, %v894_v46  ;;  %v472_v56 = vadd.f32 %v1537_v39, %v471_v52  ;;  %v512_v57 = vadd.f32 %v1537_v39, %v511_v53  ;;  %v393_v58 = vpop.f32.mrf.mxu0  ;;  %v433_v59 = vpop.f32.mrf.mxu1  ;;  %v705_v46 = vmul.f32 %v1532_v37, %v1276_v32  ;;  %v674_v52 = vmul.f32 %v1532_v37, %v1213_v36 }
  0xcf   :  { %975 = vst.msk [vmem:[%s2020_s5 + $0xdc] sm:$0xf] %vm919_vm1, %v910_v47  ;;  %v394_v62 = vadd.f32 %v1537_v39, %v393_v58  ;;  %v434_v63 = vadd.f32 %v1537_v39, %v433_v59  ;;  %v721_v47 = vmul.f32 %v1532_v37, %v1308_v33  ;;  %v690_v53 = vmul.f32 %v1532_v37, %v1245_v38  ;;  %v1323_v58 = vld [vmem:[%s2019_s4 + $0x30] sm:$0xff]  }
  0xd0   :  { %928 = vst.msk [vmem:[%s2020_s5 + $0x20] sm:$0xf] %vm919_vm1, %v863_v50  ;;  %v767_v0 = vadd.f32 %v703_v48, %v472_v56  ;;  %v783_v1 = vadd.f32 %v719_v49, %v512_v57  ;;  %v1331_v59 = vld [vmem:[%s2019_s4 + $0x70] sm:$0xff]  }
  0xd1   :  { %944 = vst.msk [vmem:[%s2020_s5 + $0x60] sm:$0xf] %vm919_vm1, %v879_v51  ;;  %v736_v4 = vadd.f32 %v672_v54, %v394_v62  ;;  %v752_v5 = vadd.f32 %v688_v55, %v434_v63 }
  0xd2   :  { %v831_v8 = vmax.f32 %v767_v0, 0.0  ;;  %v847_v9 = vmax.f32 %v783_v1, 0.0  ;;  %v1277_v0 = vunpack.c.h.bf16 %v1338_v22  ;;  %v1309_v1 = vunpack.c.h.bf16 %v1346_v23 }
  0xd3   :  { %v800_v10 = vmax.f32 %v736_v4, 0.0  ;;  %v816_v11 = vmax.f32 %v752_v5, 0.0  ;;  %v1216_v4 = vunpack.c.l.bf16 %v1323_v58  ;;  %v1248_v5 = vunpack.c.l.bf16 %v1331_v59 }
  0xd4   :  { %v895_v12 = vpack.c.bf16 %v831_v8, %v831_v8  ;;  %v911_v13 = vpack.c.bf16 %v847_v9, %v847_v9 }
  0xd5   :  { %v864_v16 = vpack.c.bf16 %v800_v10, %v800_v10  ;;  %v880_v17 = vpack.c.bf16 %v816_v11, %v816_v11  ;;  %v473_v18 = vpop.f32.mrf.mxu2  ;;  %v513_v19 = vpop.f32.mrf.mxu3 }
  0xd6   :  { %960 = vst.msk [vmem:[%s2020_s5 + $0xa0] sm:$0xf] %vm919_vm1, %v895_v12  ;;  %v474_v24 = vadd.f32 %v1537_v39, %v473_v18  ;;  %v514_v25 = vadd.f32 %v1537_v39, %v513_v19  ;;  %v396_v26 = vpop.f32.mrf.mxu0  ;;  %v436_v27 = vpop.f32.mrf.mxu1  ;;  %v706_v12 = vmul.f32 %v1532_v37, %v1277_v0  ;;  %v675_v18 = vmul.f32 %v1532_v37, %v1216_v4 }
  0xd7   :  { %976 = vst.msk [vmem:[%s2020_s5 + $0xe0] sm:$0xf] %vm919_vm1, %v911_v13  ;;  %v397_v28 = vadd.f32 %v1537_v39, %v396_v26  ;;  %v437_v29 = vadd.f32 %v1537_v39, %v436_v27  ;;  %v722_v13 = vmul.f32 %v1532_v37, %v1309_v1  ;;  %v691_v19 = vmul.f32 %v1532_v37, %v1248_v5 }
  0xd8   :  { %929 = vst.msk [vmem:[%s2020_s5 + $0x24] sm:$0xf] %vm919_vm1, %v864_v16  ;;  %v768_v30 = vadd.f32 %v704_v14, %v474_v24  ;;  %v784_v31 = vadd.f32 %v720_v15, %v514_v25 }
  0xd9   :  { %945 = vst.msk [vmem:[%s2020_s5 + $0x64] sm:$0xf] %vm919_vm1, %v880_v17  ;;  %v737_v34 = vadd.f32 %v673_v20, %v397_v28  ;;  %v753_v35 = vadd.f32 %v689_v21, %v437_v29  ;;  %v1339_v20 = vld [vmem:[%s2019_s4 + $0xb0] sm:$0xff]  }
  0xda   :  { %v832_v40 = vmax.f32 %v768_v30, 0.0  ;;  %v848_v41 = vmax.f32 %v784_v31, 0.0  ;;  %v1347_v21 = vld [vmem:[%s2019_s4 + $0xf0] sm:$0xff]   ;;  %v1280_v30 = vunpack.c.l.bf16 %v1339_v20 }
  0xdb   :  { %v801_v42 = vmax.f32 %v737_v34, 0.0  ;;  %v817_v43 = vmax.f32 %v753_v35, 0.0  ;;  %v1312_v31 = vunpack.c.l.bf16 %v1347_v21  ;;  %v1217_v34 = vunpack.c.h.bf16 %v1323_v58 }
  0xdc   :  { %v896_v44 = vpack.c.bf16 %v832_v40, %v832_v40  ;;  %v912_v45 = vpack.c.bf16 %v848_v41, %v848_v41  ;;  %v1249_v35 = vunpack.c.h.bf16 %v1331_v59 }
  0xdd   :  { %v865_v48 = vpack.c.bf16 %v801_v42, %v801_v42  ;;  %v881_v49 = vpack.c.bf16 %v817_v43, %v817_v43  ;;  %v476_v50 = vpop.f32.mrf.mxu2  ;;  %v516_v51 = vpop.f32.mrf.mxu3 }
  0xde   :  { %961 = vst.msk [vmem:[%s2020_s5 + $0xa4] sm:$0xf] %vm919_vm1, %v896_v44  ;;  %v477_v54 = vadd.f32 %v1537_v39, %v476_v50  ;;  %v517_v55 = vadd.f32 %v1537_v39, %v516_v51  ;;  %v398_v56 = vpop.f32.mrf.mxu0  ;;  %v438_v57 = vpop.f32.mrf.mxu1  ;;  %v707_v44 = vmul.f32 %v1532_v37, %v1280_v30  ;;  %v676_v50 = vmul.f32 %v1532_v37, %v1217_v34 }
  0xdf   :  { %977 = vst.msk [vmem:[%s2020_s5 + $0xe4] sm:$0xf] %vm919_vm1, %v912_v45  ;;  %v399_v60 = vadd.f32 %v1537_v39, %v398_v56  ;;  %v439_v61 = vadd.f32 %v1537_v39, %v438_v57  ;;  %v723_v45 = vmul.f32 %v1532_v37, %v1312_v31  ;;  %v692_v51 = vmul.f32 %v1532_v37, %v1249_v35  ;;  %v1324_v56 = vld [vmem:[%s2019_s4 + $0x38] sm:$0xff]  }
  0xe0   :  { %930 = vst.msk [vmem:[%s2020_s5 + $0x28] sm:$0xf] %vm919_vm1, %v865_v48  ;;  %v769_v62 = vadd.f32 %v705_v46, %v477_v54  ;;  %v785_v63 = vadd.f32 %v721_v47, %v517_v55  ;;  %v1332_v57 = vld [vmem:[%s2019_s4 + $0x78] sm:$0xff]  }
  0xe1   :  { %946 = vst.msk [vmem:[%s2020_s5 + $0x68] sm:$0xf] %vm919_vm1, %v881_v49  ;;  %v738_v2 = vadd.f32 %v674_v52, %v399_v60  ;;  %v754_v3 = vadd.f32 %v690_v53, %v439_v61 }
  0xe2   :  { %v833_v6 = vmax.f32 %v769_v62, 0.0  ;;  %v849_v7 = vmax.f32 %v785_v63, 0.0  ;;  %v1281_v62 = vunpack.c.h.bf16 %v1339_v20  ;;  %v1313_v63 = vunpack.c.h.bf16 %v1347_v21 }
  0xe3   :  { %v802_v8 = vmax.f32 %v738_v2, 0.0  ;;  %v818_v9 = vmax.f32 %v754_v3, 0.0  ;;  %v1220_v2 = vunpack.c.l.bf16 %v1324_v56  ;;  %v1252_v3 = vunpack.c.l.bf16 %v1332_v57 }
  0xe4   :  { %v897_v10 = vpack.c.bf16 %v833_v6, %v833_v6  ;;  %v913_v11 = vpack.c.bf16 %v849_v7, %v849_v7 }
  0xe5   :  { %v866_v14 = vpack.c.bf16 %v802_v8, %v802_v8  ;;  %v882_v15 = vpack.c.bf16 %v818_v9, %v818_v9  ;;  %v478_v16 = vpop.f32.mrf.mxu2  ;;  %v518_v17 = vpop.f32.mrf.mxu3 }
  0xe6   :  { %962 = vst.msk [vmem:[%s2020_s5 + $0xa8] sm:$0xf] %vm919_vm1, %v897_v10  ;;  %v479_v22 = vadd.f32 %v1537_v39, %v478_v16  ;;  %v519_v23 = vadd.f32 %v1537_v39, %v518_v17  ;;  %v401_v24 = vpop.f32.mrf.mxu0  ;;  %v441_v25 = vpop.f32.mrf.mxu1  ;;  %v708_v10 = vmul.f32 %v1532_v37, %v1281_v62  ;;  %v677_v16 = vmul.f32 %v1532_v37, %v1220_v2  ;;  %v1357_v2 = vld [vmem:[%s2018_s3] ss:$0 sm:$0xff] }
  0xe7   :  { %978 = vst.msk [vmem:[%s2020_s5 + $0xe8] sm:$0xf] %vm919_vm1, %v913_v11  ;;  %v402_v26 = vadd.f32 %v1537_v39, %v401_v24  ;;  %v442_v27 = vadd.f32 %v1537_v39, %v441_v25  ;;  %v724_v11 = vmul.f32 %v1532_v37, %v1313_v63  ;;  %v693_v17 = vmul.f32 %v1532_v37, %v1252_v3 }
  0xe8   :  { %931 = vst.msk [vmem:[%s2020_s5 + $0x2c] sm:$0xf] %vm919_vm1, %v866_v14  ;;  %v770_v28 = vadd.f32 %v706_v12, %v479_v22  ;;  %v786_v29 = vadd.f32 %v722_v13, %v519_v23 }
  0xe9   :  { %947 = vst.msk [vmem:[%s2020_s5 + $0x6c] sm:$0xf] %vm919_vm1, %v882_v15  ;;  %v739_v32 = vadd.f32 %v675_v18, %v402_v26  ;;  %v755_v33 = vadd.f32 %v691_v19, %v442_v27  ;;  %v1340_v18 = vld [vmem:[%s2019_s4 + $0xb8] sm:$0xff]  }
  0xea   :  { %v834_v36 = vmax.f32 %v770_v28, 0.0  ;;  %v850_v38 = vmax.f32 %v786_v29, 0.0  ;;  %v1348_v19 = vld [vmem:[%s2019_s4 + $0xf8] sm:$0xff]   ;;  %v1284_v28 = vunpack.c.l.bf16 %v1340_v18 }
  0xeb   :  { %v803_v40 = vmax.f32 %v739_v32, 0.0  ;;  %v819_v41 = vmax.f32 %v755_v33, 0.0  ;;  %v1316_v29 = vunpack.c.l.bf16 %v1348_v19  ;;  %v1221_v32 = vunpack.c.h.bf16 %v1324_v56 }
  0xec   :  { %v898_v42 = vpack.c.bf16 %v834_v36, %v834_v36  ;;  %v914_v43 = vpack.c.bf16 %v850_v38, %v850_v38  ;;  %v1253_v33 = vunpack.c.h.bf16 %v1332_v57  ;;  %v1285_v57 = vunpack.c.h.bf16 %v1340_v18 }
  0xed   :  { %v867_v46 = vpack.c.bf16 %v803_v40, %v803_v40  ;;  %v883_v47 = vpack.c.bf16 %v819_v41, %v819_v41  ;;  %v481_v48 = vpop.f32.mrf.mxu2  ;;  %v521_v49 = vpop.f32.mrf.mxu3 }
  0xee   :  { %963 = vst.msk [vmem:[%s2020_s5 + $0xac] sm:$0xf] %vm919_vm1, %v898_v42  ;;  %v482_v52 = vadd.f32 %v1537_v39, %v481_v48  ;;  %v522_v53 = vadd.f32 %v1537_v39, %v521_v49  ;;  %v403_v54 = vpop.f32.mrf.mxu0  ;;  %v443_v55 = vpop.f32.mrf.mxu1  ;;  %v709_v42 = vmul.f32 %v1532_v37, %v1284_v28  ;;  %v678_v48 = vmul.f32 %v1532_v37, %v1221_v32 }
  0xef   :  { %979 = vst.msk [vmem:[%s2020_s5 + $0xec] sm:$0xf] %vm919_vm1, %v914_v43  ;;  %v404_v58 = vadd.f32 %v1537_v39, %v403_v54  ;;  %v444_v59 = vadd.f32 %v1537_v39, %v443_v55  ;;  %v725_v43 = vmul.f32 %v1532_v37, %v1316_v29  ;;  %v694_v49 = vmul.f32 %v1532_v37, %v1253_v33 }
  0xf0   :  { %932 = vst.msk [vmem:[%s2020_s5 + $0x30] sm:$0xf] %vm919_vm1, %v867_v46  ;;  %v771_v60 = vadd.f32 %v707_v44, %v482_v52  ;;  %v787_v61 = vadd.f32 %v723_v45, %v522_v53  ;;  %v710_v3 = vmul.f32 %v1357_v2, %v1285_v57 }
  0xf1   :  { %948 = vst.msk [vmem:[%s2020_s5 + $0x70] sm:$0xf] %vm919_vm1, %v883_v47  ;;  %v740_v0 = vadd.f32 %v676_v50, %v404_v58  ;;  %v756_v1 = vadd.f32 %v692_v51, %v444_v59  ;;  %v1317_v58 = vunpack.c.h.bf16 %v1348_v19 }
  0xf2   :  { %v835_v4 = vmax.f32 %v771_v60, 0.0  ;;  %v851_v5 = vmax.f32 %v787_v61, 0.0 }
  0xf3   :  { %v804_v6 = vmax.f32 %v740_v0, 0.0  ;;  %v820_v7 = vmax.f32 %v756_v1, 0.0 }
  0xf4   :  { %v899_v8 = vpack.c.bf16 %v835_v4, %v835_v4  ;;  %v915_v9 = vpack.c.bf16 %v851_v5, %v851_v5  ;;  %v726_v4 = vmul.f32 %v1357_v2, %v1317_v58 }
  0xf5   :  { %v868_v12 = vpack.c.bf16 %v804_v6, %v804_v6  ;;  %v884_v13 = vpack.c.bf16 %v820_v7, %v820_v7  ;;  %v483_v14 = vpop.f32.mrf.mxu2  ;;  %v523_v15 = vpop.f32.mrf.mxu3 }
  0xf6   :  { %964 = vst.msk [vmem:[%s2020_s5 + $0xb0] sm:$0xf] %vm919_vm1, %v899_v8  ;;  %v484_v20 = vadd.f32 %v1537_v39, %v483_v14  ;;  %v524_v21 = vadd.f32 %v1537_v39, %v523_v15  ;;  %v406_v22 = vpop.f32.mrf.mxu0  ;;  %v446_v23 = vpop.f32.mrf.mxu1 }
  0xf7   :  { %980 = vst.msk [vmem:[%s2020_s5 + $0xf0] sm:$0xf] %vm919_vm1, %v915_v9  ;;  %v407_v24 = vadd.f32 %v1537_v39, %v406_v22  ;;  %v447_v25 = vadd.f32 %v1537_v39, %v446_v23  ;;  %v1358_v9 = vld [vmem:[%s2017_s2] ss:$0 sm:$0xff] }
  0xf8   :  { %933 = vst.msk [vmem:[%s2020_s5 + $0x34] sm:$0xf] %vm919_vm1, %v868_v12  ;;  %v772_v26 = vadd.f32 %v708_v10, %v484_v20  ;;  %v788_v27 = vadd.f32 %v724_v11, %v524_v21 }
  0xf9   :  { %949 = vst.msk [vmem:[%s2020_s5 + $0x74] sm:$0xf] %vm919_vm1, %v884_v13  ;;  %v741_v30 = vadd.f32 %v677_v16, %v407_v24  ;;  %v757_v31 = vadd.f32 %v693_v17, %v447_v25 }
  0xfa   :  { %v836_v34 = vmax.f32 %v772_v26, 0.0  ;;  %v852_v35 = vmax.f32 %v788_v27, 0.0 }
  0xfb   :  { %v805_v36 = vmax.f32 %v741_v30, 0.0  ;;  %v821_v38 = vmax.f32 %v757_v31, 0.0 }
  0xfc   :  { %v900_v40 = vpack.c.bf16 %v836_v34, %v836_v34  ;;  %v916_v41 = vpack.c.bf16 %v852_v35, %v852_v35 }
  0xfd   :  { %v869_v44 = vpack.c.bf16 %v805_v36, %v805_v36  ;;  %v885_v45 = vpack.c.bf16 %v821_v38, %v821_v38  ;;  %v486_v46 = vpop.f32.mrf.mxu2  ;;  %v526_v47 = vpop.f32.mrf.mxu3 }
  0xfe   :  { %965 = vst.msk [vmem:[%s2020_s5 + $0xb4] sm:$0xf] %vm919_vm1, %v900_v40  ;;  %v487_v50 = vadd.f32 %v1537_v39, %v486_v46  ;;  %v527_v51 = vadd.f32 %v1537_v39, %v526_v47  ;;  %v408_v52 = vpop.f32.mrf.mxu0  ;;  %v448_v53 = vpop.f32.mrf.mxu1 }
  0xff   :  { %981 = vst.msk [vmem:[%s2020_s5 + $0xf4] sm:$0xf] %vm919_vm1, %v916_v41  ;;  %v409_v54 = vadd.f32 %v1537_v39, %v408_v52  ;;  %v449_v37 = vadd.f32 %v1537_v39, %v448_v53 }
 0x100   :  { %934 = vst.msk [vmem:[%s2020_s5 + $0x38] sm:$0xf] %vm919_vm1, %v869_v44  ;;  %v773_v55 = vadd.f32 %v709_v42, %v487_v50  ;;  %v789_v56 = vadd.f32 %v725_v43, %v527_v51 }
 0x101   :  { %950 = vst.msk [vmem:[%s2020_s5 + $0x78] sm:$0xf] %vm919_vm1, %v885_v45  ;;  %v742_v59 = vadd.f32 %v678_v48, %v409_v54  ;;  %v758_v60 = vadd.f32 %v694_v49, %v449_v37 }
 0x102   :  { %v837_v61 = vmax.f32 %v773_v55, 0.0  ;;  %v853_v62 = vmax.f32 %v789_v56, 0.0 }
 0x103   :  { %v806_v63 = vmax.f32 %v742_v59, 0.0  ;;  %v822_v39 = vmax.f32 %v758_v60, 0.0 }
 0x104   :  { %v901_v0 = vpack.c.bf16 %v837_v61, %v837_v61  ;;  %v917_v1 = vpack.c.bf16 %v853_v62, %v853_v62 }
 0x105   :  { %v870_v5 = vpack.c.bf16 %v806_v63, %v806_v63  ;;  %v886_v6 = vpack.c.bf16 %v822_v39, %v822_v39  ;;  %v488_v7 = vpop.f32.mrf.mxu2  ;;  %v528_v8 = vpop.f32.mrf.mxu3 }
 0x106   :  { %966 = vst.msk [vmem:[%s2020_s5 + $0xb8] sm:$0xf] %vm919_vm1, %v901_v0  ;;  %v489_v10 = vadd.f32 %v1358_v9, %v488_v7  ;;  %v529_v11 = vadd.f32 %v1358_v9, %v528_v8 }
 0x107   :  { %982 = vst.msk [vmem:[%s2020_s5 + $0xf8] sm:$0xf] %vm919_vm1, %v917_v1 }
 0x108   :  { %935 = vst.msk [vmem:[%s2020_s5 + $0x3c] sm:$0xf] %vm919_vm1, %v870_v5  ;;  %v774_v12 = vadd.f32 %v710_v3, %v489_v10  ;;  %v790_v13 = vadd.f32 %v726_v4, %v529_v11 }
 0x109   :  { %951 = vst.msk [vmem:[%s2020_s5 + $0x7c] sm:$0xf] %vm919_vm1, %v886_v6 }
 0x10a   :  { %v838_v14 = vmax.f32 %v774_v12, 0.0  ;;  %v854_v15 = vmax.f32 %v790_v13, 0.0 }
 0x10c   :  { %v902_v16 = vpack.c.bf16 %v838_v14, %v838_v14  ;;  %v918_v17 = vpack.c.bf16 %v854_v15, %v854_v15 }
 0x10e   :  { %967 = vst.msk [vmem:[%s2020_s5 + $0xbc] sm:$0xf] %vm919_vm1, %v902_v16 }
 0x10f   :  { %983 = vst.msk [vmem:[%s2020_s5 + $0xfc] sm:$0xf] %vm919_vm1, %v918_v17 }

// kernel: forward.13
= control target key start
LH: loop header
LB: loop body
LE: loop exit
PB: predicated region body
PF: predicated region fallthrough
CT: control target
= control target key end

     0   :  { %vm275_vm0 = vcmask 523264   ;;  %vm605_vm1 = vcmask 257024   ;;  %s1384_s1 = inlined_call_operand.vmem [shape: bf16[64,32], index: 1, kind: input, shape index: {}]   ;;  %s1385_s2 = inlined_call_operand.vmem [shape: f32[1,32], index: 2, kind: input, shape index: {}]   ;;  %s1386_s0 = inlined_call_operand.vmem [shape: bf16[512,64], index: 0, kind: input, shape index: {}]   ;;  %s1387_s3 = inlined_call_operand.vmem [shape: bf16[512,32], index: 3, kind: output, shape index: {}]  }
   0x1   :  { %v885_v0 = vld [vmem:[%s1384_s1 + $0x18] sm:$0xff]  ;;  %v884_v1 = vld [vmem:[%s1384_s1 + $0x10] sm:$0xff]  ;;  %v883_v2 = vld [vmem:[%s1384_s1 + $0x8] sm:$0xff] }
   0x2   :  { %376 = vmatpush.bf16.msra.mxu0 %v885_v0  ;;  %886 = vmatpush.bf16.msra.mxu1 %v885_v0  ;;  %v882_v3 = vld [vmem:[%s1384_s1] sm:$0xff]  ;;  %v851_v8 = vld [vmem:[%s1386_s0 + $0x8] sm:$0xff]  ;;  %v852_v12 = vld [vmem:[%s1386_s0 + $0x10] sm:$0xff] }
   0x3   :  { %887 = vmatpush.bf16.msra.mxu2 %v885_v0  ;;  %888 = vmatpush.bf16.msra.mxu3 %v885_v0  ;;  %v850_v4 = vld [vmem:[%s1386_s0] sm:$0xff]  ;;  %v859_v9 = vld [vmem:[%s1386_s0 + $0x48] sm:$0xff]  ;;  %v860_v13 = vld [vmem:[%s1386_s0 + $0x50] sm:$0xff] }
   0x4   :  { %v858_v5 = vld [vmem:[%s1386_s0 + $0x40] sm:$0xff]  ;;  %v867_v10 = vld [vmem:[%s1386_s0 + $0x88] sm:$0xff]  ;;  %v868_v14 = vld [vmem:[%s1386_s0 + $0x90] sm:$0xff] }
   0x5   :  { %v866_v6 = vld [vmem:[%s1386_s0 + $0x80] sm:$0xff]  ;;  %v875_v11 = vld [vmem:[%s1386_s0 + $0xc8] sm:$0xff]  ;;  %v876_v15 = vld [vmem:[%s1386_s0 + $0xd0] sm:$0xff] }
   0x6   :  { %377 = vmatpush.bf16.msra.mxu0 %v884_v1  ;;  %889 = vmatpush.bf16.msra.mxu1 %v884_v1  ;;  %v874_v7 = vld [vmem:[%s1386_s0 + $0xc0] sm:$0xff]  ;;  %v853_v16 = vld [vmem:[%s1386_s0 + $0x18] sm:$0xff]  ;;  %v855_v24 = vld [vmem:[%s1386_s0 + $0x28] sm:$0xff] }
   0x7   :  { %890 = vmatpush.bf16.msra.mxu2 %v884_v1  ;;  %891 = vmatpush.bf16.msra.mxu3 %v884_v1  ;;  %v861_v17 = vld [vmem:[%s1386_s0 + $0x58] sm:$0xff]  ;;  %v854_v20 = vld [vmem:[%s1386_s0 + $0x20] sm:$0xff]  ;;  %v863_v25 = vld [vmem:[%s1386_s0 + $0x68] sm:$0xff] }
   0x8   :  { %v869_v18 = vld [vmem:[%s1386_s0 + $0x98] sm:$0xff]  ;;  %v862_v21 = vld [vmem:[%s1386_s0 + $0x60] sm:$0xff]  ;;  %v871_v26 = vld [vmem:[%s1386_s0 + $0xa8] sm:$0xff] }
   0x9   :  { %v877_v19 = vld [vmem:[%s1386_s0 + $0xd8] sm:$0xff]  ;;  %v870_v22 = vld [vmem:[%s1386_s0 + $0xa0] sm:$0xff]  ;;  %v879_v27 = vld [vmem:[%s1386_s0 + $0xe8] sm:$0xff] }
   0xa   :  { %378 = vmatpush.bf16.msra.mxu0 %v883_v2  ;;  %892 = vmatpush.bf16.msra.mxu1 %v883_v2  ;;  %v878_v23 = vld [vmem:[%s1386_s0 + $0xe0] sm:$0xff]  ;;  %v856_v28 = vld [vmem:[%s1386_s0 + $0x30] sm:$0xff]  ;;  %v857_v32 = vld [vmem:[%s1386_s0 + $0x38] sm:$0xff] }
   0xb   :  { %893 = vmatpush.bf16.msra.mxu2 %v883_v2  ;;  %894 = vmatpush.bf16.msra.mxu3 %v883_v2  ;;  %v864_v29 = vld [vmem:[%s1386_s0 + $0x70] sm:$0xff]  ;;  %v865_v33 = vld [vmem:[%s1386_s0 + $0x78] sm:$0xff]  ;;  %v1062_v36 = vld [vmem:[%s1385_s2] ss:$0 sm:$0xff] }
   0xc   :  { %v872_v30 = vld [vmem:[%s1386_s0 + $0xb0] sm:$0xff]  ;;  %v873_v34 = vld [vmem:[%s1386_s0 + $0xb8] sm:$0xff] }
   0xd   :  { %v880_v31 = vld [vmem:[%s1386_s0 + $0xf0] sm:$0xff]  ;;  %v881_v35 = vld [vmem:[%s1386_s0 + $0xf8] sm:$0xff] }
   0xe   :  { %379 = vmatpush.bf16.msra.mxu0 %v882_v3  ;;  %895 = vmatpush.bf16.msra.mxu1 %v882_v3 }
   0xf   :  { %896 = vmatpush.bf16.msra.mxu2 %v882_v3  ;;  %897 = vmatpush.bf16.msra.mxu3 %v882_v3 }
  0x11   :  { %818 = vmatmul.msk.bf16.vlgmr.msra.gmra.mxu0 %vm275_vm0, %v850_v4  ;;  %826 = vmatmul.msk.bf16.vlgmr.msra.gmra.mxu1 %vm275_vm0, %v858_v5 }
  0x12   :  { %834 = vmatmul.msk.bf16.vlgmr.msra.gmra.mxu2 %vm275_vm0, %v866_v6  ;;  %842 = vmatmul.msk.bf16.vlgmr.msra.gmra.mxu3 %vm275_vm0, %v874_v7 }
  0x21   :  { %819 = vmatmul.msk.bf16.gmra.mxu0 %vm275_vm0, %v851_v8  ;;  %827 = vmatmul.msk.bf16.gmra.mxu1 %vm275_vm0, %v859_v9 }
  0x22   :  { %835 = vmatmul.msk.bf16.gmra.mxu2 %vm275_vm0, %v867_v10  ;;  %843 = vmatmul.msk.bf16.gmra.mxu3 %vm275_vm0, %v875_v11 }
  0x31   :  { %820 = vmatmul.msk.bf16.gmra.mxu0 %vm275_vm0, %v852_v12  ;;  %828 = vmatmul.msk.bf16.gmra.mxu1 %vm275_vm0, %v860_v13 }
  0x32   :  { %836 = vmatmul.msk.bf16.gmra.mxu2 %vm275_vm0, %v868_v14  ;;  %844 = vmatmul.msk.bf16.gmra.mxu3 %vm275_vm0, %v876_v15 }
  0x41   :  { %821 = vmatmul.msk.bf16.gmra.mxu0 %vm275_vm0, %v853_v16  ;;  %829 = vmatmul.msk.bf16.gmra.mxu1 %vm275_vm0, %v861_v17 }
  0x42   :  { %837 = vmatmul.msk.bf16.gmra.mxu2 %vm275_vm0, %v869_v18  ;;  %845 = vmatmul.msk.bf16.gmra.mxu3 %vm275_vm0, %v877_v19 }
  0x51   :  { %822 = vmatmul.msk.bf16.gmra.mxu0 %vm275_vm0, %v854_v20  ;;  %830 = vmatmul.msk.bf16.gmra.mxu1 %vm275_vm0, %v862_v21 }
  0x52   :  { %838 = vmatmul.msk.bf16.gmra.mxu2 %vm275_vm0, %v870_v22  ;;  %846 = vmatmul.msk.bf16.gmra.mxu3 %vm275_vm0, %v878_v23 }
  0x61   :  { %823 = vmatmul.msk.bf16.gmra.mxu0 %vm275_vm0, %v855_v24  ;;  %831 = vmatmul.msk.bf16.gmra.mxu1 %vm275_vm0, %v863_v25 }
  0x62   :  { %839 = vmatmul.msk.bf16.gmra.mxu2 %vm275_vm0, %v871_v26  ;;  %847 = vmatmul.msk.bf16.gmra.mxu3 %vm275_vm0, %v879_v27 }
  0x71   :  { %824 = vmatmul.msk.bf16.gmra.mxu0 %vm275_vm0, %v856_v28  ;;  %832 = vmatmul.msk.bf16.gmra.mxu1 %vm275_vm0, %v864_v29 }
  0x72   :  { %840 = vmatmul.msk.bf16.gmra.mxu2 %vm275_vm0, %v872_v30  ;;  %848 = vmatmul.msk.bf16.gmra.mxu3 %vm275_vm0, %v880_v31 }
  0x81   :  { %825 = vmatmul.msk.bf16.gmra.mxu0 %vm275_vm0, %v857_v32  ;;  %833 = vmatmul.msk.bf16.gmra.mxu1 %vm275_vm0, %v865_v33 }
  0x82   :  { %841 = vmatmul.msk.bf16.gmra.mxu2 %vm275_vm0, %v873_v34  ;;  %849 = vmatmul.msk.bf16.gmra.mxu3 %vm275_vm0, %v881_v35 }
  0x8e   :  { %v381_v37 = vpop.f32.mrf.mxu0  ;;  %v421_v38 = vpop.f32.mrf.mxu1 }
  0x8f   :  { %v382_v39 = vadd.f32 %v1062_v36, %v381_v37  ;;  %v422_v40 = vadd.f32 %v1062_v36, %v421_v38 }
  0x91   :  { %v541_v41 = vpack.c.bf16 %v382_v39, %v382_v39  ;;  %v557_v42 = vpack.c.bf16 %v422_v40, %v422_v40 }
  0x93   :  { %606 = vst.msk [vmem:[%s1387_s3] sm:$0xf] %vm605_vm1, %v541_v41 }
  0x94   :  { %622 = vst.msk [vmem:[%s1387_s3 + $0x40] sm:$0xf] %vm605_vm1, %v557_v42 }
  0x95   :  { %v461_v43 = vpop.f32.mrf.mxu2  ;;  %v501_v44 = vpop.f32.mrf.mxu3 }
  0x96   :  { %v462_v45 = vadd.f32 %v1062_v36, %v461_v43  ;;  %v502_v46 = vadd.f32 %v1062_v36, %v501_v44  ;;  %v383_v47 = vpop.f32.mrf.mxu0  ;;  %v423_v48 = vpop.f32.mrf.mxu1 }
  0x97   :  { %v384_v49 = vadd.f32 %v1062_v36, %v383_v47  ;;  %v424_v50 = vadd.f32 %v1062_v36, %v423_v48 }
  0x98   :  { %v573_v51 = vpack.c.bf16 %v462_v45, %v462_v45  ;;  %v589_v52 = vpack.c.bf16 %v502_v46, %v502_v46 }
  0x99   :  { %v542_v53 = vpack.c.bf16 %v384_v49, %v384_v49  ;;  %v558_v54 = vpack.c.bf16 %v424_v50, %v424_v50 }
  0x9a   :  { %638 = vst.msk [vmem:[%s1387_s3 + $0x80] sm:$0xf] %vm605_vm1, %v573_v51 }
  0x9b   :  { %654 = vst.msk [vmem:[%s1387_s3 + $0xc0] sm:$0xf] %vm605_vm1, %v589_v52 }
  0x9c   :  { %607 = vst.msk [vmem:[%s1387_s3 + $0x4] sm:$0xf] %vm605_vm1, %v542_v53 }
  0x9d   :  { %623 = vst.msk [vmem:[%s1387_s3 + $0x44] sm:$0xf] %vm605_vm1, %v558_v54  ;;  %v463_v55 = vpop.f32.mrf.mxu2  ;;  %v503_v56 = vpop.f32.mrf.mxu3 }
  0x9e   :  { %v464_v57 = vadd.f32 %v1062_v36, %v463_v55  ;;  %v504_v58 = vadd.f32 %v1062_v36, %v503_v56  ;;  %v386_v59 = vpop.f32.mrf.mxu0  ;;  %v426_v60 = vpop.f32.mrf.mxu1 }
  0x9f   :  { %v387_v61 = vadd.f32 %v1062_v36, %v386_v59  ;;  %v427_v62 = vadd.f32 %v1062_v36, %v426_v60 }
  0xa0   :  { %v574_v63 = vpack.c.bf16 %v464_v57, %v464_v57  ;;  %v590_v0 = vpack.c.bf16 %v504_v58, %v504_v58 }
  0xa1   :  { %v543_v1 = vpack.c.bf16 %v387_v61, %v387_v61  ;;  %v559_v2 = vpack.c.bf16 %v427_v62, %v427_v62 }
  0xa2   :  { %639 = vst.msk [vmem:[%s1387_s3 + $0x84] sm:$0xf] %vm605_vm1, %v574_v63 }
  0xa3   :  { %655 = vst.msk [vmem:[%s1387_s3 + $0xc4] sm:$0xf] %vm605_vm1, %v590_v0 }
  0xa4   :  { %608 = vst.msk [vmem:[%s1387_s3 + $0x8] sm:$0xf] %vm605_vm1, %v543_v1 }
  0xa5   :  { %624 = vst.msk [vmem:[%s1387_s3 + $0x48] sm:$0xf] %vm605_vm1, %v559_v2  ;;  %v466_v3 = vpop.f32.mrf.mxu2  ;;  %v506_v4 = vpop.f32.mrf.mxu3 }
  0xa6   :  { %v467_v5 = vadd.f32 %v1062_v36, %v466_v3  ;;  %v507_v6 = vadd.f32 %v1062_v36, %v506_v4  ;;  %v388_v7 = vpop.f32.mrf.mxu0  ;;  %v428_v8 = vpop.f32.mrf.mxu1 }
  0xa7   :  { %v389_v9 = vadd.f32 %v1062_v36, %v388_v7  ;;  %v429_v10 = vadd.f32 %v1062_v36, %v428_v8 }
  0xa8   :  { %v575_v11 = vpack.c.bf16 %v467_v5, %v467_v5  ;;  %v591_v12 = vpack.c.bf16 %v507_v6, %v507_v6 }
  0xa9   :  { %v544_v13 = vpack.c.bf16 %v389_v9, %v389_v9  ;;  %v560_v14 = vpack.c.bf16 %v429_v10, %v429_v10 }
  0xaa   :  { %640 = vst.msk [vmem:[%s1387_s3 + $0x88] sm:$0xf] %vm605_vm1, %v575_v11 }
  0xab   :  { %656 = vst.msk [vmem:[%s1387_s3 + $0xc8] sm:$0xf] %vm605_vm1, %v591_v12 }
  0xac   :  { %609 = vst.msk [vmem:[%s1387_s3 + $0xc] sm:$0xf] %vm605_vm1, %v544_v13 }
  0xad   :  { %625 = vst.msk [vmem:[%s1387_s3 + $0x4c] sm:$0xf] %vm605_vm1, %v560_v14  ;;  %v468_v15 = vpop.f32.mrf.mxu2  ;;  %v508_v16 = vpop.f32.mrf.mxu3 }
  0xae   :  { %v469_v17 = vadd.f32 %v1062_v36, %v468_v15  ;;  %v509_v18 = vadd.f32 %v1062_v36, %v508_v16  ;;  %v391_v19 = vpop.f32.mrf.mxu0  ;;  %v431_v20 = vpop.f32.mrf.mxu1 }
  0xaf   :  { %v392_v21 = vadd.f32 %v1062_v36, %v391_v19  ;;  %v432_v22 = vadd.f32 %v1062_v36, %v431_v20 }
  0xb0   :  { %v576_v23 = vpack.c.bf16 %v469_v17, %v469_v17  ;;  %v592_v24 = vpack.c.bf16 %v509_v18, %v509_v18 }
  0xb1   :  { %v545_v25 = vpack.c.bf16 %v392_v21, %v392_v21  ;;  %v561_v26 = vpack.c.bf16 %v432_v22, %v432_v22 }
  0xb2   :  { %641 = vst.msk [vmem:[%s1387_s3 + $0x8c] sm:$0xf] %vm605_vm1, %v576_v23 }
  0xb3   :  { %657 = vst.msk [vmem:[%s1387_s3 + $0xcc] sm:$0xf] %vm605_vm1, %v592_v24 }
  0xb4   :  { %610 = vst.msk [vmem:[%s1387_s3 + $0x10] sm:$0xf] %vm605_vm1, %v545_v25 }
  0xb5   :  { %626 = vst.msk [vmem:[%s1387_s3 + $0x50] sm:$0xf] %vm605_vm1, %v561_v26  ;;  %v471_v27 = vpop.f32.mrf.mxu2  ;;  %v511_v28 = vpop.f32.mrf.mxu3 }
  0xb6   :  { %v472_v29 = vadd.f32 %v1062_v36, %v471_v27  ;;  %v512_v30 = vadd.f32 %v1062_v36, %v511_v28  ;;  %v393_v31 = vpop.f32.mrf.mxu0  ;;  %v433_v32 = vpop.f32.mrf.mxu1 }
  0xb7   :  { %v394_v33 = vadd.f32 %v1062_v36, %v393_v31  ;;  %v434_v34 = vadd.f32 %v1062_v36, %v433_v32 }
  0xb8   :  { %v577_v35 = vpack.c.bf16 %v472_v29, %v472_v29  ;;  %v593_v37 = vpack.c.bf16 %v512_v30, %v512_v30 }
  0xb9   :  { %v546_v38 = vpack.c.bf16 %v394_v33, %v394_v33  ;;  %v562_v39 = vpack.c.bf16 %v434_v34, %v434_v34 }
  0xba   :  { %642 = vst.msk [vmem:[%s1387_s3 + $0x90] sm:$0xf] %vm605_vm1, %v577_v35 }
  0xbb   :  { %658 = vst.msk [vmem:[%s1387_s3 + $0xd0] sm:$0xf] %vm605_vm1, %v593_v37 }
  0xbc   :  { %611 = vst.msk [vmem:[%s1387_s3 + $0x14] sm:$0xf] %vm605_vm1, %v546_v38 }
  0xbd   :  { %627 = vst.msk [vmem:[%s1387_s3 + $0x54] sm:$0xf] %vm605_vm1, %v562_v39  ;;  %v473_v40 = vpop.f32.mrf.mxu2  ;;  %v513_v41 = vpop.f32.mrf.mxu3 }
  0xbe   :  { %v474_v42 = vadd.f32 %v1062_v36, %v473_v40  ;;  %v514_v43 = vadd.f32 %v1062_v36, %v513_v41  ;;  %v396_v44 = vpop.f32.mrf.mxu0  ;;  %v436_v45 = vpop.f32.mrf.mxu1 }
  0xbf   :  { %v397_v46 = vadd.f32 %v1062_v36, %v396_v44  ;;  %v437_v47 = vadd.f32 %v1062_v36, %v436_v45 }
  0xc0   :  { %v578_v48 = vpack.c.bf16 %v474_v42, %v474_v42  ;;  %v594_v49 = vpack.c.bf16 %v514_v43, %v514_v43 }
  0xc1   :  { %v547_v50 = vpack.c.bf16 %v397_v46, %v397_v46  ;;  %v563_v51 = vpack.c.bf16 %v437_v47, %v437_v47 }
  0xc2   :  { %643 = vst.msk [vmem:[%s1387_s3 + $0x94] sm:$0xf] %vm605_vm1, %v578_v48 }
  0xc3   :  { %659 = vst.msk [vmem:[%s1387_s3 + $0xd4] sm:$0xf] %vm605_vm1, %v594_v49 }
  0xc4   :  { %612 = vst.msk [vmem:[%s1387_s3 + $0x18] sm:$0xf] %vm605_vm1, %v547_v50 }
  0xc5   :  { %628 = vst.msk [vmem:[%s1387_s3 + $0x58] sm:$0xf] %vm605_vm1, %v563_v51  ;;  %v476_v52 = vpop.f32.mrf.mxu2  ;;  %v516_v53 = vpop.f32.mrf.mxu3 }
  0xc6   :  { %v477_v54 = vadd.f32 %v1062_v36, %v476_v52  ;;  %v517_v55 = vadd.f32 %v1062_v36, %v516_v53  ;;  %v398_v56 = vpop.f32.mrf.mxu0  ;;  %v438_v57 = vpop.f32.mrf.mxu1 }
  0xc7   :  { %v399_v58 = vadd.f32 %v1062_v36, %v398_v56  ;;  %v439_v59 = vadd.f32 %v1062_v36, %v438_v57 }
  0xc8   :  { %v579_v60 = vpack.c.bf16 %v477_v54, %v477_v54  ;;  %v595_v61 = vpack.c.bf16 %v517_v55, %v517_v55 }
  0xc9   :  { %v548_v62 = vpack.c.bf16 %v399_v58, %v399_v58  ;;  %v564_v63 = vpack.c.bf16 %v439_v59, %v439_v59 }
  0xca   :  { %644 = vst.msk [vmem:[%s1387_s3 + $0x98] sm:$0xf] %vm605_vm1, %v579_v60 }
  0xcb   :  { %660 = vst.msk [vmem:[%s1387_s3 + $0xd8] sm:$0xf] %vm605_vm1, %v595_v61 }
  0xcc   :  { %613 = vst.msk [vmem:[%s1387_s3 + $0x1c] sm:$0xf] %vm605_vm1, %v548_v62 }
  0xcd   :  { %629 = vst.msk [vmem:[%s1387_s3 + $0x5c] sm:$0xf] %vm605_vm1, %v564_v63  ;;  %v478_v0 = vpop.f32.mrf.mxu2  ;;  %v518_v1 = vpop.f32.mrf.mxu3 }
  0xce   :  { %v479_v2 = vadd.f32 %v1062_v36, %v478_v0  ;;  %v519_v3 = vadd.f32 %v1062_v36, %v518_v1  ;;  %v401_v4 = vpop.f32.mrf.mxu0  ;;  %v441_v5 = vpop.f32.mrf.mxu1 }
  0xcf   :  { %v402_v6 = vadd.f32 %v1062_v36, %v401_v4  ;;  %v442_v7 = vadd.f32 %v1062_v36, %v441_v5 }
  0xd0   :  { %v580_v8 = vpack.c.bf16 %v479_v2, %v479_v2  ;;  %v596_v9 = vpack.c.bf16 %v519_v3, %v519_v3 }
  0xd1   :  { %v549_v10 = vpack.c.bf16 %v402_v6, %v402_v6  ;;  %v565_v11 = vpack.c.bf16 %v442_v7, %v442_v7 }
  0xd2   :  { %645 = vst.msk [vmem:[%s1387_s3 + $0x9c] sm:$0xf] %vm605_vm1, %v580_v8 }
  0xd3   :  { %661 = vst.msk [vmem:[%s1387_s3 + $0xdc] sm:$0xf] %vm605_vm1, %v596_v9 }
  0xd4   :  { %614 = vst.msk [vmem:[%s1387_s3 + $0x20] sm:$0xf] %vm605_vm1, %v549_v10 }
  0xd5   :  { %630 = vst.msk [vmem:[%s1387_s3 + $0x60] sm:$0xf] %vm605_vm1, %v565_v11  ;;  %v481_v12 = vpop.f32.mrf.mxu2  ;;  %v521_v13 = vpop.f32.mrf.mxu3 }
  0xd6   :  { %v482_v14 = vadd.f32 %v1062_v36, %v481_v12  ;;  %v522_v15 = vadd.f32 %v1062_v36, %v521_v13  ;;  %v403_v16 = vpop.f32.mrf.mxu0  ;;  %v443_v17 = vpop.f32.mrf.mxu1 }
  0xd7   :  { %v404_v18 = vadd.f32 %v1062_v36, %v403_v16  ;;  %v444_v19 = vadd.f32 %v1062_v36, %v443_v17 }
  0xd8   :  { %v581_v20 = vpack.c.bf16 %v482_v14, %v482_v14  ;;  %v597_v21 = vpack.c.bf16 %v522_v15, %v522_v15 }
  0xd9   :  { %v550_v22 = vpack.c.bf16 %v404_v18, %v404_v18  ;;  %v566_v23 = vpack.c.bf16 %v444_v19, %v444_v19 }
  0xda   :  { %646 = vst.msk [vmem:[%s1387_s3 + $0xa0] sm:$0xf] %vm605_vm1, %v581_v20 }
  0xdb   :  { %662 = vst.msk [vmem:[%s1387_s3 + $0xe0] sm:$0xf] %vm605_vm1, %v597_v21 }
  0xdc   :  { %615 = vst.msk [vmem:[%s1387_s3 + $0x24] sm:$0xf] %vm605_vm1, %v550_v22 }
  0xdd   :  { %631 = vst.msk [vmem:[%s1387_s3 + $0x64] sm:$0xf] %vm605_vm1, %v566_v23  ;;  %v483_v24 = vpop.f32.mrf.mxu2  ;;  %v523_v25 = vpop.f32.mrf.mxu3 }
  0xde   :  { %v484_v26 = vadd.f32 %v1062_v36, %v483_v24  ;;  %v524_v27 = vadd.f32 %v1062_v36, %v523_v25  ;;  %v406_v28 = vpop.f32.mrf.mxu0  ;;  %v446_v29 = vpop.f32.mrf.mxu1 }
  0xdf   :  { %v407_v30 = vadd.f32 %v1062_v36, %v406_v28  ;;  %v447_v31 = vadd.f32 %v1062_v36, %v446_v29 }
  0xe0   :  { %v582_v32 = vpack.c.bf16 %v484_v26, %v484_v26  ;;  %v598_v33 = vpack.c.bf16 %v524_v27, %v524_v27 }
  0xe1   :  { %v551_v34 = vpack.c.bf16 %v407_v30, %v407_v30  ;;  %v567_v35 = vpack.c.bf16 %v447_v31, %v447_v31 }
  0xe2   :  { %647 = vst.msk [vmem:[%s1387_s3 + $0xa4] sm:$0xf] %vm605_vm1, %v582_v32 }
  0xe3   :  { %663 = vst.msk [vmem:[%s1387_s3 + $0xe4] sm:$0xf] %vm605_vm1, %v598_v33 }
  0xe4   :  { %616 = vst.msk [vmem:[%s1387_s3 + $0x28] sm:$0xf] %vm605_vm1, %v551_v34 }
  0xe5   :  { %632 = vst.msk [vmem:[%s1387_s3 + $0x68] sm:$0xf] %vm605_vm1, %v567_v35  ;;  %v486_v37 = vpop.f32.mrf.mxu2  ;;  %v526_v38 = vpop.f32.mrf.mxu3 }
  0xe6   :  { %v487_v39 = vadd.f32 %v1062_v36, %v486_v37  ;;  %v527_v40 = vadd.f32 %v1062_v36, %v526_v38  ;;  %v408_v41 = vpop.f32.mrf.mxu0  ;;  %v448_v42 = vpop.f32.mrf.mxu1 }
  0xe7   :  { %v409_v43 = vadd.f32 %v1062_v36, %v408_v41  ;;  %v449_v44 = vadd.f32 %v1062_v36, %v448_v42 }
  0xe8   :  { %v583_v45 = vpack.c.bf16 %v487_v39, %v487_v39  ;;  %v599_v46 = vpack.c.bf16 %v527_v40, %v527_v40 }
  0xe9   :  { %v552_v47 = vpack.c.bf16 %v409_v43, %v409_v43  ;;  %v568_v48 = vpack.c.bf16 %v449_v44, %v449_v44 }
  0xea   :  { %648 = vst.msk [vmem:[%s1387_s3 + $0xa8] sm:$0xf] %vm605_vm1, %v583_v45 }
  0xeb   :  { %664 = vst.msk [vmem:[%s1387_s3 + $0xe8] sm:$0xf] %vm605_vm1, %v599_v46 }
  0xec   :  { %617 = vst.msk [vmem:[%s1387_s3 + $0x2c] sm:$0xf] %vm605_vm1, %v552_v47 }
  0xed   :  { %633 = vst.msk [vmem:[%s1387_s3 + $0x6c] sm:$0xf] %vm605_vm1, %v568_v48  ;;  %v488_v49 = vpop.f32.mrf.mxu2  ;;  %v528_v50 = vpop.f32.mrf.mxu3 }
  0xee   :  { %v489_v51 = vadd.f32 %v1062_v36, %v488_v49  ;;  %v529_v52 = vadd.f32 %v1062_v36, %v528_v50  ;;  %v411_v53 = vpop.f32.mrf.mxu0  ;;  %v451_v54 = vpop.f32.mrf.mxu1 }
  0xef   :  { %v412_v55 = vadd.f32 %v1062_v36, %v411_v53  ;;  %v452_v56 = vadd.f32 %v1062_v36, %v451_v54 }
  0xf0   :  { %v584_v57 = vpack.c.bf16 %v489_v51, %v489_v51  ;;  %v600_v58 = vpack.c.bf16 %v529_v52, %v529_v52 }
  0xf1   :  { %v553_v59 = vpack.c.bf16 %v412_v55, %v412_v55  ;;  %v569_v60 = vpack.c.bf16 %v452_v56, %v452_v56 }
  0xf2   :  { %649 = vst.msk [vmem:[%s1387_s3 + $0xac] sm:$0xf] %vm605_vm1, %v584_v57 }
  0xf3   :  { %665 = vst.msk [vmem:[%s1387_s3 + $0xec] sm:$0xf] %vm605_vm1, %v600_v58 }
  0xf4   :  { %618 = vst.msk [vmem:[%s1387_s3 + $0x30] sm:$0xf] %vm605_vm1, %v553_v59 }
  0xf5   :  { %634 = vst.msk [vmem:[%s1387_s3 + $0x70] sm:$0xf] %vm605_vm1, %v569_v60  ;;  %v491_v61 = vpop.f32.mrf.mxu2  ;;  %v531_v62 = vpop.f32.mrf.mxu3 }
  0xf6   :  { %v492_v63 = vadd.f32 %v1062_v36, %v491_v61  ;;  %v532_v0 = vadd.f32 %v1062_v36, %v531_v62  ;;  %v413_v1 = vpop.f32.mrf.mxu0  ;;  %v453_v2 = vpop.f32.mrf.mxu1 }
  0xf7   :  { %v414_v3 = vadd.f32 %v1062_v36, %v413_v1  ;;  %v454_v4 = vadd.f32 %v1062_v36, %v453_v2 }
  0xf8   :  { %v585_v5 = vpack.c.bf16 %v492_v63, %v492_v63  ;;  %v601_v6 = vpack.c.bf16 %v532_v0, %v532_v0 }
  0xf9   :  { %v554_v7 = vpack.c.bf16 %v414_v3, %v414_v3  ;;  %v570_v8 = vpack.c.bf16 %v454_v4, %v454_v4 }
  0xfa   :  { %650 = vst.msk [vmem:[%s1387_s3 + $0xb0] sm:$0xf] %vm605_vm1, %v585_v5 }
  0xfb   :  { %666 = vst.msk [vmem:[%s1387_s3 + $0xf0] sm:$0xf] %vm605_vm1, %v601_v6 }
  0xfc   :  { %619 = vst.msk [vmem:[%s1387_s3 + $0x34] sm:$0xf] %vm605_vm1, %v554_v7 }
  0xfd   :  { %635 = vst.msk [vmem:[%s1387_s3 + $0x74] sm:$0xf] %vm605_vm1, %v570_v8  ;;  %v493_v9 = vpop.f32.mrf.mxu2  ;;  %v533_v10 = vpop.f32.mrf.mxu3 }
  0xfe   :  { %v494_v11 = vadd.f32 %v1062_v36, %v493_v9  ;;  %v534_v12 = vadd.f32 %v1062_v36, %v533_v10  ;;  %v416_v13 = vpop.f32.mrf.mxu0  ;;  %v456_v14 = vpop.f32.mrf.mxu1 }
  0xff   :  { %v417_v15 = vadd.f32 %v1062_v36, %v416_v13  ;;  %v457_v16 = vadd.f32 %v1062_v36, %v456_v14 }
 0x100   :  { %v586_v17 = vpack.c.bf16 %v494_v11, %v494_v11  ;;  %v602_v18 = vpack.c.bf16 %v534_v12, %v534_v12 }
 0x101   :  { %v555_v19 = vpack.c.bf16 %v417_v15, %v417_v15  ;;  %v571_v20 = vpack.c.bf16 %v457_v16, %v457_v16 }
 0x102   :  { %651 = vst.msk [vmem:[%s1387_s3 + $0xb4] sm:$0xf] %vm605_vm1, %v586_v17 }
 0x103   :  { %667 = vst.msk [vmem:[%s1387_s3 + $0xf4] sm:$0xf] %vm605_vm1, %v602_v18 }
 0x104   :  { %620 = vst.msk [vmem:[%s1387_s3 + $0x38] sm:$0xf] %vm605_vm1, %v555_v19 }
 0x105   :  { %636 = vst.msk [vmem:[%s1387_s3 + $0x78] sm:$0xf] %vm605_vm1, %v571_v20  ;;  %v496_v21 = vpop.f32.mrf.mxu2  ;;  %v536_v22 = vpop.f32.mrf.mxu3 }
 0x106   :  { %v497_v23 = vadd.f32 %v1062_v36, %v496_v21  ;;  %v537_v24 = vadd.f32 %v1062_v36, %v536_v22  ;;  %v418_v25 = vpop.f32.mrf.mxu0  ;;  %v458_v26 = vpop.f32.mrf.mxu1 }
 0x107   :  { %v419_v27 = vadd.f32 %v1062_v36, %v418_v25  ;;  %v459_v28 = vadd.f32 %v1062_v36, %v458_v26 }
 0x108   :  { %v587_v29 = vpack.c.bf16 %v497_v23, %v497_v23  ;;  %v603_v30 = vpack.c.bf16 %v537_v24, %v537_v24 }
 0x109   :  { %v556_v31 = vpack.c.bf16 %v419_v27, %v419_v27  ;;  %v572_v32 = vpack.c.bf16 %v459_v28, %v459_v28 }
 0x10a   :  { %652 = vst.msk [vmem:[%s1387_s3 + $0xb8] sm:$0xf] %vm605_vm1, %v587_v29 }
 0x10b   :  { %668 = vst.msk [vmem:[%s1387_s3 + $0xf8] sm:$0xf] %vm605_vm1, %v603_v30 }
 0x10c   :  { %621 = vst.msk [vmem:[%s1387_s3 + $0x3c] sm:$0xf] %vm605_vm1, %v556_v31 }
 0x10d   :  { %637 = vst.msk [vmem:[%s1387_s3 + $0x7c] sm:$0xf] %vm605_vm1, %v572_v32  ;;  %v498_v33 = vpop.f32.mrf.mxu2  ;;  %v538_v34 = vpop.f32.mrf.mxu3 }
 0x10e   :  { %v499_v35 = vadd.f32 %v1062_v36, %v498_v33  ;;  %v539_v37 = vadd.f32 %v1062_v36, %v538_v34 }
 0x110   :  { %v588_v38 = vpack.c.bf16 %v499_v35, %v499_v35  ;;  %v604_v39 = vpack.c.bf16 %v539_v37, %v539_v37 }
 0x112   :  { %653 = vst.msk [vmem:[%s1387_s3 + $0xbc] sm:$0xf] %vm605_vm1, %v588_v38 }
 0x113   :  { %669 = vst.msk [vmem:[%s1387_s3 + $0xfc] sm:$0xf] %vm605_vm1, %v604_v39 }

// kernel: forward.10
= control target key start
LH: loop header
LB: loop body
LE: loop exit
PB: predicated region body
PF: predicated region fallthrough
CT: control target
= control target key end

     0   :  { %s3774_s12 = smov 0   ;;  %s4892_s0 = inlined_call_operand.vmem [shape: bf16[2,328,32], index: 0, kind: input, shape index: {}]   ;;  %s4893_s1 = inlined_call_operand.vmem [shape: bf16[288,32], index: 1, kind: input, shape index: {}]   ;;  %s4894_s2 = inlined_call_operand.vmem [shape: f32[1,32], index: 2, kind: input, shape index: {}]   ;;  %s4895_s3 = inlined_call_operand.vmem [shape: bf16[2,288,32], index: 3, kind: output, shape index: {}]  }
   0x1 LB: > { %s3185_s13 = sadd.s32 4294967295, %s3752_s12   ;;  %p3189_p0 = scmp.ge.s32.totalorder %s3752_s12, 1  ;;  %s3752_s12 = sphi %s3774_s12, %s13_s12  }
   0x2   : > { %p137_p1 = scmp.lt.s32.totalorder %s3752_s12, 3 }
   0x4   : > { %p138_p2 = pnand %p3189_p0, %p137_p1 }
   0x6   : > { %141 = sbr.rel (%p138_p2) target bundleno = 817 (0x331), region = 32 }
   0xb   : > { %v3652_v0 = vld [vmem:[%s4893_s1 + $0x18] sm:$0xff]  ;;  %p161_p3 = scmp.lt.s32.totalorder %s3185_s13, 1  ;;  %v3651_v1 = vld [vmem:[%s4893_s1 + $0x10] sm:$0xff]  ;;  %v3654_v2 = vld [vmem:[%s4893_s1 + $0x28] sm:$0xff]  ;;  %vm310_vm0 = vsmask.f32 7424 }
   0xc   : > { %3708 = vmatpush.bf16.msra.mxu1 %v3652_v0  ;;  %3709 = vmatpush.bf16.msra.mxu2 %v3652_v0  ;;  %v3650_v3 = vld [vmem:[%s4893_s1 + $0x8] sm:$0xff]  ;;  %vm471_vm1 = vcmask 261120   ;;  %v3673_v39 = vld [vmem:[%s4893_s1 + $0x38] sm:$0xff]  ;;  %v3653_v40 = vld [vmem:[%s4893_s1 + $0x20] sm:$0xff]  ;;  %vm780_vm2 = vcmask 1046528   ;;  %vm1779_vm5 = vcmask 1045504  }
   0xd   : > { %s4921_s13 = smov (!%p161_p3, %s3185_s13), 1  ;;  %532 = vmatpush.bf16.msra.mxu0 %v3652_v0  ;;  %3710 = vmatpush.bf16.msra.mxu3 %v3652_v0  ;;  %v3675_v4 = vld [vmem:[%s4893_s1 + $0x48] sm:$0xff]  ;;  %v3649_v42 = vld [vmem:[%s4893_s1] sm:$0xff]  ;;  %vm1399_vm3 = vsmask.f32 6400  ;;  %vm2778_vm6 = vcmask 1044480  }
   0xe   : > { %s3714_s20 = smul.u32 164, %s4921_s13  ;;  %vm2398_vm4 = vsmask.f32 5376  ;;  %vm3093_vm7 = vcmask 257024  }
   0xf   : > { %s3715_s5 = smul.u32 144, %s4921_s13 }
  0x10   : > { %3711 = vmatpush.bf16.msra.mxu1 %v3651_v1  ;;  %3712 = vmatpush.bf16.msra.mxu2 %v3651_v1  ;;  %s3803_s27 = scalar_lea.vmem %s4892_s0, %s3714_s20 }
  0x11   : > { %533 = vmatpush.bf16.msra.mxu0 %v3651_v1  ;;  %v3806_v5 = vld [vmem:[%s3803_s27 + $0x28] sm:$0xff]  ;;  %v3809_v6 = vld [vmem:[%s3803_s27 + $0x30] sm:$0xff]  ;;  %v3815_v8 = vld [vmem:[%s3803_s27 + $0x58] sm:$0xff]  ;;  %3713 = vmatpush.bf16.msra.mxu3 %v3651_v1  ;;  %s4584_s13 = scalar_lea.vmem %s4895_s3, %s3715_s5 }
  0x12   : > { %v3812_v7 = vld [vmem:[%s3803_s27 + $0x50] sm:$0xff]  ;;  %v3818_v9 = vld [vmem:[%s3803_s27] sm:$0xff]   ;;  %v3821_v10 = vld [vmem:[%s3803_s27 + $0x8] sm:$0xff]  ;;  %v351_v11 = vshll.u32 %v3806_v5, 16  ;;  %v355_v12 = vshrl.u32 %v3806_v5, 16  ;;  %v359_v13 = vshll.u32 %v3809_v6, 16 }
  0x13   : > { %v391_v14 = vshll.u32 %v3812_v7, 16  ;;  %v395_v15 = vshrl.u32 %v3812_v7, 16  ;;  %v399_v16 = vshll.u32 %v3815_v8, 16  ;;  %v312_v17 = vshrl.u32 %v3818_v9, 16  ;;  %v3839_v28 = vld [vmem:[%s3803_s27 + $0x78] sm:$0xff]  ;;  %v3647_v29 = vld [vmem:[%s3803_s27 + $0x80] sm:$0xff] }
  0x14   : > { %890 = vmatpush.bf16.msrb.mxu2 %v3654_v2  ;;  %679 = vmatpush.bf16.msrb.mxu1 %v3650_v3  ;;  %v314_v18 = vshll.u32 %v3818_v9, 16  ;;  %v3831_v19 = vrot.slane %v351_v11, 1  ;;  %v361_v20 = vrot.slane %v359_v13, 1  ;;  %v319_v22 = vshll.u32 %v3821_v10, 16  ;;  %v3848_v34 = vld [vmem:[%s3803_s27 + $0x38] sm:$0xff]  ;;  %v3852_v35 = vld [vmem:[%s3803_s27 + $0x60] sm:$0xff] }
  0x15   : > { %1642 = vmatpush.bf16.msrb.mxu0 %v3675_v4  ;;  %v3833_v21 = vrot.slane %v391_v14, 1  ;;  %v401_v23 = vrot.slane %v399_v16, 1  ;;  %v431_v36 = vshll.u32 %v3839_v28, 16  ;;  %v435_v37 = vshrl.u32 %v3839_v28, 16  ;;  %v3863_v41 = vld [vmem:[%s3803_s27 + $0x10] sm:$0xff]  ;;  %1262 = vmatpush.bf16.msrb.mxu3 %v3673_v39  ;;  %v3648_v57 = vld [vmem:[%s3803_s27 + $0x88] sm:$0xff] }
  0x16   : > { %v316_v24 = vrot.slane %v314_v18, 1  ;;  %v357_v25 = vor.u32 %v355_v12, %v3831_v19  ;;  %v321_v27 = vrot.slane %v319_v22, 1  ;;  %v439_v38 = vshll.u32 %v3647_v29, 16  ;;  %v3881_v58 = vld [vmem:[%s3803_s27 + $0x48] sm:$0xff]  ;;  %v3890_v3 = vld [vmem:[%s3803_s27 + $0x40] sm:$0xff] }
  0x17   : > { %v397_v26 = vor.u32 %v395_v15, %v3833_v21  ;;  %v3868_v43 = vrot.slane %v431_v36, 1  ;;  %v363_v45 = vshrl.u32 %v3809_v6, 16  ;;  %v367_v46 = vshll.u32 %v3848_v34, 16  ;;  %v3893_v4 = vld [vmem:[%s3803_s27 + $0x68] sm:$0xff]  ;;  %v3674_v14 = vld [vmem:[%s4893_s1 + $0x40] sm:$0xff]  ;;  %v3672_v15 = vld [vmem:[%s4893_s1 + $0x30] sm:$0xff] }
  0x18   : > { %v317_v30 = vor.u32 %v316_v24, %v312_v17  ;;  %v362_v31 = vsel %vm310_vm0, %v357_v25, %v361_v20  ;;  %v441_v44 = vrot.slane %v439_v38, 1  ;;  %891 = vmatpush.bf16.msrb.mxu2 %v3653_v40  ;;  %680 = vmatpush.bf16.msrb.mxu1 %v3649_v42  ;;  %v403_v47 = vshrl.u32 %v3815_v8, 16  ;;  %v3904_v17 = vld [vmem:[%s3803_s27 + $0x18] sm:$0xff]  ;;  %v212_v18 = vld [vmem:[%s3803_s27 + $0x90] sm:$0x1] }
  0x19   : > { %v402_v32 = vsel %vm310_vm0, %v397_v26, %v401_v23  ;;  %3273 = vmatmul.msk.bf16.vlgmr.msra.gmra.mxu1 %vm471_vm1, %v362_v31  ;;  %v407_v48 = vshll.u32 %v3852_v35, 16  ;;  %v437_v49 = vor.u32 %v435_v37, %v3868_v43  ;;  %v323_v50 = vshrl.u32 %v3821_v10, 16  ;;  %1643 = vmatpush.bf16.msrb.mxu0 %v3674_v14 }
  0x1a   : > { %3278 = vmatmul.msk.bf16.vlgmr.msra.gmra.mxu2 %vm471_vm1, %v402_v32  ;;  %v322_v33 = vsel %vm310_vm0, %v317_v30, %v321_v27  ;;  %v327_v51 = vshll.u32 %v3863_v41, 16  ;;  %v365_v53 = vor.u32 %v363_v45, %v361_v20  ;;  %v369_v54 = vrot.slane %v367_v46, 1  ;;  %1263 = vmatpush.bf16.msrb.mxu3 %v3672_v15 }
  0x1b   : > { %3268 = vmatmul.msk.bf16.vlgmr.msra.gmra.mxu0 %vm471_vm1, %v322_v33  ;;  %v442_v52 = vsel %vm310_vm0, %v437_v49, %v441_v44  ;;  %v405_v55 = vor.u32 %v403_v47, %v401_v23  ;;  %v409_v56 = vrot.slane %v407_v48, 1  ;;  %v325_v59 = vor.u32 %v323_v50, %v321_v27  ;;  %v3913_v27 = vld [vmem:[%s3803_s27 + $0x20] sm:$0xff] }
  0x1c   : > { %3283 = vmatmul.msk.bf16.vlgmr.msra.gmra.mxu3 %vm471_vm1, %v442_v52  ;;  %v329_v60 = vrot.slane %v327_v51, 1  ;;  %v370_v61 = vsel %vm310_vm0, %v365_v53, %v369_v54  ;;  %v443_v63 = vshrl.u32 %v3647_v29, 16  ;;  %v447_v0 = vshll.u32 %v3648_v57, 16  ;;  %v3934_v52 = vld [vmem:[%s3803_s27 + $0x70] sm:$0xff] }
  0x1d   : > { %v410_v62 = vsel %vm310_vm0, %v405_v55, %v409_v56  ;;  %v383_v1 = vshll.u32 %v3881_v58, 16  ;;  %v387_v16 = vshrl.u32 %v3881_v58, 16  ;;  %v371_v22 = vshrl.u32 %v3848_v34, 16 }
  0x1e   : > { %v330_v2 = vsel %vm310_vm0, %v325_v59, %v329_v60  ;;  %v445_v11 = vor.u32 %v443_v63, %v441_v44  ;;  %v449_v12 = vrot.slane %v447_v0, 1  ;;  %v375_v23 = vshll.u32 %v3890_v3, 16  ;;  %v3945_v63 = vld [vmem:[%s3803_s27 + $0xc] sm:$0xf] }
  0x1f   : > { %v385_v13 = vrot.slane %v383_v1, 1  ;;  %v411_v24 = vshrl.u32 %v3852_v35, 16  ;;  %v415_v25 = vshll.u32 %v3893_v4, 16  ;;  %v290_v29 = vunpack.c.l.b16 %v212_v18 }
  0x20   : > { %v450_v26 = vsel %vm310_vm0, %v445_v11, %v449_v12  ;;  %v331_v31 = vshrl.u32 %v3863_v41, 16  ;;  %v335_v32 = vshll.u32 %v3904_v17, 16  ;;  %v373_v33 = vor.u32 %v371_v22, %v369_v54  ;;  %v3696_v22 = vld [vmem:[%s4893_s1 + $0x68] sm:$0xff] }
  0x21   : > { %v389_v20 = vor.u32 %v387_v16, %v385_v13  ;;  %v377_v36 = vrot.slane %v375_v23, 1  ;;  %v413_v37 = vor.u32 %v411_v24, %v409_v56  ;;  %v417_v38 = vrot.slane %v415_v25, 1  ;;  %v3655_v16 = vld [vmem:[%s3803_s27 + $0x10] sm:$0xff]  ;;  %v3698_v24 = vld [vmem:[%s4893_s1 + $0x78] sm:$0xff]  ;;  %2261 = vmatpush.bf16.msra.mxu2 %v3696_v22 }
  0x22   : > { %v343_v39 = vshll.u32 %v3913_v27, 16  ;;  %v3923_v40 = vpack.c.b16 %v290_v29, %v290_v29  ;;  %v333_v42 = vor.u32 %v331_v31, %v329_v60  ;;  %v337_v44 = vrot.slane %v335_v32, 1  ;;  %v3677_v25 = vld [vmem:[%s4893_s1 + $0x58] sm:$0xff]  ;;  %2641 = vmatpush.bf16.msra.mxu3 %v3698_v24 }
  0x23   : > { %v3917_v30 = vsel %vm310_vm0, %v389_v20, %v3833_v21  ;;  %v378_v21 = vsel %vm310_vm0, %v373_v33, %v377_v36  ;;  %v418_v45 = vsel %vm310_vm0, %v413_v37, %v417_v38  ;;  %v451_v47 = vshrl.u32 %v3648_v57, 16  ;;  %1889 = vmatpush.bf16.msra.mxu1 %v3677_v25  ;;  %v3705_v37 = vld [vmem:[%s3803_s27] sm:$0xf0] }
  0x24   : > { %v345_v46 = vrot.slane %v343_v39, 1  ;;  %v455_v48 = vshll.u32 %v3923_v40, 16  ;;  %v347_v49 = vshrl.u32 %v3913_v27, 16  ;;  %v338_v50 = vsel %vm310_vm0, %v333_v42, %v337_v44  ;;  %v3706_v39 = vld [vmem:[%s3803_s27] sm:$0xe] }
  0x25   : > { %v453_v53 = vor.u32 %v451_v47, %v449_v12  ;;  %v379_v56 = vshrl.u32 %v3890_v3, 16  ;;  %v419_v57 = vshrl.u32 %v3893_v4, 16  ;;  %v423_v59 = vshll.u32 %v3934_v52, 16 }
  0x26   : > { %v349_v51 = vor.u32 %v347_v49, %v345_v46  ;;  %v457_v54 = vrot.slane %v455_v48, 1  ;;  %v4896_v11 = vunpack.c.l.b16 %v3945_v63  ;;  %v1154_v23 = vrot.slane %v3655_v16, 1 }
  0x27   : > { %v381_v0 = vor.u32 %v379_v56, %v377_v36  ;;  %v421_v1 = vor.u32 %v419_v57, %v417_v38  ;;  %v427_v29 = vshrl.u32 %v3934_v52, 16  ;;  %v3656_v36 = vld [vmem:[%s3803_s27 + $0x18] sm:$0xff]  ;;  %v3657_v56 = vld [vmem:[%s3803_s27 + $0x20] sm:$0xff] }
  0x28   : > { %v354_v55 = vsel %vm310_vm0, %v349_v51, %v3831_v19  ;;  %v458_v60 = vsel %vm310_vm0, %v453_v53, %v457_v54  ;;  %v1156_v38 = vrot.slane %v3656_v36, 1  ;;  %v782_v51 = vrot.slane %v3821_v10, 1 }
  0x29   : > { %3274 = vmatmul.msk.bf16.gmra.mxu1 %vm471_vm1, %v370_v61  ;;  %v339_v61 = vshrl.u32 %v3904_v17, 16  ;;  %v386_v14 = vsel %vm310_vm0, %v381_v0, %v385_v13 }
  0x2a   : > { %3279 = vmatmul.msk.bf16.gmra.mxu2 %vm471_vm1, %v410_v62  ;;  %v1019_v62 = vld [vmem:[%s3803_s27 + $0x8] sm:$0xe]  ;;  %v1157_v47 = vsel %vm780_vm2, %v1154_v23, %v1156_v38 }
  0x2b   : > { %3269 = vmatmul.msk.bf16.gmra.mxu0 %vm471_vm1, %v330_v2  ;;  %v425_v2 = vrot.slane %v423_v59, 1  ;;  %v1097_v19 = vunpack.c.l.b16 %v1019_v62  ;;  %v341_v12 = vor.u32 %v339_v61, %v337_v44  ;;  %v1158_v59 = vrot.slane %v3657_v56, 1 }
  0x2c   : > { %3284 = vmatmul.msk.bf16.gmra.mxu3 %vm471_vm1, %v450_v26  ;;  %v3700_v26 = vld [vmem:[%s4893_s1 + $0x88] sm:$0xff]  ;;  %v1421_v61 = vshll.u32 %v3656_v36, 16 }
  0x2d   : > { %v426_v15 = vsel %vm310_vm0, %v421_v1, %v425_v2  ;;  %v1134_v18 = vpack.c.b16 %v4896_v11, %v1097_v19  ;;  %v346_v20 = vsel %vm310_vm0, %v341_v12, %v345_v46  ;;  %2888 = vmatpush.bf16.msra.mxu0 %v3700_v26  ;;  %v429_v32 = vor.u32 %v427_v29, %v425_v2  ;;  %v3659_v26 = vld [vmem:[%s3803_s27 + $0x30] sm:$0xff] }
  0x2e   : > { %v3707_v46 = vor.u32 %v3706_v39, %v3705_v37  ;;  %v1159_v62 = vsel %vm780_vm2, %v1156_v38, %v1158_v59  ;;  %v1423_v1 = vrot.slane %v1421_v61, 2  ;;  %v784_v2 = vrot.slane %v3863_v41, 1 }
  0x2f   : > { %v1153_v13 = vrot.slane %v1134_v18, 1  ;;  %v434_v33 = vsel %vm310_vm0, %v429_v32, %v3868_v43  ;;  %v1401_v42 = vshrl.u32 %v1134_v18, 16  ;;  %v1404_v44 = vshll.u32 %v1134_v18, 16 }
  0x30   : > { %v785_v12 = vsel %vm780_vm2, %v782_v51, %v784_v2  ;;  %v1430_v18 = vshll.u32 %v3657_v56, 16  ;;  %v1162_v29 = vrot.slane %v3659_v26, 1  ;;  %v788_v38 = vrot.slane %v3913_v27, 1 }
  0x31   : > { %v1155_v31 = vsel %vm780_vm2, %v1153_v13, %v1154_v23  ;;  %v1403_v43 = vrot.slane %v1401_v42, 1  ;;  %v1406_v48 = vrot.slane %v1404_v44, 2  ;;  %v786_v23 = vrot.slane %v3904_v17, 1  ;;  %v3660_v44 = vld [vmem:[%s3803_s27 + $0x38] sm:$0xff] }
  0x32   : > { %v1432_v13 = vrot.slane %v1430_v18, 2  ;;  %v792_v18 = vrot.slane %v3809_v6, 1 }
  0x33   : > { %v1407_v53 = vor.u32 %v1406_v48, %v1403_v43  ;;  %v787_v25 = vsel %vm780_vm2, %v784_v2, %v786_v23  ;;  %v1448_v43 = vshll.u32 %v3659_v26, 16  ;;  %v1457_v2 = vshll.u32 %v3660_v44, 16 }
  0x39   : > { %3275 = vmatmul.msk.bf16.gmra.mxu1 %vm471_vm1, %v378_v21  ;;  %v1409_v21 = vshrl.u32 %v3655_v16, 16 }
  0x3a   : > { %3280 = vmatmul.msk.bf16.gmra.mxu2 %vm471_vm1, %v418_v45  ;;  %v1412_v45 = vshll.u32 %v3655_v16, 16  ;;  %v1427_v16 = vshrl.u32 %v3657_v56, 16 }
  0x3b   : > { %3270 = vmatmul.msk.bf16.gmra.mxu0 %vm471_vm1, %v338_v50  ;;  %v1411_v49 = vrot.slane %v1409_v21, 1 }
  0x3c   : > { %3285 = vmatmul.msk.bf16.gmra.mxu3 %vm471_vm1, %v458_v60  ;;  %v1414_v50 = vrot.slane %v1412_v45, 2  ;;  %v1418_v60 = vshrl.u32 %v3656_v36, 16  ;;  %v1429_v22 = vrot.slane %v1427_v16, 1 }
  0x3e   : > { %v1415_v54 = vor.u32 %v1414_v50, %v1411_v49  ;;  %v1420_v0 = vrot.slane %v1418_v60, 1  ;;  %v1433_v24 = vor.u32 %v1432_v13, %v1429_v22  ;;  %v3661_v60 = vld [vmem:[%s3803_s27 + $0x40] sm:$0xff] }
  0x40   : > { %v1416_v57 = vsel %vm1399_vm3, %v1407_v53, %v1415_v54  ;;  %v1424_v19 = vor.u32 %v1423_v1, %v1420_v0  ;;  %v1450_v53 = vrot.slane %v1448_v43, 2  ;;  %v1166_v0 = vrot.slane %v3661_v60, 1 }
  0x41   : > { %v1454_v1 = vshrl.u32 %v3660_v44, 16 }
  0x43   : > { %v1456_v16 = vrot.slane %v1454_v1, 1 }
  0x49   : > { %3276 = vmatmul.msk.bf16.gmra.mxu1 %vm471_vm1, %v386_v14  ;;  %v1425_v14 = vsel %vm1399_vm3, %v1415_v54, %v1424_v19 }
  0x4a   : > { %3281 = vmatmul.msk.bf16.gmra.mxu2 %vm471_vm1, %v426_v15 }
  0x4b   : > { %3271 = vmatmul.msk.bf16.gmra.mxu0 %vm471_vm1, %v346_v20 }
  0x4c   : > { %3414 = vmatmul.msk.bf16.vlgmr.msrb.gmra.mxu3 %vm471_vm1, %v1155_v31 }
  0x59   : > { %3277 = vmatmul.msk.bf16.gmra.mxu1 %vm471_vm1, %v3917_v30  ;;  %v781_v30 = vrot.slane %v3707_v46, 1  ;;  %v1164_v46 = vrot.slane %v3660_v44, 1  ;;  %v794_v44 = vrot.slane %v3848_v34, 1 }
  0x5a   : > { %3282 = vmatmul.msk.bf16.gmra.mxu2 %vm471_vm1, %v434_v33 }
  0x5b   : > { %3272 = vmatmul.msk.bf16.gmra.mxu0 %vm471_vm1, %v354_v55  ;;  %v783_v55 = vsel %vm780_vm2, %v781_v30, %v782_v51  ;;  %v1165_v50 = vsel %vm780_vm2, %v1162_v29, %v1164_v46 }
  0x5c   : > { %3415 = vmatmul.msk.bf16.gmra.mxu3 %vm471_vm1, %v1157_v47  ;;  %v1445_v47 = vshrl.u32 %v3659_v26, 16 }
  0x5e   : > { %v1447_v51 = vrot.slane %v1445_v47, 1 }
  0x60   : > { %v1451_v54 = vor.u32 %v1450_v53, %v1447_v51  ;;  %v3663_v51 = vld [vmem:[%s3803_s27 + $0x50] sm:$0xff] }
  0x69   : > { %3294 = vmatmul.msk.bf16.vlgmr.msrb.gmra.mxu1 %vm471_vm1, %v3818_v9  ;;  %v3658_v9 = vld [vmem:[%s3803_s27 + $0x28] sm:$0xff] }
  0x6a   : > { %3320 = vmatmul.msk.bf16.vlgmr.msrb.gmra.mxu2 %vm471_vm1, %v783_v55  ;;  %v1160_v15 = vrot.slane %v3658_v9, 1  ;;  %v1436_v31 = vshrl.u32 %v3658_v9, 16  ;;  %v1439_v32 = vshll.u32 %v3658_v9, 16 }
  0x6b   : > { %3440 = vmatmul.msk.bf16.vlgmr.msrb.gmra.mxu0 %vm471_vm1, %v1416_v57 }
  0x6c   : > { %3416 = vmatmul.msk.bf16.gmra.mxu3 %vm471_vm1, %v1159_v62  ;;  %v1161_v20 = vsel %vm780_vm2, %v1158_v59, %v1160_v15  ;;  %v1163_v33 = vsel %vm780_vm2, %v1160_v15, %v1162_v29  ;;  %v1438_v36 = vrot.slane %v1436_v31, 1  ;;  %v1441_v37 = vrot.slane %v1439_v32, 2 }
  0x6d   : > { %v1463_v31 = vshrl.u32 %v3661_v60, 16  ;;  %v1466_v32 = vshll.u32 %v3661_v60, 16 }
  0x6e   : > { %v1442_v39 = vor.u32 %v1441_v37, %v1438_v36 }
  0x70   : > { %v1443_v45 = vsel %vm1399_vm3, %v1433_v24, %v1442_v39  ;;  %v1452_v62 = vsel %vm1399_vm3, %v1442_v39, %v1451_v54 }
  0x79   : > { %3295 = vmatmul.msk.bf16.gmra.mxu1 %vm471_vm1, %v3821_v10  ;;  %v1434_v10 = vsel %vm1399_vm3, %v1424_v19, %v1433_v24 }
  0x7a   : > { %3321 = vmatmul.msk.bf16.gmra.mxu2 %vm471_vm1, %v785_v12 }
  0x7b   : > { %3441 = vmatmul.msk.bf16.gmra.mxu0 %vm471_vm1, %v1425_v14  ;;  %v1167_v14 = vsel %vm780_vm2, %v1164_v46, %v1166_v0 }
  0x7c   : > { %3417 = vmatmul.msk.bf16.gmra.mxu3 %vm471_vm1, %v1161_v20 }
  0x89   : > { %3296 = vmatmul.msk.bf16.gmra.mxu1 %vm471_vm1, %v3863_v41  ;;  %v789_v41 = vsel %vm780_vm2, %v786_v23, %v788_v38 }
  0x8a   : > { %3322 = vmatmul.msk.bf16.gmra.mxu2 %vm471_vm1, %v787_v25  ;;  %v3662_v25 = vld [vmem:[%s3803_s27 + $0x48] sm:$0xff] }
  0x8b   : > { %3442 = vmatmul.msk.bf16.gmra.mxu0 %vm471_vm1, %v1434_v10  ;;  %v1168_v29 = vrot.slane %v3662_v25, 1  ;;  %v1475_v60 = vshll.u32 %v3662_v25, 16 }
  0x8c   : > { %3418 = vmatmul.msk.bf16.gmra.mxu3 %vm471_vm1, %v1163_v33 }
  0x96   : > { %v4015_v42 = vpop.f32.mrf.mxu1 }
  0x98   : > { %v4019_v21 = vpop.f32.mrf.mxu0 }
  0x99   : > { %3297 = vmatmul.msk.bf16.gmra.mxu1 %vm471_vm1, %v3904_v17  ;;  %v790_v17 = vrot.slane %v3806_v5, 1 }
  0x9a   : > { %3323 = vmatmul.msk.bf16.gmra.mxu2 %vm471_vm1, %v789_v41  ;;  %v1465_v41 = vrot.slane %v1463_v31, 1  ;;  %v3664_v31 = vld [vmem:[%s3803_s27 + $0x58] sm:$0xff] }
  0x9b   : > { %3443 = vmatmul.msk.bf16.gmra.mxu0 %vm471_vm1, %v1443_v45  ;;  %v791_v59 = vsel %vm780_vm2, %v788_v38, %v790_v17  ;;  %v793_v24 = vsel %vm780_vm2, %v790_v17, %v792_v18  ;;  %v1169_v38 = vsel %vm780_vm2, %v1166_v0, %v1168_v29 }
  0x9c   : > { %3419 = vmatmul.msk.bf16.gmra.mxu3 %vm471_vm1, %v1165_v50  ;;  %v795_v50 = vsel %vm780_vm2, %v792_v18, %v794_v44 }
  0x9d   : > { %v4026_v48 = vpop.f32.mrf.mxu2 }
  0x9e   : > { %v4028_v49 = vpop.f32.mrf.mxu1 }
  0x9f   : > { %v4037_v56 = vpop.f32.mrf.mxu3 }
  0xa0   : > { %v4031_v30 = vpop.f32.mrf.mxu0  ;;  %4898 = vst [vmem:[#allocation2_spill] sm:$0xff] %v4037_v56 }
  0xa5   : > { %v4035_v55 = vpop.f32.mrf.mxu2 }
  0xa6   : > { %v4039_v57 = vpop.f32.mrf.mxu1 }
  0xa7   : > { %v4052_v12 = vpop.f32.mrf.mxu3 }
  0xa8   : > { %v4043_v61 = vpop.f32.mrf.mxu0  ;;  %4899 = vst [vmem:[#allocation3_spill] sm:$0xff] %v4052_v12 }
  0xa9   : > { %3298 = vmatmul.msk.bf16.gmra.mxu1 %vm471_vm1, %v3913_v27  ;;  %v1459_v27 = vrot.slane %v1457_v2, 2 }
  0xaa   : > { %3324 = vmatmul.msk.bf16.gmra.mxu2 %vm471_vm1, %v791_v59  ;;  %v1472_v59 = vshrl.u32 %v3662_v25, 16 }
  0xab   : > { %3444 = vmatmul.msk.bf16.gmra.mxu0 %vm471_vm1, %v1452_v62  ;;  %v1460_v20 = vor.u32 %v1459_v27, %v1456_v16  ;;  %v796_v27 = vrot.slane %v3890_v3, 1 }
  0xac   : > { %3420 = vmatmul.msk.bf16.gmra.mxu3 %vm471_vm1, %v1167_v14  ;;  %v1474_v16 = vrot.slane %v1472_v59, 1 }
  0xad   : > { %v4050_v19 = vpop.f32.mrf.mxu2  ;;  %v1461_v10 = vsel %vm1399_vm3, %v1451_v54, %v1460_v20  ;;  %v1170_v54 = vrot.slane %v3663_v51, 1 }
  0xae   : > { %v4054_v9 = vpop.f32.mrf.mxu1 }
  0xaf   : > { %v4063_v13 = vpop.f32.mrf.mxu3  ;;  %v1171_v2 = vsel %vm780_vm2, %v1168_v29, %v1170_v54 }
  0xb0   : > { %v4057_v15 = vpop.f32.mrf.mxu0  ;;  %4900 = vst [vmem:[#allocation4_spill] sm:$0xff] %v4063_v13 }
  0xb5   : > { %v4061_v22 = vpop.f32.mrf.mxu2 }
  0xb6   : > { %v4065_v23 = vpop.f32.mrf.mxu1 }
  0xb7   : > { %v4078_v36 = vpop.f32.mrf.mxu3 }
  0xb8   : > { %v4069_v26 = vpop.f32.mrf.mxu0  ;;  %4901 = vst [vmem:[#allocation5_spill] sm:$0xff] %v4078_v36 }
  0xb9   : > { %3299 = vmatmul.msk.bf16.gmra.mxu1 %vm471_vm1, %v3806_v5  ;;  %v1468_v5 = vrot.slane %v1466_v32, 2 }
  0xba   : > { %3325 = vmatmul.msk.bf16.gmra.mxu2 %vm471_vm1, %v793_v24 }
  0xbb   : > { %3445 = vmatmul.msk.bf16.gmra.mxu0 %vm471_vm1, %v1461_v10  ;;  %v1469_v45 = vor.u32 %v1468_v5, %v1465_v41  ;;  %v797_v10 = vsel %vm780_vm2, %v794_v44, %v796_v27  ;;  %v1172_v41 = vrot.slane %v3664_v31, 1  ;;  %v3697_v5 = vld [vmem:[%s4893_s1 + $0x70] sm:$0xff]  ;;  %v1481_v44 = vshrl.u32 %v3663_v51, 16 }
  0xbc   : > { %3421 = vmatmul.msk.bf16.gmra.mxu3 %vm471_vm1, %v1169_v38  ;;  %v3695_v38 = vld [vmem:[%s4893_s1 + $0x60] sm:$0xff] }
  0xbd   : > { %v4076_v33 = vpop.f32.mrf.mxu2  ;;  %v1470_v17 = vsel %vm1399_vm3, %v1460_v20, %v1469_v45  ;;  %2262 = vmatpush.bf16.msra.mxu2 %v3695_v38  ;;  %2642 = vmatpush.bf16.msra.mxu3 %v3697_v5  ;;  %v1173_v59 = vsel %vm780_vm2, %v1170_v54, %v1172_v41 }
  0xbe   : > { %v4080_v37 = vpop.f32.mrf.mxu1 }
  0xbf   : > { %v4089_v47 = vpop.f32.mrf.mxu3 }
  0xc0   : > { %v4083_v39 = vpop.f32.mrf.mxu0  ;;  %4902 = vst [vmem:[#allocation6_spill] sm:$0xff] %v4089_v47 }
  0xc5   : > { %v4087_v46 = vpop.f32.mrf.mxu2 }
  0xc6   : > { %v4091_v43 = vpop.f32.mrf.mxu1 }
  0xc7   : > { %v4104_v0 = vpop.f32.mrf.mxu3 }
  0xc8   : > { %v4095_v53 = vpop.f32.mrf.mxu0  ;;  %4903 = vst [vmem:[#allocation7_spill] sm:$0xff] %v4104_v0 }
  0xc9   : > { %3300 = vmatmul.msk.bf16.gmra.mxu1 %vm471_vm1, %v3809_v6  ;;  %v1477_v6 = vrot.slane %v1475_v60, 2 }
  0xca   : > { %3326 = vmatmul.msk.bf16.gmra.mxu2 %vm471_vm1, %v795_v50  ;;  %v1484_v50 = vshll.u32 %v3663_v51, 16  ;;  %v3699_v51 = vld [vmem:[%s4893_s1 + $0x80] sm:$0xff] }
  0xcb   : > { %3446 = vmatmul.msk.bf16.gmra.mxu0 %vm471_vm1, %v1470_v17  ;;  %v1478_v18 = vor.u32 %v1477_v6, %v1474_v16  ;;  %v3676_v6 = vld [vmem:[%s4893_s1 + $0x50] sm:$0xff] }
  0xcc   : > { %3422 = vmatmul.msk.bf16.gmra.mxu3 %vm471_vm1, %v1171_v2  ;;  %v1483_v2 = vrot.slane %v1481_v44, 1  ;;  %v1486_v16 = vrot.slane %v1484_v50, 2  ;;  %1890 = vmatpush.bf16.msra.mxu1 %v3676_v6  ;;  %v3665_v50 = vld [vmem:[%s3803_s27 + $0x60] sm:$0xff]  ;;  %v1493_v6 = vshll.u32 %v3664_v31, 16 }
  0xcd   : > { %v4102_v62 = vpop.f32.mrf.mxu2  ;;  %v1479_v29 = vsel %vm1399_vm3, %v1469_v45, %v1478_v18  ;;  %2889 = vmatpush.bf16.msra.mxu0 %v3699_v51 }
  0xce   : > { %v4106_v1 = vpop.f32.mrf.mxu1 }
  0xcf   : > { %v1265_v24 = vpop.f32.mrf.mxu3 }
  0xd0   : > { %v4109_v14 = vpop.f32.mrf.mxu0 }
  0xd5   : > { %v4113_v20 = vpop.f32.mrf.mxu2 }
  0xd6   : > { %v4115_v25 = vpop.f32.mrf.mxu1 }
  0xd7   : > { %v1267_v17 = vpop.f32.mrf.mxu3 }
  0xd8   : > { %v4119_v32 = vpop.f32.mrf.mxu0 }
  0xd9   : > { %3301 = vmatmul.msk.bf16.gmra.mxu1 %vm471_vm1, %v3848_v34 }
  0xda   : > { %3327 = vmatmul.msk.bf16.gmra.mxu2 %vm471_vm1, %v797_v10  ;;  %v798_v10 = vrot.slane %v3881_v58, 1 }
  0xdb   : > { %3447 = vmatmul.msk.bf16.gmra.mxu0 %vm471_vm1, %v1479_v29  ;;  %v1487_v29 = vor.u32 %v1486_v16, %v1483_v2  ;;  %v1490_v16 = vshrl.u32 %v3664_v31, 16 }
  0xdc   : > { %3423 = vmatmul.msk.bf16.gmra.mxu3 %vm471_vm1, %v1173_v59  ;;  %v799_v44 = vsel %vm780_vm2, %v796_v27, %v798_v10  ;;  %v1174_v59 = vrot.slane %v3665_v50, 1 }
  0xdd   : > { %v4132_v45 = vpop.f32.mrf.mxu2  ;;  %v1488_v0 = vsel %vm1399_vm3, %v1478_v18, %v1487_v29  ;;  %v1492_v56 = vrot.slane %v1490_v16, 1 }
  0xde   : > { %4904 = vst [vmem:[#allocation8_spill] sm:$0xff] %v4132_v45  ;;  %v4134_v34 = vpop.f32.mrf.mxu1  ;;  %v1175_v13 = vsel %vm780_vm2, %v1172_v41, %v1174_v59  ;;  %v3666_v41 = vld [vmem:[%s3803_s27 + $0x68] sm:$0xff] }
  0xdf   : > { %v1270_v38 = vpop.f32.mrf.mxu3 }
  0xe0   : > { %v4137_v60 = vpop.f32.mrf.mxu0 }
  0xe5   : > { %v4147_v54 = vpop.f32.mrf.mxu2 }
  0xe6   : > { %4905 = vst [vmem:[#allocation9_spill] sm:$0xff] %v4147_v54  ;;  %v682_v5 = vpop.f32.mrf.mxu1 }
  0xe7   : > { %v683_v2 = vadd.f32 %v682_v5, %v4019_v21  ;;  %v1272_v47 = vpop.f32.mrf.mxu3 }
  0xe8   : > { %v1645_v11 = vpop.f32.mrf.mxu0 }
  0xe9   : > { %3302 = vmatmul.msk.bf16.gmra.mxu1 %vm471_vm1, %v3890_v3  ;;  %v1495_v3 = vrot.slane %v1493_v6, 2  ;;  %v1502_v6 = vshll.u32 %v3665_v50, 16 }
  0xea   : > { %3328 = vmatmul.msk.bf16.gmra.mxu2 %vm471_vm1, %v799_v44 }
  0xeb   : > { %3448 = vmatmul.msk.bf16.gmra.mxu0 %vm471_vm1, %v1488_v0  ;;  %v800_v0 = vrot.slane %v3812_v7, 1  ;;  %v1496_v31 = vor.u32 %v1495_v3, %v1492_v56 }
  0xec   : > { %3424 = vmatmul.msk.bf16.gmra.mxu3 %vm471_vm1, %v1175_v13  ;;  %v1499_v13 = vshrl.u32 %v3665_v50, 16 }
  0xed   : > { %v893_v51 = vpop.f32.mrf.mxu2  ;;  %v801_v45 = vsel %vm780_vm2, %v798_v10, %v800_v0  ;;  %v1497_v16 = vsel %vm1399_vm3, %v1487_v29, %v1496_v31 }
  0xee   : > { %v983_v36 = vadd.f32 %v893_v51, %v683_v2  ;;  %v684_v27 = vpop.f32.mrf.mxu1 }
  0xef   : > { %v685_v21 = vadd.f32 %v684_v27, %v4031_v30  ;;  %v1275_v54 = vpop.f32.mrf.mxu3  ;;  %v1176_v30 = vrot.slane %v3666_v41, 1 }
  0xf0   : > { %v1355_v18 = vadd.f32 %v1265_v24, %v983_v36  ;;  %v1647_v12 = vpop.f32.mrf.mxu0 }
  0xf1   : > { %v1177_v29 = vsel %vm780_vm2, %v1174_v59, %v1176_v30  ;;  %v3667_v59 = vld [vmem:[%s3803_s27 + $0x70] sm:$0xff] }
  0xf2   : > { %v4159_v44 = vadd.f32 %v1645_v11, %v1355_v18 }
  0xf5   : > { %v895_v5 = vpop.f32.mrf.mxu2 }
  0xf6   : > { %v984_v2 = vadd.f32 %v895_v5, %v685_v21  ;;  %v687_v51 = vpop.f32.mrf.mxu1  ;;  %v1501_v21 = vrot.slane %v1499_v13, 1  ;;  %v802_v5 = vrot.slane %v3815_v8, 1 }
  0xf7   : > { %v688_v56 = vadd.f32 %v687_v51, %v4043_v61  ;;  %v1277_v27 = vpop.f32.mrf.mxu3 }
  0xf8   : > { %v1356_v36 = vadd.f32 %v1267_v17, %v984_v2  ;;  %v1650_v24 = vpop.f32.mrf.mxu0 }
  0xf9   : > { %3303 = vmatmul.msk.bf16.gmra.mxu1 %vm471_vm1, %v3881_v58 }
  0xfa   : > { %3329 = vmatmul.msk.bf16.gmra.mxu2 %vm471_vm1, %v801_v45  ;;  %v4169_v11 = vadd.f32 %v1647_v12, %v1356_v36  ;;  %v1504_v45 = vrot.slane %v1502_v6, 2 }
  0xfb   : > { %3449 = vmatmul.msk.bf16.gmra.mxu0 %vm471_vm1, %v1497_v16 }
  0xfc   : > { %3425 = vmatmul.msk.bf16.gmra.mxu3 %vm471_vm1, %v1177_v29  ;;  %v1505_v50 = vor.u32 %v1504_v45, %v1501_v21 }
  0xfd   : > { %v898_v10 = vpop.f32.mrf.mxu2 }
  0xfe   : > { %v985_v17 = vadd.f32 %v898_v10, %v688_v56  ;;  %v689_v18 = vpop.f32.mrf.mxu1  ;;  %v803_v56 = vsel %vm780_vm2, %v800_v0, %v802_v5  ;;  %v1506_v13 = vsel %vm1399_vm3, %v1496_v31, %v1505_v50 }
  0xff   : > { %v690_v61 = vadd.f32 %v689_v18, %v4057_v15  ;;  %v1280_v51 = vpop.f32.mrf.mxu3  ;;  %v1178_v15 = vrot.slane %v3667_v59, 1  ;;  %v1511_v18 = vshll.u32 %v3666_v41, 16 }
 0x100   : > { %v1357_v3 = vadd.f32 %v1270_v38, %v985_v17  ;;  %v1652_v58 = vpop.f32.mrf.mxu0  ;;  %v1508_v17 = vshrl.u32 %v3666_v41, 16 }
 0x101   : > { %v1179_v31 = vsel %vm780_vm2, %v1176_v30, %v1178_v15  ;;  %v3668_v30 = vld [vmem:[%s3803_s27 + $0x78] sm:$0xff] }
 0x102   : > { %v4175_v12 = vadd.f32 %v1650_v24, %v1357_v3  ;;  %v1510_v45 = vrot.slane %v1508_v17, 1 }
 0x105   : > { %v900_v2 = vpop.f32.mrf.mxu2 }
 0x106   : > { %v986_v36 = vadd.f32 %v900_v2, %v690_v61  ;;  %v692_v16 = vpop.f32.mrf.mxu1  ;;  %v1513_v61 = vrot.slane %v1511_v18, 2  ;;  %v804_v2 = vrot.slane %v3852_v35, 1 }
 0x107   : > { %v693_v6 = vadd.f32 %v692_v16, %v4069_v26  ;;  %v1282_v29 = vpop.f32.mrf.mxu3 }
 0x108   : > { %v1358_v38 = vadd.f32 %v1272_v47, %v986_v36  ;;  %v1655_v10 = vpop.f32.mrf.mxu0  ;;  %v1514_v41 = vor.u32 %v1513_v61, %v1510_v45 }
 0x109   : > { %3304 = vmatmul.msk.bf16.gmra.mxu1 %vm471_vm1, %v3812_v7 }
 0x10a   : > { %3330 = vmatmul.msk.bf16.gmra.mxu2 %vm471_vm1, %v803_v56  ;;  %v4185_v24 = vadd.f32 %v1652_v58, %v1358_v38  ;;  %v1515_v17 = vsel %vm1399_vm3, %v1505_v50, %v1514_v41 }
 0x10b   : > { %3450 = vmatmul.msk.bf16.gmra.mxu0 %vm471_vm1, %v1506_v13  ;;  %v805_v13 = vsel %vm780_vm2, %v802_v5, %v804_v2 }
 0x10c   : > { %3426 = vmatmul.msk.bf16.gmra.mxu3 %vm471_vm1, %v1179_v31 }
 0x10d   : > { %v903_v0 = vpop.f32.mrf.mxu2 }
 0x10e   : > { %v987_v47 = vadd.f32 %v903_v0, %v693_v6  ;;  %v694_v3 = vpop.f32.mrf.mxu1  ;;  %v1517_v0 = vshrl.u32 %v3667_v59, 16 }
 0x10f   : > { %v695_v26 = vadd.f32 %v694_v3, %v4083_v39  ;;  %v1285_v16 = vpop.f32.mrf.mxu3  ;;  %v1180_v39 = vrot.slane %v3668_v30, 1 }
 0x110   : > { %v1359_v21 = vadd.f32 %v1275_v54, %v987_v47  ;;  %v1657_v7 = vpop.f32.mrf.mxu0  ;;  %v1520_v47 = vshll.u32 %v3667_v59, 16  ;;  %v1519_v45 = vrot.slane %v1517_v0, 1 }
 0x111   : > { %v1181_v50 = vsel %vm780_vm2, %v1178_v15, %v1180_v39  ;;  %v3669_v15 = vld [vmem:[%s3803_s27 + $0x80] sm:$0xff] }
 0x112   : > { %v4191_v58 = vadd.f32 %v1655_v10, %v1359_v21  ;;  %v1522_v61 = vrot.slane %v1520_v47, 2  ;;  %v1526_v47 = vshrl.u32 %v3668_v30, 16 }
 0x114   : > { %v1523_v59 = vor.u32 %v1522_v61, %v1519_v45  ;;  %v808_v61 = vrot.slane %v3934_v52, 1 }
 0x115   : > { %v905_v36 = vpop.f32.mrf.mxu2 }
 0x116   : > { %v988_v56 = vadd.f32 %v905_v36, %v695_v26  ;;  %v697_v38 = vpop.f32.mrf.mxu1  ;;  %v806_v26 = vrot.slane %v3893_v4, 1 }
 0x117   : > { %v698_v18 = vadd.f32 %v697_v38, %v4095_v53  ;;  %v1287_v3 = vpop.f32.mrf.mxu3 }
 0x118   : > { %v1360_v54 = vadd.f32 %v1277_v27, %v988_v56  ;;  %v1660_v6 = vpop.f32.mrf.mxu0 }
 0x119   : > { %3305 = vmatmul.msk.bf16.gmra.mxu1 %vm471_vm1, %v3815_v8 }
 0x11a   : > { %3331 = vmatmul.msk.bf16.gmra.mxu2 %vm471_vm1, %v805_v13  ;;  %v4201_v10 = vadd.f32 %v1657_v7, %v1360_v54  ;;  %v807_v54 = vsel %vm780_vm2, %v804_v2, %v806_v26 }
 0x11b   : > { %3451 = vmatmul.msk.bf16.gmra.mxu0 %vm471_vm1, %v1515_v17 }
 0x11c   : > { %3427 = vmatmul.msk.bf16.gmra.mxu3 %vm471_vm1, %v1181_v50 }
 0x11d   : > { %v908_v5 = vpop.f32.mrf.mxu2 }
 0x11e   : > { %v989_v27 = vadd.f32 %v908_v5, %v698_v18  ;;  %v699_v31 = vpop.f32.mrf.mxu1  ;;  %v1524_v18 = vsel %vm1399_vm3, %v1514_v41, %v1523_v59  ;;  %v1529_v5 = vshll.u32 %v3668_v30, 16 }
 0x11f   : > { %v700_v53 = vadd.f32 %v699_v31, %v4109_v14  ;;  %v1290_v56 = vpop.f32.mrf.mxu3  ;;  %v1182_v14 = vrot.slane %v3669_v15, 1 }
 0x120   : > { %v1361_v21 = vadd.f32 %v1280_v51, %v989_v27  ;;  %v1662_v8 = vpop.f32.mrf.mxu0  ;;  %v1531_v45 = vrot.slane %v1529_v5, 2  ;;  %v1538_v5 = vshll.u32 %v3669_v15, 16 }
 0x121   : > { %v1183_v41 = vsel %vm780_vm2, %v1180_v39, %v1182_v14  ;;  %v3670_v39 = vld [vmem:[%s3803_s27 + $0x88] sm:$0xff] }
 0x122   : > { %v4207_v7 = vadd.f32 %v1660_v6, %v1361_v21  ;;  %v1528_v21 = vrot.slane %v1526_v47, 1  ;;  %v1535_v47 = vshrl.u32 %v3669_v15, 16 }
 0x124   : > { %v1532_v30 = vor.u32 %v1531_v45, %v1528_v21  ;;  %v810_v21 = vrot.slane %v3839_v28, 1 }
 0x125   : > { %v910_v36 = vpop.f32.mrf.mxu2 }
 0x126   : > { %v990_v38 = vadd.f32 %v910_v36, %v700_v53  ;;  %v702_v13 = vpop.f32.mrf.mxu1 }
 0x127   : > { %v703_v0 = vadd.f32 %v702_v13, %v4119_v32  ;;  %v1292_v27 = vpop.f32.mrf.mxu3 }
 0x128   : > { %v1362_v51 = vadd.f32 %v1282_v29, %v990_v38  ;;  %v1665_v17 = vpop.f32.mrf.mxu0 }
 0x129   : > { %3306 = vmatmul.msk.bf16.gmra.mxu1 %vm471_vm1, %v3852_v35 }
 0x12a   : > { %3332 = vmatmul.msk.bf16.gmra.mxu2 %vm471_vm1, %v807_v54  ;;  %v4217_v6 = vadd.f32 %v1662_v8, %v1362_v51  ;;  %v809_v54 = vsel %vm780_vm2, %v806_v26, %v808_v61 }
 0x12b   : > { %3452 = vmatmul.msk.bf16.gmra.mxu0 %vm471_vm1, %v1524_v18  ;;  %v1533_v18 = vsel %vm1399_vm3, %v1523_v59, %v1532_v30 }
 0x12c   : > { %3428 = vmatmul.msk.bf16.gmra.mxu3 %vm471_vm1, %v1183_v41  ;;  %v1537_v41 = vrot.slane %v1535_v47, 1 }
 0x12d   : > { %v913_v2 = vpop.f32.mrf.mxu2 }
 0x12e   : > { %v991_v29 = vadd.f32 %v913_v2, %v703_v0  ;;  %v704_v31 = vpop.f32.mrf.mxu1 }
 0x12f   : > { %v705_v32 = vadd.f32 %v704_v31, %v4137_v60  ;;  %v1295_v36 = vpop.f32.mrf.mxu3  ;;  %v1184_v60 = vrot.slane %v3670_v39, 1 }
 0x130   : > { %v1363_v50 = vadd.f32 %v1285_v16, %v991_v29  ;;  %v1667_v35 = vpop.f32.mrf.mxu0 }
 0x131   : > { %v1185_v59 = vsel %vm780_vm2, %v1182_v14, %v1184_v60  ;;  %v3671_v14 = vld [vmem:[%s3803_s27 + $0x90] sm:$0xff] }
 0x132   : > { %v4223_v8 = vadd.f32 %v1665_v17, %v1363_v50  ;;  %v1540_v50 = vrot.slane %v1538_v5, 2 }
 0x134   : > { %v1541_v15 = vor.u32 %v1540_v50, %v1537_v41 }
 0x135   : > { %v915_v53 = vpop.f32.mrf.mxu2 }
 0x136   : > { %v992_v38 = vadd.f32 %v915_v53, %v705_v32  ;;  %v707_v13 = vpop.f32.mrf.mxu1 }
 0x137   : > { %v708_v0 = vadd.f32 %v707_v13, %v4015_v42  ;;  %v1297_v2 = vpop.f32.mrf.mxu3  ;;  %v811_v13 = vsel %vm780_vm2, %v808_v61, %v810_v21  ;;  %v1544_v61 = vshrl.u32 %v3670_v39, 16 }
 0x138   : > { %v1364_v16 = vadd.f32 %v1287_v3, %v992_v38  ;;  %v1670_v51 = vpop.f32.mrf.mxu0 }
 0x139   : > { %3307 = vmatmul.msk.bf16.gmra.mxu1 %vm471_vm1, %v3893_v4 }
 0x13a   : > { %3333 = vmatmul.msk.bf16.gmra.mxu2 %vm471_vm1, %v809_v54  ;;  %v4233_v17 = vadd.f32 %v1667_v35, %v1364_v16  ;;  %v1542_v16 = vsel %vm1399_vm3, %v1532_v30, %v1541_v15 }
 0x13b   : > { %3453 = vmatmul.msk.bf16.gmra.mxu0 %vm471_vm1, %v1533_v18  ;;  %v1547_v18 = vshll.u32 %v3670_v39, 16 }
 0x13c   : > { %3429 = vmatmul.msk.bf16.gmra.mxu3 %vm471_vm1, %v1185_v59  ;;  %v1055_v59 = vld [vmem:[%s3803_s27 + $0x98] sm:$0x1] }
 0x13d   : > { %v918_v26 = vpop.f32.mrf.mxu2 }
 0x13e   : > { %v993_v3 = vadd.f32 %v918_v26, %v708_v0  ;;  %v709_v29 = vpop.f32.mrf.mxu1 }
 0x13f   : > { %v710_v42 = vadd.f32 %v709_v29, %v4028_v49  ;;  %v1300_v32 = vpop.f32.mrf.mxu3  ;;  %v1186_v49 = vrot.slane %v3671_v14, 1  ;;  %v1549_v29 = vrot.slane %v1547_v18, 2 }
 0x140   : > { %v1365_v31 = vadd.f32 %v1290_v56, %v993_v3  ;;  %v1672_v4 = vpop.f32.mrf.mxu0  ;;  %v1546_v3 = vrot.slane %v1544_v61, 1  ;;  %v3726_v61 = vld [vmem:[%s3803_s27 + $0x78] sm:$0xff] }
 0x142   : > { %v4239_v35 = vadd.f32 %v1670_v51, %v1365_v31 }
 0x145   : > { %v920_v45 = vpop.f32.mrf.mxu2 }
 0x146   : > { %v994_v53 = vadd.f32 %v920_v45, %v710_v42  ;;  %v712_v38 = vpop.f32.mrf.mxu1 }
 0x147   : > { %v713_v51 = vadd.f32 %v712_v38, %v4039_v57  ;;  %v4253_v0 = vpop.f32.mrf.mxu3  ;;  %v4261_v57 = vld [vmem:[%s3803_s27 + $0x80] sm:$0xff] }
 0x148   : > { %v1366_v56 = vadd.f32 %v1292_v27, %v994_v53  ;;  %v1675_v54 = vpop.f32.mrf.mxu0  ;;  %v812_v39 = vrot.slane %v4261_v57, 1 }
 0x149   : > { %3308 = vmatmul.msk.bf16.gmra.mxu1 %vm471_vm1, %v3934_v52  ;;  %v1187_v52 = vsel %vm780_vm2, %v1184_v60, %v1186_v49  ;;  %v1550_v60 = vor.u32 %v1549_v29, %v1546_v3  ;;  %v4285_v29 = vld [vmem:[%s3803_s27 + $0x18] sm:$0xff] }
 0x14a   : > { %3334 = vmatmul.msk.bf16.gmra.mxu2 %vm471_vm1, %v811_v13  ;;  %v4249_v28 = vadd.f32 %v1672_v4, %v1366_v56  ;;  %v1133_v4 = vunpack.c.l.b16 %v1055_v59  ;;  %v813_v53 = vsel %vm780_vm2, %v810_v21, %v812_v39 }
 0x14b   : > { %3454 = vmatmul.msk.bf16.gmra.mxu0 %vm471_vm1, %v1542_v16  ;;  %v2018_v16 = vld [vmem:[%s3803_s27 + $0x10] sm:$0xc] }
 0x14c   : > { %3430 = vmatmul.msk.bf16.gmra.mxu3 %vm471_vm1, %v1187_v52  ;;  %v1152_v38 = vpack.c.b16 %v1133_v4, %v1133_v4  ;;  %v2096_v21 = vunpack.c.l.b16 %v2018_v16 }
 0x14d   : > { %v923_v27 = vpop.f32.mrf.mxu2 }
 0x14e   : > { %v995_v30 = vadd.f32 %v923_v27, %v713_v51  ;;  %v714_v47 = vpop.f32.mrf.mxu1  ;;  %v4271_v51 = vld [vmem:[%s3803_s27 + $0x14] sm:$0xf]  ;;  %v1188_v18 = vrot.slane %v1152_v38, 1  ;;  %v1553_v27 = vshrl.u32 %v3671_v14, 16 }
 0x14f   : > { %v715_v41 = vadd.f32 %v714_v47, %v4054_v9  ;;  %v4265_v50 = vpop.f32.mrf.mxu3 }
 0x150   : > { %v1367_v5 = vadd.f32 %v1295_v36, %v995_v30  ;;  %v1677_v26 = vpop.f32.mrf.mxu0  ;;  %v1556_v30 = vshll.u32 %v3671_v14, 16 }
 0x152   : > { %v4258_v31 = vadd.f32 %v1675_v54, %v1367_v5  ;;  %v1551_v54 = vsel %vm1399_vm3, %v1541_v15, %v1550_v60 }
 0x155   : > { %v925_v36 = vpop.f32.mrf.mxu2 }
 0x156   : > { %v996_v42 = vadd.f32 %v925_v36, %v715_v41  ;;  %v717_v45 = vpop.f32.mrf.mxu1  ;;  %v1555_v36 = vrot.slane %v1553_v27, 1 }
 0x157   : > { %v718_v15 = vadd.f32 %v717_v45, %v4065_v23  ;;  %v4281_v52 = vpop.f32.mrf.mxu3  ;;  %v1391_v23 = vld [vmem:[%s3803_s27 + $0x98] sm:$0x3]  ;;  %v4293_v45 = vld [vmem:[%s3803_s27 + $0x88] sm:$0xff] }
 0x158   : > { %v1368_v13 = vadd.f32 %v1297_v2, %v996_v42  ;;  %v1680_v56 = vpop.f32.mrf.mxu0  ;;  %v4897_v2 = vunpack.c.l.b16 %v4271_v51  ;;  %v1558_v42 = vrot.slane %v1556_v30, 2  ;;  %v814_v14 = vrot.slane %v4293_v45, 1 }
 0x159   : > { %3309 = vmatmul.msk.bf16.gmra.mxu1 %vm471_vm1, %v3726_v61  ;;  %v1397_v61 = vunpack.c.l.b16 %v1391_v23 }
 0x15a   : > { %3335 = vmatmul.msk.bf16.gmra.mxu2 %vm471_vm1, %v813_v53  ;;  %v4276_v9 = vadd.f32 %v1677_v26, %v1368_v13  ;;  %v1189_v26 = vsel %vm780_vm2, %v1186_v49, %v1188_v18  ;;  %v4289_v59 = vpack.c.b16 %v4897_v2, %v2096_v21  ;;  %v2408_v13 = vshrl.u32 %v4285_v29, 16 }
 0x15b   : > { %3455 = vmatmul.msk.bf16.gmra.mxu0 %vm471_vm1, %v1551_v54  ;;  %v1559_v16 = vor.u32 %v1558_v42, %v1555_v36  ;;  %v815_v27 = vsel %vm780_vm2, %v812_v39, %v814_v14 }
 0x15c   : > { %4906 = vst [vmem:[#allocation10_spill] sm:$0xff] %v4276_v9  ;;  %3431 = vmatmul.msk.bf16.gmra.mxu3 %vm471_vm1, %v1189_v26  ;;  %v2400_v49 = vshrl.u32 %v4289_v59, 16  ;;  %v2403_v38 = vshll.u32 %v4289_v59, 16  ;;  %v4309_v9 = vpack.c.b16 %v1397_v61, %v1397_v61  ;;  %v816_v61 = vrot.slane %v3923_v40, 1 }
 0x15d   : > { %v928_v47 = vpop.f32.mrf.mxu2 }
 0x15e   : > { %v997_v5 = vadd.f32 %v928_v47, %v718_v15  ;;  %v719_v3 = vpop.f32.mrf.mxu1  ;;  %v2402_v30 = vrot.slane %v2400_v49, 2  ;;  %v2405_v47 = vrot.slane %v2403_v38, 3 }
 0x15f   : > { %v720_v54 = vadd.f32 %v719_v3, %v4080_v37  ;;  %v4304_v21 = vpop.f32.mrf.mxu3 }
 0x160   : > { %v1369_v4 = vadd.f32 %v1300_v32, %v997_v5  ;;  %v1682_v41 = vpop.f32.mrf.mxu0  ;;  %v2411_v32 = vshll.u32 %v4285_v29, 16  ;;  %v2410_v5 = vrot.slane %v2408_v13, 2  ;;  %v2406_v39 = vor.u32 %v2405_v47, %v2402_v30 }
 0x162   : > { %v4297_v53 = vadd.f32 %v1680_v56, %v1369_v4  ;;  %v2413_v26 = vrot.slane %v2411_v32, 3 }
 0x164   : > { %4907 = vst [vmem:[#allocation11_spill] sm:$0xff] %v4297_v53  ;;  %v1560_v53 = vsel %vm1399_vm3, %v1550_v60, %v1559_v16  ;;  %v2414_v3 = vor.u32 %v2413_v26, %v2410_v5  ;;  %v1565_v60 = vshll.u32 %v4309_v9, 16  ;;  %v817_v26 = vsel %vm780_vm2, %v814_v14, %v816_v61  ;;  %v4354_v61 = vld [vmem:[%s3803_s27 + $0x28] sm:$0xff] }
 0x165   : > { %v930_v18 = vpop.f32.mrf.mxu2 }
 0x166   : > { %v998_v15 = vadd.f32 %v930_v18, %v720_v54  ;;  %v722_v56 = vpop.f32.mrf.mxu1  ;;  %v2415_v38 = vsel %vm2398_vm4, %v2406_v39, %v2414_v3 }
 0x167   : > { %v723_v36 = vadd.f32 %v722_v56, %v4091_v43  ;;  %v4320_v23 = vpop.f32.mrf.mxu3  ;;  %v1567_v43 = vrot.slane %v1565_v60, 2  ;;  %v2770_v60 = vld [vmem:[%s3803_s27 + $0x10] sm:$0x8] }
 0x168   : > { %v1370_v4 = vadd.f32 %v4253_v0, %v998_v15  ;;  %v1685_v2 = vpop.f32.mrf.mxu0  ;;  %v1562_v0 = vshrl.u32 %v4309_v9, 16 }
 0x169   : > { %3310 = vmatmul.msk.bf16.gmra.mxu1 %vm471_vm1, %v4261_v57 }
 0x16a   : > { %3336 = vmatmul.msk.bf16.gmra.mxu2 %vm471_vm1, %v815_v27  ;;  %v4314_v37 = vadd.f32 %v1682_v41, %v1370_v4  ;;  %v4324_v41 = vld [vmem:[%s3803_s27 + $0x20] sm:$0xff]  ;;  %v1564_v32 = vrot.slane %v1562_v0, 1  ;;  %v1771_v4 = vld [vmem:[%s3803_s27 + $0x8] sm:$0xc] }
 0x16b   : > { %3456 = vmatmul.msk.bf16.gmra.mxu0 %vm471_vm1, %v1560_v53  ;;  %v2417_v18 = vshrl.u32 %v4324_v41, 16  ;;  %v2420_v15 = vshll.u32 %v4324_v41, 16 }
 0x16c   : > { %3586 = vmatmul.msk.bf16.vlgmr.msra.gmra.mxu3 %vm471_vm1, %v2415_v38  ;;  %v1568_v56 = vor.u32 %v1567_v43, %v1564_v32 }
 0x16d   : > { %v933_v42 = vpop.f32.mrf.mxu2  ;;  %v2422_v39 = vrot.slane %v2420_v15, 3  ;;  %v4909_v15 = vunpack.c.l.b16 %v4271_v51 }
 0x16e   : > { %v999_v49 = vadd.f32 %v933_v42, %v723_v36  ;;  %v724_v57 = vpop.f32.mrf.mxu1  ;;  %v1569_v0 = vsel %vm1399_vm3, %v1559_v16, %v1568_v56  ;;  %v3728_v56 = vld [vmem:[%s3803_s27 + $0x10] sm:$0xff] }
 0x16f   : > { %v725_v27 = vadd.f32 %v724_v57, %v4106_v1  ;;  %v1777_v1 = vunpack.c.l.b16 %v1771_v4  ;;  %v2780_v4 = vrot.slane %v4285_v29, 3 }
 0x170   : > { %v1371_v53 = vadd.f32 %v4265_v50, %v999_v49  ;;  %v1687_v13 = vpop.f32.mrf.mxu0  ;;  %v4334_v50 = vpop.f32.mrf.mxu3 }
 0x172   : > { %v4328_v54 = vadd.f32 %v1685_v2, %v1371_v53  ;;  %v2419_v2 = vrot.slane %v2417_v18, 2  ;;  %v4908_v53 = vunpack.c.l.b16 %v3945_v63  ;;  %v2152_v63 = vrot.slane %v4289_v59, 2 }
 0x174   : > { %v2423_v14 = vor.u32 %v2422_v39, %v2419_v2  ;;  %v1778_v32 = vpack.c.b16 %v4908_v53, %v1777_v1 }
 0x175   : > { %v935_v30 = vpop.f32.mrf.mxu2 }
 0x176   : > { %v1000_v47 = vadd.f32 %v935_v30, %v725_v27  ;;  %v727_v5 = vpop.f32.mrf.mxu1  ;;  %v2424_v43 = vsel %vm2398_vm4, %v2414_v3, %v2423_v14  ;;  %v1781_v30 = vrot.slane %v3728_v56, 2  ;;  %v2426_v3 = vshrl.u32 %v4354_v61, 16 }
 0x177   : > { %v728_v49 = vadd.f32 %v727_v5, %v4115_v25  ;;  %v1780_v25 = vrot.slane %v1778_v32, 2  ;;  %v2153_v5 = vrot.slane %v4285_v29, 2 }
 0x178   : > { %v1372_v40 = vadd.f32 %v4281_v52, %v1000_v47  ;;  %v1690_v36 = vpop.f32.mrf.mxu0  ;;  %v2776_v52 = vunpack.c.l.b16 %v2770_v60  ;;  %v4348_v38 = vpop.f32.mrf.mxu3  ;;  %v2428_v60 = vrot.slane %v2426_v3, 2 }
 0x179   : > { %3311 = vmatmul.msk.bf16.gmra.mxu1 %vm471_vm1, %v4293_v45  ;;  %v2154_v59 = vsel %vm1779_vm5, %v2152_v63, %v2153_v5  ;;  %v2155_v63 = vrot.slane %v4324_v41, 2 }
 0x17a   : > { %3337 = vmatmul.msk.bf16.gmra.mxu2 %vm471_vm1, %v817_v26  ;;  %v4344_v42 = vadd.f32 %v1687_v13, %v1372_v40  ;;  %v2777_v27 = vpack.c.b16 %v4909_v15, %v2776_v52  ;;  %v2429_v26 = vshll.u32 %v4354_v61, 16 }
 0x17b   : > { %3457 = vmatmul.msk.bf16.gmra.mxu0 %vm471_vm1, %v1569_v0  ;;  %v1782_v0 = vsel %vm1779_vm5, %v1780_v25, %v1781_v30  ;;  %v3729_v25 = vld [vmem:[%s3803_s27 + $0x18] sm:$0xff] }
 0x17c   : > { %3587 = vmatmul.msk.bf16.gmra.mxu3 %vm471_vm1, %v2424_v43  ;;  %v2779_v51 = vrot.slane %v2777_v27, 3  ;;  %v2431_v1 = vrot.slane %v2429_v26, 3  ;;  %v1783_v56 = vrot.slane %v3729_v25, 2 }
 0x17d   : > { %v938_v57 = vpop.f32.mrf.mxu2 }
 0x17e   : > { %v1001_v16 = vadd.f32 %v938_v57, %v728_v49  ;;  %v729_v45 = vpop.f32.mrf.mxu1  ;;  %v2432_v57 = vor.u32 %v2431_v1, %v2428_v60 }
 0x180   : > { %v1373_v13 = vadd.f32 %v4304_v21, %v1001_v16  ;;  %v1692_v18 = vpop.f32.mrf.mxu0  ;;  %v730_v21 = vadd.f32 %v729_v45, %v4134_v34  ;;  %v1320_v39 = vpop.f32.mrf.mxu3  ;;  %v2781_v34 = vsel %vm2778_vm6, %v2779_v51, %v2780_v4 }
 0x182   : > { %v4361_v47 = vadd.f32 %v1690_v36, %v1373_v13  ;;  %v4381_v13 = vld [vmem:[%s3803_s27 + $0x30] sm:$0xff] }
 0x183   : > { %v2438_v3 = vshll.u32 %v4381_v13, 16 }
 0x185   : > { %v940_v2 = vpop.f32.mrf.mxu2 }
 0x186   : > { %v1002_v40 = vadd.f32 %v940_v2, %v730_v21  ;;  %v732_v36 = vpop.f32.mrf.mxu1 }
 0x187   : > { %v733_v16 = vadd.f32 %v732_v36, %v4026_v48  ;;  %v2435_v48 = vshrl.u32 %v4381_v13, 16  ;;  %v2156_v36 = vsel %vm1779_vm5, %v2153_v5, %v2155_v63 }
 0x188   : > { %v1374_v49 = vadd.f32 %v4320_v23, %v1002_v40  ;;  %v1695_v52 = vpop.f32.mrf.mxu0  ;;  %v1322_v32 = vpop.f32.mrf.mxu3  ;;  %v2433_v23 = vsel %vm2398_vm4, %v2423_v14, %v2432_v57  ;;  %v2782_v14 = vrot.slane %v4324_v41, 3  ;;  %v1784_v40 = vsel %vm1779_vm5, %v1781_v30, %v1783_v56 }
 0x189   : > { %3466 = vmatmul.msk.bf16.vlgmr.msra.gmra.mxu1 %vm471_vm1, %v1782_v0  ;;  %v2437_v0 = vrot.slane %v2435_v48, 2 }
 0x18a   : > { %3560 = vmatmul.msk.bf16.vlgmr.msra.gmra.mxu2 %vm471_vm1, %v2154_v59  ;;  %v4375_v29 = vadd.f32 %v1692_v18, %v1374_v49  ;;  %v2440_v59 = vrot.slane %v2438_v3, 3  ;;  %v2783_v49 = vsel %vm2778_vm6, %v2780_v4, %v2782_v14 }
 0x18b   : > { %3612 = vmatmul.msk.bf16.vlgmr.msra.gmra.mxu0 %vm471_vm1, %v2781_v34 }
 0x18c   : > { %3588 = vmatmul.msk.bf16.gmra.mxu3 %vm471_vm1, %v2433_v23  ;;  %v2441_v41 = vor.u32 %v2440_v59, %v2437_v0  ;;  %v3730_v23 = vld [vmem:[%s3803_s27 + $0x20] sm:$0xff] }
 0x18d   : > { %v943_v53 = vpop.f32.mrf.mxu2 }
 0x18e   : > { %v1003_v45 = vadd.f32 %v943_v53, %v733_v16  ;;  %v734_v43 = vpop.f32.mrf.mxu1  ;;  %v4405_v53 = vld [vmem:[%s3803_s27 + $0x38] sm:$0xff] }
 0x18f   : > { %v735_v26 = vadd.f32 %v734_v43, %v4035_v55  ;;  %v2447_v25 = vshll.u32 %v4405_v53, 16 }
 0x190   : > { %v1375_v15 = vadd.f32 %v4334_v50, %v1003_v45  ;;  %v1697_v27 = vpop.f32.mrf.mxu0  ;;  %v1325_v51 = vpop.f32.mrf.mxu3 }
 0x192   : > { %v4385_v18 = vadd.f32 %v1695_v52, %v1375_v15  ;;  %v1785_v15 = vrot.slane %v3730_v23, 2 }
 0x195   : > { %v945_v21 = vpop.f32.mrf.mxu2 }
 0x196   : > { %v1004_v50 = vadd.f32 %v945_v21, %v735_v26  ;;  %v737_v2 = vpop.f32.mrf.mxu1 }
 0x197   : > { %v738_v30 = vadd.f32 %v737_v2, %v4050_v19  ;;  %v2444_v19 = vshrl.u32 %v4405_v53, 16 }
 0x198   : > { %v1376_v60 = vadd.f32 %v4348_v38, %v1004_v50  ;;  %v1700_v1 = vpop.f32.mrf.mxu0  ;;  %v1327_v52 = vpop.f32.mrf.mxu3  ;;  %v2442_v38 = vsel %vm2398_vm4, %v2432_v57, %v2441_v41  ;;  %v2784_v57 = vrot.slane %v4354_v61, 3  ;;  %v1786_v50 = vsel %vm1779_vm5, %v1783_v56, %v1785_v15 }
 0x199   : > { %3467 = vmatmul.msk.bf16.gmra.mxu1 %vm471_vm1, %v1784_v40  ;;  %v2446_v40 = vrot.slane %v2444_v19, 2 }
 0x19a   : > { %3561 = vmatmul.msk.bf16.gmra.mxu2 %vm471_vm1, %v2156_v36  ;;  %v4399_v55 = vadd.f32 %v1697_v27, %v1376_v60  ;;  %v2157_v27 = vrot.slane %v4354_v61, 2  ;;  %v2449_v36 = vrot.slane %v2447_v25, 3  ;;  %v2785_v60 = vsel %vm2778_vm6, %v2782_v14, %v2784_v57 }
 0x19b   : > { %3613 = vmatmul.msk.bf16.gmra.mxu0 %vm471_vm1, %v2783_v49 }
 0x19c   : > { %3589 = vmatmul.msk.bf16.gmra.mxu3 %vm471_vm1, %v2442_v38  ;;  %v2158_v2 = vsel %vm1779_vm5, %v2155_v63, %v2157_v27  ;;  %v2450_v61 = vor.u32 %v2449_v36, %v2446_v40  ;;  %v3731_v38 = vld [vmem:[%s3803_s27 + $0x28] sm:$0xff] }
 0x19d   : > { %v948_v5 = vpop.f32.mrf.mxu2 }
 0x19e   : > { %v1005_v34 = vadd.f32 %v948_v5, %v738_v30  ;;  %v739_v16 = vpop.f32.mrf.mxu1  ;;  %v4427_v5 = vld [vmem:[%s3803_s27 + $0x40] sm:$0xff] }
 0x19f   : > { %v740_v48 = vadd.f32 %v739_v16, %v4061_v22  ;;  %v2456_v23 = vshll.u32 %v4427_v5, 16 }
 0x1a0   : > { %v1377_v4 = vadd.f32 %v1320_v39, %v1005_v34  ;;  %v1702_v45 = vpop.f32.mrf.mxu0  ;;  %v1330_v26 = vpop.f32.mrf.mxu3 }
 0x1a2   : > { %v4408_v43 = vadd.f32 %v1700_v1, %v1377_v4  ;;  %v1787_v4 = vrot.slane %v3731_v38, 2 }
 0x1a5   : > { %v950_v3 = vpop.f32.mrf.mxu2 }
 0x1a6   : > { %v1006_v39 = vadd.f32 %v950_v3, %v740_v48  ;;  %v742_v21 = vpop.f32.mrf.mxu1 }
 0x1a7   : > { %v743_v56 = vadd.f32 %v742_v21, %v4076_v33  ;;  %v2453_v33 = vshrl.u32 %v4427_v5, 16 }
 0x1a8   : > { %v1378_v0 = vadd.f32 %v1322_v32, %v1006_v39  ;;  %v1705_v59 = vpop.f32.mrf.mxu0  ;;  %v1332_v1 = vpop.f32.mrf.mxu3  ;;  %v2451_v32 = vsel %vm2398_vm4, %v2441_v41, %v2450_v61  ;;  %v2786_v41 = vrot.slane %v4381_v13, 3  ;;  %v1788_v39 = vsel %vm1779_vm5, %v1785_v15, %v1787_v4 }
 0x1a9   : > { %3468 = vmatmul.msk.bf16.gmra.mxu1 %vm471_vm1, %v1786_v50  ;;  %v2455_v50 = vrot.slane %v2453_v33, 2 }
 0x1aa   : > { %3562 = vmatmul.msk.bf16.gmra.mxu2 %vm471_vm1, %v2158_v2  ;;  %v4421_v22 = vadd.f32 %v1702_v45, %v1378_v0  ;;  %v2159_v45 = vrot.slane %v4381_v13, 2  ;;  %v2458_v2 = vrot.slane %v2456_v23, 3  ;;  %v2787_v0 = vsel %vm2778_vm6, %v2784_v57, %v2786_v41 }
 0x1ab   : > { %3614 = vmatmul.msk.bf16.gmra.mxu0 %vm471_vm1, %v2785_v60 }
 0x1ac   : > { %3590 = vmatmul.msk.bf16.gmra.mxu3 %vm471_vm1, %v2451_v32  ;;  %v2160_v21 = vsel %vm1779_vm5, %v2157_v27, %v2159_v45  ;;  %v2459_v13 = vor.u32 %v2458_v2, %v2455_v50  ;;  %v3732_v32 = vld [vmem:[%s3803_s27 + $0x30] sm:$0xff] }
 0x1ad   : > { %v953_v63 = vpop.f32.mrf.mxu2 }
 0x1ae   : > { %v1007_v49 = vadd.f32 %v953_v63, %v743_v56  ;;  %v744_v30 = vpop.f32.mrf.mxu1  ;;  %v4449_v63 = vld [vmem:[%s3803_s27 + $0x48] sm:$0xff] }
 0x1af   : > { %v745_v19 = vadd.f32 %v744_v30, %v4087_v46  ;;  %v2465_v38 = vshll.u32 %v4449_v63, 16 }
 0x1b0   : > { %v1379_v14 = vadd.f32 %v1325_v51, %v1007_v49  ;;  %v1707_v34 = vpop.f32.mrf.mxu0  ;;  %v1335_v48 = vpop.f32.mrf.mxu3 }
 0x1b2   : > { %v4430_v16 = vadd.f32 %v1705_v59, %v1379_v14  ;;  %v1789_v14 = vrot.slane %v3732_v32, 2  ;;  %v2163_v32 = vrot.slane %v4427_v5, 2 }
 0x1b5   : > { %v955_v25 = vpop.f32.mrf.mxu2 }
 0x1b6   : > { %v1008_v51 = vadd.f32 %v955_v25, %v745_v19  ;;  %v747_v3 = vpop.f32.mrf.mxu1 }
 0x1b7   : > { %v748_v15 = vadd.f32 %v747_v3, %v4102_v62  ;;  %v2462_v62 = vshrl.u32 %v4449_v63, 16 }
 0x1b8   : > { %v1380_v40 = vadd.f32 %v1327_v52, %v1008_v51  ;;  %v1710_v36 = vpop.f32.mrf.mxu0  ;;  %v1337_v59 = vpop.f32.mrf.mxu3  ;;  %v2460_v52 = vsel %vm2398_vm4, %v2450_v61, %v2459_v13  ;;  %v2788_v61 = vrot.slane %v4405_v53, 3  ;;  %v1790_v51 = vsel %vm1779_vm5, %v1787_v4, %v1789_v14  ;;  %v4910_v4 = vld [vmem:[#allocation8_spill] sm:$0xff] }
 0x1b9   : > { %3469 = vmatmul.msk.bf16.gmra.mxu1 %vm471_vm1, %v1788_v39  ;;  %v2464_v39 = vrot.slane %v2462_v62, 2 }
 0x1ba   : > { %3563 = vmatmul.msk.bf16.gmra.mxu2 %vm471_vm1, %v2160_v21  ;;  %v4443_v46 = vadd.f32 %v1707_v34, %v1380_v40  ;;  %v2161_v34 = vrot.slane %v4405_v53, 2  ;;  %v2467_v21 = vrot.slane %v2465_v38, 3  ;;  %v2789_v40 = vsel %vm2778_vm6, %v2786_v41, %v2788_v61 }
 0x1bb   : > { %3615 = vmatmul.msk.bf16.gmra.mxu0 %vm471_vm1, %v2787_v0 }
 0x1bc   : > { %3591 = vmatmul.msk.bf16.gmra.mxu3 %vm471_vm1, %v2460_v52  ;;  %v2162_v3 = vsel %vm1779_vm5, %v2159_v45, %v2161_v34  ;;  %v2468_v53 = vor.u32 %v2467_v21, %v2464_v39  ;;  %v2164_v39 = vsel %vm1779_vm5, %v2161_v34, %v2163_v32 }
 0x1bd   : > { %v958_v27 = vpop.f32.mrf.mxu2 }
 0x1be   : > { %v1009_v60 = vadd.f32 %v958_v27, %v748_v15  ;;  %v749_v56 = vpop.f32.mrf.mxu1 }
 0x1bf   : > { %v750_v33 = vadd.f32 %v749_v56, %v4113_v20 }
 0x1c0   : > { %v1381_v57 = vadd.f32 %v1330_v26, %v1009_v60  ;;  %v1712_v49 = vpop.f32.mrf.mxu0  ;;  %v1340_v19 = vpop.f32.mrf.mxu3  ;;  %v4471_v60 = vld [vmem:[%s3803_s27 + $0x50] sm:$0xff] }
 0x1c1   : > { %v2471_v62 = vshrl.u32 %v4471_v60, 16  ;;  %v2474_v38 = vshll.u32 %v4471_v60, 16 }
 0x1c2   : > { %v4452_v30 = vadd.f32 %v1710_v36, %v1381_v57  ;;  %v3733_v57 = vld [vmem:[%s3803_s27 + $0x38] sm:$0xff] }
 0x1c3   : > { %v2473_v21 = vrot.slane %v2471_v62, 2 }
 0x1c5   : > { %v960_v23 = vpop.f32.mrf.mxu2 }
 0x1c6   : > { %v1010_v26 = vadd.f32 %v960_v23, %v750_v33  ;;  %v752_v25 = vpop.f32.mrf.mxu1  ;;  %v4911_v33 = vld [vmem:[#allocation9_spill] sm:$0xff] }
 0x1c7   : > { %v753_v36 = vadd.f32 %v752_v25, %v4910_v4 }
 0x1c8   : > { %v1382_v50 = vadd.f32 %v1332_v1, %v1010_v26  ;;  %v1715_v2 = vpop.f32.mrf.mxu0  ;;  %v1342_v0 = vpop.f32.mrf.mxu3  ;;  %v2469_v1 = vsel %vm2398_vm4, %v2459_v13, %v2468_v53  ;;  %v2790_v13 = vrot.slane %v4427_v5, 3 }
 0x1c9   : > { %3470 = vmatmul.msk.bf16.gmra.mxu1 %vm471_vm1, %v1790_v51 }
 0x1ca   : > { %3564 = vmatmul.msk.bf16.gmra.mxu2 %vm471_vm1, %v2162_v3  ;;  %v4465_v20 = vadd.f32 %v1712_v49, %v1382_v50  ;;  %v1791_v49 = vrot.slane %v3733_v57, 2  ;;  %v2476_v50 = vrot.slane %v2474_v38, 3  ;;  %v2791_v4 = vsel %vm2778_vm6, %v2788_v61, %v2790_v13 }
 0x1cb   : > { %3616 = vmatmul.msk.bf16.gmra.mxu0 %vm471_vm1, %v2789_v40 }
 0x1cc   : > { %3592 = vmatmul.msk.bf16.gmra.mxu3 %vm471_vm1, %v2469_v1  ;;  %v1792_v3 = vsel %vm1779_vm5, %v1789_v14, %v1791_v49  ;;  %v4912_v14 = vld [vmem:[#allocation2_spill] sm:$0xff] }
 0x1cd   : > { %v963_v45 = vpop.f32.mrf.mxu2 }
 0x1ce   : > { %v1011_v15 = vadd.f32 %v963_v45, %v753_v36  ;;  %v754_v27 = vpop.f32.mrf.mxu1  ;;  %v2477_v36 = vor.u32 %v2476_v50, %v2473_v21 }
 0x1cf   : > { %v755_v23 = vadd.f32 %v754_v27, %v4911_v33  ;;  %v2165_v33 = vrot.slane %v4449_v63, 2 }
 0x1d0   : > { %v1383_v41 = vadd.f32 %v1335_v48, %v1011_v15  ;;  %v1717_v56 = vpop.f32.mrf.mxu0  ;;  %v1345_v25 = vpop.f32.mrf.mxu3 }
 0x1d2   : > { %v4474_v52 = vadd.f32 %v1715_v2, %v1383_v41  ;;  %v4493_v41 = vld [vmem:[%s3803_s27 + $0x58] sm:$0xff] }
 0x1d5   : > { %v965_v26 = vpop.f32.mrf.mxu2 }
 0x1d6   : > { %v1012_v48 = vadd.f32 %v965_v26, %v755_v23  ;;  %v757_v51 = vpop.f32.mrf.mxu1  ;;  %v2480_v23 = vshrl.u32 %v4493_v41, 16  ;;  %v2483_v26 = vshll.u32 %v4493_v41, 16 }
 0x1d7   : > { %v758_v45 = vadd.f32 %v757_v51, %v4912_v14 }
 0x1d8   : > { %v1384_v2 = vadd.f32 %v1337_v59, %v1012_v48  ;;  %v1720_v40 = vpop.f32.mrf.mxu0  ;;  %v1347_v15 = vpop.f32.mrf.mxu3  ;;  %v2478_v59 = vsel %vm2398_vm4, %v2468_v53, %v2477_v36  ;;  %v4913_v48 = vld [vmem:[#allocation3_spill] sm:$0xff]  ;;  %v2792_v53 = vrot.slane %v4449_v63, 3 }
 0x1d9   : > { %3471 = vmatmul.msk.bf16.gmra.mxu1 %vm471_vm1, %v1792_v3 }
 0x1da   : > { %3565 = vmatmul.msk.bf16.gmra.mxu2 %vm471_vm1, %v2164_v39  ;;  %v4487_v5 = vadd.f32 %v1717_v56, %v1384_v2  ;;  %v3734_v56 = vld [vmem:[%s3803_s27 + $0x40] sm:$0xff]  ;;  %v2166_v2 = vsel %vm1779_vm5, %v2163_v32, %v2165_v33 }
 0x1db   : > { %3617 = vmatmul.msk.bf16.gmra.mxu0 %vm471_vm1, %v2791_v4  ;;  %v1793_v38 = vrot.slane %v3734_v56, 2  ;;  %v2485_v4 = vrot.slane %v2483_v26, 3 }
 0x1dc   : > { %3593 = vmatmul.msk.bf16.gmra.mxu3 %vm471_vm1, %v2478_v59 }
 0x1dd   : > { %v968_v34 = vpop.f32.mrf.mxu2  ;;  %v1794_v50 = vsel %vm1779_vm5, %v1791_v49, %v1793_v38  ;;  %v4914_v49 = vld [vmem:[#allocation4_spill] sm:$0xff] }
 0x1de   : > { %v1013_v27 = vadd.f32 %v968_v34, %v758_v45  ;;  %v759_v1 = vpop.f32.mrf.mxu1  ;;  %v2793_v34 = vsel %vm2778_vm6, %v2790_v13, %v2792_v53 }
 0x1df   : > { %v760_v51 = vadd.f32 %v759_v1, %v4913_v48 }
 0x1e0   : > { %v1385_v61 = vadd.f32 %v1340_v19, %v1013_v27  ;;  %v1722_v57 = vpop.f32.mrf.mxu0  ;;  %v1350_v39 = vpop.f32.mrf.mxu3 }
 0x1e2   : > { %v4496_v62 = vadd.f32 %v1720_v40, %v1385_v61  ;;  %v2482_v40 = vrot.slane %v2480_v23, 2  ;;  %v4515_v23 = vld [vmem:[%s3803_s27 + $0x60] sm:$0xff] }
 0x1e4   : > { %v2486_v27 = vor.u32 %v2485_v4, %v2482_v40 }
 0x1e5   : > { %v970_v3 = vpop.f32.mrf.mxu2 }
 0x1e6   : > { %v1014_v19 = vadd.f32 %v970_v3, %v760_v51  ;;  %v762_v21 = vpop.f32.mrf.mxu1  ;;  %v2167_v3 = vrot.slane %v4471_v60, 2 }
 0x1e7   : > { %v763_v1 = vadd.f32 %v762_v21, %v4914_v49  ;;  %v2492_v21 = vshll.u32 %v4515_v23, 16 }
 0x1e8   : > { %v1386_v14 = vadd.f32 %v1342_v0, %v1014_v19  ;;  %v1725_v45 = vpop.f32.mrf.mxu0  ;;  %v1352_v59 = vpop.f32.mrf.mxu3  ;;  %v2487_v0 = vsel %vm2398_vm4, %v2477_v36, %v2486_v27  ;;  %v2489_v19 = vshrl.u32 %v4515_v23, 16  ;;  %v2794_v36 = vrot.slane %v4471_v60, 3 }
 0x1e9   : > { %3472 = vmatmul.msk.bf16.gmra.mxu1 %vm471_vm1, %v1794_v50  ;;  %v4915_v50 = vld [vmem:[#allocation5_spill] sm:$0xff] }
 0x1ea   : > { %3566 = vmatmul.msk.bf16.gmra.mxu2 %vm471_vm1, %v2166_v2  ;;  %v4509_v63 = vadd.f32 %v1722_v57, %v1386_v14  ;;  %v3735_v57 = vld [vmem:[%s3803_s27 + $0x48] sm:$0xff]  ;;  %v2491_v49 = vrot.slane %v2489_v19, 2 }
 0x1eb   : > { %3618 = vmatmul.msk.bf16.gmra.mxu0 %vm471_vm1, %v2793_v34  ;;  %v1795_v51 = vrot.slane %v3735_v57, 2 }
 0x1ec   : > { %3594 = vmatmul.msk.bf16.gmra.mxu3 %vm471_vm1, %v2487_v0  ;;  %v2795_v0 = vsel %vm2778_vm6, %v2792_v53, %v2794_v36  ;;  %v4539_v53 = vld [vmem:[%s3803_s27 + $0x68] sm:$0xff] }
 0x1ed   : > { %v973_v32 = vpop.f32.mrf.mxu2  ;;  %v1796_v34 = vsel %vm1779_vm5, %v1793_v38, %v1795_v51  ;;  %v4916_v38 = vld [vmem:[#allocation6_spill] sm:$0xff] }
 0x1ee   : > { %v1015_v61 = vadd.f32 %v973_v32, %v763_v1  ;;  %v764_v56 = vpop.f32.mrf.mxu1  ;;  %v2494_v1 = vrot.slane %v2492_v21, 3 }
 0x1ef   : > { %v765_v2 = vadd.f32 %v764_v56, %v4915_v50 }
 0x1f0   : > { %v1387_v13 = vadd.f32 %v1345_v25, %v1015_v61  ;;  %v1727_v26 = vpop.f32.mrf.mxu0  ;;  %v2644_v4 = vpop.f32.mrf.mxu3  ;;  %v2495_v56 = vor.u32 %v2494_v1, %v2491_v49  ;;  %v4917_v49 = vld [vmem:[#allocation7_spill] sm:$0xff] }
 0x1f2   : > { %v4518_v48 = vadd.f32 %v1725_v45, %v1387_v13  ;;  %v2168_v45 = vsel %vm1779_vm5, %v2165_v33, %v2167_v3  ;;  %v2496_v21 = vsel %vm2398_vm4, %v2486_v27, %v2495_v56  ;;  %v2796_v27 = vrot.slane %v4493_v41, 3 }
 0x1f5   : > { %v975_v40 = vpop.f32.mrf.mxu2 }
 0x1f6   : > { %v1016_v25 = vadd.f32 %v975_v40, %v765_v2  ;;  %v767_v14 = vpop.f32.mrf.mxu1  ;;  %v3736_v40 = vld [vmem:[%s3803_s27 + $0x50] sm:$0xff] }
 0x1f7   : > { %v768_v13 = vadd.f32 %v767_v14, %v4916_v38  ;;  %v2498_v14 = vshrl.u32 %v4539_v53, 16 }
 0x1f8   : > { %v1388_v32 = vadd.f32 %v1347_v15, %v1016_v25  ;;  %v1730_v61 = vpop.f32.mrf.mxu0  ;;  %v4535_v57 = vpop.f32.mrf.mxu3  ;;  %v1797_v25 = vrot.slane %v3736_v40, 2  ;;  %v2797_v40 = vsel %vm2778_vm6, %v2794_v36, %v2796_v27 }
 0x1f9   : > { %3473 = vmatmul.msk.bf16.gmra.mxu1 %vm471_vm1, %v1796_v34  ;;  %v2169_v34 = vrot.slane %v4493_v41, 2 }
 0x1fa   : > { %3567 = vmatmul.msk.bf16.gmra.mxu2 %vm471_vm1, %v2168_v45  ;;  %v4531_v60 = vadd.f32 %v1727_v26, %v1388_v32  ;;  %v2501_v45 = vshll.u32 %v4539_v53, 16 }
 0x1fb   : > { %3619 = vmatmul.msk.bf16.gmra.mxu0 %vm471_vm1, %v2795_v0 }
 0x1fc   : > { %3595 = vmatmul.msk.bf16.gmra.mxu3 %vm471_vm1, %v2496_v21 }
 0x1fd   : > { %v978_v33 = vpop.f32.mrf.mxu2 }
 0x1fe   : > { %v1017_v19 = vadd.f32 %v978_v33, %v768_v13  ;;  %v769_v15 = vpop.f32.mrf.mxu1  ;;  %v2170_v13 = vsel %vm1779_vm5, %v2167_v3, %v2169_v34  ;;  %v2500_v33 = vrot.slane %v2498_v14, 2 }
 0x1ff   : > { %v770_v1 = vadd.f32 %v769_v15, %v4917_v49  ;;  %v4565_v49 = vld [vmem:[%s3803_s27 + $0x70] sm:$0xff] }
 0x200   : > { %v1389_v50 = vadd.f32 %v1350_v39, %v1017_v19  ;;  %v1732_v2 = vpop.f32.mrf.mxu0  ;;  %v4550_v0 = vpop.f32.mrf.mxu3  ;;  %v2503_v19 = vrot.slane %v2501_v45, 3 }
 0x202   : > { %v4542_v26 = vadd.f32 %v1730_v61, %v1389_v50  ;;  %v1798_v61 = vsel %vm1779_vm5, %v1795_v51, %v1797_v25  ;;  %v2504_v51 = vor.u32 %v2503_v19, %v2500_v33  ;;  %v2798_v19 = vrot.slane %v4515_v23, 3 }
 0x204   : > { %v2505_v36 = vsel %vm2398_vm4, %v2495_v56, %v2504_v51  ;;  %v2510_v56 = vshll.u32 %v4565_v49, 16 }
 0x205   : > { %v980_v32 = vpop.f32.mrf.mxu2 }
 0x206   : > { %v1018_v39 = vadd.f32 %v980_v32, %v770_v1  ;;  %v1892_v38 = vpop.f32.mrf.mxu1 }
 0x207   : > { %v1982_v3 = vadd.f32 %v1892_v38, %v4159_v44  ;;  %v3737_v44 = vld [vmem:[%s3803_s27 + $0x58] sm:$0xff] }
 0x208   : > { %v1390_v21 = vadd.f32 %v1352_v59, %v1018_v39  ;;  %v2891_v50 = vpop.f32.mrf.mxu0  ;;  %v4561_v14 = vpop.f32.mrf.mxu3  ;;  %v1799_v38 = vrot.slane %v3737_v44, 2 }
 0x209   : > { %3474 = vmatmul.msk.bf16.gmra.mxu1 %vm471_vm1, %v1798_v61  ;;  %v2171_v61 = vrot.slane %v4515_v23, 2 }
 0x20a   : > { %3568 = vmatmul.msk.bf16.gmra.mxu2 %vm471_vm1, %v2170_v13  ;;  %v4557_v41 = vadd.f32 %v1732_v2, %v1390_v21  ;;  %v4570_v2 = vld [vmem:[%s4894_s2] ss:$0 sm:$0xff]  ;;  %v2507_v13 = vshrl.u32 %v4565_v49, 16 }
 0x20b   : > { %3620 = vmatmul.msk.bf16.gmra.mxu0 %vm471_vm1, %v2797_v40 }
 0x20c   : > { %3596 = vmatmul.msk.bf16.gmra.mxu3 %vm471_vm1, %v2505_v36  ;;  %v2172_v36 = vsel %vm1779_vm5, %v2169_v34, %v2171_v61 }
 0x20d   : > { %v2264_v15 = vpop.f32.mrf.mxu2 }
 0x20e   : > { %v2354_v59 = vadd.f32 %v2264_v15, %v1982_v3  ;;  %v1894_v45 = vpop.f32.mrf.mxu1 }
 0x20f   : > { %v1983_v33 = vadd.f32 %v1894_v45, %v4169_v11  ;;  %v2509_v11 = vrot.slane %v2507_v13, 2  ;;  %v2512_v45 = vrot.slane %v2510_v56, 3 }
 0x210   : > { %v2734_v1 = vadd.f32 %v2644_v4, %v2354_v59  ;;  %v2893_v32 = vpop.f32.mrf.mxu0  ;;  %v1800_v59 = vsel %vm1779_vm5, %v1797_v25, %v1799_v38 }
 0x211   : > { %v2513_v25 = vor.u32 %v2512_v45, %v2509_v11 }
 0x212   : > { %v2981_v39 = vadd.f32 %v2891_v50, %v2734_v1  ;;  %v4586_v50 = vpop.f32.mrf.mxu3 }
 0x214   : > { %v3021_v4 = vadd.f32 %v4570_v2, %v2981_v39  ;;  %v2799_v39 = vsel %vm2778_vm6, %v2796_v27, %v2798_v19  ;;  %v2514_v27 = vsel %vm2398_vm4, %v2504_v51, %v2513_v25 }
 0x215   : > { %v2266_v21 = vpop.f32.mrf.mxu2 }
 0x216   : > { %v3057_v40 = vpack.c.bf16 %v3021_v4, %v3021_v4  ;;  %v2355_v3 = vadd.f32 %v2266_v21, %v1983_v33  ;;  %v1897_v15 = vpop.f32.mrf.mxu1 }
 0x217   : > { %v1984_v13 = vadd.f32 %v1897_v15, %v4175_v12  ;;  %v2173_v15 = vrot.slane %v4539_v53, 2 }
 0x218   : > { %3094 = vst.msk [vmem:[%s4584_s13] sm:$0xf] %vm3093_vm7, %v3057_v40  ;;  %v2735_v23 = vadd.f32 %v4535_v57, %v2355_v3  ;;  %v2896_v1 = vpop.f32.mrf.mxu0 }
 0x219   : > { %3475 = vmatmul.msk.bf16.gmra.mxu1 %vm471_vm1, %v1800_v59 }
 0x21a   : > { %v2982_v44 = vadd.f32 %v2893_v32, %v2735_v23  ;;  %3569 = vmatmul.msk.bf16.gmra.mxu2 %vm471_vm1, %v2172_v36  ;;  %v4599_v57 = vpop.f32.mrf.mxu3  ;;  %v4603_v32 = vld [vmem:[%s3803_s27 + $0x78] sm:$0xff]  ;;  %v3738_v36 = vld [vmem:[%s3803_s27 + $0x60] sm:$0xff] }
 0x21b   : > { %3621 = vmatmul.msk.bf16.gmra.mxu0 %vm471_vm1, %v2799_v39  ;;  %v1801_v12 = vrot.slane %v3738_v36, 2  ;;  %v2516_v11 = vshrl.u32 %v4603_v32, 16  ;;  %v2519_v45 = vshll.u32 %v4603_v32, 16  ;;  %v2800_v39 = vrot.slane %v4539_v53, 3 }
 0x21c   : > { %v3022_v34 = vadd.f32 %v4570_v2, %v2982_v44  ;;  %3597 = vmatmul.msk.bf16.gmra.mxu3 %vm471_vm1, %v2514_v27 }
 0x21d   : > { %v2269_v56 = vpop.f32.mrf.mxu2  ;;  %v2521_v27 = vrot.slane %v2519_v45, 3  ;;  %v2801_v53 = vsel %vm2778_vm6, %v2798_v19, %v2800_v39 }
 0x21e   : > { %v3058_v4 = vpack.c.bf16 %v3022_v34, %v3022_v34  ;;  %v2356_v33 = vadd.f32 %v2269_v56, %v1984_v13  ;;  %v1899_v21 = vpop.f32.mrf.mxu1  ;;  %v1802_v56 = vsel %vm1779_vm5, %v1799_v38, %v1801_v12 }
 0x21f   : > { %v1985_v23 = vadd.f32 %v1899_v21, %v4185_v24 }
 0x220   : > { %3095 = vst.msk [vmem:[%s4584_s13 + $0x4] sm:$0xf] %vm3093_vm7, %v3058_v4  ;;  %v2736_v40 = vadd.f32 %v4550_v0, %v2356_v33  ;;  %v2898_v3 = vpop.f32.mrf.mxu0  ;;  %v2174_v4 = vsel %vm1779_vm5, %v2171_v61, %v2173_v15  ;;  %v2518_v33 = vrot.slane %v2516_v11, 2 }
 0x222   : > { %v2983_v59 = vadd.f32 %v2896_v1, %v2736_v40  ;;  %v4616_v44 = vpop.f32.mrf.mxu3  ;;  %v2522_v38 = vor.u32 %v2521_v27, %v2518_v33  ;;  %v2802_v27 = vrot.slane %v4565_v49, 3 }
 0x224   : > { %v3023_v51 = vadd.f32 %v4570_v2, %v2983_v59  ;;  %v2523_v19 = vsel %vm2398_vm4, %v2513_v25, %v2522_v38 }
 0x225   : > { %v2271_v0 = vpop.f32.mrf.mxu2 }
 0x226   : > { %v3059_v1 = vpack.c.bf16 %v3023_v51, %v3023_v51  ;;  %v2357_v34 = vadd.f32 %v2271_v0, %v1985_v23  ;;  %v1902_v13 = vpop.f32.mrf.mxu1 }
 0x227   : > { %v1986_v59 = vadd.f32 %v1902_v13, %v4191_v58  ;;  %v2175_v13 = vrot.slane %v4565_v49, 2  ;;  %v2803_v49 = vsel %vm2778_vm6, %v2800_v39, %v2802_v27 }
 0x228   : > { %3096 = vst.msk [vmem:[%s4584_s13 + $0x8] sm:$0xf] %vm3093_vm7, %v3059_v1  ;;  %v2737_v40 = vadd.f32 %v4561_v14, %v2357_v34  ;;  %v2901_v24 = vpop.f32.mrf.mxu0  ;;  %v3739_v34 = vld [vmem:[%s3803_s27 + $0x68] sm:$0xff] }
 0x229   : > { %3476 = vmatmul.msk.bf16.gmra.mxu1 %vm471_vm1, %v1802_v56  ;;  %v1803_v58 = vrot.slane %v3739_v34, 2 }
 0x22a   : > { %v2984_v21 = vadd.f32 %v2898_v3, %v2737_v40  ;;  %3570 = vmatmul.msk.bf16.gmra.mxu2 %vm471_vm1, %v2174_v4  ;;  %v4629_v14 = vpop.f32.mrf.mxu3  ;;  %v4633_v3 = vld [vmem:[%s3803_s27 + $0x80] sm:$0xff] }
 0x22b   : > { %3622 = vmatmul.msk.bf16.gmra.mxu0 %vm471_vm1, %v2801_v53  ;;  %v2525_v56 = vshrl.u32 %v4633_v3, 16  ;;  %v2528_v4 = vshll.u32 %v4633_v3, 16 }
 0x22c   : > { %v3024_v61 = vadd.f32 %v4570_v2, %v2984_v21  ;;  %3598 = vmatmul.msk.bf16.gmra.mxu3 %vm471_vm1, %v2523_v19 }
 0x22d   : > { %v2274_v36 = vpop.f32.mrf.mxu2 }
 0x22e   : > { %v3060_v11 = vpack.c.bf16 %v3024_v61, %v3024_v61  ;;  %v2358_v45 = vadd.f32 %v2274_v36, %v1986_v59  ;;  %v1904_v51 = vpop.f32.mrf.mxu1  ;;  %v1804_v61 = vsel %vm1779_vm5, %v1801_v12, %v1803_v58  ;;  %v2176_v59 = vsel %vm1779_vm5, %v2173_v15, %v2175_v13 }
 0x22f   : > { %v1987_v33 = vadd.f32 %v1904_v51, %v4201_v10  ;;  %v2527_v36 = vrot.slane %v2525_v56, 2 }
 0x230   : > { %3097 = vst.msk [vmem:[%s4584_s13 + $0xc] sm:$0xf] %vm3093_vm7, %v3060_v11  ;;  %v2738_v23 = vadd.f32 %v4586_v50, %v2358_v45  ;;  %v2903_v0 = vpop.f32.mrf.mxu0  ;;  %v2530_v11 = vrot.slane %v2528_v4, 3 }
 0x232   : > { %v2985_v1 = vadd.f32 %v2901_v24, %v2738_v23  ;;  %v4646_v40 = vpop.f32.mrf.mxu3  ;;  %v2531_v12 = vor.u32 %v2530_v11, %v2527_v36 }
 0x234   : > { %v3025_v25 = vadd.f32 %v4570_v2, %v2985_v1  ;;  %v2532_v39 = vsel %vm2398_vm4, %v2522_v38, %v2531_v12 }
 0x235   : > { %v2276_v50 = vpop.f32.mrf.mxu2 }
 0x236   : > { %v3061_v24 = vpack.c.bf16 %v3025_v25, %v3025_v25  ;;  %v2359_v53 = vadd.f32 %v2276_v50, %v1987_v33  ;;  %v1907_v21 = vpop.f32.mrf.mxu1  ;;  %v3740_v50 = vld [vmem:[%s3803_s27 + $0x70] sm:$0xff] }
 0x237   : > { %v1988_v19 = vadd.f32 %v1907_v21, %v4207_v7  ;;  %v1805_v7 = vrot.slane %v3740_v50, 2 }
 0x238   : > { %3098 = vst.msk [vmem:[%s4584_s13 + $0x10] sm:$0xf] %vm3093_vm7, %v3061_v24  ;;  %v2739_v45 = vadd.f32 %v4599_v57, %v2359_v53  ;;  %v2906_v10 = vpop.f32.mrf.mxu0  ;;  %v2177_v24 = vrot.slane %v4603_v32, 2 }
 0x239   : > { %3477 = vmatmul.msk.bf16.gmra.mxu1 %vm471_vm1, %v1804_v61 }
 0x23a   : > { %v2986_v51 = vadd.f32 %v2903_v0, %v2739_v45  ;;  %3571 = vmatmul.msk.bf16.gmra.mxu2 %vm471_vm1, %v2176_v59  ;;  %v4659_v57 = vpop.f32.mrf.mxu3  ;;  %v4663_v0 = vld [vmem:[%s3803_s27 + $0x88] sm:$0xff]  ;;  %v2804_v59 = vrot.slane %v4603_v32, 3 }
 0x23b   : > { %3623 = vmatmul.msk.bf16.gmra.mxu0 %vm471_vm1, %v2803_v49  ;;  %v2534_v53 = vshrl.u32 %v4663_v0, 16  ;;  %v2537_v21 = vshll.u32 %v4663_v0, 16  ;;  %v1806_v49 = vsel %vm1779_vm5, %v1803_v58, %v1805_v7 }
 0x23c   : > { %v3026_v15 = vadd.f32 %v4570_v2, %v2986_v51  ;;  %3599 = vmatmul.msk.bf16.gmra.mxu3 %vm471_vm1, %v2532_v39  ;;  %v2178_v51 = vsel %vm1779_vm5, %v2175_v13, %v2177_v24  ;;  %v2805_v32 = vsel %vm2778_vm6, %v2802_v27, %v2804_v59 }
 0x23d   : > { %v2279_v23 = vpop.f32.mrf.mxu2 }
 0x23e   : > { %v3062_v1 = vpack.c.bf16 %v3026_v15, %v3026_v15  ;;  %v2360_v34 = vadd.f32 %v2279_v23, %v1988_v19  ;;  %v1909_v56 = vpop.f32.mrf.mxu1  ;;  %v2536_v15 = vrot.slane %v2534_v53, 2  ;;  %v2539_v19 = vrot.slane %v2537_v21, 3 }
 0x23f   : > { %v1989_v61 = vadd.f32 %v1909_v56, %v4217_v6 }
 0x240   : > { %3099 = vst.msk [vmem:[%s4584_s13 + $0x14] sm:$0xf] %vm3093_vm7, %v3062_v1  ;;  %v2740_v4 = vadd.f32 %v4616_v44, %v2360_v34  ;;  %v2908_v25 = vpop.f32.mrf.mxu0  ;;  %v2540_v58 = vor.u32 %v2539_v19, %v2536_v15 }
 0x242   : > { %v2987_v33 = vadd.f32 %v2906_v10, %v2740_v4  ;;  %v4676_v36 = vpop.f32.mrf.mxu3  ;;  %v2541_v27 = vsel %vm2398_vm4, %v2531_v12, %v2540_v58 }
 0x244   : > { %v3027_v38 = vadd.f32 %v4570_v2, %v2987_v33 }
 0x245   : > { %v2281_v44 = vpop.f32.mrf.mxu2 }
 0x246   : > { %v3063_v11 = vpack.c.bf16 %v3027_v38, %v3027_v38  ;;  %v2361_v45 = vadd.f32 %v2281_v44, %v1989_v61  ;;  %v1912_v10 = vpop.f32.mrf.mxu1  ;;  %v3741_v38 = vld [vmem:[%s3803_s27 + $0x78] sm:$0xff]  ;;  %v2179_v61 = vrot.slane %v4633_v3, 2 }
 0x247   : > { %v1990_v34 = vadd.f32 %v1912_v10, %v4223_v8  ;;  %v1807_v8 = vrot.slane %v3741_v38, 2  ;;  %v2806_v10 = vrot.slane %v4633_v3, 3 }
 0x248   : > { %3100 = vst.msk [vmem:[%s4584_s13 + $0x18] sm:$0xf] %vm3093_vm7, %v3063_v11  ;;  %v2741_v23 = vadd.f32 %v4629_v14, %v2361_v45  ;;  %v2911_v6 = vpop.f32.mrf.mxu0 }
 0x249   : > { %3478 = vmatmul.msk.bf16.gmra.mxu1 %vm471_vm1, %v1806_v49  ;;  %v2807_v3 = vsel %vm2778_vm6, %v2804_v59, %v2806_v10 }
 0x24a   : > { %v2988_v1 = vadd.f32 %v2908_v25, %v2741_v23  ;;  %3572 = vmatmul.msk.bf16.gmra.mxu2 %vm471_vm1, %v2178_v51  ;;  %v4689_v14 = vpop.f32.mrf.mxu3  ;;  %v4693_v25 = vld [vmem:[%s3803_s27 + $0x90] sm:$0xff]  ;;  %v1808_v23 = vsel %vm1779_vm5, %v1805_v7, %v1807_v8 }
 0x24b   : > { %3624 = vmatmul.msk.bf16.gmra.mxu0 %vm471_vm1, %v2805_v32  ;;  %v2543_v44 = vshrl.u32 %v4693_v25, 16  ;;  %v2546_v11 = vshll.u32 %v4693_v25, 16 }
 0x24c   : > { %v3028_v13 = vadd.f32 %v4570_v2, %v2988_v1  ;;  %3600 = vmatmul.msk.bf16.gmra.mxu3 %vm471_vm1, %v2541_v27 }
 0x24d   : > { %v2284_v56 = vpop.f32.mrf.mxu2  ;;  %v2545_v32 = vrot.slane %v2543_v44, 2  ;;  %v2548_v1 = vrot.slane %v2546_v11, 3  ;;  %v3742_v44 = vld [vmem:[%s3803_s27 + $0x80] sm:$0xff]  ;;  %v2181_v11 = vrot.slane %v4663_v0, 2 }
 0x24e   : > { %v3064_v39 = vpack.c.bf16 %v3028_v13, %v3028_v13  ;;  %v2362_v4 = vadd.f32 %v2284_v56, %v1990_v34  ;;  %v1914_v33 = vpop.f32.mrf.mxu1 }
 0x24f   : > { %v1991_v45 = vadd.f32 %v1914_v33, %v4233_v17  ;;  %v2549_v7 = vor.u32 %v2548_v1, %v2545_v32  ;;  %v2182_v1 = vsel %vm1779_vm5, %v2179_v61, %v2181_v11 }
 0x250   : > { %3101 = vst.msk [vmem:[%s4584_s13 + $0x1c] sm:$0xf] %vm3093_vm7, %v3064_v39  ;;  %v2742_v50 = vadd.f32 %v4646_v40, %v2362_v4  ;;  %v2913_v53 = vpop.f32.mrf.mxu0 }
 0x251   : > { %v2550_v59 = vsel %vm2398_vm4, %v2540_v58, %v2549_v7 }
 0x252   : > { %v2989_v21 = vadd.f32 %v2911_v6, %v2742_v50  ;;  %v4706_v49 = vpop.f32.mrf.mxu3  ;;  %v2180_v6 = vsel %vm1779_vm5, %v2177_v24, %v2179_v61  ;;  %v4723_v50 = vld [vmem:[%s3803_s27 + $0x98] sm:$0xff] }
 0x254   : > { %v3029_v12 = vadd.f32 %v4570_v2, %v2989_v21 }
 0x255   : > { %v2286_v40 = vpop.f32.mrf.mxu2 }
 0x256   : > { %v3065_v51 = vpack.c.bf16 %v3029_v12, %v3029_v12  ;;  %v2363_v15 = vadd.f32 %v2286_v40, %v1991_v45  ;;  %v1917_v19 = vpop.f32.mrf.mxu1  ;;  %v2552_v12 = vshrl.u32 %v4723_v50, 16  ;;  %v2555_v45 = vshll.u32 %v4723_v50, 16 }
 0x257   : > { %v1992_v56 = vadd.f32 %v1917_v19, %v4239_v35  ;;  %v1809_v35 = vrot.slane %v3742_v44, 2 }
 0x258   : > { %3102 = vst.msk [vmem:[%s4584_s13 + $0x20] sm:$0xf] %vm3093_vm7, %v3065_v51  ;;  %v2743_v13 = vadd.f32 %v4659_v57, %v2363_v15  ;;  %v2916_v17 = vpop.f32.mrf.mxu0 }
 0x259   : > { %3479 = vmatmul.msk.bf16.gmra.mxu1 %vm471_vm1, %v1808_v23  ;;  %v1810_v32 = vsel %vm1779_vm5, %v1807_v8, %v1809_v35 }
 0x25a   : > { %v2990_v34 = vadd.f32 %v2913_v53, %v2743_v13  ;;  %3573 = vmatmul.msk.bf16.gmra.mxu2 %vm471_vm1, %v2180_v6  ;;  %v4719_v57 = vpop.f32.mrf.mxu3  ;;  %v2554_v13 = vrot.slane %v2552_v12, 2  ;;  %v3743_v12 = vld [vmem:[%s3803_s27 + $0x88] sm:$0xff] }
 0x25b   : > { %3625 = vmatmul.msk.bf16.gmra.mxu0 %vm471_vm1, %v2807_v3 }
 0x25c   : > { %v3030_v24 = vadd.f32 %v4570_v2, %v2990_v34  ;;  %3601 = vmatmul.msk.bf16.gmra.mxu3 %vm471_vm1, %v2550_v59 }
 0x25d   : > { %v2289_v39 = vpop.f32.mrf.mxu2 }
 0x25e   : > { %v3066_v4 = vpack.c.bf16 %v3030_v24, %v3030_v24  ;;  %v2364_v33 = vadd.f32 %v2289_v39, %v1992_v56  ;;  %v1919_v27 = vpop.f32.mrf.mxu1 }
 0x25f   : > { %v1993_v40 = vadd.f32 %v1919_v27, %v4249_v28 }
 0x260   : > { %3103 = vst.msk [vmem:[%s4584_s13 + $0x24] sm:$0xf] %vm3093_vm7, %v3066_v4  ;;  %v2744_v53 = vadd.f32 %v4676_v36, %v2364_v33  ;;  %v2918_v21 = vpop.f32.mrf.mxu0  ;;  %v2808_v36 = vrot.slane %v4663_v0, 3  ;;  %v2390_v0 = vld [vmem:[%s3803_s27 + $0xa0] sm:$0x7] }
 0x261   : > { %v2396_v61 = vunpack.c.l.b16 %v2390_v0 }
 0x262   : > { %v2991_v38 = vadd.f32 %v2916_v17, %v2744_v53  ;;  %v4736_v15 = vpop.f32.mrf.mxu3  ;;  %v2557_v17 = vrot.slane %v2555_v45, 3  ;;  %v2809_v28 = vsel %vm2778_vm6, %v2806_v10, %v2808_v36  ;;  %v2183_v45 = vrot.slane %v4693_v25, 2 }
 0x263   : > { %v4753_v53 = vpack.c.b16 %v2396_v61, %v2396_v61 }
 0x264   : > { %v3031_v58 = vadd.f32 %v4570_v2, %v2991_v38  ;;  %v2558_v8 = vor.u32 %v2557_v17, %v2554_v13 }
 0x265   : > { %v2291_v51 = vpop.f32.mrf.mxu2 }
 0x266   : > { %v3067_v19 = vpack.c.bf16 %v3031_v58, %v3031_v58  ;;  %v2365_v23 = vadd.f32 %v2291_v51, %v1993_v40  ;;  %v1922_v6 = vpop.f32.mrf.mxu1  ;;  %v2559_v59 = vsel %vm2398_vm4, %v2549_v7, %v2558_v8  ;;  %v2561_v58 = vshrl.u32 %v4753_v53, 16  ;;  %v4918_v51 = vld [vmem:[#allocation10_spill] sm:$0xff] }
 0x267   : > { %v1994_v39 = vadd.f32 %v1922_v6, %v4258_v31  ;;  %v1811_v31 = vrot.slane %v3743_v12, 2  ;;  %v2564_v40 = vshll.u32 %v4753_v53, 16 }
 0x268   : > { %3104 = vst.msk [vmem:[%s4584_s13 + $0x28] sm:$0xf] %vm3093_vm7, %v3067_v19  ;;  %v2745_v3 = vadd.f32 %v4689_v14, %v2365_v23  ;;  %v2921_v34 = vpop.f32.mrf.mxu0  ;;  %v2810_v23 = vrot.slane %v4693_v25, 3 }
 0x269   : > { %3480 = vmatmul.msk.bf16.gmra.mxu1 %vm471_vm1, %v1810_v32  ;;  %v1812_v17 = vsel %vm1779_vm5, %v1809_v35, %v1811_v31 }
 0x26a   : > { %v2992_v24 = vadd.f32 %v2918_v21, %v2745_v3  ;;  %3574 = vmatmul.msk.bf16.gmra.mxu2 %vm471_vm1, %v2182_v1  ;;  %v4750_v4 = vpop.f32.mrf.mxu3  ;;  %v2184_v3 = vsel %vm1779_vm5, %v2181_v11, %v2183_v45  ;;  %v2811_v61 = vsel %vm2778_vm6, %v2808_v36, %v2810_v23 }
 0x26b   : > { %3626 = vmatmul.msk.bf16.gmra.mxu0 %vm471_vm1, %v2809_v28  ;;  %v2566_v28 = vrot.slane %v2564_v40, 3 }
 0x26c   : > { %v3032_v56 = vadd.f32 %v4570_v2, %v2992_v24  ;;  %3602 = vmatmul.msk.bf16.gmra.mxu3 %vm471_vm1, %v2559_v59 }
 0x26d   : > { %v2294_v14 = vpop.f32.mrf.mxu2 }
 0x26e   : > { %v3068_v10 = vpack.c.bf16 %v3032_v56, %v3032_v56  ;;  %v2366_v33 = vadd.f32 %v2294_v14, %v1994_v39  ;;  %v1924_v27 = vpop.f32.mrf.mxu1  ;;  %v4919_v56 = vld [vmem:[#allocation11_spill] sm:$0xff] }
 0x26f   : > { %v1995_v19 = vadd.f32 %v1924_v27, %v4918_v51 }
 0x270   : > { %3105 = vst.msk [vmem:[%s4584_s13 + $0x2c] sm:$0xf] %vm3093_vm7, %v3068_v10  ;;  %v2746_v21 = vadd.f32 %v4706_v49, %v2366_v33  ;;  %v2923_v38 = vpop.f32.mrf.mxu0 }
 0x272   : > { %v2993_v44 = vadd.f32 %v2921_v34, %v2746_v21  ;;  %v2684_v6 = vpop.f32.mrf.mxu3  ;;  %v2563_v34 = vrot.slane %v2561_v58, 2  ;;  %v2185_v58 = vrot.slane %v4723_v50, 2 }
 0x274   : > { %v3033_v7 = vadd.f32 %v4570_v2, %v2993_v44  ;;  %v2567_v35 = vor.u32 %v2566_v28, %v2563_v34  ;;  %v3744_v44 = vld [vmem:[%s3803_s27 + $0x90] sm:$0xff] }
 0x275   : > { %v2296_v49 = vpop.f32.mrf.mxu2  ;;  %v1813_v12 = vrot.slane %v3744_v44, 2 }
 0x276   : > { %v3069_v32 = vpack.c.bf16 %v3033_v7, %v3033_v7  ;;  %v2367_v1 = vadd.f32 %v2296_v49, %v1995_v19  ;;  %v1927_v13 = vpop.f32.mrf.mxu1  ;;  %v2568_v36 = vsel %vm2398_vm4, %v2558_v8, %v2567_v35  ;;  %v2812_v8 = vrot.slane %v4723_v50, 3 }
 0x277   : > { %v1996_v39 = vadd.f32 %v1927_v13, %v4919_v56  ;;  %v2186_v13 = vsel %vm1779_vm5, %v2183_v45, %v2185_v58 }
 0x278   : > { %3106 = vst.msk [vmem:[%s4584_s13 + $0x30] sm:$0xf] %vm3093_vm7, %v3069_v32  ;;  %v2747_v0 = vadd.f32 %v4719_v57, %v2367_v1  ;;  %v2926_v24 = vpop.f32.mrf.mxu0  ;;  %v1814_v1 = vsel %vm1779_vm5, %v1811_v31, %v1813_v12  ;;  %v2813_v34 = vsel %vm2778_vm6, %v2810_v23, %v2812_v8 }
 0x279   : > { %3481 = vmatmul.msk.bf16.gmra.mxu1 %vm471_vm1, %v1812_v17 }
 0x27a   : > { %v2994_v25 = vadd.f32 %v2923_v38, %v2747_v0  ;;  %3575 = vmatmul.msk.bf16.gmra.mxu2 %vm471_vm1, %v2184_v3  ;;  %v2686_v10 = vpop.f32.mrf.mxu3 }
 0x27b   : > { %3627 = vmatmul.msk.bf16.gmra.mxu0 %vm471_vm1, %v2811_v61 }
 0x27c   : > { %v3034_v11 = vadd.f32 %v4570_v2, %v2994_v25  ;;  %3603 = vmatmul.msk.bf16.gmra.mxu3 %vm471_vm1, %v2568_v36 }
 0x27d   : > { %v2299_v14 = vpop.f32.mrf.mxu2 }
 0x27e   : > { %v3070_v57 = vpack.c.bf16 %v3034_v11, %v3034_v11  ;;  %v2368_v33 = vadd.f32 %v2299_v14, %v1996_v39  ;;  %v1929_v27 = vpop.f32.mrf.mxu1  ;;  %v1815_v39 = vrot.slane %v4309_v9, 2 }
 0x27f   : > { %v1997_v7 = vadd.f32 %v1929_v27, %v4314_v37  ;;  %v2054_v37 = vld [vmem:[%s3803_s27 + $0xa0] sm:$0x3] }
 0x280   : > { %3107 = vst.msk [vmem:[%s4584_s13 + $0x34] sm:$0xf] %vm3093_vm7, %v3070_v57  ;;  %v2748_v59 = vadd.f32 %v4736_v15, %v2368_v33  ;;  %v2928_v21 = vpop.f32.mrf.mxu0  ;;  %v2132_v50 = vunpack.c.l.b16 %v2054_v37  ;;  %v1816_v44 = vsel %vm1779_vm5, %v1813_v12, %v1815_v39 }
 0x282   : > { %v2995_v38 = vadd.f32 %v2926_v24, %v2748_v59  ;;  %v2689_v19 = vpop.f32.mrf.mxu3  ;;  %v2151_v35 = vpack.c.b16 %v2132_v50, %v2132_v50 }
 0x284   : > { %v3035_v40 = vadd.f32 %v4570_v2, %v2995_v38  ;;  %v2187_v14 = vrot.slane %v2151_v35, 2 }
 0x285   : > { %v2301_v51 = vpop.f32.mrf.mxu2 }
 0x286   : > { %v3071_v49 = vpack.c.bf16 %v3035_v40, %v3035_v40  ;;  %v2369_v15 = vadd.f32 %v2301_v51, %v1997_v7  ;;  %v1932_v32 = vpop.f32.mrf.mxu1 }
 0x287   : > { %v1998_v45 = vadd.f32 %v1932_v32, %v4328_v54  ;;  %v2814_v54 = vrot.slane %v4753_v53, 3 }
 0x288   : > { %3108 = vst.msk [vmem:[%s4584_s13 + $0x38] sm:$0xf] %vm3093_vm7, %v3071_v49  ;;  %v2749_v17 = vadd.f32 %v4750_v4, %v2369_v15  ;;  %v2931_v3 = vpop.f32.mrf.mxu0 }
 0x289   : > { %3482 = vmatmul.msk.bf16.gmra.mxu1 %vm471_vm1, %v1814_v1  ;;  %v2815_v7 = vsel %vm2778_vm6, %v2812_v8, %v2814_v54 }
 0x28a   : > { %v2996_v28 = vadd.f32 %v2928_v21, %v2749_v17  ;;  %3576 = vmatmul.msk.bf16.gmra.mxu2 %vm471_vm1, %v2186_v13  ;;  %v2691_v24 = vpop.f32.mrf.mxu3 }
 0x28b   : > { %3628 = vmatmul.msk.bf16.gmra.mxu0 %vm471_vm1, %v2813_v34 }
 0x28c   : > { %v3036_v31 = vadd.f32 %v4570_v2, %v2996_v28 }
 0x28d   : > { %v2304_v0 = vpop.f32.mrf.mxu2 }
 0x28e   : > { %v3072_v4 = vpack.c.bf16 %v3036_v31, %v3036_v31  ;;  %v2370_v61 = vadd.f32 %v2304_v0, %v1998_v45  ;;  %v1934_v25 = vpop.f32.mrf.mxu1 }
 0x28f   : > { %v1999_v33 = vadd.f32 %v1934_v25, %v4344_v42 }
 0x290   : > { %3109 = vst.msk [vmem:[%s4584_s13 + $0x3c] sm:$0xf] %vm3093_vm7, %v3072_v4  ;;  %v2750_v23 = vadd.f32 %v2684_v6, %v2370_v61  ;;  %v2933_v11 = vpop.f32.mrf.mxu0  ;;  %v2188_v6 = vsel %vm1779_vm5, %v2185_v58, %v2187_v14 }
 0x292   : > { %v2997_v56 = vadd.f32 %v2931_v3, %v2750_v23  ;;  %v2694_v36 = vpop.f32.mrf.mxu3 }
 0x294   : > { %v3037_v57 = vadd.f32 %v4570_v2, %v2997_v56 }
 0x295   : > { %v2306_v27 = vpop.f32.mrf.mxu2 }
 0x296   : > { %v3073_v59 = vpack.c.bf16 %v3037_v57, %v3037_v57  ;;  %v2371_v21 = vadd.f32 %v2306_v27, %v1999_v33  ;;  %v1937_v38 = vpop.f32.mrf.mxu1 }
 0x297   : > { %v2000_v53 = vadd.f32 %v1937_v38, %v4361_v47 }
 0x298   : > { %3110 = vst.msk [vmem:[%s4584_s13 + $0x40] sm:$0xf] %vm3093_vm7, %v3073_v59  ;;  %v2751_v9 = vadd.f32 %v2686_v10, %v2371_v21  ;;  %v2936_v40 = vpop.f32.mrf.mxu0 }
 0x299   : > { %3483 = vmatmul.msk.bf16.gmra.mxu1 %vm471_vm1, %v1816_v44 }
 0x29a   : > { %v2998_v51 = vadd.f32 %v2933_v11, %v2751_v9  ;;  %3577 = vmatmul.msk.bf16.gmra.mxu2 %vm471_vm1, %v2188_v6  ;;  %v2696_v58 = vpop.f32.mrf.mxu3 }
 0x29b   : > { %3629 = vmatmul.msk.bf16.gmra.mxu0 %vm471_vm1, %v2815_v7 }
 0x29c   : > { %v3038_v42 = vadd.f32 %v4570_v2, %v2998_v51 }
 0x29d   : > { %v2309_v12 = vpop.f32.mrf.mxu2 }
 0x29e   : > { %v3074_v49 = vpack.c.bf16 %v3038_v42, %v3038_v42  ;;  %v2372_v15 = vadd.f32 %v2309_v12, %v2000_v53  ;;  %v1939_v10 = vpop.f32.mrf.mxu1 }
 0x29f   : > { %v2001_v17 = vadd.f32 %v1939_v10, %v4375_v29 }
 0x2a0   : > { %3111 = vst.msk [vmem:[%s4584_s13 + $0x44] sm:$0xf] %vm3093_vm7, %v3074_v49  ;;  %v2752_v8 = vadd.f32 %v2689_v19, %v2372_v15  ;;  %v2938_v32 = vpop.f32.mrf.mxu0 }
 0x2a2   : > { %v2999_v1 = vadd.f32 %v2936_v40, %v2752_v8  ;;  %v2699_v34 = vpop.f32.mrf.mxu3 }
 0x2a4   : > { %v3039_v13 = vadd.f32 %v4570_v2, %v2999_v1 }
 0x2a5   : > { %v2311_v3 = vpop.f32.mrf.mxu2 }
 0x2a6   : > { %v3075_v37 = vpack.c.bf16 %v3039_v13, %v3039_v13  ;;  %v2373_v47 = vadd.f32 %v2311_v3, %v2001_v17  ;;  %v1942_v28 = vpop.f32.mrf.mxu1 }
 0x2a7   : > { %v2002_v19 = vadd.f32 %v1942_v28, %v4385_v18 }
 0x2a8   : > { %3112 = vst.msk [vmem:[%s4584_s13 + $0x48] sm:$0xf] %vm3093_vm7, %v3075_v37  ;;  %v2753_v50 = vadd.f32 %v2691_v24, %v2373_v47  ;;  %v2941_v31 = vpop.f32.mrf.mxu0 }
 0x2aa   : > { %v3000_v45 = vadd.f32 %v2938_v32, %v2753_v50  ;;  %v2701_v35 = vpop.f32.mrf.mxu3 }
 0x2ac   : > { %v3040_v0 = vadd.f32 %v4570_v2, %v3000_v45 }
 0x2ad   : > { %v2314_v4 = vpop.f32.mrf.mxu2 }
 0x2ae   : > { %v3076_v61 = vpack.c.bf16 %v3040_v0, %v3040_v0  ;;  %v2374_v25 = vadd.f32 %v2314_v4, %v2002_v19  ;;  %v1944_v29 = vpop.f32.mrf.mxu1 }
 0x2af   : > { %v2003_v24 = vadd.f32 %v1944_v29, %v4399_v55 }
 0x2b0   : > { %3113 = vst.msk [vmem:[%s4584_s13 + $0x4c] sm:$0xf] %vm3093_vm7, %v3076_v61  ;;  %v2754_v23 = vadd.f32 %v2694_v36, %v2374_v25  ;;  %v2943_v11 = vpop.f32.mrf.mxu0 }
 0x2b2   : > { %v3001_v56 = vadd.f32 %v2941_v31, %v2754_v23  ;;  %v2704_v59 = vpop.f32.mrf.mxu3 }
 0x2b4   : > { %v3041_v39 = vadd.f32 %v4570_v2, %v3001_v56 }
 0x2b5   : > { %v2316_v14 = vpop.f32.mrf.mxu2 }
 0x2b6   : > { %v3077_v57 = vpack.c.bf16 %v3041_v39, %v3041_v39  ;;  %v2375_v33 = vadd.f32 %v2316_v14, %v2003_v24  ;;  %v1947_v18 = vpop.f32.mrf.mxu1 }
 0x2b7   : > { %v2004_v36 = vadd.f32 %v1947_v18, %v4408_v43 }
 0x2b8   : > { %3114 = vst.msk [vmem:[%s4584_s13 + $0x50] sm:$0xf] %vm3093_vm7, %v3077_v57  ;;  %v2755_v54 = vadd.f32 %v2696_v58, %v2375_v33  ;;  %v2946_v27 = vpop.f32.mrf.mxu0 }
 0x2ba   : > { %v3002_v21 = vadd.f32 %v2943_v11, %v2755_v54  ;;  %v2706_v42 = vpop.f32.mrf.mxu3 }
 0x2bc   : > { %v3042_v38 = vadd.f32 %v4570_v2, %v3002_v21 }
 0x2bd   : > { %v2319_v44 = vpop.f32.mrf.mxu2 }
 0x2be   : > { %v3078_v6 = vpack.c.bf16 %v3042_v38, %v3042_v38  ;;  %v2376_v9 = vadd.f32 %v2319_v44, %v2004_v36  ;;  %v1949_v55 = vpop.f32.mrf.mxu1 }
 0x2bf   : > { %v2005_v12 = vadd.f32 %v1949_v55, %v4421_v22 }
 0x2c0   : > { %3115 = vst.msk [vmem:[%s4584_s13 + $0x54] sm:$0xf] %vm3093_vm7, %v3078_v6  ;;  %v2756_v40 = vadd.f32 %v2699_v34, %v2376_v9  ;;  %v2948_v7 = vpop.f32.mrf.mxu0 }
 0x2c2   : > { %v3003_v51 = vadd.f32 %v2946_v27, %v2756_v40  ;;  %v2709_v3 = vpop.f32.mrf.mxu3 }
 0x2c4   : > { %v3043_v53 = vadd.f32 %v4570_v2, %v3003_v51 }
 0x2c5   : > { %v2321_v58 = vpop.f32.mrf.mxu2 }
 0x2c6   : > { %v3079_v49 = vpack.c.bf16 %v3043_v53, %v3043_v53  ;;  %v2377_v15 = vadd.f32 %v2321_v58, %v2005_v12  ;;  %v1952_v43 = vpop.f32.mrf.mxu1 }
 0x2c7   : > { %v2006_v13 = vadd.f32 %v1952_v43, %v4430_v16 }
 0x2c8   : > { %3116 = vst.msk [vmem:[%s4584_s13 + $0x58] sm:$0xf] %vm3093_vm7, %v3079_v49  ;;  %v2757_v10 = vadd.f32 %v2701_v35, %v2377_v15  ;;  %v2951_v8 = vpop.f32.mrf.mxu0 }
 0x2ca   : > { %v3004_v32 = vadd.f32 %v2948_v7, %v2757_v10  ;;  %v2711_v61 = vpop.f32.mrf.mxu3 }
 0x2cc   : > { %v3044_v1 = vadd.f32 %v4570_v2, %v3004_v32 }
 0x2cd   : > { %v2324_v17 = vpop.f32.mrf.mxu2 }
 0x2ce   : > { %v3080_v34 = vpack.c.bf16 %v3044_v1, %v3044_v1  ;;  %v2378_v37 = vadd.f32 %v2324_v17, %v2006_v13  ;;  %v1954_v22 = vpop.f32.mrf.mxu1 }
 0x2cf   : > { %v2007_v45 = vadd.f32 %v1954_v22, %v4443_v46 }
 0x2d0   : > { %3117 = vst.msk [vmem:[%s4584_s13 + $0x5c] sm:$0xf] %vm3093_vm7, %v3080_v34  ;;  %v2758_v47 = vadd.f32 %v2704_v59, %v2378_v37  ;;  %v2953_v28 = vpop.f32.mrf.mxu0 }
 0x2d2   : > { %v3005_v50 = vadd.f32 %v2951_v8, %v2758_v47  ;;  %v2714_v33 = vpop.f32.mrf.mxu3 }
 0x2d4   : > { %v3045_v31 = vadd.f32 %v4570_v2, %v3005_v50 }
 0x2d5   : > { %v2326_v0 = vpop.f32.mrf.mxu2 }
 0x2d6   : > { %v3081_v19 = vpack.c.bf16 %v3045_v31, %v3045_v31  ;;  %v2379_v4 = vadd.f32 %v2326_v0, %v2007_v45  ;;  %v1957_v16 = vpop.f32.mrf.mxu1 }
 0x2d7   : > { %v2008_v11 = vadd.f32 %v1957_v16, %v4452_v30 }
 0x2d8   : > { %3118 = vst.msk [vmem:[%s4584_s13 + $0x60] sm:$0xf] %vm3093_vm7, %v3081_v19  ;;  %v2759_v25 = vadd.f32 %v2706_v42, %v2379_v4  ;;  %v2956_v29 = vpop.f32.mrf.mxu0 }
 0x2da   : > { %v3006_v35 = vadd.f32 %v2953_v28, %v2759_v25  ;;  %v2716_v9 = vpop.f32.mrf.mxu3 }
 0x2dc   : > { %v3046_v23 = vadd.f32 %v4570_v2, %v3006_v35 }
 0x2dd   : > { %v2329_v56 = vpop.f32.mrf.mxu2 }
 0x2de   : > { %v3082_v39 = vpack.c.bf16 %v3046_v23, %v3046_v23  ;;  %v2380_v24 = vadd.f32 %v2329_v56, %v2008_v11  ;;  %v1959_v46 = vpop.f32.mrf.mxu1 }
 0x2df   : > { %v2009_v27 = vadd.f32 %v1959_v46, %v4465_v20 }
 0x2e0   : > { %3119 = vst.msk [vmem:[%s4584_s13 + $0x64] sm:$0xf] %vm3093_vm7, %v3082_v39  ;;  %v2760_v14 = vadd.f32 %v2709_v3, %v2380_v24  ;;  %v2958_v57 = vpop.f32.mrf.mxu0 }
 0x2e2   : > { %v3007_v18 = vadd.f32 %v2956_v29, %v2760_v14  ;;  %v2719_v10 = vpop.f32.mrf.mxu3 }
 0x2e4   : > { %v3047_v54 = vadd.f32 %v4570_v2, %v3007_v18 }
 0x2e5   : > { %v2331_v59 = vpop.f32.mrf.mxu2 }
 0x2e6   : > { %v3083_v21 = vpack.c.bf16 %v3047_v54, %v3047_v54  ;;  %v2381_v38 = vadd.f32 %v2331_v59, %v2009_v27  ;;  %v1962_v30 = vpop.f32.mrf.mxu1 }
 0x2e7   : > { %v2010_v40 = vadd.f32 %v1962_v30, %v4474_v52 }
 0x2e8   : > { %3120 = vst.msk [vmem:[%s4584_s13 + $0x68] sm:$0xf] %vm3093_vm7, %v3083_v21  ;;  %v2761_v36 = vadd.f32 %v2711_v61, %v2381_v38  ;;  %v2961_v44 = vpop.f32.mrf.mxu0 }
 0x2ea   : > { %v3008_v6 = vadd.f32 %v2958_v57, %v2761_v36  ;;  %v2721_v28 = vpop.f32.mrf.mxu3 }
 0x2ec   : > { %v3048_v55 = vadd.f32 %v4570_v2, %v3008_v6 }
 0x2ed   : > { %v2334_v7 = vpop.f32.mrf.mxu2 }
 0x2ee   : > { %v3084_v51 = vpack.c.bf16 %v3048_v55, %v3048_v55  ;;  %v2382_v42 = vadd.f32 %v2334_v7, %v2010_v40  ;;  %v1964_v20 = vpop.f32.mrf.mxu1 }
 0x2ef   : > { %v2011_v15 = vadd.f32 %v1964_v20, %v4487_v5 }
 0x2f0   : > { %3121 = vst.msk [vmem:[%s4584_s13 + $0x6c] sm:$0xf] %vm3093_vm7, %v3084_v51  ;;  %v2762_v53 = vadd.f32 %v2714_v33, %v2382_v42  ;;  %v2963_v12 = vpop.f32.mrf.mxu0 }
 0x2f2   : > { %v3009_v58 = vadd.f32 %v2961_v44, %v2762_v53  ;;  %v2724_v29 = vpop.f32.mrf.mxu3  ;;  %v3745_v53 = vld [vmem:[%s4894_s2] ss:$0 sm:$0xff] }
 0x2f4   : > { %v3049_v49 = vadd.f32 %v4570_v2, %v3009_v58 }
 0x2f5   : > { %v2336_v43 = vpop.f32.mrf.mxu2 }
 0x2f6   : > { %v3085_v8 = vpack.c.bf16 %v3049_v49, %v3049_v49  ;;  %v2383_v32 = vadd.f32 %v2336_v43, %v2011_v15  ;;  %v1967_v52 = vpop.f32.mrf.mxu1 }
 0x2f7   : > { %v2012_v34 = vadd.f32 %v1967_v52, %v4496_v62 }
 0x2f8   : > { %3122 = vst.msk [vmem:[%s4584_s13 + $0x70] sm:$0xf] %vm3093_vm7, %v3085_v8  ;;  %v2763_v1 = vadd.f32 %v2716_v9, %v2383_v32  ;;  %v2966_v13 = vpop.f32.mrf.mxu0 }
 0x2fa   : > { %v3010_v17 = vadd.f32 %v2963_v12, %v2763_v1  ;;  %v2726_v33 = vpop.f32.mrf.mxu3 }
 0x2fc   : > { %v3050_v3 = vadd.f32 %v4570_v2, %v3010_v17 }
 0x2fd   : > { %v2339_v37 = vpop.f32.mrf.mxu2 }
 0x2fe   : > { %v3086_v22 = vpack.c.bf16 %v3050_v3, %v3050_v3  ;;  %v2384_v47 = vadd.f32 %v2339_v37, %v2012_v34  ;;  %v1969_v5 = vpop.f32.mrf.mxu1 }
 0x2ff   : > { %v2013_v19 = vadd.f32 %v1969_v5, %v4509_v63 }
 0x300   : > { %3123 = vst.msk [vmem:[%s4584_s13 + $0x74] sm:$0xf] %vm3093_vm7, %v3086_v22  ;;  %v2764_v50 = vadd.f32 %v2719_v10, %v2384_v47  ;;  %v2968_v31 = vpop.f32.mrf.mxu0 }
 0x302   : > { %v3011_v45 = vadd.f32 %v2966_v13, %v2764_v50  ;;  %v2729_v9 = vpop.f32.mrf.mxu3 }
 0x304   : > { %v3051_v0 = vadd.f32 %v4570_v2, %v3011_v45 }
 0x305   : > { %v2341_v4 = vpop.f32.mrf.mxu2 }
 0x306   : > { %v3087_v16 = vpack.c.bf16 %v3051_v0, %v3051_v0  ;;  %v2385_v61 = vadd.f32 %v2341_v4, %v2013_v19  ;;  %v1972_v62 = vpop.f32.mrf.mxu1 }
 0x307   : > { %v2014_v56 = vadd.f32 %v1972_v62, %v4518_v48 }
 0x308   : > { %3124 = vst.msk [vmem:[%s4584_s13 + $0x78] sm:$0xf] %vm3093_vm7, %v3087_v16  ;;  %v2765_v25 = vadd.f32 %v2721_v28, %v2385_v61  ;;  %v2971_v23 = vpop.f32.mrf.mxu0 }
 0x30a   : > { %v3012_v35 = vadd.f32 %v2968_v31, %v2765_v25  ;;  %v2731_v15 = vpop.f32.mrf.mxu3 }
 0x30c   : > { %v3052_v11 = vadd.f32 %v4570_v2, %v3012_v35 }
 0x30d   : > { %v2344_v39 = vpop.f32.mrf.mxu2 }
 0x30e   : > { %v3088_v24 = vpack.c.bf16 %v3052_v11, %v3052_v11  ;;  %v2386_v46 = vadd.f32 %v2344_v39, %v2014_v56  ;;  %v1974_v63 = vpop.f32.mrf.mxu1 }
 0x30f   : > { %v2015_v54 = vadd.f32 %v1974_v63, %v4531_v60 }
 0x310   : > { %3125 = vst.msk [vmem:[%s4584_s13 + $0x7c] sm:$0xf] %vm3093_vm7, %v3088_v24  ;;  %v2766_v14 = vadd.f32 %v2724_v29, %v2386_v46  ;;  %v2973_v27 = vpop.f32.mrf.mxu0 }
 0x312   : > { %v3013_v57 = vadd.f32 %v2971_v23, %v2766_v14 }
 0x314   : > { %v3053_v18 = vadd.f32 %v4570_v2, %v3013_v57 }
 0x315   : > { %v2346_v59 = vpop.f32.mrf.mxu2 }
 0x316   : > { %v3089_v21 = vpack.c.bf16 %v3053_v18, %v3053_v18  ;;  %v2387_v38 = vadd.f32 %v2346_v59, %v2015_v54  ;;  %v1977_v48 = vpop.f32.mrf.mxu1 }
 0x317   : > { %v2016_v6 = vadd.f32 %v1977_v48, %v4542_v26 }
 0x318   : > { %3126 = vst.msk [vmem:[%s4584_s13 + $0x80] sm:$0xf] %vm3093_vm7, %v3089_v21  ;;  %v2767_v30 = vadd.f32 %v2726_v33, %v2387_v38  ;;  %v2976_v60 = vpop.f32.mrf.mxu0 }
 0x31a   : > { %v3014_v36 = vadd.f32 %v2973_v27, %v2767_v30 }
 0x31c   : > { %v3054_v44 = vadd.f32 %v4570_v2, %v3014_v36 }
 0x31d   : > { %v2349_v55 = vpop.f32.mrf.mxu2 }
 0x31e   : > { %v3090_v40 = vpack.c.bf16 %v3054_v44, %v3054_v44  ;;  %v2388_v7 = vadd.f32 %v2349_v55, %v2016_v6  ;;  %v1979_v42 = vpop.f32.mrf.mxu1 }
 0x31f   : > { %v2017_v2 = vadd.f32 %v1979_v42, %v4557_v41 }
 0x320   : > { %3127 = vst.msk [vmem:[%s4584_s13 + $0x84] sm:$0xf] %vm3093_vm7, %v3090_v40  ;;  %v2768_v51 = vadd.f32 %v2729_v9, %v2388_v7  ;;  %v2978_v10 = vpop.f32.mrf.mxu0 }
 0x322   : > { %v3015_v20 = vadd.f32 %v2976_v60, %v2768_v51 }
 0x324   : > { %v3055_v12 = vadd.f32 %v3745_v53, %v3015_v20 }
 0x325   : > { %v2351_v26 = vpop.f32.mrf.mxu2 }
 0x326   : > { %v3091_v58 = vpack.c.bf16 %v3055_v12, %v3055_v12  ;;  %v2389_v49 = vadd.f32 %v2351_v26, %v2017_v2 }
 0x328   : > { %3128 = vst.msk [vmem:[%s4584_s13 + $0x88] sm:$0xf] %vm3093_vm7, %v3091_v58  ;;  %v2769_v43 = vadd.f32 %v2731_v15, %v2389_v49 }
 0x32a   : > { %v3016_v8 = vadd.f32 %v2978_v10, %v2769_v43 }
 0x32c   : > { %v3056_v32 = vadd.f32 %v3745_v53, %v3016_v8 }
 0x32e   : > { %v3092_v52 = vpack.c.bf16 %v3056_v32, %v3056_v32 }
 0x330   : > { %3129 = vst.msk [vmem:[%s4584_s13 + $0x8c] sm:$0xf] %vm3093_vm7, %v3092_v52 }
 0x331 PF: > { %s13_s12 = sadd.s32 1, %s3752_s12  }
 0x332   : > { %p10_p4 = scmp.ge.s32.totalorder %s13_s12, 4  }
 0x334   :  { %12 = sbr.rel (!%p10_p4) target bundleno = 1 (0x1), region = 62 }

// kernel: forward.14
= control target key start
LH: loop header
LB: loop body
LE: loop exit
PB: predicated region body
PF: predicated region fallthrough
CT: control target
= control target key end

     0   :  { %vm315_vm0 = vcmask 261120   ;;  %vm503_vm1 = vcmask 257024   ;;  %s1070_s1 = inlined_call_operand.vmem [shape: bf16[288,32], index: 1, kind: input, shape index: {}]   ;;  %s1071_s0 = inlined_call_operand.vmem [shape: bf16[128,288], index: 0, kind: input, shape index: {}]   ;;  %s1072_s2 = inlined_call_operand.vmem [shape: f32[1,32], index: 2, kind: input, shape index: {}]   ;;  %s1073_s3 = inlined_call_operand.vmem [shape: bf16[128,32], index: 3, kind: output, shape index: {}]  }
   0x1   :  { %v731_v0 = vld [vmem:[%s1070_s1 + $0x38] sm:$0xff]  ;;  %v741_v1 = vld [vmem:[%s1070_s1 + $0x88] sm:$0xff]  ;;  %v730_v3 = vld [vmem:[%s1070_s1 + $0x30] sm:$0xff] }
   0x2   :  { %v739_v2 = vld [vmem:[%s1070_s1 + $0x78] sm:$0xff]  ;;  %340 = vmatpush.bf16.msra.mxu0 %v731_v0  ;;  %742 = vmatpush.bf16.msra.mxu3 %v731_v0  ;;  %v740_v4 = vld [vmem:[%s1070_s1 + $0x80] sm:$0xff]  ;;  %v738_v5 = vld [vmem:[%s1070_s1 + $0x70] sm:$0xff] }
   0x3   :  { %444 = vmatpush.bf16.msra.mxu2 %v741_v1  ;;  %389 = vmatpush.bf16.msra.mxu1 %v739_v2  ;;  %v534_v6 = vld [vmem:[%s1071_s0 + $0x8] sm:$0xf]  ;;  %v702_v7 = vld [vmem:[%s1071_s0 + $0x10] sm:$0xf0]  ;;  %v728_v11 = vld [vmem:[%s1070_s1 + $0x20] sm:$0xff] }
   0x4   :  { %v535_v8 = vor.u32 %v702_v7, %v534_v6  ;;  %v729_v9 = vld [vmem:[%s1070_s1 + $0x28] sm:$0xff]  ;;  %v736_v12 = vld [vmem:[%s1070_s1 + $0x60] sm:$0xff]  ;;  %v727_v13 = vld [vmem:[%s1070_s1 + $0x18] sm:$0xff] }
   0x5   :  { %v737_v10 = vld [vmem:[%s1070_s1 + $0x68] sm:$0xff]  ;;  %v735_v14 = vld [vmem:[%s1070_s1 + $0x58] sm:$0xff]  ;;  %v726_v15 = vld [vmem:[%s1070_s1 + $0x10] sm:$0xff] }
   0x6   :  { %341 = vmatpush.bf16.msra.mxu0 %v730_v3  ;;  %743 = vmatpush.bf16.msra.mxu3 %v730_v3  ;;  %v734_v16 = vld [vmem:[%s1070_s1 + $0x50] sm:$0xff]  ;;  %v546_v17 = vld [vmem:[%s1071_s0 + $0x20] sm:$0xf]  ;;  %v705_v18 = vld [vmem:[%s1071_s0 + $0x28] sm:$0xf0] }
   0x7   :  { %445 = vmatpush.bf16.msra.mxu2 %v740_v4  ;;  %390 = vmatpush.bf16.msra.mxu1 %v738_v5  ;;  %v547_v19 = vor.u32 %v705_v18, %v546_v17  ;;  %v725_v20 = vld [vmem:[%s1070_s1 + $0x8] sm:$0xff]  ;;  %v724_v22 = vld [vmem:[%s1070_s1] sm:$0xff]  ;;  %v598_v26 = vld [vmem:[%s1071_s0 + $0x90] sm:$0xf] }
   0x8   :  { %v733_v21 = vld [vmem:[%s1070_s1 + $0x48] sm:$0xff]  ;;  %v732_v23 = vld [vmem:[%s1070_s1 + $0x40] sm:$0xff]  ;;  %v719_v27 = vld [vmem:[%s1071_s0 + $0x98] sm:$0xf0] }
   0x9   :  { %v526_v24 = vld [vmem:[%s1071_s0] sm:$0xf]  ;;  %v701_v25 = vld [vmem:[%s1071_s0 + $0x8] sm:$0xf0]  ;;  %v700_v28 = vld [vmem:[%s1071_s0 + $0x4] sm:$0xf]  ;;  %v599_v31 = vor.u32 %v719_v27, %v598_v26 }
   0xa   :  { %692 = vmatmul.msk.bf16.vlgmr.msra.gmra.mxu2 %vm315_vm0, %v535_v8  ;;  %342 = vmatpush.bf16.msra.mxu0 %v729_v9  ;;  %v528_v29 = vld [vmem:[%s1071_s0 + $0xc] sm:$0xf0]  ;;  %v527_v30 = vor.u32 %v701_v25, %v526_v24  ;;  %v558_v33 = vld [vmem:[%s1071_s0 + $0x38] sm:$0xf]  ;;  %v708_v34 = vld [vmem:[%s1071_s0 + $0x40] sm:$0xf0] }
   0xb   :  { %744 = vmatpush.bf16.msra.mxu3 %v729_v9  ;;  %391 = vmatpush.bf16.msra.mxu1 %v737_v10  ;;  %v531_v32 = vor.u32 %v700_v28, %v528_v29  ;;  %v559_v35 = vor.u32 %v708_v34, %v558_v33  ;;  %v538_v36 = vld [vmem:[%s1071_s0 + $0x18] sm:$0xf]  ;;  %v704_v37 = vld [vmem:[%s1071_s0 + $0x20] sm:$0xf0]  ;;  %v610_v38 = vld [vmem:[%s1071_s0 + $0xa8] sm:$0xf] }
   0xc   :  { %v722_v39 = vld [vmem:[%s1071_s0 + $0xb0] sm:$0xf0]  ;;  %v703_v40 = vld [vmem:[%s1071_s0 + $0x1c] sm:$0xf]  ;;  %v540_v41 = vld [vmem:[%s1071_s0 + $0x24] sm:$0xf0]  ;;  %v539_v42 = vor.u32 %v704_v37, %v538_v36 }
   0xd   :  { %v611_v43 = vor.u32 %v722_v39, %v610_v38  ;;  %v543_v44 = vor.u32 %v703_v40, %v540_v41  ;;  %v570_v45 = vld [vmem:[%s1071_s0 + $0x50] sm:$0xf]  ;;  %v711_v46 = vld [vmem:[%s1071_s0 + $0x58] sm:$0xf0]  ;;  %v718_v50 = vld [vmem:[%s1071_s0 + $0x94] sm:$0xf] }
   0xe   :  { %343 = vmatpush.bf16.msra.mxu0 %v728_v11  ;;  %v571_v47 = vor.u32 %v711_v46, %v570_v45  ;;  %v550_v48 = vld [vmem:[%s1071_s0 + $0x30] sm:$0xf]  ;;  %v707_v49 = vld [vmem:[%s1071_s0 + $0x38] sm:$0xf0]  ;;  %v600_v51 = vld [vmem:[%s1071_s0 + $0x9c] sm:$0xf0] }
   0xf   :  { %745 = vmatpush.bf16.msra.mxu3 %v728_v11  ;;  %392 = vmatpush.bf16.msra.mxu1 %v736_v12  ;;  %v706_v52 = vld [vmem:[%s1071_s0 + $0x34] sm:$0xf]  ;;  %v552_v53 = vld [vmem:[%s1071_s0 + $0x3c] sm:$0xf0]  ;;  %v551_v54 = vor.u32 %v707_v49, %v550_v48  ;;  %v603_v55 = vor.u32 %v718_v50, %v600_v51  ;;  %v582_v57 = vld [vmem:[%s1071_s0 + $0x68] sm:$0xf] }
  0x10   :  { %v555_v56 = vor.u32 %v706_v52, %v552_v53  ;;  %v714_v58 = vld [vmem:[%s1071_s0 + $0x70] sm:$0xf0]  ;;  %v562_v60 = vld [vmem:[%s1071_s0 + $0x48] sm:$0xf]  ;;  %v721_v62 = vld [vmem:[%s1071_s0 + $0xac] sm:$0xf] }
  0x11   :  { %v583_v59 = vor.u32 %v714_v58, %v582_v57  ;;  %v710_v61 = vld [vmem:[%s1071_s0 + $0x50] sm:$0xf0]  ;;  %v612_v63 = vld [vmem:[%s1071_s0 + $0xb4] sm:$0xf0]  ;;  %v709_v0 = vld [vmem:[%s1071_s0 + $0x4c] sm:$0xf] }
  0x12   :  { %344 = vmatpush.bf16.msra.mxu0 %v727_v13  ;;  %v564_v1 = vld [vmem:[%s1071_s0 + $0x54] sm:$0xf0]  ;;  %v615_v3 = vor.u32 %v721_v62, %v612_v63  ;;  %v717_v6 = vld [vmem:[%s1071_s0 + $0x88] sm:$0xf0]  ;;  %v574_v8 = vld [vmem:[%s1071_s0 + $0x60] sm:$0xf] }
  0x13   :  { %746 = vmatpush.bf16.msra.mxu3 %v727_v13  ;;  %393 = vmatpush.bf16.msra.mxu1 %v735_v14  ;;  %v567_v4 = vor.u32 %v709_v0, %v564_v1  ;;  %v713_v9 = vld [vmem:[%s1071_s0 + $0x68] sm:$0xf0]  ;;  %v576_v11 = vld [vmem:[%s1071_s0 + $0x6c] sm:$0xf0]  ;;  %v586_v17 = vld [vmem:[%s1071_s0 + $0x78] sm:$0xf] }
  0x14   :  { %v716_v18 = vld [vmem:[%s1071_s0 + $0x80] sm:$0xf0]  ;;  %v723_v24 = vld [vmem:[%s1071_s0 + $0xb8] sm:$0xf0]  ;;  %v988_v28 = vld [vmem:[%s1072_s2] ss:$0 sm:$0xff] }
  0x16   :  { %345 = vmatpush.bf16.msra.mxu0 %v726_v15 }
  0x17   :  { %747 = vmatpush.bf16.msra.mxu3 %v726_v15  ;;  %394 = vmatpush.bf16.msra.mxu1 %v734_v16  ;;  %v720_v15 = vld [vmem:[%s1071_s0 + $0xa0] sm:$0xf0] }
  0x1a   :  { %693 = vmatmul.msk.bf16.gmra.mxu2 %vm315_vm0, %v547_v19  ;;  %346 = vmatpush.bf16.msra.mxu0 %v725_v20  ;;  %v715_v19 = vld [vmem:[%s1071_s0 + $0x7c] sm:$0xf] }
  0x1b   :  { %748 = vmatpush.bf16.msra.mxu3 %v725_v20  ;;  %395 = vmatpush.bf16.msra.mxu1 %v733_v21  ;;  %v588_v20 = vld [vmem:[%s1071_s0 + $0x84] sm:$0xf0] }
  0x1e   :  { %347 = vmatpush.bf16.msra.mxu0 %v724_v22 }
  0x1f   :  { %749 = vmatpush.bf16.msra.mxu3 %v724_v22  ;;  %396 = vmatpush.bf16.msra.mxu1 %v732_v23  ;;  %v591_v22 = vor.u32 %v715_v19, %v588_v20 }
  0x21   :  { %348 = vmatmul.bf16.vlgmr.msra.gmra.mxu0 %v527_v30 }
  0x22   :  { %378 = vmatmul.bf16.vlgmr.msra.gmra.mxu3 %v599_v31  ;;  %397 = vmatmul.bf16.vlgmr.msra.gmra.mxu1 %v531_v32 }
  0x23   :  { %750 = vmatpush.bf16.msrb.mxu3 %v739_v2  ;;  %v563_v2 = vor.u32 %v710_v61, %v562_v60 }
  0x27   :  { %751 = vmatpush.bf16.msrb.mxu3 %v738_v5  ;;  %v594_v5 = vld [vmem:[%s1071_s0 + $0x80] sm:$0xf] }
  0x28   :  { %v595_v7 = vor.u32 %v717_v6, %v594_v5 }
  0x2a   :  { %694 = vmatmul.msk.bf16.gmra.mxu2 %vm315_vm0, %v559_v35 }
  0x2b   :  { %752 = vmatpush.bf16.msrb.mxu3 %v737_v10  ;;  %v712_v10 = vld [vmem:[%s1071_s0 + $0x64] sm:$0xf] }
  0x2c   :  { %v579_v13 = vor.u32 %v712_v10, %v576_v11 }
  0x2f   :  { %753 = vmatpush.bf16.msrb.mxu3 %v736_v12  ;;  %v575_v12 = vor.u32 %v713_v9, %v574_v8 }
  0x31   :  { %353 = vmatmul.bf16.gmra.mxu0 %v539_v42 }
  0x32   :  { %383 = vmatmul.bf16.gmra.mxu3 %v611_v43  ;;  %402 = vmatmul.bf16.gmra.mxu1 %v543_v44 }
  0x33   :  { %754 = vmatpush.bf16.msrb.mxu3 %v735_v14  ;;  %v606_v14 = vld [vmem:[%s1071_s0 + $0x98] sm:$0xf] }
  0x37   :  { %755 = vmatpush.bf16.msrb.mxu3 %v734_v16  ;;  %v607_v16 = vor.u32 %v720_v15, %v606_v14 }
  0x3a   :  { %695 = vmatmul.msk.bf16.gmra.mxu2 %vm315_vm0, %v571_v47 }
  0x3b   :  { %756 = vmatpush.bf16.msrb.mxu3 %v733_v21  ;;  %v587_v21 = vor.u32 %v716_v18, %v586_v17 }
  0x3f   :  { %757 = vmatpush.bf16.msrb.mxu3 %v732_v23  ;;  %v618_v23 = vld [vmem:[%s1071_s0 + $0xb0] sm:$0xf] }
  0x40   :  { %v619_v25 = vor.u32 %v723_v24, %v618_v23 }
  0x41   :  { %358 = vmatmul.bf16.gmra.mxu0 %v551_v54 }
  0x42   :  { %427 = vmatmul.bf16.vlgmr.msrb.gmra.mxu3 %v603_v55  ;;  %407 = vmatmul.bf16.gmra.mxu1 %v555_v56 }
  0x4a   :  { %696 = vmatmul.msk.bf16.gmra.mxu2 %vm315_vm0, %v583_v59 }
  0x51   :  { %363 = vmatmul.bf16.gmra.mxu0 %v563_v2 }
  0x52   :  { %432 = vmatmul.bf16.gmra.mxu3 %v615_v3  ;;  %412 = vmatmul.bf16.gmra.mxu1 %v567_v4 }
  0x5a   :  { %697 = vmatmul.msk.bf16.gmra.mxu2 %vm315_vm0, %v595_v7 }
  0x61   :  { %368 = vmatmul.bf16.gmra.mxu0 %v575_v12 }
  0x62   :  { %417 = vmatmul.bf16.gmra.mxu1 %v579_v13 }
  0x6a   :  { %698 = vmatmul.msk.bf16.gmra.mxu2 %vm315_vm0, %v607_v16 }
  0x71   :  { %373 = vmatmul.bf16.gmra.mxu0 %v587_v21 }
  0x72   :  { %422 = vmatmul.bf16.gmra.mxu1 %v591_v22 }
  0x7a   :  { %699 = vmatmul.msk.bf16.gmra.mxu2 %vm315_vm0, %v619_v25 }
  0x8d   :  { %v447_v26 = vpop.f32.mrf.mxu2 }
  0x95   :  { %v449_v27 = vpop.f32.mrf.mxu2 }
  0x9d   :  { %v452_v29 = vpop.f32.mrf.mxu2 }
  0x9e   :  { %v349_v30 = vpop.f32.mrf.mxu0 }
  0x9f   :  { %v350_v31 = vadd.f32 %v988_v28, %v349_v30  ;;  %v398_v32 = vpop.f32.mrf.mxu1 }
  0xa1   :  { %v399_v33 = vadd.f32 %v398_v32, %v350_v31 }
  0xa3   :  { %v448_v34 = vadd.f32 %v447_v26, %v399_v33 }
  0xa5   :  { %v487_v35 = vpack.c.bf16 %v448_v34, %v448_v34  ;;  %v454_v36 = vpop.f32.mrf.mxu2  ;;  %v379_v55 = vpop.f32.mrf.mxu3 }
  0xa6   :  { %v351_v37 = vpop.f32.mrf.mxu0 }
  0xa7   :  { %504 = vst.msk [vmem:[%s1073_s3] sm:$0xf] %vm503_vm1, %v487_v35  ;;  %v352_v38 = vadd.f32 %v988_v28, %v351_v37  ;;  %v400_v39 = vpop.f32.mrf.mxu1 }
  0xa9   :  { %v401_v40 = vadd.f32 %v400_v39, %v352_v38  ;;  %v380_v38 = vadd.f32 %v988_v28, %v379_v55 }
  0xab   :  { %v450_v41 = vadd.f32 %v449_v27, %v401_v40 }
  0xad   :  { %v488_v42 = vpack.c.bf16 %v450_v41, %v450_v41  ;;  %v457_v43 = vpop.f32.mrf.mxu2  ;;  %v381_v0 = vpop.f32.mrf.mxu3 }
  0xae   :  { %v354_v44 = vpop.f32.mrf.mxu0 }
  0xaf   :  { %505 = vst.msk [vmem:[%s1073_s3 + $0x4] sm:$0xf] %vm503_vm1, %v488_v42  ;;  %v355_v45 = vadd.f32 %v988_v28, %v354_v44  ;;  %v403_v46 = vpop.f32.mrf.mxu1 }
  0xb1   :  { %v404_v47 = vadd.f32 %v403_v46, %v355_v45 }
  0xb3   :  { %v453_v48 = vadd.f32 %v452_v29, %v404_v47 }
  0xb5   :  { %v489_v49 = vpack.c.bf16 %v453_v48, %v453_v48  ;;  %v459_v50 = vpop.f32.mrf.mxu2  ;;  %v384_v11 = vpop.f32.mrf.mxu3 }
  0xb6   :  { %v356_v51 = vpop.f32.mrf.mxu0 }
  0xb7   :  { %506 = vst.msk [vmem:[%s1073_s3 + $0x8] sm:$0xf] %vm503_vm1, %v489_v49  ;;  %v357_v52 = vadd.f32 %v988_v28, %v356_v51  ;;  %v405_v53 = vpop.f32.mrf.mxu1  ;;  %v382_v49 = vadd.f32 %v988_v28, %v381_v0 }
  0xb9   :  { %v406_v54 = vadd.f32 %v405_v53, %v357_v52 }
  0xbb   :  { %v455_v56 = vadd.f32 %v454_v36, %v406_v54 }
  0xbd   :  { %v490_v57 = vpack.c.bf16 %v455_v56, %v455_v56  ;;  %v462_v58 = vpop.f32.mrf.mxu2  ;;  %v386_v21 = vpop.f32.mrf.mxu3 }
  0xbe   :  { %v359_v59 = vpop.f32.mrf.mxu0 }
  0xbf   :  { %507 = vst.msk [vmem:[%s1073_s3 + $0xc] sm:$0xf] %vm503_vm1, %v490_v57  ;;  %v360_v60 = vadd.f32 %v988_v28, %v359_v59  ;;  %v408_v61 = vpop.f32.mrf.mxu1 }
  0xc1   :  { %v409_v62 = vadd.f32 %v408_v61, %v360_v60  ;;  %v385_v61 = vadd.f32 %v988_v28, %v384_v11 }
  0xc3   :  { %v458_v63 = vadd.f32 %v457_v43, %v409_v62 }
  0xc5   :  { %v491_v1 = vpack.c.bf16 %v458_v63, %v458_v63  ;;  %v464_v2 = vpop.f32.mrf.mxu2  ;;  %v428_v31 = vpop.f32.mrf.mxu3 }
  0xc6   :  { %v361_v3 = vpop.f32.mrf.mxu0  ;;  %v429_v41 = vadd.f32 %v428_v31, %v380_v38 }
  0xc7   :  { %508 = vst.msk [vmem:[%s1073_s3 + $0x10] sm:$0xf] %vm503_vm1, %v491_v1  ;;  %v362_v4 = vadd.f32 %v988_v28, %v361_v3  ;;  %v410_v5 = vpop.f32.mrf.mxu1 }
  0xc9   :  { %v411_v6 = vadd.f32 %v410_v5, %v362_v4  ;;  %v387_v5 = vadd.f32 %v988_v28, %v386_v21 }
  0xcb   :  { %v460_v7 = vadd.f32 %v459_v50, %v411_v6 }
  0xcd   :  { %v492_v8 = vpack.c.bf16 %v460_v7, %v460_v7  ;;  %v467_v9 = vpop.f32.mrf.mxu2  ;;  %v430_v42 = vpop.f32.mrf.mxu3 }
  0xce   :  { %v364_v10 = vpop.f32.mrf.mxu0  ;;  %v431_v53 = vadd.f32 %v430_v42, %v382_v49 }
  0xcf   :  { %509 = vst.msk [vmem:[%s1073_s3 + $0x14] sm:$0xf] %vm503_vm1, %v492_v8  ;;  %v365_v12 = vadd.f32 %v988_v28, %v364_v10  ;;  %v413_v13 = vpop.f32.mrf.mxu1 }
  0xd1   :  { %v414_v14 = vadd.f32 %v413_v13, %v365_v12 }
  0xd3   :  { %v463_v15 = vadd.f32 %v462_v58, %v414_v14 }
  0xd5   :  { %v493_v16 = vpack.c.bf16 %v463_v15, %v463_v15  ;;  %v469_v17 = vpop.f32.mrf.mxu2  ;;  %v433_v58 = vpop.f32.mrf.mxu3 }
  0xd6   :  { %v366_v18 = vpop.f32.mrf.mxu0  ;;  %v434_v1 = vadd.f32 %v433_v58, %v385_v61 }
  0xd7   :  { %510 = vst.msk [vmem:[%s1073_s3 + $0x18] sm:$0xf] %vm503_vm1, %v493_v16  ;;  %v367_v19 = vadd.f32 %v988_v28, %v366_v18  ;;  %v415_v20 = vpop.f32.mrf.mxu1 }
  0xd9   :  { %v416_v22 = vadd.f32 %v415_v20, %v367_v19 }
  0xdb   :  { %v465_v23 = vadd.f32 %v464_v2, %v416_v22 }
  0xdd   :  { %v494_v24 = vpack.c.bf16 %v465_v23, %v465_v23  ;;  %v472_v25 = vpop.f32.mrf.mxu2  ;;  %v435_v7 = vpop.f32.mrf.mxu3 }
  0xde   :  { %v369_v26 = vpop.f32.mrf.mxu0  ;;  %v436_v8 = vadd.f32 %v435_v7, %v387_v5 }
  0xdf   :  { %511 = vst.msk [vmem:[%s1073_s3 + $0x1c] sm:$0xf] %vm503_vm1, %v494_v24  ;;  %v370_v27 = vadd.f32 %v988_v28, %v369_v26  ;;  %v418_v29 = vpop.f32.mrf.mxu1 }
  0xe1   :  { %v419_v30 = vadd.f32 %v418_v29, %v370_v27 }
  0xe3   :  { %v468_v32 = vadd.f32 %v467_v9, %v419_v30 }
  0xe5   :  { %v495_v33 = vpack.c.bf16 %v468_v32, %v468_v32  ;;  %v474_v34 = vpop.f32.mrf.mxu2 }
  0xe6   :  { %v371_v35 = vpop.f32.mrf.mxu0 }
  0xe7   :  { %512 = vst.msk [vmem:[%s1073_s3 + $0x20] sm:$0xf] %vm503_vm1, %v495_v33  ;;  %v372_v36 = vadd.f32 %v988_v28, %v371_v35  ;;  %v420_v37 = vpop.f32.mrf.mxu1 }
  0xe9   :  { %v421_v39 = vadd.f32 %v420_v37, %v372_v36 }
  0xeb   :  { %v470_v40 = vadd.f32 %v469_v17, %v421_v39 }
  0xed   :  { %v496_v43 = vpack.c.bf16 %v470_v40, %v470_v40  ;;  %v477_v44 = vpop.f32.mrf.mxu2 }
  0xee   :  { %v478_v45 = vadd.f32 %v477_v44, %v429_v41  ;;  %v374_v46 = vpop.f32.mrf.mxu0 }
  0xef   :  { %513 = vst.msk [vmem:[%s1073_s3 + $0x24] sm:$0xf] %vm503_vm1, %v496_v43  ;;  %v375_v47 = vadd.f32 %v988_v28, %v374_v46  ;;  %v423_v48 = vpop.f32.mrf.mxu1 }
  0xf0   :  { %v499_v50 = vpack.c.bf16 %v478_v45, %v478_v45 }
  0xf1   :  { %v424_v51 = vadd.f32 %v423_v48, %v375_v47 }
  0xf2   :  { %516 = vst.msk [vmem:[%s1073_s3 + $0x30] sm:$0xf] %vm503_vm1, %v499_v50 }
  0xf3   :  { %v473_v52 = vadd.f32 %v472_v25, %v424_v51 }
  0xf5   :  { %v497_v54 = vpack.c.bf16 %v473_v52, %v473_v52  ;;  %v479_v55 = vpop.f32.mrf.mxu2 }
  0xf6   :  { %v480_v56 = vadd.f32 %v479_v55, %v431_v53  ;;  %v376_v57 = vpop.f32.mrf.mxu0 }
  0xf7   :  { %514 = vst.msk [vmem:[%s1073_s3 + $0x28] sm:$0xf] %vm503_vm1, %v497_v54  ;;  %v377_v59 = vadd.f32 %v988_v28, %v376_v57  ;;  %v425_v60 = vpop.f32.mrf.mxu1 }
  0xf8   :  { %v500_v62 = vpack.c.bf16 %v480_v56, %v480_v56 }
  0xf9   :  { %v426_v63 = vadd.f32 %v425_v60, %v377_v59 }
  0xfa   :  { %517 = vst.msk [vmem:[%s1073_s3 + $0x34] sm:$0xf] %vm503_vm1, %v500_v62 }
  0xfb   :  { %v475_v0 = vadd.f32 %v474_v34, %v426_v63 }
  0xfd   :  { %v498_v2 = vpack.c.bf16 %v475_v0, %v475_v0  ;;  %v482_v3 = vpop.f32.mrf.mxu2 }
  0xfe   :  { %v483_v4 = vadd.f32 %v482_v3, %v434_v1 }
  0xff   :  { %515 = vst.msk [vmem:[%s1073_s3 + $0x2c] sm:$0xf] %vm503_vm1, %v498_v2 }
 0x100   :  { %v501_v6 = vpack.c.bf16 %v483_v4, %v483_v4 }
 0x102   :  { %518 = vst.msk [vmem:[%s1073_s3 + $0x38] sm:$0xf] %vm503_vm1, %v501_v6 }
 0x105   :  { %v484_v9 = vpop.f32.mrf.mxu2 }
 0x106   :  { %v485_v10 = vadd.f32 %v484_v9, %v436_v8 }
 0x108   :  { %v502_v11 = vpack.c.bf16 %v485_v10, %v485_v10 }
 0x10a   :  { %519 = vst.msk [vmem:[%s1073_s3 + $0x3c] sm:$0xf] %vm503_vm1, %v502_v11 }

// kernel: forward.15
= control target key start
LH: loop header
LB: loop body
LE: loop exit
PB: predicated region body
PF: predicated region fallthrough
CT: control target
= control target key end

     0   :  { %vm97_vm0 = vcmask 261120   ;;  %vm271_vm1 = vcmask 519168   ;;  %s595_s1 = inlined_call_operand.vmem [shape: bf16[32,64], index: 1, kind: input, shape index: {}]   ;;  %s596_s0 = inlined_call_operand.vmem [shape: bf16[128,32], index: 0, kind: input, shape index: {}]   ;;  %s597_s2 = inlined_call_operand.vmem [shape: f32[1,64], index: 2, kind: input, shape index: {}]   ;;  %s598_s3 = inlined_call_operand.vmem [shape: f32[1,64], index: 3, kind: input, shape index: {}]   ;;  %s599_s4 = inlined_call_operand.vmem [shape: bf16[128,64], index: 4, kind: input, shape index: {}]   ;;  %s600_s5 = inlined_call_operand.vmem [shape: bf16[128,64], index: 5, kind: output, shape index: {}]  }
   0x1   :  { %v349_v0 = vld [vmem:[%s595_s1 + $0x8] sm:$0xff]  ;;  %v348_v1 = vld [vmem:[%s595_s1] sm:$0xff]  ;;  %v342_v3 = vld [vmem:[%s596_s0 + $0x10] sm:$0xff] }
   0x2   :  { %128 = vmatpush.bf16.msra.mxu0 %v349_v0  ;;  %389 = vmatpush.bf16.msra.mxu1 %v349_v0  ;;  %v340_v2 = vld [vmem:[%s596_s0] sm:$0xff]  ;;  %v346_v5 = vld [vmem:[%s596_s0 + $0x30] sm:$0xff]  ;;  %v341_v6 = vld [vmem:[%s596_s0 + $0x8] sm:$0xff] }
   0x3   :  { %390 = vmatpush.bf16.msra.mxu2 %v349_v0  ;;  %391 = vmatpush.bf16.msra.mxu3 %v349_v0  ;;  %v344_v4 = vld [vmem:[%s596_s0 + $0x20] sm:$0xff]  ;;  %v343_v7 = vld [vmem:[%s596_s0 + $0x18] sm:$0xff]  ;;  %v345_v8 = vld [vmem:[%s596_s0 + $0x28] sm:$0xff] }
   0x4   :  { %v347_v9 = vld [vmem:[%s596_s0 + $0x38] sm:$0xff]  ;;  %v351_v10 = vld [vmem:[%s599_s4] sm:$0xff]   ;;  %v383_v11 = vld [vmem:[%s599_s4 + $0x10] sm:$0xff]  }
   0x5   :  { %v352_v12 = vunpack.c.l.bf16 %v351_v10  ;;  %v474_v13 = vld [vmem:[%s598_s3] ss:$0 sm:$0xff]  ;;  %v360_v14 = vunpack.c.l.bf16 %v383_v11  ;;  %v387_v19 = vld [vmem:[%s599_s4 + $0x30] sm:$0xff]   ;;  %v353_v28 = vunpack.c.h.bf16 %v351_v10  ;;  %v361_v29 = vunpack.c.h.bf16 %v383_v11  ;;  %v382_v44 = vld [vmem:[%s599_s4 + $0x8] sm:$0xff]  }
   0x6   :  { %129 = vmatpush.bf16.msra.mxu0 %v348_v1  ;;  %392 = vmatpush.bf16.msra.mxu1 %v348_v1  ;;  %v479_v15 = vld [vmem:[%s597_s2] ss:$0 sm:$0xff]  ;;  %v376_v25 = vunpack.c.l.bf16 %v387_v19  ;;  %v384_v45 = vld [vmem:[%s599_s4 + $0x18] sm:$0xff]   ;;  %v377_v51 = vunpack.c.h.bf16 %v387_v19  ;;  %v356_v54 = vunpack.c.l.bf16 %v382_v44 }
   0x7   :  { %393 = vmatpush.bf16.msra.mxu2 %v348_v1  ;;  %394 = vmatpush.bf16.msra.mxu3 %v348_v1  ;;  %v207_v16 = vmul.f32 %v474_v13, %v352_v12  ;;  %v211_v17 = vmul.f32 %v474_v13, %v360_v14  ;;  %v385_v18 = vld [vmem:[%s599_s4 + $0x20] sm:$0xff]   ;;  %v208_v38 = vmul.f32 %v474_v13, %v353_v28  ;;  %v364_v55 = vunpack.c.l.bf16 %v384_v45 }
   0x8   :  { %v368_v24 = vunpack.c.l.bf16 %v385_v18  ;;  %v219_v33 = vmul.f32 %v474_v13, %v376_v25  ;;  %v212_v39 = vmul.f32 %v474_v13, %v361_v29  ;;  %v369_v50 = vunpack.c.h.bf16 %v385_v18 }
   0x9   :  { %332 = vmatmul.msk.bf16.vlgmr.msra.gmra.mxu0 %vm97_vm0, %v340_v2  ;;  %334 = vmatmul.msk.bf16.vlgmr.msra.gmra.mxu1 %vm97_vm0, %v342_v3  ;;  %v220_v63 = vmul.f32 %v474_v13, %v377_v51 }
   0xa   :  { %336 = vmatmul.msk.bf16.vlgmr.msra.gmra.mxu2 %vm97_vm0, %v344_v4  ;;  %338 = vmatmul.msk.bf16.vlgmr.msra.gmra.mxu3 %vm97_vm0, %v346_v5  ;;  %v215_v32 = vmul.f32 %v474_v13, %v368_v24  ;;  %v216_v62 = vmul.f32 %v474_v13, %v369_v50  ;;  %v209_v4 = vmul.f32 %v474_v13, %v356_v54 }
   0xb   :  { %v213_v5 = vmul.f32 %v474_v13, %v364_v55 }
  0x19   :  { %333 = vmatmul.msk.bf16.gmra.mxu0 %vm97_vm0, %v341_v6  ;;  %335 = vmatmul.msk.bf16.gmra.mxu1 %vm97_vm0, %v343_v7  ;;  %v386_v6 = vld [vmem:[%s599_s4 + $0x28] sm:$0xff]   ;;  %v388_v7 = vld [vmem:[%s599_s4 + $0x38] sm:$0xff]  }
  0x1a   :  { %337 = vmatmul.msk.bf16.gmra.mxu2 %vm97_vm0, %v345_v8  ;;  %339 = vmatmul.msk.bf16.gmra.mxu3 %vm97_vm0, %v347_v9  ;;  %v372_v18 = vunpack.c.l.bf16 %v386_v6  ;;  %v380_v19 = vunpack.c.l.bf16 %v388_v7 }
  0x86   :  { %v131_v20 = vpop.f32.mrf.mxu0  ;;  %v141_v21 = vpop.f32.mrf.mxu1 }
  0x87   :  { %v132_v22 = vadd.f32 %v479_v15, %v131_v20  ;;  %v142_v23 = vadd.f32 %v479_v15, %v141_v21 }
  0x89   :  { %v223_v26 = vadd.f32 %v207_v16, %v132_v22  ;;  %v227_v27 = vadd.f32 %v211_v17, %v142_v23  ;;  %v357_v22 = vunpack.c.h.bf16 %v382_v44  ;;  %v365_v23 = vunpack.c.h.bf16 %v384_v45 }
  0x8b   :  { %v239_v30 = vmax.f32 %v223_v26, 0.0  ;;  %v243_v31 = vmax.f32 %v227_v27, 0.0 }
  0x8d   :  { %v255_v34 = vpack.c.bf16 %v239_v30, %v239_v30  ;;  %v259_v35 = vpack.c.bf16 %v243_v31, %v243_v31  ;;  %v151_v36 = vpop.f32.mrf.mxu2  ;;  %v161_v37 = vpop.f32.mrf.mxu3  ;;  %v217_v30 = vmul.f32 %v474_v13, %v372_v18  ;;  %v221_v31 = vmul.f32 %v474_v13, %v380_v19 }
  0x8e   :  { %v152_v40 = vadd.f32 %v479_v15, %v151_v36  ;;  %v162_v41 = vadd.f32 %v479_v15, %v161_v37  ;;  %v133_v42 = vpop.f32.mrf.mxu0  ;;  %v143_v43 = vpop.f32.mrf.mxu1  ;;  %v210_v36 = vmul.f32 %v474_v13, %v357_v22  ;;  %v214_v37 = vmul.f32 %v474_v13, %v365_v23 }
  0x8f   :  { %272 = vst.msk [vmem:[%s600_s5] sm:$0xf] %vm271_vm1, %v255_v34  ;;  %v134_v46 = vadd.f32 %v479_v15, %v133_v42  ;;  %v144_v47 = vadd.f32 %v479_v15, %v143_v43 }
  0x90   :  { %276 = vst.msk [vmem:[%s600_s5 + $0x10] sm:$0xf] %vm271_vm1, %v259_v35  ;;  %v231_v48 = vadd.f32 %v215_v32, %v152_v40  ;;  %v235_v49 = vadd.f32 %v219_v33, %v162_v41 }
  0x91   :  { %v224_v52 = vadd.f32 %v208_v38, %v134_v46  ;;  %v228_v53 = vadd.f32 %v212_v39, %v144_v47  ;;  %v373_v46 = vunpack.c.h.bf16 %v386_v6  ;;  %v381_v47 = vunpack.c.h.bf16 %v388_v7 }
  0x92   :  { %v247_v56 = vmax.f32 %v231_v48, 0.0  ;;  %v251_v57 = vmax.f32 %v235_v49, 0.0 }
  0x93   :  { %v240_v58 = vmax.f32 %v224_v52, 0.0  ;;  %v244_v59 = vmax.f32 %v228_v53, 0.0 }
  0x94   :  { %v263_v60 = vpack.c.bf16 %v247_v56, %v247_v56  ;;  %v267_v61 = vpack.c.bf16 %v251_v57, %v251_v57  ;;  %v218_v56 = vmul.f32 %v474_v13, %v373_v46  ;;  %v222_v57 = vmul.f32 %v474_v13, %v381_v47 }
  0x95   :  { %v256_v0 = vpack.c.bf16 %v240_v58, %v240_v58  ;;  %v260_v1 = vpack.c.bf16 %v244_v59, %v244_v59  ;;  %v153_v2 = vpop.f32.mrf.mxu2  ;;  %v163_v3 = vpop.f32.mrf.mxu3 }
  0x96   :  { %280 = vst.msk [vmem:[%s600_s5 + $0x20] sm:$0xf] %vm271_vm1, %v263_v60  ;;  %v154_v8 = vadd.f32 %v479_v15, %v153_v2  ;;  %v164_v9 = vadd.f32 %v479_v15, %v163_v3  ;;  %v136_v10 = vpop.f32.mrf.mxu0  ;;  %v146_v11 = vpop.f32.mrf.mxu1 }
  0x97   :  { %284 = vst.msk [vmem:[%s600_s5 + $0x30] sm:$0xf] %vm271_vm1, %v267_v61  ;;  %v137_v12 = vadd.f32 %v479_v15, %v136_v10  ;;  %v147_v14 = vadd.f32 %v479_v15, %v146_v11 }
  0x98   :  { %273 = vst.msk [vmem:[%s600_s5 + $0x4] sm:$0xf] %vm271_vm1, %v256_v0  ;;  %v232_v16 = vadd.f32 %v216_v62, %v154_v8  ;;  %v236_v17 = vadd.f32 %v220_v63, %v164_v9 }
  0x99   :  { %277 = vst.msk [vmem:[%s600_s5 + $0x14] sm:$0xf] %vm271_vm1, %v260_v1  ;;  %v225_v20 = vadd.f32 %v209_v4, %v137_v12  ;;  %v229_v21 = vadd.f32 %v213_v5, %v147_v14 }
  0x9a   :  { %v248_v24 = vmax.f32 %v232_v16, 0.0  ;;  %v252_v25 = vmax.f32 %v236_v17, 0.0 }
  0x9b   :  { %v241_v26 = vmax.f32 %v225_v20, 0.0  ;;  %v245_v27 = vmax.f32 %v229_v21, 0.0 }
  0x9c   :  { %v264_v28 = vpack.c.bf16 %v248_v24, %v248_v24  ;;  %v268_v29 = vpack.c.bf16 %v252_v25, %v252_v25 }
  0x9d   :  { %v257_v32 = vpack.c.bf16 %v241_v26, %v241_v26  ;;  %v261_v33 = vpack.c.bf16 %v245_v27, %v245_v27  ;;  %v156_v34 = vpop.f32.mrf.mxu2  ;;  %v166_v35 = vpop.f32.mrf.mxu3 }
  0x9e   :  { %281 = vst.msk [vmem:[%s600_s5 + $0x24] sm:$0xf] %vm271_vm1, %v264_v28  ;;  %v157_v38 = vadd.f32 %v479_v15, %v156_v34  ;;  %v167_v39 = vadd.f32 %v479_v15, %v166_v35  ;;  %v138_v40 = vpop.f32.mrf.mxu0  ;;  %v148_v41 = vpop.f32.mrf.mxu1 }
  0x9f   :  { %285 = vst.msk [vmem:[%s600_s5 + $0x34] sm:$0xf] %vm271_vm1, %v268_v29  ;;  %v139_v42 = vadd.f32 %v479_v15, %v138_v40  ;;  %v149_v43 = vadd.f32 %v479_v15, %v148_v41 }
  0xa0   :  { %274 = vst.msk [vmem:[%s600_s5 + $0x8] sm:$0xf] %vm271_vm1, %v257_v32  ;;  %v233_v44 = vadd.f32 %v217_v30, %v157_v38  ;;  %v237_v45 = vadd.f32 %v221_v31, %v167_v39 }
  0xa1   :  { %278 = vst.msk [vmem:[%s600_s5 + $0x18] sm:$0xf] %vm271_vm1, %v261_v33  ;;  %v226_v48 = vadd.f32 %v210_v36, %v139_v42  ;;  %v230_v49 = vadd.f32 %v214_v37, %v149_v43 }
  0xa2   :  { %v249_v50 = vmax.f32 %v233_v44, 0.0  ;;  %v253_v51 = vmax.f32 %v237_v45, 0.0 }
  0xa3   :  { %v242_v52 = vmax.f32 %v226_v48, 0.0  ;;  %v246_v53 = vmax.f32 %v230_v49, 0.0 }
  0xa4   :  { %v265_v54 = vpack.c.bf16 %v249_v50, %v249_v50  ;;  %v269_v55 = vpack.c.bf16 %v253_v51, %v253_v51 }
  0xa5   :  { %v258_v58 = vpack.c.bf16 %v242_v52, %v242_v52  ;;  %v262_v59 = vpack.c.bf16 %v246_v53, %v246_v53  ;;  %v158_v60 = vpop.f32.mrf.mxu2  ;;  %v168_v61 = vpop.f32.mrf.mxu3 }
  0xa6   :  { %282 = vst.msk [vmem:[%s600_s5 + $0x28] sm:$0xf] %vm271_vm1, %v265_v54  ;;  %v159_v62 = vadd.f32 %v479_v15, %v158_v60  ;;  %v169_v63 = vadd.f32 %v479_v15, %v168_v61 }
  0xa7   :  { %286 = vst.msk [vmem:[%s600_s5 + $0x38] sm:$0xf] %vm271_vm1, %v269_v55 }
  0xa8   :  { %275 = vst.msk [vmem:[%s600_s5 + $0xc] sm:$0xf] %vm271_vm1, %v258_v58  ;;  %v234_v13 = vadd.f32 %v218_v56, %v159_v62  ;;  %v238_v0 = vadd.f32 %v222_v57, %v169_v63 }
  0xa9   :  { %279 = vst.msk [vmem:[%s600_s5 + $0x1c] sm:$0xf] %vm271_vm1, %v262_v59 }
  0xaa   :  { %v250_v1 = vmax.f32 %v234_v13, 0.0  ;;  %v254_v2 = vmax.f32 %v238_v0, 0.0 }
  0xac   :  { %v266_v15 = vpack.c.bf16 %v250_v1, %v250_v1  ;;  %v270_v3 = vpack.c.bf16 %v254_v2, %v254_v2 }
  0xae   :  { %283 = vst.msk [vmem:[%s600_s5 + $0x2c] sm:$0xf] %vm271_vm1, %v266_v15 }
  0xaf   :  { %287 = vst.msk [vmem:[%s600_s5 + $0x3c] sm:$0xf] %vm271_vm1, %v270_v3 }

</bundles_post_ra>
